<compile_context>
chip_gen: v6e
topology: v6e:2x2x1
jax: 0.10.0
libtpu: 0.0.40
codegen_flags: <defaults>
</compile_context>

<pallas_src>
import numpy as np
import jax
import jax.numpy as jnp
from jax.experimental import pallas as pl
from jax.experimental.pallas import tpu as pltpu

# ----------------------------- configuration -----------------------------
N_QUBITS = 8
N_CLASS = 3
N_QLAYERS = 1
TT_IN_MODES = (7, 16, 7)
TT_OUT_MODES = (2, 2, 2)
TT_RANK = (1, 2, 2, 1)
INPUT_DIMS = int(np.prod(TT_IN_MODES))   # 784
DIM = 1 << N_QUBITS                      # 256 statevector amplitudes
K_PAD = 896                              # 784 -> 7*128 (includes the folded-bias ones column)
LANE_PAD = 128                           # lane-dense output slab width
NEG_PAD = -1e30                          # pad-logit value (exp underflows to 0)
BATCH = 256
BATCH_TILE = 128


# ------------------------------ Pallas kernel ----------------------------
def ttn_vqc_kernel(x_ref, wpre_ref, utcat_ref, wz_ref, bpost_ref, out_ref):
    # ---- pre_net: TT-linear (dense [896,8], bias folded into row 784) ----
    pre = jnp.dot(x_ref[...], wpre_ref[...],
                  preferred_element_type=jnp.float32)                  # [BT, 8]

    # ---- half-angle of RY encoding: sigmoid(pre) * pi/4  (== (sigmoid*pi/2)/2) ----
    half = jax.nn.sigmoid(pre) * (np.pi / 4.0)                         # [BT, 8]
    c = jnp.cos(half)                                                  # [BT, 8]
    s = jnp.sin(half)                                                  # [BT, 8]

    # ---- RY(q_in) product-state encoding (wire 0 = MSB of state index) ----
    bt = x_ref.shape[0]
    idx = jax.lax.broadcasted_iota(jnp.int32, (1, DIM), 1)             # [1, 256]
    bit0 = ((idx >> (N_QUBITS - 1)) & 1) == 1
    psi = jnp.where(bit0, s[:, 0:1], c[:, 0:1])                        # [BT, 256]
    for w in range(1, N_QUBITS):
        bit = ((idx >> (N_QUBITS - 1 - w)) & 1) == 1                   # [1, 256]
        psi = psi * jnp.where(bit, s[:, w:w + 1], c[:, w:w + 1])       # [BT, 256]

    # ---- fixed variational unitary: one bf16 matmul against [re | im] concat ----
    amp = jnp.dot(psi.astype(jnp.bfloat16), utcat_ref[...],
                  preferred_element_type=jnp.float32)                  # [BT, 512]
    amp_re = amp[:, :DIM]
    amp_im = amp[:, DIM:]
    probs = amp_re * amp_re + amp_im * amp_im                          # [BT, 256]

    # ---- fused PauliZ measurement + post_net: probs @ (zsigns @ W_post) + b ----
    logits = jnp.dot(probs, wz_ref[...],
                     preferred_element_type=jnp.float32) + bpost_ref[...]  # [BT, 128]

    # ---- log_softmax over the 3 valid classes (padded cols carry -1e30) ----
    m = jnp.max(logits, axis=-1, keepdims=True)
    z = logits - m
    lse = jnp.log(jnp.sum(jnp.exp(z), axis=-1, keepdims=True))
    out_ref[...] = z - lse


def ttn_vqc_forward(x_pad, w_pre_pad, ut_cat, wz_pad, b_post_pad, *, batch_tile=BATCH_TILE):
    B = x_pad.shape[0]
    assert B % batch_tile == 0
    grid = (B // batch_tile,)
    out_padded = pl.pallas_call(
        ttn_vqc_kernel,
        out_shape=jax.ShapeDtypeStruct((B, LANE_PAD), jnp.float32),
        grid=grid,
        in_specs=[
            pl.BlockSpec((batch_tile, K_PAD), lambda i: (i, 0)),   # x tile
            pl.BlockSpec((K_PAD, N_QUBITS), lambda i: (0, 0)),     # W_pre (resident)
            pl.BlockSpec((DIM, 2 * DIM), lambda i: (0, 0)),        # [Ure|Uim] bf16 (resident)
            pl.BlockSpec((DIM, LANE_PAD), lambda i: (0, 0)),       # zsigns@W_post (resident)
            pl.BlockSpec((1, LANE_PAD), lambda i: (0, 0)),         # padded bias (resident)
        ],
        out_specs=pl.BlockSpec((batch_tile, LANE_PAD), lambda i: (i, 0)),
        compiler_params=pltpu.CompilerParams(
            dimension_semantics=("parallel",)),
    )(x_pad, w_pre_pad, ut_cat, wz_pad, b_post_pad)
    return out_padded[:, :N_CLASS]


def pad_input(x):
    """[B, 784] -> [B, 896]: append a ones column (folded bias) then zero padding."""
    B = x.shape[0]
    ones = jnp.ones((B, 1), dtype=jnp.float32)
    zeros = jnp.zeros((B, K_PAD - INPUT_DIMS - 1), dtype=jnp.float32)
    return jnp.concatenate([x, ones, zeros], axis=1)


# -------------------- deterministic parameter construction ----------------
def _rx(t):
    c, s = np.cos(t / 2), np.sin(t / 2)
    return np.array([[c, -1j * s], [-1j * s, c]], dtype=np.complex128)


def _ry(t):
    c, s = np.cos(t / 2), np.sin(t / 2)
    return np.array([[c, -s], [s, c]], dtype=np.complex128)


def _rz(t):
    return np.array([[np.exp(-1j * t / 2), 0.0], [0.0, np.exp(1j * t / 2)]],
                    dtype=np.complex128)


def _kron_all(gates):
    U = np.eye(1, dtype=np.complex128)
    for g in gates:            # wire 0 is leftmost factor -> MSB of state index
        U = np.kron(U, g)
    return U


def _cnot(n, ctrl, tgt):
    dim = 1 << n
    M = np.zeros((dim, dim), dtype=np.complex128)
    for st in range(dim):
        bc = (st >> (n - 1 - ctrl)) & 1
        st2 = st ^ (bc << (n - 1 - tgt))
        M[st2, st] = 1.0
    return M


def build_params(key):
    ks = jax.random.split(key, 6)

    # ---- TTLinear cores G_k: [r_k, inp_mode_k, out_mode_k, r_{k+1}] ----
    # TODO(synk): t3nsor-style TTLinear uses the interleaved (i_k, j_k) Kronecker index
    # convention; this plain (i1,i2,i3)x(j1,j2,j3) materialization may permute W_pre's rows/cols.
    G1 = 0.5 * jax.random.normal(ks[0], (TT_RANK[0], 7, 2, TT_RANK[1]), jnp.float32)
    G2 = 0.5 * jax.random.normal(ks[1], (TT_RANK[1], 16, 2, TT_RANK[2]), jnp.float32)
    G3 = 0.5 * jax.random.normal(ks[2], (TT_RANK[2], 7, 2, TT_RANK[3]), jnp.float32)
    b_pre = 0.1 * jax.random.normal(ks[3], (1, N_QUBITS), jnp.float32)

    W6 = jnp.einsum('aixr,rjys,skzb->ijkxyz', G1, G2, G3)      # [7,16,7,2,2,2]
    W_pre = W6.reshape(INPUT_DIMS, N_QUBITS).astype(jnp.float32)

    # Fold bias into row 784 and zero-pad K to 896 (aligned MXU contraction dim).
    W_pre_pad = jnp.concatenate(
        [W_pre, b_pre,
         jnp.zeros((K_PAD - INPUT_DIMS - 1, N_QUBITS), jnp.float32)], axis=0)   # [896, 8]

    # ---- fixed VQC circuit unitary (deterministic angles) ----
    rx_ang = 0.10 * (np.arange(N_QLAYERS * N_QUBITS) + 1.0).reshape(N_QLAYERS, N_QUBITS)
    ry_ang = 0.20 * (np.arange(N_QLAYERS * N_QUBITS) + 1.0).reshape(N_QLAYERS, N_QUBITS)
    rz_ang = 0.30 * (np.arange(N_QLAYERS * N_QUBITS) + 1.0).reshape(N_QLAYERS, N_QUBITS)

    U = np.eye(DIM, dtype=np.complex128)
    for layer in range(N_QLAYERS):
        U = _kron_all([_rx(a) for a in rx_ang[layer]]) @ U
        U = _kron_all([_ry(a) for a in ry_ang[layer]]) @ U
        U = _kron_all([_rz(a) for a in rz_ang[layer]]) @ U
        for w in range(N_QUBITS):
            U = _cnot(N_QUBITS, w, (w + 1) % N_QUBITS) @ U

    # Concatenated [U_re^T | U_im^T] in bf16 (f32 accumulation in-kernel).
    ut_cat = jnp.asarray(np.concatenate([U.real.T, U.imag.T], axis=1),
                         dtype=jnp.bfloat16)                   # [256, 512]

    # ---- fold PauliZ expectation signs into the classifier weights ----
    states = np.arange(DIM)
    bits_np = np.zeros((N_QUBITS, DIM), dtype=np.float32)
    for w in range(N_QUBITS):
        bits_np[w] = (states >> (N_QUBITS - 1 - w)) & 1
    zsigns = jnp.asarray((1.0 - 2.0 * bits_np).T)              # [256, 8]

    W_post = 0.5 * jax.random.normal(ks[4], (N_QUBITS, N_CLASS), jnp.float32)  # [8, 3]
    b_post = 0.1 * jax.random.normal(ks[5], (1, N_CLASS), jnp.float32)

    Wz = zsigns @ W_post                                       # [256, 3]
    Wz_pad = jnp.concatenate(
        [Wz, jnp.zeros((DIM, LANE_PAD - N_CLASS), jnp.float32)], axis=1)       # [256, 128]
    b_post_pad = jnp.concatenate(
        [b_post, jnp.full((1, LANE_PAD - N_CLASS), NEG_PAD, jnp.float32)], axis=1)  # [1, 128]

    return (W_pre_pad, ut_cat, Wz_pad, b_post_pad)


# --------------------------------- main ----------------------------------
if __name__ == "__main__":
    key = jax.random.PRNGKey(0)
    kx, kp = jax.random.split(key)

    x = jax.random.normal(kx, (BATCH, INPUT_DIMS), dtype=jnp.float32)  # [256, 784]
    params = build_params(kp)
    x_pad = pad_input(x)

    out = ttn_vqc_forward(x_pad, *params, batch_tile=BATCH_TILE)
    out = jax.block_until_ready(out)

    assert out.shape == (BATCH, N_CLASS)
    # log_softmax rows must exponentiate to probability vectors
    row_sums = jnp.sum(jnp.exp(out), axis=1)
    assert bool(jnp.all(jnp.abs(row_sums - 1.0) < 1e-3)), row_sums
    print("KERNEL_OK")
</pallas_src>

<mosaic_0001>
module attributes {stable_mosaic.version = 11 : i64} {
  func.func @ttn_vqc_kernel(%arg0: i32, %arg1: memref<128x896xf32, #tpu.memory_space<vmem>>, %arg2: memref<896x8xf32, #tpu.memory_space<vmem>>, %arg3: memref<256x512xbf16, #tpu.memory_space<vmem>>, %arg4: memref<256x128xf32, #tpu.memory_space<vmem>>, %arg5: memref<1x128xf32, #tpu.memory_space<vmem>>, %arg6: memref<128x128xf32, #tpu.memory_space<vmem>>) attributes {dimension_semantics = [#tpu.dimension_semantics<parallel>], iteration_bounds = array<i64: 2>, scalar_prefetch = 0 : i64, scratch_operands = 0 : i64, tpu.core_type = #tpu.core_type<tc>, window_params = [{transform_indices = @transform_0, window_bounds = array<i64: 128, 896>}, {pipeline_mode = #tpu.pipeline_mode<synchronous>, transform_indices = @transform_1, window_bounds = array<i64: 896, 8>}, {pipeline_mode = #tpu.pipeline_mode<synchronous>, transform_indices = @transform_2, window_bounds = array<i64: 256, 512>}, {pipeline_mode = #tpu.pipeline_mode<synchronous>, transform_indices = @transform_3, window_bounds = array<i64: 256, 128>}, {pipeline_mode = #tpu.pipeline_mode<synchronous>, transform_indices = @transform_4, window_bounds = array<i64: 1, 128>}, {transform_indices = @transform_5, window_bounds = array<i64: 128, 128>}]} {
    %c0 = arith.constant 0 : index
    %c0_0 = arith.constant 0 : index
    %0 = vector.load %arg1[%c0, %c0_0] : memref<128x896xf32, #tpu.memory_space<vmem>>, vector<128x896xf32>
    %c0_1 = arith.constant 0 : index
    %c0_2 = arith.constant 0 : index
    %1 = vector.load %arg2[%c0_1, %c0_2] : memref<896x8xf32, #tpu.memory_space<vmem>>, vector<896x8xf32>
    %cst = arith.constant dense<0.000000e+00> : vector<128x8xf32>
    %2 = tpu.matmul %0, %1, %cst {dimension_numbers = #tpu.dot_dimension_numbers<[1], [0], [0], [1], [0, 0, 1, 1], [], []>} : vector<128x896xf32>, vector<896x8xf32>, vector<128x8xf32> -> vector<128x8xf32>
    %3 = arith.negf %2 : vector<128x8xf32>
    %4 = math.exp %3 : vector<128x8xf32>
    %cst_3 = arith.constant 1.000000e+00 : f32
    %5 = vector.broadcast %cst_3 : f32 to vector<128x8xf32>
    %6 = arith.addf %5, %4 : vector<128x8xf32>
    %7 = arith.divf %5, %6 : vector<128x8xf32>
    %cst_4 = arith.constant 0.785398185 : f32
    %8 = vector.broadcast %cst_4 : f32 to vector<128x8xf32>
    %9 = arith.mulf %7, %8 : vector<128x8xf32>
    %10 = math.cos %9 : vector<128x8xf32>
    %11 = math.sin %9 : vector<128x8xf32>
    %12 = tpu.iota {dimensions = array<i32: 1>} : vector<1x256xi32>
    %c7_i32 = arith.constant 7 : i32
    %13 = vector.broadcast %c7_i32 : i32 to vector<1x256xi32>
    %14 = arith.shrsi %12, %13 : vector<1x256xi32>
    %c1_i32 = arith.constant 1 : i32
    %15 = vector.broadcast %c1_i32 : i32 to vector<1x256xi32>
    %16 = arith.andi %14, %15 : vector<1x256xi32>
    %c1_i32_5 = arith.constant 1 : i32
    %17 = vector.broadcast %c1_i32_5 : i32 to vector<1x256xi32>
    %18 = arith.cmpi eq, %16, %17 : vector<1x256xi32>
    %19 = vector.extract_strided_slice %11 {offsets = [0, 0], sizes = [128, 1], strides = [1, 1]} : vector<128x8xf32> to vector<128x1xf32>
    %20 = vector.extract_strided_slice %10 {offsets = [0, 0], sizes = [128, 1], strides = [1, 1]} : vector<128x8xf32> to vector<128x1xf32>
    %21 = vector.shape_cast %18 : vector<1x256xi1> to vector<1x256xi1>
    %22 = vector.broadcast %21 : vector<1x256xi1> to vector<128x256xi1>
    %23 = vector.shape_cast %19 : vector<128x1xf32> to vector<128x1xf32>
    %24 = vector.broadcast %23 : vector<128x1xf32> to vector<128x256xf32>
    %25 = vector.shape_cast %20 : vector<128x1xf32> to vector<128x1xf32>
    %26 = vector.broadcast %25 : vector<128x1xf32> to vector<128x256xf32>
    %27 = arith.select %22, %24, %26 : vector<128x256xi1>, vector<128x256xf32>
    %c6_i32 = arith.constant 6 : i32
    %28 = vector.broadcast %c6_i32 : i32 to vector<1x256xi32>
    %29 = arith.shrsi %12, %28 : vector<1x256xi32>
    %c1_i32_6 = arith.constant 1 : i32
    %30 = vector.broadcast %c1_i32_6 : i32 to vector<1x256xi32>
    %31 = arith.andi %29, %30 : vector<1x256xi32>
    %c1_i32_7 = arith.constant 1 : i32
    %32 = vector.broadcast %c1_i32_7 : i32 to vector<1x256xi32>
    %33 = arith.cmpi eq, %31, %32 : vector<1x256xi32>
    %34 = vector.extract_strided_slice %11 {offsets = [0, 1], sizes = [128, 1], strides = [1, 1]} : vector<128x8xf32> to vector<128x1xf32>
    %35 = vector.extract_strided_slice %10 {offsets = [0, 1], sizes = [128, 1], strides = [1, 1]} : vector<128x8xf32> to vector<128x1xf32>
    %36 = vector.shape_cast %33 : vector<1x256xi1> to vector<1x256xi1>
    %37 = vector.broadcast %36 : vector<1x256xi1> to vector<128x256xi1>
    %38 = vector.shape_cast %34 : vector<128x1xf32> to vector<128x1xf32>
    %39 = vector.broadcast %38 : vector<128x1xf32> to vector<128x256xf32>
    %40 = vector.shape_cast %35 : vector<128x1xf32> to vector<128x1xf32>
    %41 = vector.broadcast %40 : vector<128x1xf32> to vector<128x256xf32>
    %42 = arith.select %37, %39, %41 : vector<128x256xi1>, vector<128x256xf32>
    %43 = arith.mulf %27, %42 : vector<128x256xf32>
    %c5_i32 = arith.constant 5 : i32
    %44 = vector.broadcast %c5_i32 : i32 to vector<1x256xi32>
    %45 = arith.shrsi %12, %44 : vector<1x256xi32>
    %c1_i32_8 = arith.constant 1 : i32
    %46 = vector.broadcast %c1_i32_8 : i32 to vector<1x256xi32>
    %47 = arith.andi %45, %46 : vector<1x256xi32>
    %c1_i32_9 = arith.constant 1 : i32
    %48 = vector.broadcast %c1_i32_9 : i32 to vector<1x256xi32>
    %49 = arith.cmpi eq, %47, %48 : vector<1x256xi32>
    %50 = vector.extract_strided_slice %11 {offsets = [0, 2], sizes = [128, 1], strides = [1, 1]} : vector<128x8xf32> to vector<128x1xf32>
    %51 = vector.extract_strided_slice %10 {offsets = [0, 2], sizes = [128, 1], strides = [1, 1]} : vector<128x8xf32> to vector<128x1xf32>
    %52 = vector.shape_cast %49 : vector<1x256xi1> to vector<1x256xi1>
    %53 = vector.broadcast %52 : vector<1x256xi1> to vector<128x256xi1>
    %54 = vector.shape_cast %50 : vector<128x1xf32> to vector<128x1xf32>
    %55 = vector.broadcast %54 : vector<128x1xf32> to vector<128x256xf32>
    %56 = vector.shape_cast %51 : vector<128x1xf32> to vector<128x1xf32>
    %57 = vector.broadcast %56 : vector<128x1xf32> to vector<128x256xf32>
    %58 = arith.select %53, %55, %57 : vector<128x256xi1>, vector<128x256xf32>
    %59 = arith.mulf %43, %58 : vector<128x256xf32>
    %c4_i32 = arith.constant 4 : i32
    %60 = vector.broadcast %c4_i32 : i32 to vector<1x256xi32>
    %61 = arith.shrsi %12, %60 : vector<1x256xi32>
    %c1_i32_10 = arith.constant 1 : i32
    %62 = vector.broadcast %c1_i32_10 : i32 to vector<1x256xi32>
    %63 = arith.andi %61, %62 : vector<1x256xi32>
    %c1_i32_11 = arith.constant 1 : i32
    %64 = vector.broadcast %c1_i32_11 : i32 to vector<1x256xi32>
    %65 = arith.cmpi eq, %63, %64 : vector<1x256xi32>
    %66 = vector.extract_strided_slice %11 {offsets = [0, 3], sizes = [128, 1], strides = [1, 1]} : vector<128x8xf32> to vector<128x1xf32>
    %67 = vector.extract_strided_slice %10 {offsets = [0, 3], sizes = [128, 1], strides = [1, 1]} : vector<128x8xf32> to vector<128x1xf32>
    %68 = vector.shape_cast %65 : vector<1x256xi1> to vector<1x256xi1>
    %69 = vector.broadcast %68 : vector<1x256xi1> to vector<128x256xi1>
    %70 = vector.shape_cast %66 : vector<128x1xf32> to vector<128x1xf32>
    %71 = vector.broadcast %70 : vector<128x1xf32> to vector<128x256xf32>
    %72 = vector.shape_cast %67 : vector<128x1xf32> to vector<128x1xf32>
    %73 = vector.broadcast %72 : vector<128x1xf32> to vector<128x256xf32>
    %74 = arith.select %69, %71, %73 : vector<128x256xi1>, vector<128x256xf32>
    %75 = arith.mulf %59, %74 : vector<128x256xf32>
    %c3_i32 = arith.constant 3 : i32
    %76 = vector.broadcast %c3_i32 : i32 to vector<1x256xi32>
    %77 = arith.shrsi %12, %76 : vector<1x256xi32>
    %c1_i32_12 = arith.constant 1 : i32
    %78 = vector.broadcast %c1_i32_12 : i32 to vector<1x256xi32>
    %79 = arith.andi %77, %78 : vector<1x256xi32>
    %c1_i32_13 = arith.constant 1 : i32
    %80 = vector.broadcast %c1_i32_13 : i32 to vector<1x256xi32>
    %81 = arith.cmpi eq, %79, %80 : vector<1x256xi32>
    %82 = vector.extract_strided_slice %11 {offsets = [0, 4], sizes = [128, 1], strides = [1, 1]} : vector<128x8xf32> to vector<128x1xf32>
    %83 = vector.extract_strided_slice %10 {offsets = [0, 4], sizes = [128, 1], strides = [1, 1]} : vector<128x8xf32> to vector<128x1xf32>
    %84 = vector.shape_cast %81 : vector<1x256xi1> to vector<1x256xi1>
    %85 = vector.broadcast %84 : vector<1x256xi1> to vector<128x256xi1>
    %86 = vector.shape_cast %82 : vector<128x1xf32> to vector<128x1xf32>
    %87 = vector.broadcast %86 : vector<128x1xf32> to vector<128x256xf32>
    %88 = vector.shape_cast %83 : vector<128x1xf32> to vector<128x1xf32>
    %89 = vector.broadcast %88 : vector<128x1xf32> to vector<128x256xf32>
    %90 = arith.select %85, %87, %89 : vector<128x256xi1>, vector<128x256xf32>
    %91 = arith.mulf %75, %90 : vector<128x256xf32>
    %c2_i32 = arith.constant 2 : i32
    %92 = vector.broadcast %c2_i32 : i32 to vector<1x256xi32>
    %93 = arith.shrsi %12, %92 : vector<1x256xi32>
    %c1_i32_14 = arith.constant 1 : i32
    %94 = vector.broadcast %c1_i32_14 : i32 to vector<1x256xi32>
    %95 = arith.andi %93, %94 : vector<1x256xi32>
    %c1_i32_15 = arith.constant 1 : i32
    %96 = vector.broadcast %c1_i32_15 : i32 to vector<1x256xi32>
    %97 = arith.cmpi eq, %95, %96 : vector<1x256xi32>
    %98 = vector.extract_strided_slice %11 {offsets = [0, 5], sizes = [128, 1], strides = [1, 1]} : vector<128x8xf32> to vector<128x1xf32>
    %99 = vector.extract_strided_slice %10 {offsets = [0, 5], sizes = [128, 1], strides = [1, 1]} : vector<128x8xf32> to vector<128x1xf32>
    %100 = vector.shape_cast %97 : vector<1x256xi1> to vector<1x256xi1>
    %101 = vector.broadcast %100 : vector<1x256xi1> to vector<128x256xi1>
    %102 = vector.shape_cast %98 : vector<128x1xf32> to vector<128x1xf32>
    %103 = vector.broadcast %102 : vector<128x1xf32> to vector<128x256xf32>
    %104 = vector.shape_cast %99 : vector<128x1xf32> to vector<128x1xf32>
    %105 = vector.broadcast %104 : vector<128x1xf32> to vector<128x256xf32>
    %106 = arith.select %101, %103, %105 : vector<128x256xi1>, vector<128x256xf32>
    %107 = arith.mulf %91, %106 : vector<128x256xf32>
    %c1_i32_16 = arith.constant 1 : i32
    %108 = vector.broadcast %c1_i32_16 : i32 to vector<1x256xi32>
    %109 = arith.shrsi %12, %108 : vector<1x256xi32>
    %c1_i32_17 = arith.constant 1 : i32
    %110 = vector.broadcast %c1_i32_17 : i32 to vector<1x256xi32>
    %111 = arith.andi %109, %110 : vector<1x256xi32>
    %c1_i32_18 = arith.constant 1 : i32
    %112 = vector.broadcast %c1_i32_18 : i32 to vector<1x256xi32>
    %113 = arith.cmpi eq, %111, %112 : vector<1x256xi32>
    %114 = vector.extract_strided_slice %11 {offsets = [0, 6], sizes = [128, 1], strides = [1, 1]} : vector<128x8xf32> to vector<128x1xf32>
    %115 = vector.extract_strided_slice %10 {offsets = [0, 6], sizes = [128, 1], strides = [1, 1]} : vector<128x8xf32> to vector<128x1xf32>
    %116 = vector.shape_cast %113 : vector<1x256xi1> to vector<1x256xi1>
    %117 = vector.broadcast %116 : vector<1x256xi1> to vector<128x256xi1>
    %118 = vector.shape_cast %114 : vector<128x1xf32> to vector<128x1xf32>
    %119 = vector.broadcast %118 : vector<128x1xf32> to vector<128x256xf32>
    %120 = vector.shape_cast %115 : vector<128x1xf32> to vector<128x1xf32>
    %121 = vector.broadcast %120 : vector<128x1xf32> to vector<128x256xf32>
    %122 = arith.select %117, %119, %121 : vector<128x256xi1>, vector<128x256xf32>
    %123 = arith.mulf %107, %122 : vector<128x256xf32>
    %c0_i32 = arith.constant 0 : i32
    %124 = vector.broadcast %c0_i32 : i32 to vector<1x256xi32>
    %125 = arith.shrsi %12, %124 : vector<1x256xi32>
    %c1_i32_19 = arith.constant 1 : i32
    %126 = vector.broadcast %c1_i32_19 : i32 to vector<1x256xi32>
    %127 = arith.andi %125, %126 : vector<1x256xi32>
    %c1_i32_20 = arith.constant 1 : i32
    %128 = vector.broadcast %c1_i32_20 : i32 to vector<1x256xi32>
    %129 = arith.cmpi eq, %127, %128 : vector<1x256xi32>
    %130 = vector.extract_strided_slice %11 {offsets = [0, 7], sizes = [128, 1], strides = [1, 1]} : vector<128x8xf32> to vector<128x1xf32>
    %131 = vector.extract_strided_slice %10 {offsets = [0, 7], sizes = [128, 1], strides = [1, 1]} : vector<128x8xf32> to vector<128x1xf32>
    %132 = vector.shape_cast %129 : vector<1x256xi1> to vector<1x256xi1>
    %133 = vector.broadcast %132 : vector<1x256xi1> to vector<128x256xi1>
    %134 = vector.shape_cast %130 : vector<128x1xf32> to vector<128x1xf32>
    %135 = vector.broadcast %134 : vector<128x1xf32> to vector<128x256xf32>
    %136 = vector.shape_cast %131 : vector<128x1xf32> to vector<128x1xf32>
    %137 = vector.broadcast %136 : vector<128x1xf32> to vector<128x256xf32>
    %138 = arith.select %133, %135, %137 : vector<128x256xi1>, vector<128x256xf32>
    %139 = arith.mulf %123, %138 : vector<128x256xf32>
    %140 = arith.truncf %139 : vector<128x256xf32> to vector<128x256xbf16>
    %c0_21 = arith.constant 0 : index
    %c0_22 = arith.constant 0 : index
    %141 = vector.load %arg3[%c0_21, %c0_22] : memref<256x512xbf16, #tpu.memory_space<vmem>>, vector<256x512xbf16>
    %cst_23 = arith.constant dense<0.000000e+00> : vector<128x512xf32>
    %142 = tpu.matmul %140, %141, %cst_23 {dimension_numbers = #tpu.dot_dimension_numbers<[1], [0], [0], [1], [0, 0, 1, 1], [], []>} : vector<128x256xbf16>, vector<256x512xbf16>, vector<128x512xf32> -> vector<128x512xf32>
    %143 = vector.extract_strided_slice %142 {offsets = [0, 0], sizes = [128, 256], strides = [1, 1]} : vector<128x512xf32> to vector<128x256xf32>
    %144 = vector.extract_strided_slice %142 {offsets = [0, 256], sizes = [128, 256], strides = [1, 1]} : vector<128x512xf32> to vector<128x256xf32>
    %145 = arith.mulf %143, %143 : vector<128x256xf32>
    %146 = arith.mulf %144, %144 : vector<128x256xf32>
    %147 = arith.addf %145, %146 : vector<128x256xf32>
    %c0_24 = arith.constant 0 : index
    %c0_25 = arith.constant 0 : index
    %148 = vector.load %arg4[%c0_24, %c0_25] : memref<256x128xf32, #tpu.memory_space<vmem>>, vector<256x128xf32>
    %cst_26 = arith.constant dense<0.000000e+00> : vector<128x128xf32>
    %149 = tpu.matmul %147, %148, %cst_26 {dimension_numbers = #tpu.dot_dimension_numbers<[1], [0], [0], [1], [0, 0, 1, 1], [], []>} : vector<128x256xf32>, vector<256x128xf32>, vector<128x128xf32> -> vector<128x128xf32>
    %c0_27 = arith.constant 0 : index
    %c0_28 = arith.constant 0 : index
    %150 = vector.load %arg5[%c0_27, %c0_28] : memref<1x128xf32, #tpu.memory_space<vmem>>, vector<1x128xf32>
    %151 = vector.broadcast %150 : vector<1x128xf32> to vector<128x128xf32>
    %152 = arith.addf %149, %151 : vector<128x128xf32>
    %cst_29 = arith.constant dense<0xFF800000> : vector<128xf32>
    %153 = vector.multi_reduction <maximumf>, %152, %cst_29 [1] : vector<128x128xf32> to vector<128xf32>
    %154 = vector.shape_cast %153 : vector<128xf32> to vector<128x1xf32>
    %155 = vector.broadcast %154 : vector<128x1xf32> to vector<128x128xf32>
    %156 = arith.subf %152, %155 : vector<128x128xf32>
    %157 = math.exp %156 : vector<128x128xf32>
    %cst_30 = arith.constant dense<0.000000e+00> : vector<128xf32>
    %158 = vector.multi_reduction <add>, %157, %cst_30 [1] : vector<128x128xf32> to vector<128xf32>
    %159 = vector.shape_cast %158 : vector<128xf32> to vector<128x1xf32>
    %160 = math.log %159 : vector<128x1xf32>
    %161 = vector.broadcast %160 : vector<128x1xf32> to vector<128x128xf32>
    %162 = arith.subf %156, %161 : vector<128x128xf32>
    %c0_31 = arith.constant 0 : index
    %c0_32 = arith.constant 0 : index
    %163 = vector.load %arg6[%c0_31, %c0_32] : memref<128x128xf32, #tpu.memory_space<vmem>>, vector<128x128xf32>
    tpu.vector_store %arg6[%c0_31, %c0_32], %162 {strides = array<i32>} : memref<128x128xf32, #tpu.memory_space<vmem>>, vector<128x128xf32>,
    return
  }
  func.func @transform_0(%arg0: i32) -> (i32, i32) {
    %c0_i32 = arith.constant 0 : i32
    %c0_i32_0 = arith.constant 0 : i32
    return %arg0, %c0_i32 : i32, i32
  }
  func.func @transform_1(%arg0: i32) -> (i32, i32) {
    %c0_i32 = arith.constant 0 : i32
    %c0_i32_0 = arith.constant 0 : i32
    %c0_i32_1 = arith.constant 0 : i32
    return %c0_i32, %c0_i32_0 : i32, i32
  }
  func.func @transform_2(%arg0: i32) -> (i32, i32) {
    %c0_i32 = arith.constant 0 : i32
    %c0_i32_0 = arith.constant 0 : i32
    %c0_i32_1 = arith.constant 0 : i32
    return %c0_i32, %c0_i32_0 : i32, i32
  }
  func.func @transform_3(%arg0: i32) -> (i32, i32) {
    %c0_i32 = arith.constant 0 : i32
    %c0_i32_0 = arith.constant 0 : i32
    %c0_i32_1 = arith.constant 0 : i32
    return %c0_i32, %c0_i32_0 : i32, i32
  }
  func.func @transform_4(%arg0: i32) -> (i32, i32) {
    %c0_i32 = arith.constant 0 : i32
    %c0_i32_0 = arith.constant 0 : i32
    %c0_i32_1 = arith.constant 0 : i32
    return %c0_i32, %c0_i32_0 : i32, i32
  }
  func.func @transform_5(%arg0: i32) -> (i32, i32) {
    %c0_i32 = arith.constant 0 : i32
    %c0_i32_0 = arith.constant 0 : i32
    return %arg0, %c0_i32 : i32, i32
  }
}

</mosaic_0001>

<bundles_post_ra>
// kernel: tpu_custom_call.1
= control target key start
LH: loop header
LB: loop body
LE: loop exit
PB: predicated region body
PF: predicated region fallthrough
CT: control target
= control target key end

     0   :  { %10 = vsyncpa [#allocation3], 0  ;;  %s14190_s0 = inlined_call_operand.hbm [shape: f32[256,896], index: 0, kind: input, shape index: {}]   ;;  %s14191_s1 = inlined_call_operand.vmem [shape: f32[896,8], index: 1, kind: input, shape index: {}]   ;;  %s14192_s2 = inlined_call_operand.vmem [shape: bf16[256,512], index: 2, kind: input, shape index: {}]   ;;  %s14193_s3 = inlined_call_operand.vmem [shape: f32[256,128], index: 3, kind: input, shape index: {}]   ;;  %s14194_s4 = inlined_call_operand.vmem [shape: f32[1,128], index: 4, kind: input, shape index: {}]   ;;  %s14195_s5 = inlined_call_operand.hbm [shape: f32[256,128], index: 5, kind: output, shape index: {}]  }
   0x1   :  { %12 = vsyncpa [#allocation3 + $0x1], 0 }
   0x2   :  { %13 = vsyncpa [#allocation4], 0 }
   0x3   :  { %15 = vsyncpa [#allocation4 + $0x1], 0  ;;  %s8625_s18 = smov 0   ;;  %s8627_s19 = smov 0  }
   0x4   :  { %s8629_s20 = smov 0   ;;  %s8631_s21 = smov 0  }
   0x5 LB: > { %s8646_s22 = sadd.s32 4294967295, %s8573_s21   ;;  %s7260_s23 = sadd.s32 4294967294, %s8573_s21   ;;  %s8573_s21 = sphi %s8631_s21, %s15117_s21   ;;  %s8569_s20 = sphi %s8629_s20, %s15116_s20   ;;  %s8565_s19 = sphi %s8627_s19, %s15115_s19   ;;  %s8561_s18 = sphi %s8625_s18, %s15114_s18  }
   0x6   : > { %s8650_s24 = sadd.s32 1, %s8573_s21   ;;  %s28_s25 = sadd.s32 1, %s8569_s20 }
   0x7   : > { %s25_s26 = ssub.s32 %s8573_s21, %s8650_s24  ;;  %p35_p0 = scmp.ne.s32.totalorder %s8569_s20, %s8565_s19 }
   0x8   : > { %p26_p1 = scmp.eq.s32.totalorder %s25_s26, 0  ;;  %p36_p2 = scmp.eq.s32.totalorder %s8573_s21, 0 }
   0x9   : > { %p41_p3 = scmp.ne.s32.totalorder %s8565_s19, %s8561_s18  ;;  %p42_p4 = scmp.eq.s32.totalorder %s8646_s22, 0 }
   0xa   : > { %s8662_s27 = scalar_select %p26_p1, %s8569_s20, %s28_s25  }
   0xb   : > { %p37_p5 = por %p36_p2, %p35_p0  ;;  %p8664_p6 = por %p42_p4, %p41_p3 }
   0xc   : > { %p149_p7 = scmp.eq.s32.totalorder %s8646_s22, 1  ;;  %p155_p8 = scmp.eq.s32.totalorder %s7260_s23, 1 }
   0xd   : > { %s14516_s28 = scalar_select %p8664_p6, 1, 0 }
   0xe   : > { %p8002_p10 = scmp.lt.s32.totalorder %s8573_s21, 2  ;;  %p8671_p11 = por %p149_p7, %p35_p0 }
   0xf   : > { %p8675_p12 = por %p155_p8, %p41_p3  ;;  %s187_s6 = sand.u32 1, %s8569_s20  }
  0x10   : > { %s14517_s29 = scalar_select %p8671_p11, 1, 0 }
  0x11   : > { %s14518_s30 = scalar_select %p8675_p12, 1, 0 }
  0x12   : > { %s7924_s7 = smul.u32 14336, %s8573_s21  ;;  %p8686_p13 = pnand %p8002_p10, %p37_p5 }
  0x13   : > { %s7923_s8 = smul.u32 896, %s187_s6  ;;  %s8692_s15 = scalar_lea.sflag [#allocation3], %s187_s6 }
  0x14   : > { %s8684_s11 = scalar_lea.hbm %s14190_s0, %s7924_s7  ;;  %p8483_p1 = pneg %p8686_p13 }
  0x15   : > { %s191_s13 = scalar_lea.vmem [#allocation2], %s7923_s8  ;;  %s8481_s16 = scalar_lea.hbm %s8684_s11, 14336 }
  0x16   : > { %s199_s14 = sshll.u32 %s191_s13, 4  ;;  %p8482_p0 = scmp.ne.s32.totalorder %s8684_s11, %s8481_s16  ;;  %s8690_s14 = int_to_ptr.vmem [resolvable:$true] %s199_s14 }
  0x17   : > { %s8486_s25 = scalar_lea.hbm %s14190_s0, 28672  ;;  %p8487_p4 = scmp.lt.s32.totalorder %s8684_s11, %s14190_s0 }
  0x18   : > { %p8484_p2 = pnand %p8483_p1, %p8482_p0  ;;  %p8488_p5 = scmp.lt.s32.totalorder %s8486_s25, %s8481_s16 }
  0x1a   : > { %p8485_p3 = pneg %p8484_p2  ;;  %p8489_p7 = por %p8488_p5, %p8487_p4 }
  0x1c   : > { %p8490_p8 = pnand %p8489_p7, %p8485_p3 }
  0x1e   : > { %8493 = shalt.err (!%p8490_p8)
}
  0x1f   : > { %s8494_s6 = scalar_lea.vmem %s8690_s14, 14336  ;;  %s8575_s8 = smov [#allocation2]  }
  0x20   : > { %p8495_p10 = scmp.ne.s32.totalorder %s8690_s14, %s8494_s6  ;;  %s8499_s9 = sshll.u32 %s8575_s8, 4  ;;  %s8500_s9 = int_to_ptr.vmem [resolvable:$false] %s8499_s9 }
  0x21   : > { %s8501_s10 = scalar_lea.vmem %s8500_s9, 28672  ;;  %p8502_p2 = scmp.lt.s32.totalorder %s8690_s14, %s8500_s9 }
  0x22   : > { %p8497_p9 = pnand %p8495_p10, %p8483_p1  ;;  %p8503_p12 = scmp.lt.s32.totalorder %s8501_s10, %s8494_s6 }
  0x24   : > { %p8498_p0 = pneg %p8497_p9  ;;  %p8504_p11 = por %p8503_p12, %p8502_p2 }
  0x26   : > { %p8505_p6 = pnand %p8504_p11, %p8498_p0 }
  0x28   : > { %8508 = shalt.err (!%p8505_p6)
}
  0x29   : > { %s8576_s13 = smov 896   ;;  %s8577_s16 = smov 56  }
  0x2a   : > { %7997 = dma.hbm_to_vmem [thread:$0]  (!%p8686_p13), %s8684_s11, 14336, %s8690_s14, %s8692_s15, %s8576_s13, %s8576_s13, %s8577_s16  }
  0x2b   : > { %p7266_p9 = scmp.ge.s32.totalorder %s8573_s21, 1  ;;  %p207_p1 = scmp.lt.s32.totalorder %s8573_s21, 3 }
  0x2d   : > { %p208_p3 = pnand %p7266_p9, %p207_p1 }
  0x2f   : > { %211 = sbr.rel (%p208_p3) target bundleno = 2245 (0x8c5), region = 40 }
  0x34   : > { %s8716_s17 = sand.u32 1, %s8565_s19   ;;  %p14520_p6 = scmp.ne.s32.totalorder %s14516_s28, 0 }
  0x35   : > { %s7925_s23 = smul.u32 896, %s8716_s17  ;;  %s214_s25 = scalar_lea.sflag [#allocation3], %s8716_s17 }
  0x37   : > { %s8720_s26 = scalar_lea.vmem [#allocation2], %s7925_s23 }
  0x38   : > { %8552 = dma.done.wait (%p14520_p6), %s214_s25, 14336  }
  0x39   : > { %8554 = vsyncadd (%p14520_p6), %s214_s25, 4294952960  ;;  %v389_v0 = vld [vmem:[%s14191_s1 + $0xf8] sm:$0xff]  ;;  %v388_v2 = vld [vmem:[%s14191_s1 + $0xf0] sm:$0xff]  ;;  %s7267_s25 = sshll.u32 %s8716_s17, 7  ;;  %s7482_s11 = sshll.u32 %s8646_s22, 11 }
  0x3a   : > { %v373_v1 = vld [vmem:[%s14191_s1 + $0x78] sm:$0xff]  ;;  %7891 = vmatprep.subr.mxu1 %v389_v0  ;;  %7483 = vmatprep.subr.mxu0 %v389_v0  ;;  %v372_v3 = vld [vmem:[%s14191_s1 + $0x70] sm:$0xff]  ;;  %v387_v4 = vld [vmem:[%s14191_s1 + $0xe8] sm:$0xff]  ;;  %s14143_s7 = scalar_lea.hbm %s14195_s5, %s7482_s11  ;;  %s7174_s6 = scalar_lea.sflag [#allocation4], %s8716_s17 }
  0x3b   : > { %7907 = vmatpush3.msra.mxu1 %v373_v1  ;;  %7484 = vmatpush3.msra.mxu0 %v373_v1  ;;  %v371_v5 = vld [vmem:[%s14191_s1 + $0x68] sm:$0xff]  ;;  %v386_v6 = vld [vmem:[%s14191_s1 + $0xe0] sm:$0xff]  ;;  %v385_v8 = vld [vmem:[%s14191_s1 + $0xd8] sm:$0xff]  ;;  %p15111_p12 = scmp.ne.s32.totalorder %s14517_s29, 0  ;;  %s8592_s22 = smov [#allocation5]  }
  0x3c   : > { %7892 = vmatprep.subr.mxu1 %v388_v2  ;;  %7485 = vmatprep.subr.mxu0 %v388_v2  ;;  %v370_v7 = vld [vmem:[%s14191_s1 + $0x60] sm:$0xff]  ;;  %v369_v9 = vld [vmem:[%s14191_s1 + $0x58] sm:$0xff]  ;;  %v384_v10 = vld [vmem:[%s14191_s1 + $0xd0] sm:$0xff]  ;;  %s8513_s9 = sshll.u32 %s8592_s22, 4  ;;  %s8514_s9 = int_to_ptr.vmem [resolvable:$false] %s8513_s9 }
  0x3d   : > { %7908 = vmatpush3.msra.mxu1 %v372_v3  ;;  %7486 = vmatpush3.msra.mxu0 %v372_v3  ;;  %v368_v11 = vld [vmem:[%s14191_s1 + $0x50] sm:$0xff]  ;;  %v383_v12 = vld [vmem:[%s14191_s1 + $0xc8] sm:$0xff]  ;;  %v382_v14 = vld [vmem:[%s14191_s1 + $0xc0] sm:$0xff]  ;;  %s8515_s28 = scalar_lea.vmem %s8514_s9, 4096 }
  0x3e   : > { %7893 = vmatprep.subr.mxu1 %v387_v4  ;;  %7487 = vmatprep.subr.mxu0 %v387_v4  ;;  %v367_v13 = vld [vmem:[%s14191_s1 + $0x48] sm:$0xff]  ;;  %v366_v15 = vld [vmem:[%s14191_s1 + $0x40] sm:$0xff]  ;;  %v381_v16 = vld [vmem:[%s14191_s1 + $0xb8] sm:$0xff] }
  0x3f   : > { %7909 = vmatpush3.msra.mxu1 %v371_v5  ;;  %7488 = vmatpush3.msra.mxu0 %v371_v5  ;;  %v365_v17 = vld [vmem:[%s14191_s1 + $0x38] sm:$0xff]  ;;  %v380_v18 = vld [vmem:[%s14191_s1 + $0xb0] sm:$0xff]  ;;  %v379_v20 = vld [vmem:[%s14191_s1 + $0xa8] sm:$0xff] }
  0x40   : > { %7894 = vmatprep.subr.mxu1 %v386_v6  ;;  %7489 = vmatprep.subr.mxu0 %v386_v6  ;;  %v364_v19 = vld [vmem:[%s14191_s1 + $0x30] sm:$0xff]  ;;  %v363_v21 = vld [vmem:[%s14191_s1 + $0x28] sm:$0xff]  ;;  %v378_v22 = vld [vmem:[%s14191_s1 + $0xa0] sm:$0xff] }
  0x41   : > { %7910 = vmatpush3.msra.mxu1 %v370_v7  ;;  %7490 = vmatpush3.msra.mxu0 %v370_v7  ;;  %v362_v23 = vld [vmem:[%s14191_s1 + $0x20] sm:$0xff]  ;;  %v377_v24 = vld [vmem:[%s14191_s1 + $0x98] sm:$0xff]  ;;  %v376_v26 = vld [vmem:[%s14191_s1 + $0x90] sm:$0xff] }
  0x42   : > { %7895 = vmatprep.subr.mxu1 %v385_v8  ;;  %7491 = vmatprep.subr.mxu0 %v385_v8  ;;  %v361_v25 = vld [vmem:[%s14191_s1 + $0x18] sm:$0xff]  ;;  %v360_v27 = vld [vmem:[%s14191_s1 + $0x10] sm:$0xff]  ;;  %v375_v28 = vld [vmem:[%s14191_s1 + $0x88] sm:$0xff] }
  0x43   : > { %7911 = vmatpush3.msra.mxu1 %v369_v9  ;;  %7492 = vmatpush3.msra.mxu0 %v369_v9  ;;  %v359_v29 = vld [vmem:[%s14191_s1 + $0x8] sm:$0xff]  ;;  %v374_v30 = vld [vmem:[%s14191_s1 + $0x80] sm:$0xff]  ;;  %v421_v34 = vld [vmem:[%s14191_s1 + $0x1f8] sm:$0xff] }
  0x44   : > { %7896 = vmatprep.subr.mxu1 %v384_v10  ;;  %7493 = vmatprep.subr.mxu0 %v384_v10  ;;  %v303_v31 = vld [vmem:[%s8720_s26 + $0x1c8] sm:$0xff]  ;;  %v358_v32 = vld [vmem:[%s14191_s1] sm:$0xff]  ;;  %v405_v36 = vld [vmem:[%s14191_s1 + $0x178] sm:$0xff] }
  0x45   : > { %7912 = vmatpush3.msra.mxu1 %v368_v11  ;;  %7494 = vmatpush3.msra.mxu0 %v368_v11  ;;  %v302_v33 = vld [vmem:[%s8720_s26 + $0x1c0] sm:$0xff]  ;;  %v247_v35 = vld [vmem:[%s8720_s26 + $0x8] sm:$0xff]  ;;  %v420_v38 = vld [vmem:[%s14191_s1 + $0x1f0] sm:$0xff] }
  0x46   : > { %7897 = vmatprep.subr.mxu1 %v383_v12  ;;  %7495 = vmatprep.subr.mxu0 %v383_v12  ;;  %v246_v37 = vld [vmem:[%s8720_s26] sm:$0xff]  ;;  %v453_v39 = vld [vmem:[%s14191_s1 + $0x2f8] sm:$0xff]  ;;  %v404_v41 = vld [vmem:[%s14191_s1 + $0x170] sm:$0xff] }
  0x47   : > { %7913 = vmatpush3.msra.mxu1 %v367_v13  ;;  %7496 = vmatpush3.msra.mxu0 %v367_v13  ;;  %v310_v40 = vld [vmem:[%s8720_s26 + $0x200] sm:$0xff]  ;;  %v437_v42 = vld [vmem:[%s14191_s1 + $0x278] sm:$0xff]  ;;  %v419_v44 = vld [vmem:[%s14191_s1 + $0x1e8] sm:$0xff] }
  0x48   : > { %7898 = vmatprep.subr.mxu1 %v382_v14  ;;  %7497 = vmatprep.subr.mxu0 %v382_v14  ;;  %v309_v43 = vld [vmem:[%s8720_s26 + $0x1f8] sm:$0xff]  ;;  %v452_v45 = vld [vmem:[%s14191_s1 + $0x2f0] sm:$0xff]  ;;  %v254_v46 = vld [vmem:[%s8720_s26 + $0x40] sm:$0xff] }
  0x49   : > { %7914 = vmatpush3.msra.mxu1 %v366_v15  ;;  %7498 = vmatpush3.msra.mxu0 %v366_v15  ;;  %v403_v47 = vld [vmem:[%s14191_s1 + $0x168] sm:$0xff]  ;;  %v436_v48 = vld [vmem:[%s14191_s1 + $0x270] sm:$0xff]  ;;  %v418_v49 = vld [vmem:[%s14191_s1 + $0x1e0] sm:$0xff] }
  0x4a   : > { %7899 = vmatprep.subr.mxu1 %v381_v16  ;;  %7499 = vmatprep.subr.mxu0 %v381_v16  ;;  %v253_v50 = vld [vmem:[%s8720_s26 + $0x38] sm:$0xff]  ;;  %v451_v51 = vld [vmem:[%s14191_s1 + $0x2e8] sm:$0xff]  ;;  %v402_v53 = vld [vmem:[%s14191_s1 + $0x160] sm:$0xff] }
  0x4b   : > { %7915 = vmatpush3.msra.mxu1 %v365_v17  ;;  %7500 = vmatpush3.msra.mxu0 %v365_v17  ;;  %v317_v52 = vld [vmem:[%s8720_s26 + $0x238] sm:$0xff]  ;;  %v435_v54 = vld [vmem:[%s14191_s1 + $0x268] sm:$0xff]  ;;  %v316_v55 = vld [vmem:[%s8720_s26 + $0x230] sm:$0xff] }
  0x4c   : > { %7900 = vmatprep.subr.mxu1 %v380_v18  ;;  %7501 = vmatprep.subr.mxu0 %v380_v18  ;;  %v417_v56 = vld [vmem:[%s14191_s1 + $0x1d8] sm:$0xff]  ;;  %v450_v57 = vld [vmem:[%s14191_s1 + $0x2e0] sm:$0xff]  ;;  %v416_v61 = vld [vmem:[%s14191_s1 + $0x1d0] sm:$0xff] }
  0x4d   : > { %7916 = vmatpush3.msra.mxu1 %v364_v19  ;;  %7502 = vmatpush3.msra.mxu0 %v364_v19  ;;  %v261_v58 = vld [vmem:[%s8720_s26 + $0x78] sm:$0xff]  ;;  %v434_v60 = vld [vmem:[%s14191_s1 + $0x260] sm:$0xff]  ;;  %v260_v62 = vld [vmem:[%s8720_s26 + $0x70] sm:$0xff] }
  0x4e   : > { %7901 = vmatprep.subr.mxu1 %v379_v20  ;;  %7503 = vmatprep.subr.mxu0 %v379_v20  ;;  %v401_v59 = vld [vmem:[%s14191_s1 + $0x158] sm:$0xff]  ;;  %v324_v0 = vld [vmem:[%s8720_s26 + $0x270] sm:$0xff]  ;;  %v323_v3 = vld [vmem:[%s8720_s26 + $0x268] sm:$0xff] }
  0x4f   : > { %7917 = vmatpush3.msra.mxu1 %v363_v21  ;;  %7504 = vmatpush3.msra.mxu0 %v363_v21  ;;  %v449_v63 = vld [vmem:[%s14191_s1 + $0x2d8] sm:$0xff]  ;;  %v400_v1 = vld [vmem:[%s14191_s1 + $0x150] sm:$0xff]  ;;  %v415_v4 = vld [vmem:[%s14191_s1 + $0x1c8] sm:$0xff] }
  0x50   : > { %7902 = vmatprep.subr.mxu1 %v378_v22  ;;  %7505 = vmatprep.subr.mxu0 %v378_v22  ;;  %v433_v2 = vld [vmem:[%s14191_s1 + $0x258] sm:$0xff]  ;;  %v448_v5 = vld [vmem:[%s14191_s1 + $0x2d0] sm:$0xff]  ;;  %v399_v7 = vld [vmem:[%s14191_s1 + $0x148] sm:$0xff] }
  0x51   : > { %7918 = vmatpush3.msra.mxu1 %v362_v23  ;;  %7506 = vmatpush3.msra.mxu0 %v362_v23  ;;  %v268_v6 = vld [vmem:[%s8720_s26 + $0xb0] sm:$0xff]  ;;  %v414_v9 = vld [vmem:[%s14191_s1 + $0x1c0] sm:$0xff]  ;;  %v267_v10 = vld [vmem:[%s8720_s26 + $0xa8] sm:$0xff] }
  0x52   : > { %7903 = vmatprep.subr.mxu1 %v377_v24  ;;  %7507 = vmatprep.subr.mxu0 %v377_v24  ;;  %v432_v8 = vld [vmem:[%s14191_s1 + $0x250] sm:$0xff]  ;;  %v447_v11 = vld [vmem:[%s14191_s1 + $0x2c8] sm:$0xff]  ;;  %v398_v13 = vld [vmem:[%s14191_s1 + $0x140] sm:$0xff] }
  0x53   : > { %7919 = vmatpush3.msra.mxu1 %v361_v25  ;;  %7508 = vmatpush3.msra.mxu0 %v361_v25  ;;  %v331_v12 = vld [vmem:[%s8720_s26 + $0x2a8] sm:$0xff]  ;;  %v330_v15 = vld [vmem:[%s8720_s26 + $0x2a0] sm:$0xff]  ;;  %v413_v16 = vld [vmem:[%s14191_s1 + $0x1b8] sm:$0xff] }
  0x54   : > { %7904 = vmatprep.subr.mxu1 %v376_v26  ;;  %7509 = vmatprep.subr.mxu0 %v376_v26  ;;  %v431_v14 = vld [vmem:[%s14191_s1 + $0x248] sm:$0xff]  ;;  %v446_v17 = vld [vmem:[%s14191_s1 + $0x2c0] sm:$0xff]  ;;  %v397_v19 = vld [vmem:[%s14191_s1 + $0x138] sm:$0xff] }
  0x55   : > { %7920 = vmatpush3.msra.mxu1 %v360_v27  ;;  %7510 = vmatpush3.msra.mxu0 %v360_v27  ;;  %v275_v18 = vld [vmem:[%s8720_s26 + $0xe8] sm:$0xff]  ;;  %v430_v20 = vld [vmem:[%s14191_s1 + $0x240] sm:$0xff]  ;;  %v412_v21 = vld [vmem:[%s14191_s1 + $0x1b0] sm:$0xff] }
  0x56   : > { %7905 = vmatprep.subr.mxu1 %v375_v28  ;;  %7511 = vmatprep.subr.mxu0 %v375_v28  ;;  %v274_v22 = vld [vmem:[%s8720_s26 + $0xe0] sm:$0xff]  ;;  %v445_v23 = vld [vmem:[%s14191_s1 + $0x2b8] sm:$0xff]  ;;  %v396_v25 = vld [vmem:[%s14191_s1 + $0x130] sm:$0xff] }
  0x57   : > { %7921 = vmatpush3.msra.mxu1 %v359_v29  ;;  %7512 = vmatpush3.msra.mxu0 %v359_v29  ;;  %v338_v24 = vld [vmem:[%s8720_s26 + $0x2e0] sm:$0xff]  ;;  %v429_v26 = vld [vmem:[%s14191_s1 + $0x238] sm:$0xff]  ;;  %v411_v28 = vld [vmem:[%s14191_s1 + $0x1a8] sm:$0xff] }
  0x58   : > { %7906 = vmatprep.subr.mxu1 %v374_v30  ;;  %574 = vmatprep.mubr.f32.mxu1 %v303_v31  ;;  %v337_v27 = vld [vmem:[%s8720_s26 + $0x2d8] sm:$0xff]  ;;  %v444_v29 = vld [vmem:[%s14191_s1 + $0x2b0] sm:$0xff]  ;;  %v395_v31 = vld [vmem:[%s14191_s1 + $0x128] sm:$0xff] }
  0x59   : > { %7922 = vmatpush3.msra.mxu1 %v358_v32  ;;  %7513 = vmatprep.subr.mxu0 %v374_v30  ;;  %v282_v30 = vld [vmem:[%s8720_s26 + $0x120] sm:$0xff] }
  0x5a   : > { %575 = vmatmul.mubr.f32.vlgmr.msra.gmra.mxu1 %v302_v33  ;;  %7563 = vmatprep.subr.mxu1 %v421_v34  ;;  %v410_v33 = vld [vmem:[%s14191_s1 + $0x1a0] sm:$0xff]  ;;  %v281_v34 = vld [vmem:[%s8720_s26 + $0x118] sm:$0xff] }
  0x5b   : > { %7514 = vmatpush3.msra.mxu0 %v358_v32  ;;  %534 = vmatprep.mubr.f32.mxu0 %v247_v35  ;;  %v428_v32 = vld [vmem:[%s14191_s1 + $0x230] sm:$0xff]  ;;  %v443_v35 = vld [vmem:[%s14191_s1 + $0x2a8] sm:$0xff] }
  0x5c   : > { %7564 = vmatpush3.msra.mxu1 %v405_v36  ;;  %535 = vmatmul.mubr.f32.vlgmr.msra.gmra.mxu0 %v246_v37  ;;  %v345_v36 = vld [vmem:[%s8720_s26 + $0x318] sm:$0xff]  ;;  %v394_v37 = vld [vmem:[%s14191_s1 + $0x120] sm:$0xff] }
  0x5d   : > { %7565 = vmatprep.subr.mxu1 %v420_v38  ;;  %7643 = vmatprep.subr.mxu0 %v453_v39  ;;  %v427_v38 = vld [vmem:[%s14191_s1 + $0x228] sm:$0xff]  ;;  %v344_v39 = vld [vmem:[%s8720_s26 + $0x310] sm:$0xff] }
  0x5e   : > { %579 = vmatprep.mubr.f32.mxu1 %v310_v40  ;;  %7566 = vmatpush3.msra.mxu1 %v404_v41  ;;  %v409_v40 = vld [vmem:[%s14191_s1 + $0x198] sm:$0xff]  ;;  %v442_v41 = vld [vmem:[%s14191_s1 + $0x2a0] sm:$0xff] }
  0x5f   : > { %7644 = vmatpush3.msra.mxu0 %v437_v42  ;;  %580 = vmatmul.mubr.f32.gmra.mxu1 %v309_v43  ;;  %v289_v42 = vld [vmem:[%s8720_s26 + $0x158] sm:$0xff] }
  0x60   : > { %7567 = vmatprep.subr.mxu1 %v419_v44  ;;  %7645 = vmatprep.subr.mxu0 %v452_v45  ;;  %v393_v43 = vld [vmem:[%s14191_s1 + $0x118] sm:$0xff]  ;;  %v426_v44 = vld [vmem:[%s14191_s1 + $0x220] sm:$0xff]  ;;  %v408_v45 = vld [vmem:[%s14191_s1 + $0x190] sm:$0xff] }
  0x61   : > { %539 = vmatprep.mubr.f32.mxu0 %v254_v46  ;;  %7568 = vmatpush3.msra.mxu1 %v403_v47  ;;  %v288_v46 = vld [vmem:[%s8720_s26 + $0x150] sm:$0xff]  ;;  %v441_v47 = vld [vmem:[%s14191_s1 + $0x298] sm:$0xff] }
  0x62   : > { %7646 = vmatpush3.msra.mxu0 %v436_v48  ;;  %7569 = vmatprep.subr.mxu1 %v418_v49  ;;  %v352_v48 = vld [vmem:[%s8720_s26 + $0x350] sm:$0xff] }
  0x63   : > { %540 = vmatmul.mubr.f32.gmra.mxu0 %v253_v50  ;;  %7647 = vmatprep.subr.mxu0 %v451_v51  ;;  %v392_v49 = vld [vmem:[%s14191_s1 + $0x110] sm:$0xff]  ;;  %v425_v50 = vld [vmem:[%s14191_s1 + $0x218] sm:$0xff]  ;;  %v351_v51 = vld [vmem:[%s8720_s26 + $0x348] sm:$0xff] }
  0x64   : > { %584 = vmatprep.mubr.f32.mxu1 %v317_v52  ;;  %7570 = vmatpush3.msra.mxu1 %v402_v53  ;;  %v407_v52 = vld [vmem:[%s14191_s1 + $0x188] sm:$0xff]  ;;  %v440_v53 = vld [vmem:[%s14191_s1 + $0x290] sm:$0xff] }
  0x65   : > { %7648 = vmatpush3.msra.mxu0 %v435_v54  ;;  %585 = vmatmul.mubr.f32.gmra.mxu1 %v316_v55  ;;  %v296_v54 = vld [vmem:[%s8720_s26 + $0x190] sm:$0xff]  ;;  %v391_v55 = vld [vmem:[%s14191_s1 + $0x108] sm:$0xff] }
  0x66   : > { %7571 = vmatprep.subr.mxu1 %v417_v56  ;;  %7649 = vmatprep.subr.mxu0 %v450_v57  ;;  %v424_v56 = vld [vmem:[%s14191_s1 + $0x210] sm:$0xff]  ;;  %v295_v57 = vld [vmem:[%s8720_s26 + $0x188] sm:$0xff] }
  0x67   : > { %544 = vmatprep.mubr.f32.mxu0 %v261_v58  ;;  %7572 = vmatpush3.msra.mxu1 %v401_v59  ;;  %v406_v58 = vld [vmem:[%s14191_s1 + $0x180] sm:$0xff]  ;;  %v439_v59 = vld [vmem:[%s14191_s1 + $0x288] sm:$0xff] }
  0x68   : > { %7650 = vmatpush3.msra.mxu0 %v434_v60  ;;  %7573 = vmatprep.subr.mxu1 %v416_v61  ;;  %v390_v60 = vld [vmem:[%s14191_s1 + $0x100] sm:$0xff]  ;;  %v249_v61 = vld [vmem:[%s8720_s26 + $0x18] sm:$0xff] }
  0x69   : > { %545 = vmatmul.mubr.f32.gmra.mxu0 %v260_v62  ;;  %7651 = vmatprep.subr.mxu0 %v449_v63  ;;  %v423_v62 = vld [vmem:[%s14191_s1 + $0x208] sm:$0xff]  ;;  %v248_v63 = vld [vmem:[%s8720_s26 + $0x10] sm:$0xff] }
  0x6a   : > { %589 = vmatprep.mubr.f32.mxu1 %v324_v0  ;;  %7574 = vmatpush3.msra.mxu1 %v400_v1  ;;  %v438_v0 = vld [vmem:[%s14191_s1 + $0x280] sm:$0xff]  ;;  %v469_v1 = vld [vmem:[%s14191_s1 + $0x378] sm:$0xff] }
  0x6b   : > { %7652 = vmatpush3.msra.mxu0 %v433_v2  ;;  %590 = vmatmul.mubr.f32.gmra.mxu1 %v323_v3  ;;  %v422_v2 = vld [vmem:[%s14191_s1 + $0x200] sm:$0xff]  ;;  %v251_v3 = vld [vmem:[%s8720_s26 + $0x28] sm:$0xff] }
  0x6c   : > { %7575 = vmatprep.subr.mxu1 %v415_v4  ;;  %7653 = vmatprep.subr.mxu0 %v448_v5  ;;  %v250_v4 = vld [vmem:[%s8720_s26 + $0x20] sm:$0xff]  ;;  %v256_v5 = vld [vmem:[%s8720_s26 + $0x50] sm:$0xff] }
  0x6d   : > { %549 = vmatprep.mubr.f32.mxu0 %v268_v6  ;;  %7576 = vmatpush3.msra.mxu1 %v399_v7  ;;  %v468_v6 = vld [vmem:[%s14191_s1 + $0x370] sm:$0xff]  ;;  %v255_v7 = vld [vmem:[%s8720_s26 + $0x48] sm:$0xff] }
  0x6e   : > { %7654 = vmatpush3.msra.mxu0 %v432_v8  ;;  %7577 = vmatprep.subr.mxu1 %v414_v9  ;;  %v258_v8 = vld [vmem:[%s8720_s26 + $0x60] sm:$0xff]  ;;  %v263_v9 = vld [vmem:[%s8720_s26 + $0x88] sm:$0xff] }
  0x6f   : > { %550 = vmatmul.mubr.f32.gmra.mxu0 %v267_v10  ;;  %7655 = vmatprep.subr.mxu0 %v447_v11  ;;  %v257_v10 = vld [vmem:[%s8720_s26 + $0x58] sm:$0xff]  ;;  %v467_v11 = vld [vmem:[%s14191_s1 + $0x368] sm:$0xff] }
  0x70   : > { %594 = vmatprep.mubr.f32.mxu1 %v331_v12  ;;  %7578 = vmatpush3.msra.mxu1 %v398_v13  ;;  %v265_v12 = vld [vmem:[%s8720_s26 + $0x98] sm:$0xff]  ;;  %v262_v13 = vld [vmem:[%s8720_s26 + $0x80] sm:$0xff] }
  0x71   : > { %7656 = vmatpush3.msra.mxu0 %v431_v14  ;;  %595 = vmatmul.mubr.f32.gmra.mxu1 %v330_v15  ;;  %v466_v14 = vld [vmem:[%s14191_s1 + $0x360] sm:$0xff] }
  0x72   : > { %7579 = vmatprep.subr.mxu1 %v413_v16  ;;  %7657 = vmatprep.subr.mxu0 %v446_v17  ;;  %v270_v15 = vld [vmem:[%s8720_s26 + $0xc0] sm:$0xff]  ;;  %v264_v16 = vld [vmem:[%s8720_s26 + $0x90] sm:$0xff]  ;;  %v465_v17 = vld [vmem:[%s14191_s1 + $0x358] sm:$0xff] }
  0x73   : > { %554 = vmatprep.mubr.f32.mxu0 %v275_v18  ;;  %7580 = vmatpush3.msra.mxu1 %v397_v19  ;;  %v272_v18 = vld [vmem:[%s8720_s26 + $0xd0] sm:$0xff]  ;;  %v269_v19 = vld [vmem:[%s8720_s26 + $0xb8] sm:$0xff] }
  0x74   : > { %7658 = vmatpush3.msra.mxu0 %v430_v20  ;;  %7581 = vmatprep.subr.mxu1 %v412_v21  ;;  %v464_v20 = vld [vmem:[%s14191_s1 + $0x350] sm:$0xff]  ;;  %v277_v21 = vld [vmem:[%s8720_s26 + $0xf8] sm:$0xff] }
  0x75   : > { %555 = vmatmul.mubr.f32.gmra.mxu0 %v274_v22  ;;  %7659 = vmatprep.subr.mxu0 %v445_v23  ;;  %v271_v22 = vld [vmem:[%s8720_s26 + $0xc8] sm:$0xff] }
  0x76   : > { %599 = vmatprep.mubr.f32.mxu1 %v338_v24  ;;  %7582 = vmatpush3.msra.mxu1 %v396_v25  ;;  %v463_v23 = vld [vmem:[%s14191_s1 + $0x348] sm:$0xff]  ;;  %v276_v25 = vld [vmem:[%s8720_s26 + $0xf0] sm:$0xff] }
  0x77   : > { %7660 = vmatpush3.msra.mxu0 %v429_v26  ;;  %600 = vmatmul.mubr.f32.gmra.mxu1 %v337_v27  ;;  %v279_v24 = vld [vmem:[%s8720_s26 + $0x108] sm:$0xff]  ;;  %v462_v26 = vld [vmem:[%s14191_s1 + $0x340] sm:$0xff]  ;;  %v284_v27 = vld [vmem:[%s8720_s26 + $0x130] sm:$0xff] }
  0x78   : > { %7583 = vmatprep.subr.mxu1 %v411_v28  ;;  %7661 = vmatprep.subr.mxu0 %v444_v29  ;;  %v278_v28 = vld [vmem:[%s8720_s26 + $0x100] sm:$0xff]  ;;  %v461_v29 = vld [vmem:[%s14191_s1 + $0x338] sm:$0xff] }
  0x79   : > { %559 = vmatprep.mubr.f32.mxu0 %v282_v30  ;;  %7584 = vmatpush3.msra.mxu1 %v395_v31  ;;  %v286_v30 = vld [vmem:[%s8720_s26 + $0x140] sm:$0xff]  ;;  %v283_v31 = vld [vmem:[%s8720_s26 + $0x128] sm:$0xff] }
  0x7a   : > { %7662 = vmatpush3.msra.mxu0 %v428_v32  ;;  %7585 = vmatprep.subr.mxu1 %v410_v33  ;;  %v460_v32 = vld [vmem:[%s14191_s1 + $0x330] sm:$0xff]  ;;  %v291_v33 = vld [vmem:[%s8720_s26 + $0x168] sm:$0xff] }
  0x7b   : > { %560 = vmatmul.mubr.f32.gmra.mxu0 %v281_v34  ;;  %7663 = vmatprep.subr.mxu0 %v443_v35  ;;  %v285_v34 = vld [vmem:[%s8720_s26 + $0x138] sm:$0xff]  ;;  %v459_v35 = vld [vmem:[%s14191_s1 + $0x328] sm:$0xff] }
  0x7c   : > { %604 = vmatprep.mubr.f32.mxu1 %v345_v36  ;;  %7586 = vmatpush3.msra.mxu1 %v394_v37  ;;  %v293_v36 = vld [vmem:[%s8720_s26 + $0x178] sm:$0xff]  ;;  %v290_v37 = vld [vmem:[%s8720_s26 + $0x160] sm:$0xff] }
  0x7d   : > { %7664 = vmatpush3.msra.mxu0 %v427_v38  ;;  %605 = vmatmul.mubr.f32.gmra.mxu1 %v344_v39  ;;  %v458_v38 = vld [vmem:[%s14191_s1 + $0x320] sm:$0xff] }
  0x7e   : > { %7587 = vmatprep.subr.mxu1 %v409_v40  ;;  %7665 = vmatprep.subr.mxu0 %v442_v41  ;;  %v298_v39 = vld [vmem:[%s8720_s26 + $0x1a0] sm:$0xff]  ;;  %v292_v40 = vld [vmem:[%s8720_s26 + $0x170] sm:$0xff]  ;;  %v457_v41 = vld [vmem:[%s14191_s1 + $0x318] sm:$0xff] }
  0x7f   : > { %564 = vmatprep.mubr.f32.mxu0 %v289_v42  ;;  %7588 = vmatpush3.msra.mxu1 %v393_v43  ;;  %v300_v42 = vld [vmem:[%s8720_s26 + $0x1b0] sm:$0xff]  ;;  %v297_v43 = vld [vmem:[%s8720_s26 + $0x198] sm:$0xff] }
  0x80   : > { %7666 = vmatpush3.msra.mxu0 %v426_v44  ;;  %7589 = vmatprep.subr.mxu1 %v408_v45  ;;  %v456_v44 = vld [vmem:[%s14191_s1 + $0x310] sm:$0xff]  ;;  %v305_v45 = vld [vmem:[%s8720_s26 + $0x1d8] sm:$0xff] }
  0x81   : > { %565 = vmatmul.mubr.f32.gmra.mxu0 %v288_v46  ;;  %7667 = vmatprep.subr.mxu0 %v441_v47  ;;  %v299_v46 = vld [vmem:[%s8720_s26 + $0x1a8] sm:$0xff] }
  0x82   : > { %609 = vmatprep.mubr.f32.mxu1 %v352_v48  ;;  %7590 = vmatpush3.msra.mxu1 %v392_v49  ;;  %v455_v47 = vld [vmem:[%s14191_s1 + $0x308] sm:$0xff]  ;;  %v304_v49 = vld [vmem:[%s8720_s26 + $0x1d0] sm:$0xff] }
  0x83   : > { %7668 = vmatpush3.msra.mxu0 %v425_v50  ;;  %610 = vmatmul.mubr.f32.gmra.mxu1 %v351_v51  ;;  %v307_v48 = vld [vmem:[%s8720_s26 + $0x1e8] sm:$0xff]  ;;  %v454_v50 = vld [vmem:[%s14191_s1 + $0x300] sm:$0xff]  ;;  %v312_v51 = vld [vmem:[%s8720_s26 + $0x210] sm:$0xff] }
  0x84   : > { %7591 = vmatprep.subr.mxu1 %v407_v52  ;;  %7669 = vmatprep.subr.mxu0 %v440_v53  ;;  %v306_v52 = vld [vmem:[%s8720_s26 + $0x1e0] sm:$0xff] }
  0x85   : > { %569 = vmatprep.mubr.f32.mxu0 %v296_v54  ;;  %7592 = vmatpush3.msra.mxu1 %v391_v55  ;;  %v314_v53 = vld [vmem:[%s8720_s26 + $0x220] sm:$0xff]  ;;  %v311_v54 = vld [vmem:[%s8720_s26 + $0x208] sm:$0xff] }
  0x86   : > { %7670 = vmatpush3.msra.mxu0 %v424_v56  ;;  %7593 = vmatprep.subr.mxu1 %v406_v58  ;;  %v319_v55 = vld [vmem:[%s8720_s26 + $0x248] sm:$0xff]  ;;  %v313_v56 = vld [vmem:[%s8720_s26 + $0x218] sm:$0xff]  ;;  %v318_v58 = vld [vmem:[%s8720_s26 + $0x240] sm:$0xff] }
  0x87   : > { %570 = vmatmul.mubr.f32.gmra.mxu0 %v295_v57  ;;  %7671 = vmatprep.subr.mxu0 %v439_v59  ;;  %v321_v57 = vld [vmem:[%s8720_s26 + $0x258] sm:$0xff]  ;;  %v326_v59 = vld [vmem:[%s8720_s26 + $0x280] sm:$0xff] }
  0x88   : > { %7594 = vmatpush3.msra.mxu1 %v390_v60  ;;  %679 = vmatprep.mubr.f32.mxu1 %v249_v61  ;;  %v320_v60 = vld [vmem:[%s8720_s26 + $0x250] sm:$0xff] }
  0x89   : > { %7672 = vmatpush3.msra.mxu0 %v423_v62  ;;  %680 = vmatmul.mubr.f32.vlgmr.msra.gmra.mxu1 %v248_v63  ;;  %v328_v61 = vld [vmem:[%s8720_s26 + $0x290] sm:$0xff]  ;;  %v325_v62 = vld [vmem:[%s8720_s26 + $0x278] sm:$0xff] }
  0x8a   : > { %7673 = vmatprep.subr.mxu0 %v438_v0  ;;  %7835 = vmatprep.subr.mxu1 %v469_v1  ;;  %v333_v63 = vld [vmem:[%s8720_s26 + $0x2b8] sm:$0xff]  ;;  %v327_v0 = vld [vmem:[%s8720_s26 + $0x288] sm:$0xff] }
  0x8b   : > { %7674 = vmatpush3.msra.mxu0 %v422_v2  ;;  %824 = vmatprep.mubr.f32.mxu0 %v251_v3  ;;  %v332_v2 = vld [vmem:[%s8720_s26 + $0x2b0] sm:$0xff] }
  0x8c   : > { %7836 = vmatpush3.msra.mxu1 %v469_v1  ;;  %825 = vmatmul.mubr.f32.vlgmr.msra.gmra.mxu0 %v250_v4  ;;  %v335_v1 = vld [vmem:[%s8720_s26 + $0x2c8] sm:$0xff]  ;;  %v340_v3 = vld [vmem:[%s8720_s26 + $0x2f0] sm:$0xff]  ;;  %v334_v4 = vld [vmem:[%s8720_s26 + $0x2c0] sm:$0xff] }
  0x8d   : > { %684 = vmatprep.mubr.f32.mxu1 %v256_v5  ;;  %7837 = vmatprep.subr.mxu1 %v468_v6  ;;  %v342_v5 = vld [vmem:[%s8720_s26 + $0x300] sm:$0xff] }
  0x8e   : > { %685 = vmatmul.mubr.f32.gmra.mxu1 %v255_v7  ;;  %829 = vmatprep.mubr.f32.mxu0 %v258_v8  ;;  %v347_v7 = vld [vmem:[%s8720_s26 + $0x328] sm:$0xff]  ;;  %v341_v8 = vld [vmem:[%s8720_s26 + $0x2f8] sm:$0xff] }
  0x8f   : > { %7838 = vmatpush3.msra.mxu1 %v468_v6  ;;  %689 = vmatprep.mubr.f32.mxu1 %v263_v9  ;;  %v339_v6 = vld [vmem:[%s8720_s26 + $0x2e8] sm:$0xff]  ;;  %v349_v9 = vld [vmem:[%s8720_s26 + $0x338] sm:$0xff] }
  0x90   : > { %830 = vmatmul.mubr.f32.gmra.mxu0 %v257_v10  ;;  %7839 = vmatprep.subr.mxu1 %v467_v11  ;;  %v346_v10 = vld [vmem:[%s8720_s26 + $0x320] sm:$0xff] }
  0x91   : > { %834 = vmatprep.mubr.f32.mxu0 %v265_v12  ;;  %7840 = vmatpush3.msra.mxu1 %v467_v11  ;;  %v354_v11 = vld [vmem:[%s8720_s26 + $0x360] sm:$0xff]  ;;  %v348_v12 = vld [vmem:[%s8720_s26 + $0x330] sm:$0xff] }
  0x92   : > { %690 = vmatmul.mubr.f32.gmra.mxu1 %v262_v13  ;;  %7841 = vmatprep.subr.mxu1 %v466_v14  ;;  %v356_v13 = vld [vmem:[%s8720_s26 + $0x370] sm:$0xff] }
  0x93   : > { %694 = vmatprep.mubr.f32.mxu1 %v270_v15  ;;  %7842 = vmatpush3.msra.mxu1 %v466_v14  ;;  %v353_v14 = vld [vmem:[%s8720_s26 + $0x358] sm:$0xff]  ;;  %v252_v15 = vld [vmem:[%s8720_s26 + $0x30] sm:$0xff] }
  0x94   : > { %835 = vmatmul.mubr.f32.gmra.mxu0 %v264_v16  ;;  %7843 = vmatprep.subr.mxu1 %v465_v17  ;;  %v355_v16 = vld [vmem:[%s8720_s26 + $0x368] sm:$0xff] }
  0x95   : > { %839 = vmatprep.mubr.f32.mxu0 %v272_v18  ;;  %7844 = vmatpush3.msra.mxu1 %v465_v17  ;;  %v259_v17 = vld [vmem:[%s8720_s26 + $0x68] sm:$0xff]  ;;  %v266_v18 = vld [vmem:[%s8720_s26 + $0xa0] sm:$0xff] }
  0x96   : > { %695 = vmatmul.mubr.f32.gmra.mxu1 %v269_v19  ;;  %7845 = vmatprep.subr.mxu1 %v464_v20  ;;  %v273_v19 = vld [vmem:[%s8720_s26 + $0xd8] sm:$0xff] }
  0x97   : > { %699 = vmatprep.mubr.f32.mxu1 %v277_v21  ;;  %7846 = vmatpush3.msra.mxu1 %v464_v20  ;;  %v280_v20 = vld [vmem:[%s8720_s26 + $0x110] sm:$0xff]  ;;  %v287_v21 = vld [vmem:[%s8720_s26 + $0x148] sm:$0xff] }
  0x98   : > { %840 = vmatmul.mubr.f32.gmra.mxu0 %v271_v22  ;;  %7847 = vmatprep.subr.mxu1 %v463_v23  ;;  %v294_v22 = vld [vmem:[%s8720_s26 + $0x180] sm:$0xff] }
  0x99   : > { %844 = vmatprep.mubr.f32.mxu0 %v279_v24  ;;  %7848 = vmatpush3.msra.mxu1 %v463_v23  ;;  %v301_v23 = vld [vmem:[%s8720_s26 + $0x1b8] sm:$0xff]  ;;  %v308_v24 = vld [vmem:[%s8720_s26 + $0x1f0] sm:$0xff] }
  0x9a   : > { %700 = vmatmul.mubr.f32.gmra.mxu1 %v276_v25  ;;  %7849 = vmatprep.subr.mxu1 %v462_v26  ;;  %v315_v25 = vld [vmem:[%s8720_s26 + $0x228] sm:$0xff] }
  0x9b   : > { %704 = vmatprep.mubr.f32.mxu1 %v284_v27  ;;  %7850 = vmatpush3.msra.mxu1 %v462_v26  ;;  %v322_v26 = vld [vmem:[%s8720_s26 + $0x260] sm:$0xff]  ;;  %v329_v27 = vld [vmem:[%s8720_s26 + $0x298] sm:$0xff] }
  0x9c   : > { %845 = vmatmul.mubr.f32.gmra.mxu0 %v278_v28  ;;  %7851 = vmatprep.subr.mxu1 %v461_v29  ;;  %v336_v28 = vld [vmem:[%s8720_s26 + $0x2d0] sm:$0xff] }
  0x9d   : > { %849 = vmatprep.mubr.f32.mxu0 %v286_v30  ;;  %7852 = vmatpush3.msra.mxu1 %v461_v29  ;;  %v343_v29 = vld [vmem:[%s8720_s26 + $0x308] sm:$0xff]  ;;  %v350_v30 = vld [vmem:[%s8720_s26 + $0x340] sm:$0xff] }
  0x9e   : > { %705 = vmatmul.mubr.f32.gmra.mxu1 %v283_v31  ;;  %7853 = vmatprep.subr.mxu1 %v460_v32  ;;  %v357_v31 = vld [vmem:[%s8720_s26 + $0x378] sm:$0xff]  ;;  %s14107_s26 = scalar_lea.vmem [#allocation5], %s7267_s25 }
  0x9f   : > { %709 = vmatprep.mubr.f32.mxu1 %v291_v33  ;;  %7854 = vmatpush3.msra.mxu1 %v460_v32  ;;  %s7187_s12 = sshll.u32 %s14107_s26, 4  ;;  %s14145_s12 = int_to_ptr.vmem [resolvable:$true] %s7187_s12 }
  0xa0   : > { %850 = vmatmul.mubr.f32.gmra.mxu0 %v285_v34  ;;  %7855 = vmatprep.subr.mxu1 %v459_v35  ;;  %s8509_s8 = scalar_lea.vmem %s14145_s12, 2048  ;;  %p8516_p5 = scmp.lt.s32.totalorder %s14145_s12, %s8514_s9 }
  0xa1   : > { %854 = vmatprep.mubr.f32.mxu0 %v293_v36  ;;  %7856 = vmatpush3.msra.mxu1 %v459_v35  ;;  %p8510_p11 = scmp.ne.s32.totalorder %s14145_s12, %s8509_s8  ;;  %p8517_p7 = scmp.lt.s32.totalorder %s8515_s28, %s8509_s8 }
  0xa2   : > { %710 = vmatmul.mubr.f32.gmra.mxu1 %v290_v37  ;;  %7857 = vmatprep.subr.mxu1 %v458_v38 }
  0xa3   : > { %714 = vmatprep.mubr.f32.mxu1 %v298_v39  ;;  %7858 = vmatpush3.msra.mxu1 %v458_v38  ;;  %p8511_p13 = pnand %p8510_p11, %p15111_p12  ;;  %p8518_p8 = por %p8517_p7, %p8516_p5 }
  0xa4   : > { %855 = vmatmul.mubr.f32.gmra.mxu0 %v292_v40  ;;  %7859 = vmatprep.subr.mxu1 %v457_v41 }
  0xa5   : > { %859 = vmatprep.mubr.f32.mxu0 %v300_v42  ;;  %7860 = vmatpush3.msra.mxu1 %v457_v41  ;;  %p8512_p4 = pneg %p8511_p13 }
  0xa6   : > { %715 = vmatmul.mubr.f32.gmra.mxu1 %v297_v43  ;;  %7861 = vmatprep.subr.mxu1 %v456_v44 }
  0xa7   : > { %719 = vmatprep.mubr.f32.mxu1 %v305_v45  ;;  %7862 = vmatpush3.msra.mxu1 %v456_v44  ;;  %p8519_p10 = pnand %p8518_p8, %p8512_p4 }
  0xa8   : > { %860 = vmatmul.mubr.f32.gmra.mxu0 %v299_v46  ;;  %7863 = vmatprep.subr.mxu1 %v455_v47 }
  0xa9   : > { %864 = vmatprep.mubr.f32.mxu0 %v307_v48  ;;  %7864 = vmatpush3.msra.mxu1 %v455_v47 }
  0xaa   : > { %720 = vmatmul.mubr.f32.gmra.mxu1 %v304_v49  ;;  %7865 = vmatprep.subr.mxu1 %v454_v50 }
  0xab   : > { %724 = vmatprep.mubr.f32.mxu1 %v312_v51  ;;  %7866 = vmatpush3.msra.mxu1 %v454_v50 }
  0xac   : > { %865 = vmatmul.mubr.f32.gmra.mxu0 %v306_v52 }
  0xad   : > { %869 = vmatprep.mubr.f32.mxu0 %v314_v53 }
  0xae   : > { %725 = vmatmul.mubr.f32.gmra.mxu1 %v311_v54 }
  0xaf   : > { %729 = vmatprep.mubr.f32.mxu1 %v319_v55 }
  0xb0   : > { %870 = vmatmul.mubr.f32.gmra.mxu0 %v313_v56 }
  0xb1   : > { %874 = vmatprep.mubr.f32.mxu0 %v321_v57 }
  0xb2   : > { %730 = vmatmul.mubr.f32.gmra.mxu1 %v318_v58 }
  0xb3   : > { %734 = vmatprep.mubr.f32.mxu1 %v326_v59 }
  0xb4   : > { %875 = vmatmul.mubr.f32.gmra.mxu0 %v320_v60 }
  0xb5   : > { %879 = vmatprep.mubr.f32.mxu0 %v328_v61 }
  0xb6   : > { %735 = vmatmul.mubr.f32.gmra.mxu1 %v325_v62 }
  0xb7   : > { %739 = vmatprep.mubr.f32.mxu1 %v333_v63 }
  0xb8   : > { %880 = vmatmul.mubr.f32.gmra.mxu0 %v327_v0 }
  0xb9   : > { %884 = vmatprep.mubr.f32.mxu0 %v335_v1 }
  0xba   : > { %740 = vmatmul.mubr.f32.gmra.mxu1 %v332_v2 }
  0xbb   : > { %744 = vmatprep.mubr.f32.mxu1 %v340_v3 }
  0xbc   : > { %885 = vmatmul.mubr.f32.gmra.mxu0 %v334_v4 }
  0xbd   : > { %889 = vmatprep.mubr.f32.mxu0 %v342_v5 }
  0xbe   : > { %745 = vmatmul.mubr.f32.gmra.mxu1 %v339_v6 }
  0xbf   : > { %749 = vmatprep.mubr.f32.mxu1 %v347_v7 }
  0xc0   : > { %890 = vmatmul.mubr.f32.gmra.mxu0 %v341_v8 }
  0xc1   : > { %894 = vmatprep.mubr.f32.mxu0 %v349_v9 }
  0xc2   : > { %750 = vmatmul.mubr.f32.gmra.mxu1 %v346_v10 }
  0xc3   : > { %754 = vmatprep.mubr.f32.mxu1 %v354_v11 }
  0xc4   : > { %895 = vmatmul.mubr.f32.gmra.mxu0 %v348_v12 }
  0xc5   : > { %899 = vmatprep.mubr.f32.mxu0 %v356_v13 }
  0xc6   : > { %755 = vmatmul.mubr.f32.gmra.mxu1 %v353_v14 }
  0xc7   : > { %7867 = vmatprep.mubr.f32.mxu1 %v252_v15 }
  0xc8   : > { %900 = vmatmul.mubr.f32.gmra.mxu0 %v355_v16 }
  0xca   : > { %7868 = vmatmul.mubr.f32.vlgmr.msra.gmra.mxu1 %v259_v17 }
  0xcb   : > { %7870 = vmatprep.mubr.f32.mxu1 %v266_v18 }
  0xce   : > { %7871 = vmatmul.mubr.f32.gmra.mxu1 %v273_v19 }
  0xcf   : > { %7873 = vmatprep.mubr.f32.mxu1 %v280_v20 }
  0xd2   : > { %7874 = vmatmul.mubr.f32.gmra.mxu1 %v287_v21 }
  0xd3   : > { %7876 = vmatprep.mubr.f32.mxu1 %v294_v22 }
  0xd6   : > { %7877 = vmatmul.mubr.f32.gmra.mxu1 %v301_v23 }
  0xd7   : > { %7879 = vmatprep.mubr.f32.mxu1 %v308_v24 }
  0xda   : > { %7880 = vmatmul.mubr.f32.gmra.mxu1 %v315_v25 }
  0xdb   : > { %7882 = vmatprep.mubr.f32.mxu1 %v322_v26 }
  0xde   : > { %7883 = vmatmul.mubr.f32.gmra.mxu1 %v329_v27 }
  0xdf   : > { %7885 = vmatprep.mubr.f32.mxu1 %v336_v28 }
  0xe2   : > { %7886 = vmatmul.mubr.f32.gmra.mxu1 %v343_v29 }
  0xe3   : > { %7888 = vmatprep.mubr.f32.mxu1 %v350_v30 }
  0xe6   : > { %7889 = vmatmul.mubr.f32.gmra.mxu1 %v357_v31 }
 0x11a   : > { %v7539_v32 = vpop.f32.mrf.mxu1 }
 0x11c   : > { %v7515_v33 = vpop.f32.mrf.mxu0  ;;  %v7540_v34 = vpop.f32.mrf.mxu1 }
 0x11d   : > { %v9174_v35 = vadd.f32 %v7540_v34, %v7539_v32 }
 0x11e   : > { %v7516_v36 = vpop.f32.mrf.mxu0 }
 0x11f   : > { %v7517_v37 = vadd.f32 %v7516_v36, %v7515_v33  ;;  %v7542_v38 = vpop.f32.mrf.mxu1 }
 0x121   : > { %v7543_v39 = vpop.f32.mrf.mxu1 }
 0x122   : > { %v9176_v40 = vadd.f32 %v7543_v39, %v7542_v38 }
 0x123   : > { %v9178_v41 = vpop.f32.mrf.mxu0 }
 0x125   : > { %v9180_v42 = vpop.f32.mrf.mxu0  ;;  %v7545_v43 = vpop.f32.mrf.mxu1 }
 0x127   : > { %v7546_v44 = vpop.f32.mrf.mxu1 }
 0x128   : > { %v9182_v45 = vadd.f32 %v7546_v44, %v7545_v43 }
 0x129   : > { %v7521_v46 = vpop.f32.mrf.mxu0 }
 0x12b   : > { %v7522_v47 = vpop.f32.mrf.mxu0  ;;  %v7548_v48 = vpop.f32.mrf.mxu1 }
 0x12c   : > { %v7523_v49 = vadd.f32 %v7522_v47, %v7521_v46 }
 0x12d   : > { %v7549_v50 = vpop.f32.mrf.mxu1 }
 0x12e   : > { %v9184_v51 = vadd.f32 %v7549_v50, %v7548_v48 }
 0x12f   : > { %v7524_v52 = vpop.f32.mrf.mxu0 }
 0x131   : > { %v7525_v53 = vpop.f32.mrf.mxu0  ;;  %v7551_v54 = vpop.f32.mrf.mxu1 }
 0x132   : > { %v7526_v55 = vadd.f32 %v7525_v53, %v7524_v52 }
 0x133   : > { %v7552_v56 = vpop.f32.mrf.mxu1 }
 0x134   : > { %v9186_v57 = vadd.f32 %v7552_v56, %v7551_v54 }
 0x135   : > { %v7527_v58 = vpop.f32.mrf.mxu0 }
 0x137   : > { %v7528_v59 = vpop.f32.mrf.mxu0  ;;  %v7554_v60 = vpop.f32.mrf.mxu1 }
 0x138   : > { %v7529_v61 = vadd.f32 %v7528_v59, %v7527_v58 }
 0x139   : > { %v7555_v62 = vpop.f32.mrf.mxu1 }
 0x13a   : > { %v9188_v63 = vadd.f32 %v7555_v62, %v7554_v60 }
 0x13b   : > { %v7530_v0 = vpop.f32.mrf.mxu0 }
 0x13d   : > { %v7531_v1 = vpop.f32.mrf.mxu0  ;;  %v7557_v2 = vpop.f32.mrf.mxu1 }
 0x13e   : > { %v7532_v3 = vadd.f32 %v7531_v1, %v7530_v0 }
 0x13f   : > { %v7558_v4 = vpop.f32.mrf.mxu1 }
 0x140   : > { %v9190_v5 = vadd.f32 %v7558_v4, %v7557_v2 }
 0x141   : > { %v7533_v6 = vpop.f32.mrf.mxu0 }
 0x143   : > { %v7534_v7 = vpop.f32.mrf.mxu0  ;;  %v7560_v8 = vpop.f32.mrf.mxu1 }
 0x144   : > { %v7535_v9 = vadd.f32 %v7534_v7, %v7533_v6 }
 0x145   : > { %v7561_v10 = vpop.f32.mrf.mxu1 }
 0x146   : > { %v9192_v11 = vadd.f32 %v7561_v10, %v7560_v8 }
 0x147   : > { %v7536_v12 = vpop.f32.mrf.mxu0 }
 0x149   : > { %v7537_v13 = vpop.f32.mrf.mxu0  ;;  %v7595_v14 = vpop.f32.mrf.mxu1 }
 0x14a   : > { %v7538_v15 = vadd.f32 %v7537_v13, %v7536_v12 }
 0x14b   : > { %v7596_v16 = vpop.f32.mrf.mxu1 }
 0x14c   : > { %v7597_v17 = vadd.f32 %v7596_v16, %v7595_v14  ;;  %v7675_v18 = vpop.f32.mrf.mxu0 }
 0x14e   : > { %v682_v19 = vadd.f32 %v7597_v17, %v7517_v37  ;;  %v9194_v20 = vpop.f32.mrf.mxu1  ;;  %v7676_v21 = vpop.f32.mrf.mxu0 }
 0x14f   : > { %v7677_v22 = vadd.f32 %v7676_v21, %v7675_v18 }
 0x150   : > { %v7599_v23 = vpop.f32.mrf.mxu1 }
 0x151   : > { %v9196_v24 = vadd.f32 %v7677_v22, %v682_v19 }
 0x152   : > { %v7601_v25 = vpop.f32.mrf.mxu1 }
 0x154   : > { %v7602_v26 = vpop.f32.mrf.mxu1 }
 0x155   : > { %v7603_v27 = vadd.f32 %v7602_v26, %v7601_v25  ;;  %v7678_v26 = vpop.f32.mrf.mxu0 }
 0x156   : > { %v7604_v28 = vpop.f32.mrf.mxu1 }
 0x157   : > { %v9198_v29 = vadd.f32 %v7603_v27, %v7523_v49  ;;  %v7600_v27 = vadd.f32 %v7599_v23, %v9194_v20 }
 0x158   : > { %v7605_v30 = vpop.f32.mrf.mxu1 }
 0x159   : > { %v7606_v31 = vadd.f32 %v7605_v30, %v7604_v28  ;;  %v7679_v28 = vpop.f32.mrf.mxu0 }
 0x15a   : > { %v7607_v32 = vpop.f32.mrf.mxu1  ;;  %v7680_v30 = vadd.f32 %v7679_v28, %v7678_v26  ;;  %v14202_v26 = vmov 1326507024  }
 0x15b   : > { %v9200_v33 = vadd.f32 %v7606_v31, %v7526_v55 }
 0x15c   : > { %v7608_v34 = vpop.f32.mrf.mxu1 }
 0x15d   : > { %v7609_v36 = vadd.f32 %v7608_v34, %v7607_v32 }
 0x15e   : > { %v7610_v37 = vpop.f32.mrf.mxu1 }
 0x15f   : > { %v9202_v38 = vadd.f32 %v7609_v36, %v7529_v61 }
 0x160   : > { %v7611_v39 = vpop.f32.mrf.mxu1 }
 0x161   : > { %v7612_v43 = vadd.f32 %v7611_v39, %v7610_v37 }
 0x162   : > { %v7613_v44 = vpop.f32.mrf.mxu1 }
 0x163   : > { %v9204_v46 = vadd.f32 %v7612_v43, %v7532_v3 }
 0x164   : > { %v7614_v47 = vpop.f32.mrf.mxu1 }
 0x165   : > { %v7615_v48 = vadd.f32 %v7614_v47, %v7613_v44  ;;  %v7681_v44 = vpop.f32.mrf.mxu0 }
 0x166   : > { %v7616_v50 = vpop.f32.mrf.mxu1 }
 0x167   : > { %v9206_v49 = vadd.f32 %v7615_v48, %v7535_v9 }
 0x168   : > { %v7617_v52 = vpop.f32.mrf.mxu1 }
 0x169   : > { %v7618_v53 = vadd.f32 %v7617_v52, %v7616_v50 }
 0x16a   : > { %v7619_v54 = vpop.f32.mrf.mxu1 }
 0x16b   : > { %v9208_v55 = vadd.f32 %v7618_v53, %v7538_v15 }
 0x16c   : > { %v7620_v56 = vpop.f32.mrf.mxu1 }
 0x16d   : > { %v7621_v58 = vadd.f32 %v7620_v56, %v7619_v54 }
 0x16e   : > { %v7622_v59 = vpop.f32.mrf.mxu1 }
 0x16f   : > { %v9211_v60 = vadd.f32 %v7621_v58, %v9174_v35 }
 0x170   : > { %v7623_v61 = vpop.f32.mrf.mxu1 }
 0x171   : > { %v7624_v62 = vadd.f32 %v7623_v61, %v7622_v59 }
 0x172   : > { %v7625_v0 = vpop.f32.mrf.mxu1 }
 0x173   : > { %v9214_v1 = vadd.f32 %v7624_v62, %v9176_v40 }
 0x174   : > { %v7626_v2 = vpop.f32.mrf.mxu1 }
 0x175   : > { %v7627_v3 = vadd.f32 %v7626_v2, %v7625_v0 }
 0x176   : > { %v7628_v4 = vpop.f32.mrf.mxu1 }
 0x177   : > { %v9217_v6 = vadd.f32 %v7627_v3, %v9182_v45 }
 0x178   : > { %v7629_v7 = vpop.f32.mrf.mxu1 }
 0x179   : > { %14521 = vst [vmem:[#allocation8_spill] sm:$0xff] %v9217_v6  ;;  %v7630_v8 = vadd.f32 %v7629_v7, %v7628_v4 }
 0x17a   : > { %v7631_v9 = vpop.f32.mrf.mxu1 }
 0x17b   : > { %v9220_v10 = vadd.f32 %v7630_v8, %v9184_v51 }
 0x17c   : > { %v7632_v35 = vpop.f32.mrf.mxu1 }
 0x17d   : > { %v7633_v12 = vadd.f32 %v7632_v35, %v7631_v9 }
 0x17e   : > { %v7634_v13 = vpop.f32.mrf.mxu1 }
 0x17f   : > { %v9223_v14 = vadd.f32 %v7633_v12, %v9186_v57  ;;  %v7520_v57 = vadd.f32 %v9180_v42, %v9178_v41  ;;  %v7682_v41 = vpop.f32.mrf.mxu0 }
 0x180   : > { %v7635_v40 = vpop.f32.mrf.mxu1  ;;  %v7683_v62 = vadd.f32 %v7682_v41, %v7681_v44  ;;  %v14212_v44 = vmov 683565275  }
 0x181   : > { %14522 = vst [vmem:[#allocation9_spill] sm:$0xff] %v9223_v14  ;;  %v7636_v15 = vadd.f32 %v7635_v40, %v7634_v13  ;;  %v7684_v42 = vpop.f32.mrf.mxu0 }
 0x182   : > { %v7637_v16 = vpop.f32.mrf.mxu1  ;;  %v837_v4 = vadd.f32 %v7683_v62, %v9198_v29 }
 0x183   : > { %v9226_v17 = vadd.f32 %v7636_v15, %v9188_v63  ;;  %v687_v63 = vadd.f32 %v7600_v27, %v7520_v57  ;;  %v7685_v20 = vpop.f32.mrf.mxu0 }
 0x184   : > { %v7638_v45 = vpop.f32.mrf.mxu1  ;;  %v7686_v47 = vadd.f32 %v7685_v20, %v7684_v42 }
 0x185   : > { %14523 = vst [vmem:[#allocation10_spill] sm:$0xff] %v9226_v17  ;;  %v7639_v18 = vadd.f32 %v7638_v45, %v7637_v16  ;;  %v832_v32 = vadd.f32 %v7680_v30, %v687_v63  ;;  %v7687_v13 = vpop.f32.mrf.mxu0  ;;  %v14204_v63 = vmov 2102212464  }
 0x186   : > { %v7640_v19 = vpop.f32.mrf.mxu1  ;;  %v842_v54 = vadd.f32 %v7686_v47, %v9200_v33 }
 0x187   : > { %v9229_v21 = vadd.f32 %v7639_v18, %v9190_v5  ;;  %v7688_v45 = vpop.f32.mrf.mxu0 }
 0x188   : > { %v7641_v51 = vpop.f32.mrf.mxu1 }
 0x189   : > { %14524 = vst [vmem:[#allocation11_spill] sm:$0xff] %v9229_v21  ;;  %v7642_v22 = vadd.f32 %v7641_v51, %v7640_v19  ;;  %v7690_v29 = vpop.f32.mrf.mxu0  ;;  %v14210_v51 = vmov 920167782  }
 0x18a   : > { %v7869_v31 = vpop.f32.mrf.mxu1 }
 0x18b   : > { %v9232_v25 = vadd.f32 %v7642_v22, %v9192_v11  ;;  %v977_v34 = vadd.f32 %v7869_v31, %v832_v32  ;;  %v7691_v32 = vpop.f32.mrf.mxu0 }
 0x18c   : > { %v971_v5 = vpop.f32.mrf.mxu1  ;;  %v7692_v47 = vadd.f32 %v7691_v32, %v7690_v29  ;;  %v7689_v29 = vadd.f32 %v7688_v45, %v7687_v13 }
 0x18d   : > { %14525 = vst [vmem:[#allocation12_spill] sm:$0xff] %v9232_v25  ;;  %v7269_v36 = vmul.f32 -1.442695, %v977_v34  ;;  %v972_v37 = vadd.f32 %v971_v5, %v9196_v24  ;;  %v14206_v34 = vmov 2475754826  }
 0x18e   : > { %v7872_v50 = vpop.f32.mrf.mxu1  ;;  %v14208_v5 = vmov 2131351028   ;;  %v847_v45 = vadd.f32 %v7689_v29, %v9202_v38 }
 0x18f   : > { %8289 = vpow2.f32 %v7269_v36  ;;  %v7268_v11 = vmul.f32 -1.442695, %v972_v37  ;;  %v987_v56 = vadd.f32 %v7872_v50, %v842_v54 }
 0x190   : > { %v981_v3 = vpop.f32.mrf.mxu1 }
 0x191   : > { %8291 = vpow2.f32 %v7268_v11  ;;  %v7271_v58 = vmul.f32 -1.442695, %v987_v56  ;;  %v982_v8 = vadd.f32 %v981_v3, %v837_v4 }
 0x193   : > { %v7270_v12 = vmul.f32 -1.442695, %v982_v8 }
 0x19c   : > { %v8290_v39 = vpop.eup %8289 }
 0x19d   : > { %v1099_v43 = vadd.f32 1.0, %v8290_v39 }
 0x19e   : > { %v8292_v23 = vpop.eup %8291 }
 0x19f   : > { %8293 = vrcp.f32 %v1099_v43  ;;  %v1098_v53 = vadd.f32 1.0, %v8292_v23 }
 0x1a1   : > { %8295 = vrcp.f32 %v1098_v53 }
 0x1a2   : > { %8297 = vpow2.f32 %v7271_v58 }
 0x1a3   : > { %8299 = vpow2.f32 %v7270_v12 }
 0x1ac   : > { %v8294_v48 = vpop.eup %8293 }
 0x1ad   : > { %v9238_v52 = vmul.f32 0.7853982, %v8294_v48 }
 0x1ae   : > { %v8296_v2 = vpop.eup %8295 }
 0x1af   : > { %14526 = vst [vmem:[#allocation13_spill] sm:$0xff] %v9238_v52  ;;  %v1268_v24 = vand.u32 2139095040, %v9238_v52  ;;  %v9243_v7 = vmul.f32 0.7853982, %v8296_v2  ;;  %v8298_v9 = vpop.eup %8297  ;;  %v14201_v27 = vand.u32 2147483647, %v9238_v52  ;;  %v7875_v2 = vpop.f32.mrf.mxu1 }
 0x1b0   : > { %v1101_v15 = vadd.f32 1.0, %v8298_v9  ;;  %v8300_v50 = vpop.eup %8299  ;;  %v852_v9 = vadd.f32 %v7692_v47, %v9204_v46 }
 0x1b1   : > { %v1269_v59 = vshrl.u32 %v1268_v24, 23  ;;  %v1165_v35 = vand.u32 2139095040, %v9243_v7  ;;  %v1272_v48 = vand.u32 8388607, %v14201_v27  ;;  %v14200_v47 = vand.u32 2147483647, %v9243_v7 }
 0x1b2   : > { %8301 = vrcp.f32 %v1101_v15 }
 0x1b3   : > { %v7288_v61 = vadd.s32 4294967169, %v1269_v59  ;;  %v1166_v16 = vshrl.u32 %v1165_v35, 23  ;;  %v9271_v59 = vpop.f32.mrf.mxu0  ;;  %v1273_v3 = vor.u32 8388608, %v1272_v48 }
 0x1b5   : > { %v1275_v0 = vadd.s32 1, %v7288_v61  ;;  %v7284_v19 = vadd.s32 4294967169, %v1166_v16  ;;  %v9288_v15 = vpop.f32.mrf.mxu0  ;;  %v997_v16 = vadd.f32 %v7875_v2, %v852_v9 }
 0x1b7   : > { %vm1276_vm0 = vcmp.gt.s32.totalorder %v1275_v0, 0  ;;  %v1172_v31 = vadd.s32 1, %v7284_v19 }
 0x1b8   : > { %v1277_v33 = vsel %vm1276_vm0, %v1275_v0, 0  ;;  %v1100_v0 = vadd.f32 1.0, %v8300_v50 }
 0x1b9   : > { %v1279_v40 = vand.u32 31, %v1277_v33  ;;  %v9253_v28 = vshrl.u32 %v1277_v33, 5  ;;  %vm1173_vm1 = vcmp.gt.s32.totalorder %v1172_v31, 0 }
 0x1ba   : > { %v1174_v62 = vsel %vm1173_vm1, %v1172_v31, 0  ;;  %8303 = vrcp.f32 %v1100_v0  ;;  %v7696_v31 = vpop.f32.mrf.mxu0 }
 0x1bb   : > { %v9246_v18 = vsub.s32 32, %v1279_v40  ;;  %v1291_v30 = vshll.u32 %v14204_v63, %v1279_v40  ;;  %v1294_v11 = vshll.u32 %v14210_v51, %v1279_v40  ;;  %v1282_v41 = vshll.u32 %v14212_v44, %v1279_v40 }
 0x1bc   : > { %v1285_v42 = vshll.u32 %v14206_v34, %v1279_v40  ;;  %v1288_v20 = vshll.u32 %v14208_v5, %v1279_v40  ;;  %vm1300_vm2 = vcmp.lt.s32.totalorder %v9253_v28, 4  ;;  %vm1297_vm3 = vcmp.lt.s32.totalorder %v9253_v28, 1 }
 0x1bd   : > { %v1292_v22 = vshrl.u32 %v14210_v51, %v9246_v18  ;;  %v1295_v57 = vshrl.u32 %v14202_v26, %v9246_v18  ;;  %v1283_v36 = vshrl.u32 %v14206_v34, %v9246_v18  ;;  %v1286_v37 = vshrl.u32 %v14208_v5, %v9246_v18 }
 0x1be   : > { %v1289_v39 = vshrl.u32 %v14204_v63, %v9246_v18  ;;  %vm1299_vm4 = vcmp.lt.s32.totalorder %v9253_v28, 3  ;;  %v1176_v12 = vand.u32 31, %v1174_v62  ;;  %vm1298_vm5 = vcmp.lt.s32.totalorder %v9253_v28, 2 }
 0x1bf   : > { %v1293_v43 = vor.u32 %v1292_v22, %v1291_v30  ;;  %v1296_v23 = vor.u32 %v1295_v57, %v1294_v11  ;;  %v1284_v53 = vor.u32 %v1283_v36, %v1282_v41  ;;  %v1287_v54 = vor.u32 %v1286_v37, %v1285_v42  ;;  %v8302_v58 = vpop.eup %8301 }
 0x1c0   : > { %v1290_v56 = vor.u32 %v1289_v39, %v1288_v20  ;;  %v9286_v40 = vmul.f32 0.7853982, %v8302_v58  ;;  %v1313_v22 = vshll.u32 %v1273_v3, 8  ;;  %v9295_v57 = vsub.s32 32, %v1176_v12 }
 0x1c1   : > { %v1306_v24 = vsel %vm1300_vm2, %v1293_v43, 920167782  ;;  %v1310_v61 = vsel %vm1300_vm2, %v1296_v23, 1326507024  ;;  %v1305_v4 = vsel %vm1297_vm3, %v1284_v53, %v1287_v54  ;;  %v7273_v37 = vmul.f32 -1.442695, %v997_v16  ;;  %v7697_v23 = vpop.f32.mrf.mxu0 }
 0x1c2   : > { %v1307_v8 = vsel %vm1299_vm4, %v1290_v56, %v1306_v24  ;;  %v1309_v33 = vsel %vm1297_vm3, %v1287_v54, %v1290_v56  ;;  %v1311_v35 = vsel %vm1299_vm4, %v1293_v43, %v1310_v61  ;;  %14527 = vst [vmem:[#allocation14_spill] sm:$0xff] %v9286_v40  ;;  %v1474_v30 = vand.u32 2139095040, %v9286_v40  ;;  %v991_v43 = vpop.f32.mrf.mxu1 }
 0x1c3   : > { %v1308_v19 = vsel %vm1298_vm5, %v1305_v4, %v1307_v8  ;;  %v1312_v46 = vsel %vm1298_vm5, %v1309_v33, %v1311_v35  ;;  %v1302_v13 = vsel %vm1300_vm2, %v1290_v56, 2102212464  ;;  %v1281_v41 = vshrl.u32 %v14212_v44, %v9246_v18 }
 0x1c4   : > { %v9298_v32 = vmul.u32.u64.low %v1313_v22, %v1308_v19  ;;  %v9299_v36 = vmul.u32.u64.high %v1313_v22, %v1308_v19, %v9298_v32  ;;  %v9302_v39 = vmul.u32.u64.low %v1313_v22, %v1312_v46  ;;  %v9303_v11 = vmul.u32.u64.high %v1313_v22, %v1312_v46, %v9302_v39 }
 0x1c5   : > { %v1189_v42 = vshrl.u32 %v14210_v51, %v9295_v57  ;;  %v1475_v20 = vshrl.u32 %v1474_v30, 23  ;;  %v1192_v48 = vshrl.u32 %v14202_v26, %v9295_v57  ;;  %8305 = vpow2.f32 %v7273_v37 }
 0x1c6   : > { %v992_v50 = vadd.f32 %v991_v43, %v847_v45  ;;  %v1301_v56 = vsel %vm1297_vm3, %v1281_v41, %v1284_v53  ;;  %v1303_v38 = vsel %vm1299_vm4, %v1287_v54, %v1302_v13  ;;  %v9319_v24 = vshrl.u32 %v1174_v62, 5  ;;  %v7878_v41 = vpop.f32.mrf.mxu1 }
 0x1c7   : > { %v1188_v18 = vshll.u32 %v14204_v63, %v1176_v12  ;;  %v1180_v58 = vshrl.u32 %v14206_v34, %v9295_v57  ;;  %v1183_v61 = vshrl.u32 %v14208_v5, %v9295_v57  ;;  %v1186_v0 = vshrl.u32 %v14204_v63, %v9295_v57  ;;  %v8304_v29 = vpop.eup %8303 }
 0x1c8   : > { %v1191_v2 = vshll.u32 %v14210_v51, %v1176_v12  ;;  %v7698_v3 = vadd.f32 %v7697_v23, %v7696_v31  ;;  %v1179_v53 = vshll.u32 %v14212_v44, %v1176_v12  ;;  %v7296_v54 = vadd.s32 4294967169, %v1475_v20  ;;  %v9354_v23 = vpop.f32.mrf.mxu0 }
 0x1c9   : > { %v1190_v4 = vor.u32 %v1189_v42, %v1188_v18  ;;  %v1323_v62 = vadd.s32 1, %v9299_v36  ;;  %v1182_v8 = vshll.u32 %v14206_v34, %v1176_v12  ;;  %v1185_v9 = vshll.u32 %v14208_v5, %v1176_v12 }
 0x1ca   : > { %v1193_v33 = vor.u32 %v1192_v48, %v1191_v2  ;;  %v1304_v35 = vsel %vm1298_vm5, %v1301_v56, %v1303_v38  ;;  %vm1322_vm6 = vc.u32 %v9303_v11, %v9298_v32  ;;  %v1169_v16 = vand.u32 8388607, %v14200_v47 }
 0x1cb   : > { %v7272_v19 = vmul.f32 -1.442695, %v992_v50  ;;  %v1181_v46 = vor.u32 %v1180_v58, %v1179_v53  ;;  %v1184_v30 = vor.u32 %v1183_v61, %v1182_v8  ;;  %v1187_v31 = vor.u32 %v1186_v0, %v1185_v9  ;;  %v9366_v0 = vpop.f32.mrf.mxu0 }
 0x1cc   : > { %vm1197_vm7 = vcmp.lt.s32.totalorder %v9319_v24, 4  ;;  %v1324_v37 = vsel %vm1322_vm6, %v1323_v62, %v9299_v36  ;;  %v1481_v39 = vadd.s32 1, %v7296_v54  ;;  %v862_v43 = vadd.f32 %v7698_v3, %v9208_v55 }
 0x1cd   : > { %v1203_v12 = vsel %vm1197_vm7, %v1190_v4, 920167782  ;;  %v1207_v28 = vsel %vm1197_vm7, %v1193_v33, 1326507024  ;;  %v1320_v13 = vmul.u32 %v1313_v22, %v1304_v35  ;;  %vm1194_vm8 = vcmp.lt.s32.totalorder %v9319_v24, 1 }
 0x1ce   : > { %vm1196_vm9 = vcmp.lt.s32.totalorder %v9319_v24, 3  ;;  %v9348_v45 = vmul.f32 0.7853982, %v8304_v29  ;;  %v1170_v42 = vor.u32 8388608, %v1169_v16  ;;  %v1202_v20 = vsel %vm1194_vm8, %v1181_v46, %v1184_v30 }
 0x1cf   : > { %v1204_v36 = vsel %vm1196_vm9, %v1187_v31, %v1203_v12  ;;  %8307 = vpow2.f32 %v7272_v19  ;;  %v1325_v48 = vadd.s32 %v1324_v37, %v1320_v13  ;;  %v1206_v55 = vsel %vm1194_vm8, %v1184_v30, %v1187_v31  ;;  %v7702_v19 = vpop.f32.mrf.mxu0  ;;  %v1001_v12 = vpop.f32.mrf.mxu1 }
 0x1d0   : > { %14528 = vst [vmem:[#allocation15_spill] sm:$0xff] %v9348_v45  ;;  %v1208_v22 = vsel %vm1196_vm9, %v1190_v4, %v1207_v28  ;;  %vm1195_vm10 = vcmp.lt.s32.totalorder %v9319_v24, 2  ;;  %vm1482_vm11 = vcmp.gt.s32.totalorder %v1481_v39, 0  ;;  %v1007_v50 = vadd.f32 %v7878_v41, %v862_v43 }
 0x1d1   : > { %v1205_v38 = vsel %vm1195_vm10, %v1202_v20, %v1204_v36  ;;  %v1371_v18 = vand.u32 2139095040, %v9348_v45  ;;  %v1209_v58 = vsel %vm1195_vm10, %v1206_v55, %v1208_v22  ;;  %v1210_v61 = vshll.u32 %v1170_v42, 8  ;;  %v7703_v41 = vpop.f32.mrf.mxu0 }
 0x1d2   : > { %v8306_v56 = vpop.eup %8305  ;;  %v1326_v2 = vadd.s32 536870912, %v1325_v48  ;;  %v1483_v3 = vsel %vm1482_vm11, %v1481_v39, 0  ;;  %v7695_v53 = vadd.f32 %v9288_v15, %v9271_v59  ;;  %v7275_v62 = vmul.f32 -1.442695, %v1007_v50 }
 0x1d3   : > { %v9370_v4 = vmul.u32.u64.low %v1210_v61, %v1205_v38  ;;  %v9371_v54 = vmul.u32.u64.high %v1210_v61, %v1205_v38, %v9370_v4  ;;  %v9374_v8 = vmul.u32.u64.low %v1210_v61, %v1209_v58  ;;  %v9375_v9 = vmul.u32.u64.high %v1210_v61, %v1209_v58, %v9374_v8 }
 0x1d4   : > { %v1372_v33 = vshrl.u32 %v1371_v18, 23  ;;  %v1103_v35 = vadd.f32 1.0, %v8306_v56  ;;  %v1485_v16 = vand.u32 31, %v1483_v3  ;;  %v9377_v29 = vshrl.u32 %v1326_v2, 30 }
 0x1d5   : > { %8309 = vpow2.f32 %v7275_v62  ;;  %v857_v37 = vadd.f32 %v7695_v53, %v9206_v49  ;;  %v1199_v59 = vsel %vm1197_vm7, %v1187_v31, 2102212464  ;;  %v1178_v28 = vshrl.u32 %v14212_v44, %v9295_v57  ;;  %v9409_v62 = vpop.f32.mrf.mxu0 }
 0x1d6   : > { %v7292_v15 = vadd.s32 4294967169, %v1372_v33  ;;  %8311 = vrcp.f32 %v1103_v35  ;;  %v9384_v39 = vsub.s32 32, %v1485_v16  ;;  %v1328_v42 = vshll.u32 %v9377_v29, 30 }
 0x1d7   : > { %v1002_v43 = vadd.f32 %v1001_v12, %v857_v37  ;;  %v1198_v20 = vsel %vm1194_vm8, %v1178_v28, %v1181_v46  ;;  %v1200_v49 = vsel %vm1196_vm9, %v1184_v30, %v1199_v59  ;;  %v1220_v31 = vadd.s32 1, %v9371_v54  ;;  %v7881_v59 = vpop.f32.mrf.mxu1 }
 0x1d8   : > { %vm1219_vm12 = vc.u32 %v9375_v9, %v9370_v4  ;;  %v1378_v36 = vadd.s32 1, %v7292_v15  ;;  %v7704_v57 = vadd.f32 %v7703_v41, %v7702_v19  ;;  %v1498_v55 = vshrl.u32 %v14210_v51, %v9384_v39  ;;  %v9425_v41 = vpop.f32.mrf.mxu0 }
 0x1d9   : > { %v7274_v50 = vmul.f32 -1.442695, %v1002_v43  ;;  %v9396_v56 = vsub.s32 %v1325_v48, %v1328_v42  ;;  %v1201_v46 = vsel %vm1195_vm10, %v1198_v20, %v1200_v49  ;;  %v14199_v38 = vand.u32 2147483647, %v9286_v40 }
 0x1da   : > { %v1501_v30 = vshrl.u32 %v14202_v26, %v9384_v39  ;;  %v1221_v18 = vsel %vm1219_vm12, %v1220_v31, %v9371_v54  ;;  %v9404_v58 = vshrl.u32 %v1483_v3, 5  ;;  %v1489_v2 = vshrl.u32 %v14206_v34, %v9384_v39 }
 0x1db   : > { %v1497_v53 = vshll.u32 %v14204_v63, %v1485_v16  ;;  %v1492_v24 = vshrl.u32 %v14208_v5, %v9384_v39  ;;  %v1495_v48 = vshrl.u32 %v14204_v63, %v9384_v39  ;;  %v1500_v8 = vshll.u32 %v14210_v51, %v1485_v16 }
 0x1dc   : > { %v8308_v13 = vpop.eup %8307  ;;  %vm1379_vm13 = vcmp.gt.s32.totalorder %v1378_v36, 0  ;;  %v1217_v33 = vmul.u32 %v1210_v61, %v1201_v46  ;;  %v1488_v3 = vshll.u32 %v14212_v44, %v1485_v16  ;;  %v1331_v35 = vsub.s32 0, %v9396_v56 }
 0x1dd   : > { %v1102_v22 = vadd.f32 1.0, %v8308_v13  ;;  %v1499_v54 = vor.u32 %v1498_v55, %v1497_v53  ;;  %v1491_v19 = vshll.u32 %v14206_v34, %v1485_v16  ;;  %v1494_v12 = vshll.u32 %v14208_v5, %v1485_v16 }
 0x1de   : > { %v1502_v37 = vor.u32 %v1501_v30, %v1500_v8  ;;  %v9420_v15 = vadd.s32 %v1221_v18, %v1217_v33  ;;  %v1478_v28 = vand.u32 8388607, %v14199_v38  ;;  %v1380_v43 = vsel %vm1379_vm13, %v1378_v36, 0  ;;  %v9440_v30 = vpop.f32.mrf.mxu0 }
 0x1df   : > { %8313 = vrcp.f32 %v1102_v22  ;;  %v872_v61 = vadd.f32 %v7704_v57, %v9214_v1  ;;  %v9427_v42 = vor.u32 %v1489_v2, %v1488_v3  ;;  %v9429_v20 = vor.u32 %v1492_v24, %v1491_v19 }
 0x1e0   : > { %v1496_v49 = vor.u32 %v1495_v48, %v1494_v12  ;;  %vm1506_vm14 = vcmp.lt.s32.totalorder %v9404_v58, 4  ;;  %v7289_v22 = vmin.u32 %v1331_v35, %v9396_v56  ;;  %v1382_v36 = vand.u32 31, %v1380_v43 }
 0x1e1   : > { %v1512_v31 = vsel %vm1506_vm14, %v1499_v54, 920167782  ;;  %v1017_v55 = vadd.f32 %v7881_v59, %v872_v61  ;;  %v1516_v1 = vsel %vm1506_vm14, %v1502_v37, 1326507024  ;;  %8315 = vpow2.f32 %v7274_v50  ;;  %v9463_v37 = vpop.f32.mrf.mxu0 }
 0x1e2   : > { %v8310_v13 = vpop.eup %8309  ;;  %v1223_v57 = vadd.s32 536870912, %v9420_v15  ;;  %vm1503_vm15 = vcmp.lt.s32.totalorder %v9404_v58, 1  ;;  %vm1505_vm0 = vcmp.lt.s32.totalorder %v9404_v58, 3  ;;  %v1479_v18 = vor.u32 8388608, %v1478_v28 }
 0x1e3   : > { %v8312_v16 = vpop.eup %8311  ;;  %v1105_v46 = vadd.f32 1.0, %v8310_v13  ;;  %v1511_v2 = vsel %vm1503_vm15, %v9427_v42, %v9429_v20  ;;  %v1513_v53 = vsel %vm1505_vm0, %v1496_v49, %v1512_v31  ;;  %v1515_v50 = vsel %vm1503_vm15, %v9429_v20, %v1496_v49 }
 0x1e4   : > { %v9448_v24 = vmul.f32 0.7853982, %v8312_v16  ;;  %v1517_v48 = vsel %vm1505_vm0, %v1499_v54, %v1516_v1  ;;  %v14198_v8 = vand.u32 2147483647, %v9348_v45  ;;  %v7277_v33 = vmul.f32 -1.442695, %v1017_v55 }
 0x1e5   : > { %v1333_v3 = vclz %v7289_v22  ;;  %vm1504_vm1 = vcmp.lt.s32.totalorder %v9404_v58, 2  ;;  %v9457_v35 = vsub.s32 32, %v1382_v36  ;;  %v9459_v19 = vshrl.u32 %v1223_v57, 30 }
 0x1e6   : > { %14529 = vst [vmem:[#allocation16_spill] sm:$0xff] %v9448_v24  ;;  %v1514_v12 = vsel %vm1504_vm1, %v1511_v2, %v1513_v53  ;;  %v1518_v59 = vsel %vm1504_vm1, %v1515_v50, %v1517_v48  ;;  %v9467_v28 = vshll.u32 %v1479_v18, 8  ;;  %v1680_v54 = vand.u32 2139095040, %v9448_v24  ;;  %v9488_v2 = vpop.f32.mrf.mxu0 }
 0x1e7   : > { %14530 = vst [vmem:[#allocation17_spill] sm:$0xff] %v9459_v19  ;;  %8317 = vrcp.f32 %v1105_v46  ;;  %v9472_v61 = vand.u32 8388607, %v14198_v8  ;;  %v7290_v16 = vadd.s32 4294967294, %v1333_v3  ;;  %v1395_v22 = vshrl.u32 %v14210_v51, %v9457_v35 }
 0x1e8   : > { %8319 = vpow2.f32 %v7277_v33  ;;  %v9475_v31 = vmul.u32.u64.low %v9467_v28, %v1514_v12  ;;  %v9476_v55 = vmul.u32.u64.high %v9467_v28, %v1514_v12, %v9475_v31  ;;  %v1225_v1 = vshll.u32 %v9459_v19, 30  ;;  %v9509_v21 = vpop.f32.mrf.mxu0 }
 0x1e9   : > { %v9483_v57 = vmul.u32.u64.low %v9467_v28, %v1518_v59  ;;  %v9484_v46 = vmul.u32.u64.high %v9467_v28, %v1518_v59, %v9483_v57  ;;  %v1398_v18 = vshrl.u32 %v14202_v26, %v9457_v35  ;;  %v1508_v53 = vsel %vm1506_vm14, %v1496_v49, 2102212464 }
 0x1ea   : > { %14531 = vst [vmem:[#allocation18_spill] sm:$0xff] %v9475_v31  ;;  %v9492_v50 = vshrl.u32 %v1380_v43, 5  ;;  %v1394_v48 = vshll.u32 %v14204_v63, %v1382_v36  ;;  %v1681_v33 = vshrl.u32 %v1680_v54, 23  ;;  %v1386_v3 = vshrl.u32 %v14206_v34, %v9457_v35 }
 0x1eb   : > { %14532 = vst [vmem:[#allocation19_spill] sm:$0xff] %v9484_v46  ;;  %v1389_v12 = vshrl.u32 %v14208_v5, %v9457_v35  ;;  %v1392_v59 = vshrl.u32 %v14204_v63, %v9457_v35  ;;  %v1397_v57 = vshll.u32 %v14210_v51, %v1382_v36  ;;  %vm7291_vm2 = vcmp.lt.s32.totalorder %v7290_v16, 0 }
 0x1ec   : > { %v8314_v13 = vpop.eup %8313  ;;  %v1487_v49 = vshrl.u32 %v14212_v44, %v9384_v39  ;;  %v1396_v43 = vor.u32 %v1395_v22, %v1394_v48  ;;  %v1385_v54 = vshll.u32 %v14212_v44, %v1382_v36  ;;  %v1388_v47 = vshll.u32 %v14206_v34, %v1382_v36 }
 0x1ed   : > { %v9504_v8 = vmul.f32 0.7853982, %v8314_v13  ;;  %v1391_v27 = vshll.u32 %v14208_v5, %v1382_v36  ;;  %v1399_v26 = vor.u32 %v1398_v18, %v1397_v57  ;;  %v9512_v63 = vsub.s32 %v9420_v15, %v1225_v1 }
 0x1ee   : > { %v8316_v38 = vpop.eup %8315  ;;  %v1507_v39 = vsel %vm1503_vm15, %v1487_v49, %v9427_v42  ;;  %v1509_v13 = vsel %vm1505_vm0, %v9429_v20, %v1508_v53  ;;  %v7304_v22 = vadd.s32 4294967169, %v1681_v33  ;;  %v9520_v48 = vor.u32 %v1386_v3, %v1385_v54 }
 0x1ef   : > { %14533 = vst [vmem:[#allocation20_spill] sm:$0xff] %v9504_v8  ;;  %v9522_v34 = vor.u32 %v1389_v12, %v1388_v47  ;;  %v1393_v36 = vor.u32 %v1392_v59, %v1391_v27  ;;  %vm1403_vm3 = vcmp.lt.s32.totalorder %v9492_v50, 4  ;;  %v1336_v18 = vsel %vm7291_vm2, 0, %v7290_v16  ;;  %v9535_v47 = vpop.f32.mrf.mxu0 }
 0x1f0   : > { %v1409_v15 = vsel %vm1403_vm3, %v1396_v43, 920167782  ;;  %v1577_v1 = vand.u32 2139095040, %v9504_v8  ;;  %v1104_v42 = vadd.f32 1.0, %v8316_v38  ;;  %v1510_v57 = vsel %vm1504_vm1, %v1507_v39, %v1509_v13 }
 0x1f1   : > { %v1529_v20 = vadd.s32 1, %v9476_v55  ;;  %v1376_v53 = vor.u32 8388608, %v9472_v61  ;;  %v1413_v27 = vsel %vm1403_vm3, %v1399_v26, 1326507024  ;;  %vm1528_vm4 = vc.u32 %v9484_v46, %v9475_v31  ;;  %v7715_v13 = vpop.f32.mrf.mxu0 }
 0x1f2   : > { %vm1400_vm5 = vcmp.lt.s32.totalorder %v9492_v50, 1  ;;  %vm1402_vm6 = vcmp.lt.s32.totalorder %v9492_v50, 3  ;;  %v1687_v38 = vadd.s32 1, %v7304_v22  ;;  %v1341_v58 = vsub.s32 4294967266, %v1336_v18 }
 0x1f3   : > { %v1228_v33 = vsub.s32 0, %v9512_v63  ;;  %v1408_v61 = vsel %vm1400_vm5, %v9520_v48, %v9522_v34  ;;  %v1410_v26 = vsel %vm1402_vm6, %v1393_v36, %v1409_v15  ;;  %v1412_v12 = vsel %vm1400_vm5, %v9522_v34, %v1393_v36 }
 0x1f4   : > { %v8318_v16 = vpop.eup %8317  ;;  %v1414_v59 = vsel %vm1402_vm6, %v1396_v43, %v1413_v27  ;;  %v1578_v49 = vshrl.u32 %v1577_v1, 23  ;;  %v1337_v54 = vsub.s32 32, %v1336_v18  ;;  %v1530_v39 = vsel %vm1528_vm4, %v1529_v20, %v9476_v55 }
 0x1f5   : > { %v8320_v3 = vpop.eup %8319  ;;  %vm1401_vm7 = vcmp.lt.s32.totalorder %v9492_v50, 2  ;;  %8321 = vrcp.f32 %v1104_v42  ;;  %v1526_v22 = vmul.u32 %v9467_v28, %v1510_v57  ;;  %vm1688_vm8 = vcmp.gt.s32.totalorder %v1687_v38, 0 }
 0x1f6   : > { %v1411_v15 = vsel %vm1401_vm7, %v1408_v61, %v1410_v26  ;;  %v9558_v5 = vmul.f32 0.7853982, %v8318_v16  ;;  %v1342_v51 = vadd.s32 127, %v1341_v58  ;;  %v7285_v44 = vmin.u32 %v1228_v33, %v9512_v63  ;;  %v7717_v58 = vpop.f32.mrf.mxu0 }
 0x1f7   : > { %v1415_v43 = vsel %vm1401_vm7, %v1412_v12, %v1414_v59  ;;  %v9563_v1 = vshll.u32 %v1376_v53, 8  ;;  %v1321_v55 = vadd.s32 %v9298_v32, %v9303_v11  ;;  %v9567_v42 = vadd.s32 %v1530_v39, %v1526_v22 }
 0x1f8   : > { %14534 = vst [vmem:[#allocation21_spill] sm:$0xff] %v9558_v5  ;;  %v7300_v28 = vadd.s32 4294967169, %v1578_v49  ;;  %v7701_v57 = vadd.f32 %v9366_v0, %v9354_v23  ;;  %v1689_v16 = vsel %vm1688_vm8, %v1687_v38, 0  ;;  %v1886_v32 = vand.u32 2139095040, %v9558_v5 }
 0x1f9   : > { %v9572_v20 = vmul.u32.u64.low %v9563_v1, %v1411_v15  ;;  %v9573_v27 = vmul.u32.u64.high %v9563_v1, %v1411_v15, %v9572_v20  ;;  %v1339_v33 = vshrl.u32 %v1321_v55, %v1337_v54  ;;  %v1338_v11 = vshll.u32 %v9396_v56, %v1336_v18  ;;  %v7718_v18 = vpop.f32.mrf.mxu0 }
 0x1fa   : > { %v9577_v53 = vmul.u32.u64.low %v9563_v1, %v1415_v43  ;;  %v9578_v61 = vmul.u32.u64.high %v9563_v1, %v1415_v43, %v9577_v53  ;;  %v1343_v26 = vshll.u32 %v1342_v51, 23  ;;  %v1230_v12 = vclz %v7285_v44 }
 0x1fb   : > { %14535 = vst [vmem:[#allocation22_spill] sm:$0xff] %v9572_v20  ;;  %v1532_v23 = vadd.s32 536870912, %v9567_v42  ;;  %v1405_v0 = vsel %vm1403_vm3, %v1393_v36, 2102212464  ;;  %v1691_v59 = vand.u32 31, %v1689_v16  ;;  %v1584_v49 = vadd.s32 1, %v7300_v28 }
 0x1fc   : > { %14536 = vst [vmem:[#allocation23_spill] sm:$0xff] %v9578_v61  ;;  %v9587_v38 = vadd.f32 %v9425_v41, %v9409_v62  ;;  %v9591_v54 = vadd.f32 %v9463_v37, %v9440_v30  ;;  %v9595_v56 = vadd.f32 %v9509_v21, %v9488_v2  ;;  %v14539_v51 = vmov 683565275   ;;  %v1011_v41 = vpop.f32.mrf.mxu1 }
 0x1fd   : > { %v1384_v44 = vshrl.u32 %v14539_v51, %v9457_v35  ;;  %v9599_v39 = vor.u32 %v1339_v33, %v1338_v11  ;;  %v14214_v36 = vand.u32 2147483647, %v9448_v24  ;;  %v1887_v22 = vshrl.u32 %v1886_v32, 23 }
 0x1fe   : > { %14537 = vst [vmem:[#allocation24_spill] sm:$0xff] %v9587_v38  ;;  %14538 = vst [vmem:[#allocation25_spill] sm:$0xff] %v9595_v56  ;;  %v867_v62 = vadd.f32 %v7701_v57, %v9211_v60  ;;  %v9603_v15 = vor.u32 4788187, %v1343_v26  ;;  %v7286_v30 = vadd.s32 4294967294, %v1230_v12  ;;  %v1406_v35 = vsel %vm1402_vm6, %v9522_v34, %v1405_v0 }
 0x1ff   : > { %v1404_v21 = vsel %vm1400_vm5, %v1384_v44, %v9520_v48  ;;  %v9611_v37 = vshrl.u32 %v1532_v23, 30  ;;  %v9613_v2 = vsub.s32 32, %v1691_v59  ;;  %vm1585_vm9 = vcmp.gt.s32.totalorder %v1584_v49, 0 }
 0x200   : > { %v1107_v43 = vadd.f32 1.0, %v8320_v3  ;;  %v9616_v60 = vadd.f32 %v7715_v13, %v9535_v47  ;;  %v9618_v55 = vadd.f32 %v7718_v18, %v7717_v58  ;;  %v1426_v28 = vadd.s32 1, %v9573_v27 }
 0x201   : > { %14540 = vst [vmem:[#allocation26_spill] sm:$0xff] %v9611_v37  ;;  %v9621_v57 = vadd.f32 %v1011_v41, %v867_v62  ;;  %v1407_v34 = vsel %vm1401_vm7, %v1404_v21, %v1406_v35  ;;  %vm1425_vm10 = vc.u32 %v9578_v61, %v9572_v20  ;;  %v7312_v53 = vadd.s32 4294967169, %v1887_v22 }
 0x202   : > { %14541 = vst [vmem:[#allocation27_spill] sm:$0xff] %v9616_v60  ;;  %14542 = vst [vmem:[#allocation28_spill] sm:$0xff] %v9618_v55  ;;  %v8322_v48 = vpop.eup %8321  ;;  %vm7287_vm11 = vcmp.lt.s32.totalorder %v7286_v30, 0  ;;  %v1684_v47 = vand.u32 8388607, %v14214_v36  ;;  %v1586_v13 = vsel %vm1585_vm9, %v1584_v49, 0  ;;  %8323 = vrcp.f32 %v1107_v43 }
 0x203   : > { %v1534_v58 = vshll.u32 %v9611_v37, 30  ;;  %v14543_v32 = vmov 920167782   ;;  %v14215_v26 = vand.u32 2147483647, %v9504_v8  ;;  %v1423_v50 = vmul.u32 %v9563_v1, %v1407_v34 }
 0x204   : > { %v1704_v11 = vshrl.u32 %v14543_v32, %v9613_v2  ;;  %v1427_v12 = vsel %vm1425_vm10, %v1426_v28, %v9573_v27  ;;  %v14544_v23 = vmov 1326507024   ;;  %v9639_v44 = vmul.f32 0.7853982, %v8322_v48 }
 0x205   : > { %v1707_v0 = vshrl.u32 %v14544_v23, %v9613_v2  ;;  %v9641_v18 = vshrl.u32 %v1689_v16, 5  ;;  %v14546_v49 = vmov 2102212464   ;;  %v1588_v62 = vand.u32 31, %v1586_v13 }
 0x206   : > { %14545 = vst [vmem:[#allocation29_spill] sm:$0xff] %v9639_v44  ;;  %v1703_v22 = vshll.u32 %v14546_v49, %v1691_v59  ;;  %v1893_v41 = vadd.s32 1, %v7312_v53  ;;  %v14547_v21 = vmov 2475754826   ;;  %v14548_v43 = vmov 2131351028  }
 0x207   : > { %v1695_v35 = vshrl.u32 %v14547_v21, %v9613_v2  ;;  %v1698_v36 = vshrl.u32 %v14548_v43, %v9613_v2  ;;  %v1701_v1 = vshrl.u32 %v14546_v49, %v9613_v2  ;;  %v1706_v27 = vshll.u32 %v14543_v32, %v1691_v59 }
 0x208   : > { %v9651_v28 = vadd.s32 %v1427_v12, %v1423_v50  ;;  %v1685_v48 = vor.u32 8388608, %v1684_v47  ;;  %v1705_v16 = vor.u32 %v1704_v11, %v1703_v22  ;;  %v9655_v34 = vand.u32 8388607, %v14215_v26 }
 0x209   : > { %v1694_v53 = vshll.u32 %v14539_v51, %v1691_v59  ;;  %v1697_v33 = vshll.u32 %v14547_v21, %v1691_v59  ;;  %v1700_v3 = vshll.u32 %v14548_v43, %v1691_v59  ;;  %v1708_v55 = vor.u32 %v1707_v0, %v1706_v27 }
 0x20a   : > { %v9661_v25 = vsel %vm7287_vm11, 0, %v7286_v30  ;;  %v9663_v56 = vsub.s32 32, %v1588_v62  ;;  %vm1894_vm12 = vcmp.gt.s32.totalorder %v1893_v41, 0  ;;  %v1783_v47 = vand.u32 2139095040, %v9639_v44 }
 0x20b   : > { %v9666_v11 = vor.u32 %v1695_v35, %v1694_v53  ;;  %v9668_v50 = vor.u32 %v1698_v36, %v1697_v33  ;;  %v1702_v12 = vor.u32 %v1701_v1, %v1700_v3  ;;  %vm1712_vm13 = vcmp.lt.s32.totalorder %v9641_v18, 4 }
 0x20c   : > { %v9672_v22 = vsub.s32 %v9567_v42, %v1534_v58  ;;  %v1429_v59 = vadd.s32 536870912, %v9651_v28  ;;  %v1718_v30 = vsel %vm1712_vm13, %v1705_v16, 920167782  ;;  %v9677_v0 = vshll.u32 %v1685_v48, 8 }
 0x20d   : > { %vm1709_vm14 = vcmp.lt.s32.totalorder %v9641_v18, 1  ;;  %v1722_v35 = vsel %vm1712_vm13, %v1708_v55, 1326507024  ;;  %v1895_v33 = vsel %vm1894_vm12, %v1893_v41, 0  ;;  %vm1710_vm15 = vcmp.lt.s32.totalorder %v9641_v18, 2 }
 0x20e   : > { %vm1711_vm0 = vcmp.lt.s32.totalorder %v9641_v18, 3  ;;  %v1601_v42 = vshrl.u32 %v14543_v32, %v9663_v56  ;;  %v1784_v3 = vshrl.u32 %v1783_v47, 23  ;;  %v1717_v58 = vsel %vm1709_vm14, %v9666_v11, %v9668_v50 }
 0x20f   : > { %v1719_v1 = vsel %vm1711_vm0, %v1702_v12, %v1718_v30  ;;  %v1721_v55 = vsel %vm1709_vm14, %v9668_v50, %v1702_v12  ;;  %v1604_v41 = vshrl.u32 %v14544_v23, %v9663_v56  ;;  %v1723_v27 = vsel %vm1711_vm0, %v1705_v16, %v1722_v35  ;;  %v9703_v26 = vpop.eup %8323 }
 0x210   : > { %v9700_v48 = vshrl.u32 %v1586_v13, 5  ;;  %v1600_v53 = vshll.u32 %v14546_v49, %v1588_v62  ;;  %v1897_v47 = vand.u32 31, %v1895_v33  ;;  %v1592_v30 = vshrl.u32 %v14547_v21, %v9663_v56 }
 0x211   : > { %v1595_v36 = vshrl.u32 %v14548_v43, %v9663_v56  ;;  %v1598_v8 = vshrl.u32 %v14546_v49, %v9663_v56  ;;  %v1603_v14 = vshll.u32 %v14543_v32, %v1588_v62  ;;  %v1720_v13 = vsel %vm1710_vm15, %v1717_v58, %v1719_v1 }
 0x212   : > { %v1602_v16 = vor.u32 %v1601_v42, %v1600_v53  ;;  %v7308_v24 = vadd.s32 4294967169, %v1784_v3  ;;  %v1591_v60 = vshll.u32 %v14539_v51, %v1588_v62  ;;  %v1594_v17 = vshll.u32 %v14547_v21, %v1588_v62 }
 0x213   : > { %v1597_v45 = vshll.u32 %v14548_v43, %v1588_v62  ;;  %v1605_v38 = vor.u32 %v1604_v41, %v1603_v14  ;;  %v9718_v6 = vshrl.u32 %v1429_v59, 30  ;;  %v1693_v20 = vshrl.u32 %v14539_v51, %v9613_v2 }
 0x214   : > { %v1724_v61 = vsel %vm1710_vm15, %v1721_v55, %v1723_v27  ;;  %v9724_v58 = vsub.s32 32, %v1897_v47  ;;  %v9726_v42 = vor.u32 %v1592_v30, %v1591_v60  ;;  %v9728_v3 = vor.u32 %v1595_v36, %v1594_v17 }
 0x215   : > { %v1599_v1 = vor.u32 %v1598_v8, %v1597_v45  ;;  %vm1609_vm1 = vcmp.lt.s32.totalorder %v9700_v48, 4  ;;  %v9732_v62 = vmul.u32.u64.low %v9677_v0, %v1720_v13  ;;  %v9733_v14 = vmul.u32.u64.high %v9677_v0, %v1720_v13, %v9732_v62 }
 0x216   : > { %v1615_v2 = vsel %vm1609_vm1, %v1602_v16, 920167782  ;;  %v1790_v59 = vadd.s32 1, %v7308_v24  ;;  %v1714_v55 = vsel %vm1712_vm13, %v1702_v12, 2102212464  ;;  %vm1606_vm2 = vcmp.lt.s32.totalorder %v9700_v48, 1 }
 0x217   : > { %v9741_v60 = vmul.u32.u64.low %v9677_v0, %v1724_v61  ;;  %v9742_v41 = vmul.u32.u64.high %v9677_v0, %v1724_v61, %v9741_v60  ;;  %v1619_v17 = vsel %vm1609_vm1, %v1605_v38, 1326507024  ;;  %vm1607_vm3 = vcmp.lt.s32.totalorder %v9700_v48, 2 }
 0x218   : > { %vm1608_vm4 = vcmp.lt.s32.totalorder %v9700_v48, 3  ;;  %v1910_v45 = vshrl.u32 %v14543_v32, %v9724_v58  ;;  %v1614_v24 = vsel %vm1606_vm2, %v9726_v42, %v9728_v3  ;;  %v1618_v61 = vsel %vm1606_vm2, %v9728_v3, %v1599_v1 }
 0x219   : > { %v1616_v8 = vsel %vm1608_vm4, %v1599_v1, %v1615_v2  ;;  %v1913_v38 = vshrl.u32 %v14544_v23, %v9724_v58  ;;  %v1620_v12 = vsel %vm1608_vm4, %v1602_v16, %v1619_v17  ;;  %v9764_v36 = vshrl.u32 %v1895_v33, 5 }
 0x21a   : > { %v1909_v27 = vshll.u32 %v14546_v49, %v1897_v47  ;;  %vm1791_vm5 = vcmp.gt.s32.totalorder %v1790_v59, 0  ;;  %v1901_v53 = vshrl.u32 %v14547_v21, %v9724_v58  ;;  %v1904_v30 = vshrl.u32 %v14548_v43, %v9724_v58 }
 0x21b   : > { %v1907_v13 = vshrl.u32 %v14546_v49, %v9724_v58  ;;  %v1912_v2 = vshll.u32 %v14543_v32, %v1897_v47  ;;  %v1713_v16 = vsel %vm1709_vm14, %v1693_v20, %v9666_v11  ;;  %v1617_v33 = vsel %vm1607_vm3, %v1614_v24, %v1616_v8 }
 0x21c   : > { %v1900_v60 = vshll.u32 %v14539_v51, %v1897_v47  ;;  %v1911_v17 = vor.u32 %v1910_v45, %v1909_v27  ;;  %v1903_v35 = vshll.u32 %v14547_v21, %v1897_v47  ;;  %v1906_v31 = vshll.u32 %v14548_v43, %v1897_v47 }
 0x21d   : > { %v1914_v46 = vor.u32 %v1913_v38, %v1912_v2  ;;  %v1792_v37 = vsel %vm1791_vm5, %v1790_v59, 0  ;;  %v1715_v40 = vsel %vm1711_vm0, %v9668_v50, %v1714_v55  ;;  %v1621_v19 = vsel %vm1607_vm3, %v1618_v61, %v1620_v12 }
 0x21e   : > { %v14549_v20 = vor.u32 8388608, %v9655_v34  ;;  %v14550_v24 = vand.u32 2147483647, %v9558_v5  ;;  %v9793_v8 = vor.u32 %v1901_v53, %v1900_v60  ;;  %v9795_v27 = vor.u32 %v1904_v30, %v1903_v35 }
 0x21f   : > { %v1908_v47 = vor.u32 %v1907_v13, %v1906_v31  ;;  %vm1918_vm6 = vcmp.lt.s32.totalorder %v9764_v36, 4  ;;  %v1794_v55 = vand.u32 31, %v1792_v37  ;;  %v1716_v61 = vsel %vm1710_vm15, %v1713_v16, %v1715_v40 }
 0x220   : > { %v9789_v11 = vshll.u32 %v14549_v20, 8  ;;  %v1890_v45 = vand.u32 8388607, %v14550_v24  ;;  %v1924_v34 = vsel %vm1918_vm6, %v1911_v17, 920167782  ;;  %v1735_v35 = vadd.s32 1, %v9733_v14 }
 0x221   : > { %v1928_v31 = vsel %vm1918_vm6, %v1914_v46, 1326507024  ;;  %v1611_v53 = vsel %vm1609_vm1, %v1599_v1, 2102212464  ;;  %vm1915_vm7 = vcmp.lt.s32.totalorder %v9764_v36, 1  ;;  %vm1917_vm8 = vcmp.lt.s32.totalorder %v9764_v36, 3 }
 0x222   : > { %v9799_v59 = vmul.u32.u64.low %v9789_v11, %v1617_v33  ;;  %v9800_v50 = vmul.u32.u64.high %v9789_v11, %v1617_v33, %v9799_v59  ;;  %v9808_v38 = vmul.u32.u64.low %v9789_v11, %v1621_v19  ;;  %v9809_v12 = vmul.u32.u64.high %v9789_v11, %v1621_v19, %v9808_v38 }
 0x223   : > { %v1590_v18 = vshrl.u32 %v14539_v51, %v9663_v56  ;;  %v1891_v40 = vor.u32 8388608, %v1890_v45  ;;  %v1923_v19 = vsel %vm1915_vm7, %v9793_v8, %v9795_v27  ;;  %v1925_v46 = vsel %vm1917_vm8, %v1908_v47, %v1924_v34 }
 0x224   : > { %vm1734_vm9 = vc.u32 %v9742_v41, %v9732_v62  ;;  %v1927_v1 = vsel %vm1915_vm7, %v9795_v27, %v1908_v47  ;;  %v1929_v30 = vsel %vm1917_vm8, %v1911_v17, %v1928_v31  ;;  %v9833_v56 = vsub.s32 32, %v1794_v55 }
 0x225   : > { %v1610_v2 = vsel %vm1606_vm2, %v1590_v18, %v9726_v42  ;;  %v1612_v16 = vsel %vm1608_vm4, %v9728_v3, %v1611_v53  ;;  %vm1916_vm10 = vcmp.lt.s32.totalorder %v9764_v36, 2  ;;  %v1537_v33 = vsub.s32 0, %v9672_v22 }
 0x226   : > { %v1431_v60 = vshll.u32 %v9718_v6, 30  ;;  %v1926_v17 = vsel %vm1916_vm10, %v1923_v19, %v1925_v46  ;;  %v9848_v20 = vmul.f32 0.7853982, %v9703_v26  ;;  %v1732_v24 = vmul.u32 %v9677_v0, %v1716_v61 }
 0x227   : > { %v1736_v42 = vsel %vm1734_vm9, %v1735_v35, %v9733_v14  ;;  %v1930_v45 = vsel %vm1916_vm10, %v1927_v1, %v1929_v30  ;;  %v9854_v3 = vshll.u32 %v1891_v40, 8  ;;  %v1613_v34 = vsel %vm1607_vm3, %v1610_v2, %v1612_v16 }
 0x228   : > { %14551 = vst [vmem:[#allocation30_spill] sm:$0xff] %v9848_v20  ;;  %v1632_v38 = vadd.s32 1, %v9800_v50  ;;  %v1807_v26 = vshrl.u32 %v14543_v32, %v9833_v56  ;;  %vm1631_vm11 = vc.u32 %v9809_v12, %v9799_v59  ;;  %v1810_v61 = vshrl.u32 %v14544_v23, %v9833_v56 }
 0x229   : > { %v9865_v0 = vmul.u32.u64.low %v9854_v3, %v1926_v17  ;;  %v9866_v14 = vmul.u32.u64.high %v9854_v3, %v1926_v17, %v9865_v0  ;;  %v9872_v48 = vmul.u32.u64.low %v9854_v3, %v1930_v45  ;;  %v9873_v35 = vmul.u32.u64.high %v9854_v3, %v1930_v45, %v9872_v48 }
 0x22a   : > { %v9875_v53 = vshrl.u32 %v1792_v37, 5  ;;  %v1806_v18 = vshll.u32 %v14546_v49, %v1794_v55  ;;  %v1798_v40 = vshrl.u32 %v14547_v21, %v9833_v56  ;;  %v1801_v19 = vshrl.u32 %v14548_v43, %v9833_v56 }
 0x22b   : > { %v1804_v46 = vshrl.u32 %v14546_v49, %v9833_v56  ;;  %v1809_v1 = vshll.u32 %v14543_v32, %v1794_v55  ;;  %v9885_v30 = vadd.s32 %v1736_v42, %v1732_v24  ;;  %v1629_v2 = vmul.u32 %v9789_v11, %v1613_v34 }
 0x22c   : > { %v1920_v37 = vsel %vm1918_vm6, %v1908_v47, 2102212464  ;;  %v1808_v16 = vor.u32 %v1807_v26, %v1806_v18  ;;  %v1797_v17 = vshll.u32 %v14539_v51, %v1794_v55  ;;  %v1800_v45 = vshll.u32 %v14547_v21, %v1794_v55 }
 0x22d   : > { %v1803_v48 = vshll.u32 %v14548_v43, %v1794_v55  ;;  %v1811_v13 = vor.u32 %v1810_v61, %v1809_v1  ;;  %v1633_v31 = vsel %vm1631_vm11, %v1632_v38, %v9800_v50  ;;  %v1899_v24 = vshrl.u32 %v14539_v51, %v9724_v58 }
 0x22e   : > { %v14552_v11 = vand.u32 2147483647, %v9639_v44  ;;  %v2092_v47 = vand.u32 2139095040, %v9848_v20  ;;  %v9902_v34 = vor.u32 %v1798_v40, %v1797_v17  ;;  %v9904_v26 = vor.u32 %v1801_v19, %v1800_v45 }
 0x22f   : > { %v1805_v18 = vor.u32 %v1804_v46, %v1803_v48  ;;  %vm1815_vm12 = vcmp.lt.s32.totalorder %v9875_v53, 4  ;;  %v1738_v55 = vadd.s32 536870912, %v9885_v30  ;;  %v1919_v50 = vsel %vm1915_vm7, %v1899_v24, %v9793_v8 }
 0x230   : > { %v1787_v42 = vand.u32 8388607, %v14552_v11  ;;  %v1921_v58 = vsel %vm1917_vm8, %v9795_v27, %v1920_v37  ;;  %v1821_v38 = vsel %vm1815_vm12, %v1808_v16, 920167782  ;;  %v9916_v61 = vadd.s32 %v1633_v31, %v1629_v2 }
 0x231   : > { %v1941_v40 = vadd.s32 1, %v9866_v14  ;;  %v1825_v19 = vsel %vm1815_vm12, %v1811_v13, 1326507024  ;;  %v7276_v46 = vmul.f32 -1.442695, %v9621_v57  ;;  %vm1940_vm13 = vc.u32 %v9873_v35, %v9865_v0  ;;  %v7720_v13 = vpop.f32.mrf.mxu0 }
 0x232   : > { %vm1812_vm14 = vcmp.lt.s32.totalorder %v9875_v53, 1  ;;  %vm1814_vm15 = vcmp.lt.s32.totalorder %v9875_v53, 3  ;;  %v2093_v8 = vshrl.u32 %v2092_v47, 23  ;;  %v1922_v27 = vsel %vm1916_vm10, %v1919_v50, %v1921_v58 }
 0x233   : > { %v1788_v31 = vor.u32 8388608, %v1787_v42  ;;  %v1820_v1 = vsel %vm1812_vm14, %v9902_v34, %v9904_v26  ;;  %v1822_v57 = vsel %vm1814_vm15, %v1805_v18, %v1821_v38  ;;  %v7297_v2 = vmin.u32 %v1537_v33, %v9672_v22 }
 0x234   : > { %v9936_v37 = vsub.s32 %v9651_v28, %v1431_v60  ;;  %v1824_v36 = vsel %vm1812_vm14, %v9904_v26, %v1805_v18  ;;  %v1826_v17 = vsel %vm1814_vm15, %v1808_v16, %v1825_v19  ;;  %v9943_v45 = vshrl.u32 %v1738_v55, 30  ;;  %v7721_v55 = vpop.f32.mrf.mxu0 }
 0x235   : > { %v1942_v48 = vsel %vm1940_vm13, %v1941_v40, %v9866_v14  ;;  %vm1813_vm0 = vcmp.lt.s32.totalorder %v9875_v53, 2  ;;  %8325 = vpow2.f32 %v7276_v46  ;;  %v1635_v24 = vadd.s32 536870912, %v9916_v61 }
 0x236   : > { %v1938_v33 = vmul.u32 %v9854_v3, %v1922_v27  ;;  %v1823_v28 = vsel %vm1813_vm0, %v1820_v1, %v1822_v57  ;;  %v7320_v60 = vadd.s32 4294967169, %v2093_v8  ;;  %v1218_v11 = vadd.s32 %v9370_v4, %v9375_v9 }
 0x237   : > { %v14553_v16 = vsub.s32 4294967266, %v9661_v25  ;;  %v1827_v14 = vsel %vm1813_vm0, %v1824_v36, %v1826_v17  ;;  %v9957_v47 = vshll.u32 %v1788_v31, 8  ;;  %v14554_v50 = vand.u32 2147483647, %v9603_v15 }
 0x238   : > { %v14555_v3 = vcvt.s32.f32 %v9599_v39  ;;  %v1234_v38 = vsub.s32 32, %v9661_v25  ;;  %v1539_v40 = vclz %v7297_v2  ;;  %v9964_v19 = vadd.s32 %v1942_v48, %v1938_v33 }
 0x239   : > { %v1239_v42 = vadd.s32 127, %v14553_v16  ;;  %v1434_v4 = vsub.s32 0, %v9936_v37  ;;  %v1740_v9 = vshll.u32 %v9943_v45, 30  ;;  %v9973_v27 = vshrl.u32 %v1635_v24, 30 }
 0x23a   : > { %v1348_v58 = vmul.f32 %v14555_v3, %v14554_v50  ;;  %v9969_v46 = vmul.u32.u64.low %v9957_v47, %v1823_v28  ;;  %v9970_v8 = vmul.u32.u64.high %v9957_v47, %v1823_v28, %v9969_v46  ;;  %v2099_v31 = vadd.s32 1, %v7320_v60 }
 0x23b   : > { %14556 = vst [vmem:[#allocation31_spill] sm:$0xff] %v9973_v27  ;;  %v9976_v15 = vmul.u32.u64.low %v9957_v47, %v1827_v14  ;;  %v9977_v39 = vmul.u32.u64.high %v9957_v47, %v1827_v14, %v9976_v15  ;;  %v9979_v1 = vadd.f32 %v7721_v55, %v7720_v13  ;;  %vm1267_vm1 = vcmp.lt.s32.totalorder %v9238_v52, 0 }
 0x23c   : > { %v1240_v57 = vshll.u32 %v1239_v42, 23  ;;  %v882_v2 = vadd.f32 %v9591_v54, %v9220_v10  ;;  %v14558_v36 = vand.u32 2147483647, %v9238_v52  ;;  %v1235_v48 = vshll.u32 %v9512_v63, %v9661_v25 }
 0x23d   : > { %14557 = vst [vmem:[#allocation32_spill] sm:$0xff] %v9979_v1  ;;  %v1236_v24 = vshrl.u32 %v1218_v11, %v1234_v38  ;;  %v1944_v33 = vadd.s32 536870912, %v9964_v19  ;;  %v1349_v13 = vxor.u32 2147483648, %v1348_v58  ;;  %v7298_v28 = vadd.s32 4294967294, %v1539_v40  ;;  %v14561_v11 = vld [vmem:[#allocation17_spill] sm:$0xff] }
 0x23e   : > { %vm9986_vm2 = vcmp.le.f32.partialorder %v14558_v36, 0.7853982  ;;  %v9994_v60 = vsub.s32 %v9885_v30, %v1740_v9  ;;  %v1817_v10 = vsel %vm1815_vm12, %v1805_v18, 2102212464  ;;  %v7293_v54 = vmin.u32 %v1434_v4, %v9936_v37 }
 0x23f   : > { %v1637_v16 = vshll.u32 %v9973_v27, 30  ;;  %v1796_v42 = vshrl.u32 %v14539_v51, %v9833_v56  ;;  %vm2100_vm3 = vcmp.gt.s32.totalorder %v2099_v31, 0  ;;  %v1351_v25 = vsub.s32 4, %v9377_v29 }
 0x240   : > { %vm1164_vm4 = vcmp.lt.s32.totalorder %v9243_v7, 0  ;;  %v1241_v63 = vor.u32 4788187, %v1240_v57  ;;  %v1248_v14 = vsub.s32 4, %v14561_v11  ;;  %v14562_v30 = vand.u32 2147483647, %v9243_v7 }
 0x241   : > { %v1237_v18 = vor.u32 %v1236_v24, %v1235_v48  ;;  %v10011_v50 = vshrl.u32 %v1944_v33, 30  ;;  %v1816_v56 = vsel %vm1812_vm14, %v1796_v42, %v9902_v34  ;;  %v1818_v3 = vsel %vm1814_vm15, %v9904_v26, %v1817_v10 }
 0x242   : > { %vm10007_vm5 = vcmp.le.f32.partialorder %v14562_v30, 0.7853982  ;;  %v1350_v38 = vsel %vm1267_vm1, %v1349_v13, %v1348_v58  ;;  %v1743_v40 = vsub.s32 0, %v9994_v60  ;;  %v1838_v4 = vadd.s32 1, %v9970_v8  ;;  %v8326_v15 = vpop.eup %8325  ;;  %v14566_v58 = vld [vmem:[#allocation14_spill] sm:$0xff] }
 0x243   : > { %14565 = vst [vmem:[#allocation17_spill] sm:$0xff] %v10011_v50  ;;  %v2101_v9 = vsel %vm2100_vm3, %v2099_v31, 0  ;;  %vm7299_vm6 = vcmp.lt.s32.totalorder %v7298_v28, 0  ;;  %v1436_v57 = vclz %v7293_v54  ;;  %v10024_v36 = vsub.s32 %v9916_v61, %v1637_v16 }
 0x244   : > { %vm1837_vm7 = vc.u32 %v9977_v39, %v9969_v46  ;;  %v1352_v34 = vsel %vm1267_vm1, %v1351_v25, %v9377_v29  ;;  %v1242_v26 = vand.u32 2147483647, %v1241_v63  ;;  %vm1473_vm8 = vcmp.lt.s32.totalorder %v14566_v58, 0  ;;  %v7884_v63 = vpop.f32.mrf.mxu1 }
 0x245   : > { %v1819_v48 = vsel %vm1813_vm0, %v1816_v56, %v1818_v3  ;;  %v1353_v31 = vsel %vm9986_vm2, %v9238_v52, %v1350_v38  ;;  %v1244_v24 = vcvt.s32.f32 %v1237_v18  ;;  %v1946_v61 = vshll.u32 %v10011_v50, 30  ;;  %v14567_v18 = vld [vmem:[#allocation26_spill] sm:$0xff] }
 0x246   : > { %v2103_v33 = vand.u32 31, %v2101_v9  ;;  %v10038_v13 = vsel %vm7299_vm6, 0, %v7298_v28  ;;  %v7305_v10 = vmin.u32 %v1743_v40, %v9994_v60  ;;  %v1839_v29 = vsel %vm1837_vm7, %v1838_v4, %v9970_v8  ;;  %v14569_v40 = vld [vmem:[#allocation19_spill] sm:$0xff]  ;;  %v14570_v4 = vld [vmem:[#allocation18_spill] sm:$0xff] }
 0x247   : > { %v1106_v54 = vadd.f32 1.0, %v8326_v15  ;;  %v1249_v53 = vsel %vm1164_vm4, %v1248_v14, %v14561_v11  ;;  %v7294_v16 = vadd.s32 4294967294, %v1436_v57  ;;  %v1640_v42 = vsub.s32 0, %v10024_v36 }
 0x248   : > { %v1835_v25 = vmul.u32 %v9957_v47, %v1819_v48  ;;  %v10049_v30 = vsel %vm9986_vm2, 0, %v1352_v34  ;;  %8327 = vcosq.f32 %v1353_v31  ;;  %v10051_v28 = vmul.f32 %v1244_v24, %v1242_v26  ;;  %v14571_v48 = vld [vmem:[#allocation23_spill] sm:$0xff]  ;;  %v14572_v24 = vld [vmem:[#allocation22_spill] sm:$0xff] }
 0x249   : > { %v1557_v8 = vsub.s32 4, %v14567_v18  ;;  %v1547_v56 = vsub.s32 4294967266, %v10038_v13  ;;  %v10056_v3 = vsub.s32 %v9964_v19, %v1946_v61  ;;  %v10060_v14 = vsub.s32 32, %v2103_v33 }
 0x24a   : > { %v10058_v11 = vadd.s32 %v1839_v29, %v1835_v25  ;;  %v10064_v47 = vsel %vm10007_vm5, 0, %v1249_v53  ;;  %v1745_v17 = vclz %v7305_v10  ;;  %8329 = vrcp.f32 %v1106_v54 }
 0x24b   : > { %14568 = vst [vmem:[#allocation14_spill] sm:$0xff] %v10064_v47  ;;  %v1027_v38 = vadd.f32 %v7884_v63, %v882_v2  ;;  %8331 = vsinq.f32 %v1353_v31  ;;  %v1527_v15 = vadd.s32 %v14570_v4, %v14569_v40  ;;  %vm7295_vm9 = vcmp.lt.s32.totalorder %v7294_v16, 0 }
 0x24c   : > { %v7301_v57 = vmin.u32 %v1640_v42, %v10024_v36  ;;  %v1543_v34 = vsub.s32 32, %v10038_v13  ;;  %v10074_v26 = vsel %vm1473_vm8, %v1557_v8, %v14567_v18  ;;  %v10078_v61 = vadd.s32 %v14572_v24, %v14571_v48 }
 0x24d   : > { %v1548_v2 = vadd.s32 127, %v1547_v56  ;;  %v1949_v31 = vsub.s32 0, %v10056_v3  ;;  %v1841_v10 = vadd.s32 536870912, %v10058_v11  ;;  %v2116_v29 = vshrl.u32 %v14543_v32, %v10060_v14 }
 0x24e   : > { %v10084_v54 = vsel %vm7295_vm9, 0, %v7294_v16  ;;  %v7306_v53 = vadd.s32 4294967294, %v1745_v17  ;;  %v2119_v42 = vshrl.u32 %v14544_v23, %v10060_v14  ;;  %v7279_v25 = vmul.f32 -1.442695, %v1027_v38 }
 0x24f   : > { %v1642_v63 = vclz %v7301_v57  ;;  %v10089_v8 = vshrl.u32 %v2101_v9, 5  ;;  %v2115_v56 = vshll.u32 %v14546_v49, %v2103_v33  ;;  %v2107_v40 = vshrl.u32 %v14547_v21, %v10060_v14 }
 0x250   : > { %v2110_v4 = vshrl.u32 %v14548_v43, %v10060_v14  ;;  %v2113_v16 = vshrl.u32 %v14546_v49, %v10060_v14  ;;  %v2118_v17 = vshll.u32 %v14543_v32, %v2103_v33  ;;  %v7313_v38 = vmin.u32 %v1949_v31, %v10056_v3 }
 0x251   : > { %v10100_v57 = vshrl.u32 %v1841_v10, 30  ;;  %v2106_v9 = vshll.u32 %v14539_v51, %v2103_v33  ;;  %v2117_v48 = vor.u32 %v2116_v29, %v2115_v56  ;;  %v2109_v24 = vshll.u32 %v14547_v21, %v2103_v33 }
 0x252   : > { %v2112_v19 = vshll.u32 %v14548_v43, %v2103_v33  ;;  %v2120_v18 = vor.u32 %v2119_v42, %v2118_v17  ;;  %8333 = vpow2.f32 %v7279_v25  ;;  %v1544_v47 = vshll.u32 %v9672_v22, %v10038_v13 }
 0x253   : > { %14573 = vst [vmem:[#allocation26_spill] sm:$0xff] %v10100_v57  ;;  %v1444_v1 = vsub.s32 4294967266, %v10084_v54  ;;  %vm7307_vm10 = vcmp.lt.s32.totalorder %v7306_v53, 0  ;;  %v14574_v50 = vand.u32 2147483647, %v9848_v20  ;;  %v10110_v10 = vor.u32 %v2107_v40, %v2106_v9 }
 0x254   : > { %v10112_v27 = vor.u32 %v2110_v4, %v2109_v24  ;;  %v2114_v29 = vor.u32 %v2113_v16, %v2112_v19  ;;  %vm2124_vm11 = vcmp.lt.s32.totalorder %v10089_v8, 4  ;;  %v1545_v33 = vshrl.u32 %v1527_v15, %v1543_v34  ;;  %v1021_v15 = vpop.f32.mrf.mxu1 }
 0x255   : > { %v2096_v31 = vand.u32 8388607, %v14574_v50  ;;  %v10115_v56 = vpop.eup %8327  ;;  %v1951_v42 = vclz %v7313_v38  ;;  %v1843_v25 = vshll.u32 %v10100_v57, 30  ;;  %v2130_v22 = vsel %vm2124_vm11, %v2117_v48, 920167782 }
 0x256   : > { %v1549_v13 = vshll.u32 %v1548_v2, 23  ;;  %v1440_v17 = vsub.s32 32, %v10084_v54  ;;  %v7302_v50 = vadd.s32 4294967294, %v1642_v63  ;;  %v2134_v40 = vsel %vm2124_vm11, %v2120_v18, 1326507024  ;;  %v14576_v18 = vld [vmem:[#allocation24_spill] sm:$0xff] }
 0x257   : > { %v8330_v4 = vpop.eup %8329  ;;  %v1445_v19 = vadd.s32 127, %v1444_v1  ;;  %v10124_v16 = vsel %vm7307_vm10, 0, %v7306_v53  ;;  %vm2121_vm12 = vcmp.lt.s32.totalorder %v10089_v8, 1  ;;  %vm2123_vm13 = vcmp.lt.s32.totalorder %v10089_v8, 3  ;;  %v14575_v1 = vld [vmem:[#allocation8_spill] sm:$0xff] }
 0x258   : > { %v10128_v34 = vpop.eup %8331  ;;  %v2097_v38 = vor.u32 8388608, %v2096_v31  ;;  %v2129_v2 = vsel %vm2121_vm12, %v10110_v10, %v10112_v27  ;;  %v2131_v63 = vsel %vm2123_vm13, %v2114_v29, %v2130_v22  ;;  %v877_v53 = vadd.f32 %v14576_v18, %v14575_v1 }
 0x259   : > { %v7314_v9 = vadd.s32 4294967294, %v1951_v42  ;;  %v10139_v24 = vsub.s32 %v10058_v11, %v1843_v25  ;;  %v2133_v20 = vsel %vm2121_vm12, %v10112_v27, %v2114_v29  ;;  %v2135_v31 = vsel %vm2123_vm13, %v2117_v48, %v2134_v40 }
 0x25a   : > { %vm7303_vm14 = vcmp.lt.s32.totalorder %v7302_v50, 0  ;;  %vm2122_vm15 = vcmp.lt.s32.totalorder %v10089_v8, 2  ;;  %v10147_v57 = vmul.f32 0.7853982, %v8330_v4  ;;  %v1022_v22 = vadd.f32 %v1021_v15, %v877_v53 }
 0x25b   : > { %v1546_v44 = vor.u32 %v1545_v33, %v1544_v47  ;;  %v1550_v52 = vor.u32 4788187, %v1549_v13  ;;  %v1753_v42 = vsub.s32 4294967266, %v10124_v16  ;;  %v2132_v11 = vsel %vm2122_vm15, %v2129_v2, %v2131_v63 }
 0x25c   : > { %14577 = vst [vmem:[#allocation19_spill] sm:$0xff] %v10147_v57  ;;  %v1442_v25 = vshrl.u32 %v10078_v61, %v1440_v17  ;;  %v1446_v1 = vshll.u32 %v1445_v19, 23  ;;  %v2136_v18 = vsel %vm2122_vm15, %v2133_v20, %v2135_v31  ;;  %v10155_v48 = vshll.u32 %v2097_v38, 8 }
 0x25d   : > { %v1441_v40 = vshll.u32 %v9936_v37, %v10084_v54  ;;  %v10159_v4 = vsel %vm7303_vm14, 0, %v7302_v50  ;;  %vm7315_vm0 = vcmp.lt.s32.totalorder %v7314_v9, 0  ;;  %v1846_v47 = vsub.s32 0, %v10139_v24 }
 0x25e   : > { %v10163_v33 = vmul.u32.u64.low %v10155_v48, %v2132_v11  ;;  %v10164_v13 = vmul.u32.u64.high %v10155_v48, %v2132_v11, %v10163_v33  ;;  %v1989_v61 = vand.u32 2139095040, %v10147_v57  ;;  %v7278_v17 = vmul.f32 -1.442695, %v1022_v22 }
 0x25f   : > { %v8334_v19 = vpop.eup %8333  ;;  %v14578_v20 = vxor.u32 2147483648, %v10051_v28  ;;  %v1754_v54 = vadd.s32 127, %v1753_v42  ;;  %v10174_v50 = vmul.u32.u64.low %v10155_v48, %v2136_v18  ;;  %v10175_v15 = vmul.u32.u64.high %v10155_v48, %v2136_v18, %v10174_v50 }
 0x260   : > { %v1551_v38 = vand.u32 2147483647, %v1550_v52  ;;  %v1443_v2 = vor.u32 %v1442_v25, %v1441_v40  ;;  %v1447_v63 = vor.u32 4788187, %v1446_v1  ;;  %v10177_v53 = vsel %vm7315_vm0, 0, %v7314_v9 }
 0x261   : > { %v1247_v37 = vsel %vm1164_vm4, %v14578_v20, %v10051_v28  ;;  %v1553_v31 = vcvt.s32.f32 %v1546_v44  ;;  %v1749_v22 = vsub.s32 32, %v10124_v16  ;;  %v1650_v11 = vsub.s32 4294967266, %v10159_v4 }
 0x262   : > { %v2126_v5 = vsel %vm2124_vm11, %v2114_v29, 2102212464  ;;  %v7309_v28 = vmin.u32 %v1846_v47, %v10139_v24  ;;  %v1990_v42 = vshrl.u32 %v1989_v61, 23  ;;  %v1109_v20 = vadd.f32 1.0, %v8334_v19 }
 0x263   : > { %8335 = vpow2.f32 %v7278_v17  ;;  %v1733_v52 = vadd.s32 %v9732_v62, %v9742_v41  ;;  %v1755_v25 = vshll.u32 %v1754_v54, 23  ;;  %v1959_v9 = vsub.s32 4294967266, %v10177_v53 }
 0x264   : > { %v2105_v44 = vshrl.u32 %v14539_v51, %v10060_v14  ;;  %v1250_v1 = vsel %vm10007_vm5, %v9243_v7, %v1247_v37  ;;  %v1554_v18 = vmul.f32 %v1553_v31, %v1551_v38  ;;  %v1448_v29 = vand.u32 2147483647, %v1447_v63 }
 0x265   : > { %v1450_v40 = vcvt.s32.f32 %v1443_v2  ;;  %v1751_v47 = vshrl.u32 %v1733_v52, %v1749_v22  ;;  %v1651_v61 = vadd.s32 127, %v1650_v11  ;;  %v2127_v62 = vsel %vm2123_vm13, %v10112_v27, %v2126_v5  ;;  %v7887_v52 = vpop.f32.mrf.mxu1 }
 0x266   : > { %v2125_v17 = vsel %vm2121_vm12, %v2105_v44, %v10110_v10  ;;  %v1848_v41 = vclz %v7309_v28  ;;  %v2147_v14 = vadd.s32 1, %v10164_v13  ;;  %v7316_v19 = vadd.s32 4294967169, %v1990_v42  ;;  %v14583_v44 = vld [vmem:[#allocation10_spill] sm:$0xff] }
 0x267   : > { %8337 = vrcp.f32 %v1109_v20  ;;  %v14579_v55 = vand.u32 2147483647, %v14566_v58  ;;  %v1750_v54 = vshll.u32 %v9994_v60, %v10124_v16  ;;  %v1756_v50 = vor.u32 4788187, %v1755_v25  ;;  %v14582_v16 = vld [vmem:[#allocation15_spill] sm:$0xff] }
 0x268   : > { %v1960_v10 = vadd.s32 127, %v1959_v9  ;;  %vm2146_vm2 = vc.u32 %v10175_v15, %v10163_v33  ;;  %v1555_v5 = vxor.u32 2147483648, %v1554_v18  ;;  %v1646_v27 = vsub.s32 32, %v10159_v4 }
 0x269   : > { %vm10201_vm1 = vcmp.le.f32.partialorder %v14579_v55, 0.7853982  ;;  %v1955_v38 = vsub.s32 32, %v10177_v53  ;;  %v2128_v2 = vsel %vm2122_vm15, %v2125_v17, %v2127_v62  ;;  %v1451_v63 = vmul.f32 %v1450_v40, %v1448_v29  ;;  %v14584_v29 = vld [vmem:[#allocation27_spill] sm:$0xff] }
 0x26a   : > { %v1752_v31 = vor.u32 %v1751_v47, %v1750_v54  ;;  %v1630_v22 = vadd.s32 %v9799_v59, %v9809_v12  ;;  %v1939_v60 = vadd.s32 %v9865_v0, %v9873_v35  ;;  %vm1370_vm3 = vcmp.lt.s32.totalorder %v14582_v16, 0  ;;  %v14585_v12 = vld [vmem:[#allocation16_spill] sm:$0xff] }
 0x26b   : > { %v1652_v11 = vshll.u32 %v1651_v61, 23  ;;  %v7310_v28 = vadd.s32 4294967294, %v1848_v41  ;;  %v2148_v42 = vsel %vm2146_vm2, %v2147_v14, %v10164_v13  ;;  %v1996_v20 = vadd.s32 1, %v7316_v19 }
 0x26c   : > { %v1757_v25 = vand.u32 2147483647, %v1756_v50  ;;  %v1961_v9 = vshll.u32 %v1960_v10, 23  ;;  %v2144_v8 = vmul.u32 %v10155_v48, %v2128_v2  ;;  %v892_v40 = vadd.f32 %v14584_v29, %v14583_v44 }
 0x26d   : > { %8339 = vcosq.f32 %v1250_v1  ;;  %v1556_v59 = vsel %vm1473_vm8, %v1555_v5, %v1554_v18  ;;  %vm1679_vm4 = vcmp.lt.s32.totalorder %v14585_v12, 0  ;;  %v1648_v0 = vshrl.u32 %v1630_v22, %v1646_v27 }
 0x26e   : > { %v1957_v35 = vshrl.u32 %v1939_v60, %v1955_v38  ;;  %v14586_v47 = vand.u32 2147483647, %v14582_v16  ;;  %v1759_v61 = vcvt.s32.f32 %v1752_v31  ;;  %v1647_v48 = vshll.u32 %v10024_v36, %v10159_v4 }
 0x26f   : > { %v10233_v17 = vadd.s32 %v2148_v42, %v2144_v8  ;;  %v1037_v62 = vadd.f32 %v7887_v52, %v892_v40  ;;  %v1653_v41 = vor.u32 4788187, %v1652_v11  ;;  %v1956_v18 = vshll.u32 %v10056_v3, %v10177_v53 }
 0x270   : > { %vm10227_vm5 = vcmp.le.f32.partialorder %v14586_v47, 0.7853982  ;;  %vm7311_vm6 = vcmp.lt.s32.totalorder %v7310_v28, 0  ;;  %vm1997_vm7 = vcmp.gt.s32.totalorder %v1996_v20, 0  ;;  %v8336_v14 = vpop.eup %8335  ;;  %v1452_v19 = vxor.u32 2147483648, %v1451_v63 }
 0x271   : > { %v1454_v55 = vsub.s32 4, %v9718_v6  ;;  %v1760_v54 = vmul.f32 %v1759_v61, %v1757_v25  ;;  %v1962_v50 = vor.u32 4788187, %v1961_v9  ;;  %v1559_v10 = vsel %vm10201_vm1, %v14566_v58, %v1556_v59 }
 0x272   : > { %v14589_v36 = vand.u32 2147483647, %v14585_v12  ;;  %v1763_v3 = vsub.s32 4, %v9943_v45  ;;  %v1649_v53 = vor.u32 %v1648_v0, %v1647_v48  ;;  %v1958_v5 = vor.u32 %v1957_v35, %v1956_v18 }
 0x273   : > { %v10248_v27 = vsel %vm7311_vm6, 0, %v7310_v28  ;;  %v2150_v38 = vadd.s32 536870912, %v10233_v17  ;;  %v1998_v2 = vsel %vm1997_vm7, %v1996_v20, 0  ;;  %v7281_v31 = vmul.f32 -1.442695, %v1037_v62 }
 0x274   : > { %vm10243_vm8 = vcmp.le.f32.partialorder %v14589_v36, 0.7853982  ;;  %8341 = vsinq.f32 %v1250_v1  ;;  %v10254_v22 = vsel %vm10201_vm1, 0, %v10074_v26  ;;  %v1654_v60 = vand.u32 2147483647, %v1653_v41  ;;  %v8338_v42 = vpop.eup %8337 }
 0x275   : > { %v1108_v11 = vadd.f32 1.0, %v8336_v14  ;;  %v1453_v52 = vsel %vm1370_vm3, %v1452_v19, %v1451_v63  ;;  %v10261_v28 = vsel %vm1370_vm3, %v1454_v55, %v9718_v6  ;;  %v1761_v25 = vxor.u32 2147483648, %v1760_v54 }
 0x276   : > { %v1963_v20 = vand.u32 2147483647, %v1962_v50  ;;  %8343 = vcosq.f32 %v1559_v10  ;;  %v1656_v1 = vcvt.s32.f32 %v1649_v53  ;;  %v1856_v9 = vsub.s32 4294967266, %v10248_v27 }
 0x277   : > { %v2000_v37 = vand.u32 31, %v1998_v2  ;;  %v1764_v26 = vsel %vm1679_vm4, %v1763_v3, %v9943_v45  ;;  %v1965_v8 = vcvt.s32.f32 %v1958_v5  ;;  %v10267_v44 = vshrl.u32 %v2150_v38, 30 }
 0x278   : > { %8345 = vpow2.f32 %v7281_v31  ;;  %v1456_v6 = vsel %vm10227_vm5, %v14582_v16, %v1453_v52  ;;  %v10272_v63 = vmul.f32 %v1656_v1, %v1654_v60  ;;  %v10274_v29 = vmul.f32 0.7853982, %v8338_v42 }
 0x279   : > { %14592 = vst [vmem:[#allocation18_spill] sm:$0xff] %v10267_v44  ;;  %8347 = vrcp.f32 %v1108_v11  ;;  %v1762_v40 = vsel %vm1679_vm4, %v1761_v25, %v1760_v54  ;;  %v10278_v59 = vmul.f32 %v1965_v8, %v1963_v20  ;;  %v1852_v45 = vsub.s32 32, %v10248_v27  ;;  %v14597_v8 = vld [vmem:[#allocation20_spill] sm:$0xff] }
 0x27a   : > { %14593 = vst [vmem:[#allocation23_spill] sm:$0xff] %v10274_v29  ;;  %v14247_v0 = vand.u32 2147483647, %v10147_v57  ;;  %8349 = vsinq.f32 %v1559_v10  ;;  %v1857_v35 = vadd.s32 127, %v1856_v9  ;;  %v10282_v47 = vsub.s32 32, %v2000_v37  ;;  %v10285_v48 = vpop.eup %8339 }
 0x27b   : > { %v3007_v61 = vadd.s32 3, %v10049_v30  ;;  %8351 = vcosq.f32 %v1456_v6  ;;  %v10289_v62 = vsel %vm10243_vm8, 0, %v1764_v26  ;;  %v1836_v41 = vadd.s32 %v9969_v46, %v9977_v39  ;;  %v14595_v46 = vld [vmem:[#allocation9_spill] sm:$0xff] }
 0x27c   : > { %14594 = vst [vmem:[#allocation22_spill] sm:$0xff] %v10289_v62  ;;  %v2152_v18 = vshll.u32 %v10267_v44, 30  ;;  %8353 = vsinq.f32 %v1456_v6  ;;  %v10297_v14 = vsel %vm10243_vm8, %v14585_v12, %v1762_v40  ;;  %v1658_v19 = vxor.u32 2147483648, %v10272_v63  ;;  %v14596_v39 = vld [vmem:[#allocation25_spill] sm:$0xff] }
 0x27d   : > { %v2298_v55 = vand.u32 2139095040, %v10274_v29  ;;  %v1854_v50 = vshrl.u32 %v1836_v41, %v1852_v45  ;;  %v10304_v10 = vand.u32 8388607, %v14247_v0  ;;  %v10308_v36 = vadd.f32 %v14596_v39, %v14595_v46 }
 0x27e   : > { %v1858_v3 = vshll.u32 %v1857_v35, 23  ;;  %v2013_v4 = vshrl.u32 %v14543_v32, %v10282_v47  ;;  %v3008_v53 = vand.u32 3, %v3007_v61  ;;  %v10313_v5 = vsub.s32 %v10233_v17, %v2152_v18 }
 0x27f   : > { %v10315_v38 = vshrl.u32 %v1998_v2, 5  ;;  %v2016_v31 = vshrl.u32 %v14544_v23, %v10282_v47  ;;  %v14248_v60 = vmov 0   ;;  %v14250_v11 = vxor.u32 2147483648, %v10128_v34 }
 0x280   : > { %8055 = vset.pattern.permute.xlu1 %v14248_v60  ;;  %8054 = vset.pattern.permute.xlu0 %v14248_v60  ;;  %v2003_v42 = vshll.u32 %v14539_v51, %v2000_v37  ;;  %v2004_v52 = vshrl.u32 %v14547_v21, %v10282_v47  ;;  %v2012_v17 = vshll.u32 %v14546_v49, %v2000_v37  ;;  %v2299_v25 = vshrl.u32 %v2298_v55, 23 }
 0x281   : > { %v10326_v2 = vpop.eup %8341  ;;  %v2006_v20 = vshll.u32 %v14547_v21, %v2000_v37  ;;  %v2007_v1 = vshrl.u32 %v14548_v43, %v10282_v47  ;;  %v2010_v9 = vshrl.u32 %v14546_v49, %v10282_v47  ;;  %v2015_v26 = vshll.u32 %v14543_v32, %v2000_v37 }
 0x282   : > { %vm1576_vm9 = vcmp.lt.s32.totalorder %v14597_v8, 0  ;;  %v2009_v6 = vshll.u32 %v14548_v43, %v2000_v37  ;;  %v2014_v40 = vor.u32 %v2013_v4, %v2012_v17  ;;  %v14251_v45 = vxor.u32 2147483648, %v10115_v56 }
 0x283   : > { %vm3010_vm10 = vcmp.eq.s32.totalorder %v3008_v53, 0  ;;  %v10337_v35 = vpop.eup %8343  ;;  %v2155_v61 = vsub.s32 0, %v10313_v5  ;;  %v2017_v41 = vor.u32 %v2016_v31, %v2015_v26  ;;  %vm3013_vm11 = vcmp.eq.s32.totalorder %v3008_v53, 2  ;;  %v14601_v26 = vld [vmem:[#allocation21_spill] sm:$0xff] }
 0x284   : > { %v3012_v18 = vsel %vm3010_vm10, %v10115_v56, %v14250_v11  ;;  %v1853_v46 = vshll.u32 %v10139_v24, %v10248_v27  ;;  %v10345_v39 = vor.u32 %v2004_v52, %v2003_v42  ;;  %v7328_v37 = vadd.s32 4294967169, %v2299_v25 }
 0x285   : > { %v8346_v55 = vpop.eup %8345  ;;  %v3015_v4 = vsel %vm3013_vm11, %v14251_v45, %v10128_v34  ;;  %v14598_v0 = vand.u32 2147483647, %v14597_v8  ;;  %vm1885_vm13 = vcmp.lt.s32.totalorder %v14601_v26, 0  ;;  %v10357_v60 = vor.u32 %v2007_v1, %v2006_v20 }
 0x286   : > { %v8348_v17 = vpop.eup %8347  ;;  %v2011_v11 = vor.u32 %v2010_v9, %v2009_v6  ;;  %vm2021_vm14 = vcmp.lt.s32.totalorder %v10315_v38, 4  ;;  %vm3009_vm15 = vcmp.lt.s32.totalorder %v3008_v53, 2  ;;  %v1855_v24 = vor.u32 %v1854_v50, %v1853_v46  ;;  %v1031_v9 = vpop.f32.mrf.mxu1  ;;  %v14604_v53 = vld [vmem:[#allocation13_spill] sm:$0xff] }
 0x287   : > { %vm10352_vm12 = vcmp.le.f32.partialorder %v14598_v0, 0.7853982  ;;  %v1859_v27 = vor.u32 4788187, %v1858_v3  ;;  %v2027_v42 = vsel %vm2021_vm14, %v2014_v40, 920167782  ;;  %v3016_v52 = vsel %vm3009_vm15, %v3012_v18, %v3015_v4  ;;  %v10362_v25 = vpop.eup %8349 }
 0x288   : > { %v7321_v0 = vmin.u32 %v2155_v61, %v10313_v5  ;;  %vm2018_vm0 = vcmp.lt.s32.totalorder %v10315_v38, 1  ;;  %v2031_v20 = vsel %vm2021_vm14, %v2017_v41, 1326507024  ;;  %v1111_v1 = vadd.f32 1.0, %v8346_v55  ;;  %v10368_v6 = vpop.eup %8351 }
 0x289   : > { %14602 = vst [vmem:[#allocation8_spill] sm:$0xff] %v10368_v6  ;;  %vm2020_vm1 = vcmp.lt.s32.totalorder %v10315_v38, 3  ;;  %v2305_v50 = vadd.s32 1, %v7328_v37  ;;  %v10371_v3 = vmul.f32 0.7853982, %v8348_v17  ;;  %vm1357_vm2 = vweird.f32 %v14604_v53  ;;  %v10374_v18 = vpop.eup %8353 }
 0x28a   : > { %14605 = vst [vmem:[#allocation10_spill] sm:$0xff] %v10374_v18  ;;  %v14606_v61 = vand.u32 2147483647, %v14601_v26  ;;  %v1994_v41 = vor.u32 8388608, %v10304_v10  ;;  %v2026_v55 = vsel %vm2018_vm0, %v10345_v39, %v10357_v60  ;;  %v2028_v37 = vsel %vm2020_vm1, %v2011_v11, %v2027_v42 }
 0x28b   : > { %14603 = vst [vmem:[#allocation24_spill] sm:$0xff] %v10371_v3  ;;  %v10391_v4 = vsel %vm1357_vm2, nan, %v3016_v52  ;;  %v1860_v17 = vand.u32 2147483647, %v1859_v27  ;;  %v2032_v10 = vsel %vm2020_vm1, %v2014_v40, %v2031_v20  ;;  %v1032_v45 = vadd.f32 %v1031_v9, %v10308_v36  ;;  %v14610_v27 = vld [vmem:[#allocation29_spill] sm:$0xff]  ;;  %v14611_v20 = vld [vmem:[#allocation31_spill] sm:$0xff] }
 0x28c   : > { %vm10378_vm3 = vcmp.le.f32.partialorder %v14606_v61, 0.7853982  ;;  %14609 = vst [vmem:[#allocation27_spill] sm:$0xff] %v10391_v4  ;;  %v2030_v61 = vsel %vm2018_vm0, %v10357_v60, %v2011_v11  ;;  %4494 = vperm.xlu0 %8054, %v10391_v4   ;;  %v1659_v42 = vsel %vm1576_vm9, %v1658_v19, %v10272_v63  ;;  %v1862_v52 = vcvt.s32.f32 %v1855_v24 }
 0x28d   : > { %vm2019_vm4 = vcmp.lt.s32.totalorder %v10315_v38, 2  ;;  %8355 = vrcp.f32 %v1111_v1  ;;  %vm1782_vm6 = vcmp.lt.s32.totalorder %v14610_v27, 0  ;;  %v2157_v54 = vclz %v7321_v0 }
 0x28e   : > { %v2029_v40 = vsel %vm2019_vm4, %v2026_v55, %v2028_v37  ;;  %vm2306_vm7 = vcmp.gt.s32.totalorder %v2305_v50, 0  ;;  %v2195_v36 = vand.u32 2139095040, %v10371_v3  ;;  %8357 = vcosq.f32 %v10297_v14 }
 0x28f   : > { %v1660_v9 = vsub.s32 4, %v14611_v20  ;;  %v2033_v63 = vsel %vm2019_vm4, %v2030_v61, %v2032_v10  ;;  %v10414_v19 = vshll.u32 %v1994_v41, 8  ;;  %v1662_v24 = vsel %vm10352_vm12, %v14597_v8, %v1659_v42 }
 0x290   : > { %v14612_v0 = vxor.u32 2147483648, %v10278_v59  ;;  %v1863_v55 = vmul.f32 %v1862_v52, %v1860_v17  ;;  %v7280_v37 = vmul.f32 -1.442695, %v1032_v45  ;;  %v2023_v57 = vsel %vm2021_vm14, %v2011_v11, 2102212464  ;;  %v14616_v11 = vld [vmem:[#allocation17_spill] sm:$0xff] }
 0x291   : > { %v10427_v12 = vmul.u32.u64.low %v10414_v19, %v2029_v40  ;;  %v10428_v61 = vmul.u32.u64.high %v10414_v19, %v2029_v40, %v10427_v12  ;;  %v2307_v41 = vsel %vm2306_vm7, %v2305_v50, 0  ;;  %v14613_v10 = vand.u32 2147483647, %v14610_v27  ;;  %v14617_v40 = vld [vmem:[#allocation26_spill] sm:$0xff] }
 0x292   : > { %v1968_v1 = vsel %vm1885_vm13, %v14612_v0, %v10278_v59  ;;  %v7322_v62 = vadd.s32 4294967294, %v2157_v54  ;;  %v10438_v59 = vmul.u32.u64.low %v10414_v19, %v2033_v63  ;;  %v10439_v17 = vmul.u32.u64.high %v10414_v19, %v2033_v63, %v10438_v59 }
 0x293   : > { %vm10433_vm8 = vcmp.le.f32.partialorder %v14613_v10, 0.7853982  ;;  %v2196_v45 = vshrl.u32 %v2195_v36, 23  ;;  %8359 = vsinq.f32 %v10297_v14  ;;  %v1969_v52 = vsub.s32 4, %v14616_v11 }
 0x294   : > { %v1866_v0 = vsub.s32 4, %v14617_v40  ;;  %v2002_v50 = vshrl.u32 %v14539_v51, %v10282_v47  ;;  %v10449_v10 = vsel %vm10378_vm3, %v14601_v26, %v1968_v1  ;;  %v1864_v54 = vxor.u32 2147483648, %v1863_v55  ;;  %v7890_v1 = vpop.f32.mrf.mxu1 }
 0x295   : > { %v2309_v16 = vand.u32 31, %v2307_v41  ;;  %8361 = vpow2.f32 %v7280_v37  ;;  %v10454_v36 = vsel %vm1576_vm9, %v1660_v9, %v14611_v20  ;;  %v2024_v47 = vsel %vm2020_vm1, %v10357_v60, %v2023_v57  ;;  %v14618_v9 = vld [vmem:[#allocation12_spill] sm:$0xff] }
 0x296   : > { %8363 = vcosq.f32 %v1662_v24  ;;  %v2022_v14 = vsel %vm2018_vm0, %v2002_v50, %v10345_v39  ;;  %vm7323_vm10 = vcmp.lt.s32.totalorder %v7322_v62, 0  ;;  %v7324_v63 = vadd.s32 4294967169, %v2196_v45  ;;  %v14619_v57 = vld [vmem:[#allocation32_spill] sm:$0xff] }
 0x297   : > { %8365 = vsinq.f32 %v1662_v24  ;;  %v1358_v37 = vand.u32 3, %v10049_v30  ;;  %v10466_v20 = vsel %vm1885_vm13, %v1969_v52, %v14616_v11  ;;  %v10472_v39 = vsel %vm1782_vm6, %v1866_v0, %v14617_v40  ;;  %v14620_v0 = vld [vmem:[#allocation11_spill] sm:$0xff]  ;;  %v14621_v50 = vld [vmem:[#allocation28_spill] sm:$0xff] }
 0x298   : > { %8367 = vcosq.f32 %v10449_v10  ;;  %v902_v60 = vadd.f32 %v14619_v57, %v14618_v9  ;;  %v1865_v24 = vsel %vm1782_vm6, %v1864_v54, %v1863_v55  ;;  %v2145_v30 = vadd.s32 %v10163_v33, %v10175_v15 }
 0x299   : > { %v2025_v59 = vsel %vm2019_vm4, %v2022_v14, %v2024_v47  ;;  %v10482_v45 = vsub.s32 32, %v2309_v16  ;;  %v10484_v11 = vsel %vm7323_vm10, 0, %v7322_v62  ;;  %v2044_v52 = vadd.s32 1, %v10428_v61 }
 0x29a   : > { %v10487_v40 = vadd.f32 %v7890_v1, %v902_v60  ;;  %v10491_v9 = vadd.f32 %v14621_v50, %v14620_v0  ;;  %v8356_v57 = vpop.eup %8355  ;;  %vm2043_vm9 = vc.u32 %v10439_v17, %v10427_v12  ;;  %v2202_v33 = vadd.s32 1, %v7324_v63 }
 0x29b   : > { %vm1360_vm11 = vcmp.eq.s32.totalorder %v1358_v37, 0  ;;  %vm1363_vm13 = vcmp.eq.s32.totalorder %v1358_v37, 2  ;;  %v10498_v15 = vsel %vm10433_vm8, %v14610_v27, %v1865_v24  ;;  %v2041_v62 = vmul.u32 %v10414_v19, %v2025_v59  ;;  %v10507_v47 = vpop.eup %8357 }
 0x29c   : > { %v14622_v38 = vxor.u32 2147483648, %v10128_v34  ;;  %v14623_v54 = vxor.u32 2147483648, %v10115_v56  ;;  %14624 = vst [vmem:[#allocation9_spill] sm:$0xff] %v10507_v47  ;;  %v2161_v63 = vsub.s32 32, %v10484_v11  ;;  %v2322_v60 = vshrl.u32 %v14543_v32, %v10482_v45 }
 0x29d   : > { %v2325_v19 = vshrl.u32 %v14544_v23, %v10482_v45  ;;  %v2165_v24 = vsub.s32 4294967266, %v10484_v11  ;;  %v2045_v59 = vsel %vm2043_vm9, %v2044_v52, %v10428_v61  ;;  %v10517_v0 = vmul.f32 0.7853982, %v8356_v57 }
 0x29e   : > { %v1362_v55 = vsel %vm1360_vm11, %v10115_v56, %v14622_v38  ;;  %v1365_v14 = vsel %vm1363_vm13, %v14623_v54, %v10128_v34  ;;  %vm1359_vm14 = vcmp.lt.s32.totalorder %v1358_v37, 2  ;;  %v2321_v56 = vshll.u32 %v14546_v49, %v2309_v16 }
 0x29f   : > { %14625 = vst [vmem:[#allocation25_spill] sm:$0xff] %v10517_v0  ;;  %v2324_v34 = vshll.u32 %v14543_v32, %v2309_v16  ;;  %vm2203_vm15 = vcmp.gt.s32.totalorder %v2202_v33, 0  ;;  %v1366_v50 = vsel %vm1359_vm14, %v1362_v55, %v1365_v14  ;;  %v10521_v38 = vshrl.u32 %v2307_v41, 5 }
 0x2a0   : > { %v2313_v54 = vshrl.u32 %v14547_v21, %v10482_v45  ;;  %v2316_v1 = vshrl.u32 %v14548_v43, %v10482_v45  ;;  %v2319_v61 = vshrl.u32 %v14546_v49, %v10482_v45  ;;  %v10529_v52 = vpop.eup %8359  ;;  %v10531_v37 = vadd.s32 %v2045_v59, %v2041_v62 }
 0x2a1   : > { %14626 = vst [vmem:[#allocation13_spill] sm:$0xff] %v10529_v52  ;;  %v14627_v57 = vand.u32 2147483647, %v10274_v29  ;;  %v2323_v26 = vor.u32 %v2322_v60, %v2321_v56  ;;  %v2326_v55 = vor.u32 %v2325_v19, %v2324_v34  ;;  %v2312_v14 = vshll.u32 %v14539_v51, %v2309_v16 }
 0x2a2   : > { %v8362_v41 = vpop.eup %8361  ;;  %v2315_v8 = vshll.u32 %v14547_v21, %v2309_v16  ;;  %v2318_v47 = vshll.u32 %v14548_v43, %v2309_v16  ;;  %v10540_v6 = vsel %vm1357_vm2, nan, %v1366_v50  ;;  %v2162_v62 = vshll.u32 %v10313_v5, %v10484_v11 }
 0x2a3   : > { %v2302_v27 = vand.u32 8388607, %v14627_v57  ;;  %14628 = vst [vmem:[#allocation31_spill] sm:$0xff] %v10540_v6  ;;  %v10542_v18 = vpop.eup %8363  ;;  %v10547_v59 = vsel %vm2203_vm15, %v2202_v33, 0  ;;  %v2504_v60 = vand.u32 2139095040, %v10517_v0  ;;  %4574 = vperm.xlu1 %8055, %v10540_v6   ;;  %v10553_v56 = vor.u32 %v2313_v54, %v2312_v14  ;;  %v1041_v14 = vpop.f32.mrf.mxu1 }
 0x2a4   : > { %14629 = vst [vmem:[#allocation17_spill] sm:$0xff] %v10542_v18  ;;  %v10551_v19 = vpop.eup %8365  ;;  %v10555_v16 = vor.u32 %v2316_v1, %v2315_v8  ;;  %v10557_v53 = vor.u32 %v2319_v61, %v2318_v47  ;;  %vm2330_vm0 = vcmp.lt.s32.totalorder %v10521_v38, 4  ;;  %v14263_v34 = vmov 1  }
 0x2a5   : > { %14630 = vst [vmem:[#allocation26_spill] sm:$0xff] %v10551_v19  ;;  %8057 = vset.pattern.permute.xlu0 %v14263_v34  ;;  %v10561_v5 = vpop.eup %8367  ;;  %v2047_v11 = vadd.s32 536870912, %v10531_v37  ;;  %v2336_v33 = vsel %vm2330_vm0, %v2323_v26, 920167782  ;;  %v2340_v50 = vsel %vm2330_vm0, %v2326_v55, 1326507024  ;;  %v2163_v8 = vshrl.u32 %v2145_v30, %v2161_v63 }
 0x2a6   : > { %14631 = vst [vmem:[#allocation12_spill] sm:$0xff] %v10561_v5  ;;  %v1110_v54 = vadd.f32 1.0, %v8362_v41  ;;  %4758 = vperm.xlu0 %8057, %v10540_v6   ;;  %v2166_v47 = vadd.s32 127, %v2165_v24  ;;  %v2303_v1 = vor.u32 8388608, %v2302_v27  ;;  %vm2327_vm1 = vcmp.lt.s32.totalorder %v10521_v38, 1 }
 0x2a7   : > { %vm2329_vm2 = vcmp.lt.s32.totalorder %v10521_v38, 3  ;;  %v10572_v61 = vand.u32 31, %v10547_v59  ;;  %v2505_v57 = vshrl.u32 %v2504_v60, 23  ;;  %8056 = vset.pattern.permute.xlu1 %v14263_v34  ;;  %v2335_v55 = vsel %vm2327_vm1, %v10553_v56, %v10555_v16 }
 0x2a8   : > { %v2337_v27 = vsel %vm2329_vm2, %v10557_v53, %v2336_v33  ;;  %v2339_v30 = vsel %vm2327_vm1, %v10555_v16, %v10557_v53  ;;  %v2341_v63 = vsel %vm2329_vm2, %v2323_v26, %v2340_v50  ;;  %4694 = vperm.xlu1 %8056, %v10391_v4   ;;  %8369 = vsinq.f32 %v10449_v10 }
 0x2a9   : > { %v10590_v24 = vshrl.u32 %v2047_v11, 30  ;;  %v7283_v41 = vmul.f32 -1.442695, %v10487_v40  ;;  %v14267_v60 = vmov 3   ;;  %8371 = vcosq.f32 %v10498_v15 }
 0x2aa   : > { %8060 = vset.pattern.permute.xlu0 %v14267_v60  ;;  %v10595_v33 = vor.u32 %v2163_v8, %v2162_v62  ;;  %vm2328_vm4 = vcmp.lt.s32.totalorder %v10521_v38, 2  ;;  %v1042_v34 = vadd.f32 %v1041_v14, %v10491_v9  ;;  %v2167_v26 = vshll.u32 %v2166_v47, 23 }
 0x2ab   : > { %14632 = vst [vmem:[#allocation32_spill] sm:$0xff] %v10590_v24  ;;  %5162 = vperm.xlu0 %8060, %v10540_v6   ;;  %v2338_v10 = vsel %vm2328_vm4, %v2335_v55, %v2337_v27  ;;  %v2342_v40 = vsel %vm2328_vm4, %v2339_v30, %v2341_v63  ;;  %v10604_v11 = vshll.u32 %v2303_v1, 8  ;;  %v10607_v50 = vsub.s32 32, %v10572_v61 }
 0x2ac   : > { %v7336_v62 = vadd.s32 4294967169, %v2505_v57  ;;  %8373 = vrcp.f32 %v1110_v54  ;;  %v14265_v8 = vmov 2   ;;  %v10613_v9 = vsel %vm10352_vm12, 0, %v10454_v36 }
 0x2ad   : > { %8058 = vset.pattern.permute.xlu1 %v14265_v8  ;;  %14633 = vst [vmem:[#allocation11_spill] sm:$0xff] %v10613_v9  ;;  %v10618_v47 = vsel %vm10378_vm3, 0, %v10466_v20  ;;  %v2049_v1 = vshll.u32 %v10590_v24, 30  ;;  %8375 = vpow2.f32 %v7283_v41  ;;  %v14269_v31 = vmov 6  }
 0x2ae   : > { %14634 = vst [vmem:[#allocation28_spill] sm:$0xff] %v10618_v47  ;;  %4960 = vperm.xlu1 %8058, %v10540_v6   ;;  %v10623_v54 = vmul.u32.u64.low %v10604_v11, %v2342_v40  ;;  %v10624_v57 = vmul.u32.u64.high %v10604_v11, %v2342_v40, %v10623_v54  ;;  %v10627_v14 = vmul.u32.u64.low %v10604_v11, %v2338_v10  ;;  %v10628_v55 = vmul.u32.u64.high %v10604_v11, %v2338_v10, %v10627_v14 }
 0x2af   : > { %8063 = vset.pattern.permute.xlu0 %v14269_v31  ;;  %v10635_v46 = vsel %vm10433_vm8, 0, %v10472_v39  ;;  %8377 = vsinq.f32 %v10498_v15  ;;  %v7282_v20 = vmul.f32 -1.442695, %v1042_v34  ;;  %v10640_v27 = vor.u32 4788187, %v2167_v26  ;;  %v14638_v15 = vld [vmem:[#allocation14_spill] sm:$0xff] }
 0x2b0   : > { %14635 = vst [vmem:[#allocation33_spill] sm:$0xff] %v10624_v57  ;;  %14636 = vst [vmem:[#allocation34_spill] sm:$0xff] %v10627_v14  ;;  %5704 = vperm.xlu0 %8063, %v10391_v4   ;;  %v2222_v63 = vshrl.u32 %v14544_v23, %v10607_v50  ;;  %v2511_v41 = vadd.s32 1, %v7336_v62  ;;  %v10646_v10 = vsub.s32 %v10531_v37, %v2049_v1  ;;  %v2903_v34 = vadd.s32 3, %v14638_v15 }
 0x2b1   : > { %14637 = vst [vmem:[#allocation35_spill] sm:$0xff] %v10635_v46  ;;  %v2219_v39 = vshrl.u32 %v14543_v32, %v10607_v50  ;;  %v2311_v26 = vshrl.u32 %v14539_v51, %v10482_v45  ;;  %v2332_v40 = vsel %vm2330_vm0, %v10557_v53, 2102212464  ;;  %v10659_v62 = vshrl.u32 %v10547_v59, 5 }
 0x2b2   : > { %8059 = vset.pattern.permute.xlu1 %v14267_v60  ;;  %v2221_v37 = vshll.u32 %v14543_v32, %v10572_v61  ;;  %v2213_v1 = vshrl.u32 %v14548_v43, %v10607_v50  ;;  %v2216_v54 = vshrl.u32 %v14546_v49, %v10607_v50  ;;  %v2218_v45 = vshll.u32 %v14546_v49, %v10572_v61 }
 0x2b3   : > { %5098 = vperm.xlu1 %8059, %v10391_v4   ;;  %v14639_v36 = vmov 0   ;;  %v2331_v59 = vsel %vm2327_vm1, %v2311_v26, %v10553_v56  ;;  %v2210_v53 = vshrl.u32 %v14547_v21, %v10607_v50  ;;  %vm2512_vm12 = vcmp.gt.s32.totalorder %v2511_v41, 0 }
 0x2b4   : > { %8066 = vset.pattern.permute.xlu0 %v14639_v36  ;;  %v2223_v8 = vor.u32 %v2222_v63, %v2221_v37  ;;  %v2333_v60 = vsel %vm2329_vm2, %v10555_v16, %v2332_v40  ;;  %v2212_v30 = vshll.u32 %v14547_v21, %v10572_v61  ;;  %v2215_v31 = vshll.u32 %v14548_v43, %v10572_v61 }
 0x2b5   : > { %v2220_v42 = vor.u32 %v2219_v39, %v2218_v45  ;;  %v10683_v29 = vpop.eup %8369  ;;  %vm2352_vm3 = vc.u32 %v10624_v57, %v10627_v14  ;;  %v2353_v56 = vadd.s32 1, %v10628_v55  ;;  %v14641_v63 = vand.u32 2147483647, %v10371_v3 }
 0x2b6   : > { %14640 = vst [vmem:[#allocation14_spill] sm:$0xff] %v10683_v29  ;;  %v2209_v16 = vshll.u32 %v14539_v51, %v10572_v61  ;;  %v14277_v40 = vmov 4   ;;  %v10693_v37 = vpop.eup %8371  ;;  %v10695_v24 = vor.u32 %v2213_v1, %v2212_v30  ;;  %v10697_v39 = vor.u32 %v2216_v54, %v2215_v31 }
 0x2b7   : > { %v2199_v26 = vand.u32 8388607, %v14641_v63  ;;  %8061 = vset.pattern.permute.xlu1 %v14277_v40  ;;  %14642 = vst [vmem:[#allocation36_spill] sm:$0xff] %v10693_v37  ;;  %vm2227_vm6 = vcmp.lt.s32.totalorder %v10659_v62, 4  ;;  %v2513_v45 = vsel %vm2512_vm12, %v2511_v41, 0  ;;  %v2052_v63 = vsub.s32 0, %v10646_v10 }
 0x2b8   : > { %5364 = vperm.xlu1 %8061, %v10540_v6   ;;  %v2334_v61 = vsel %vm2328_vm4, %v2331_v59, %v2333_v60  ;;  %v10705_v3 = vor.u32 %v2210_v53, %v2209_v16  ;;  %v2237_v40 = vsel %vm2227_vm6, %v2223_v8, 1326507024  ;;  %v2233_v31 = vsel %vm2227_vm6, %v2220_v42, 920167782 }
 0x2b9   : > { %v8374_v30 = vpop.eup %8373  ;;  %8379 = vpow2.f32 %v7282_v20  ;;  %v2904_v1 = vand.u32 3, %v2903_v34  ;;  %v10712_v41 = vand.u32 3, %v14638_v15  ;;  %v2354_v38 = vsel %vm2352_vm3, %v2353_v56, %v10628_v55 }
 0x2ba   : > { %v8376_v54 = vpop.eup %8375  ;;  %vm2224_vm7 = vcmp.lt.s32.totalorder %v10659_v62, 1  ;;  %vm2226_vm8 = vcmp.lt.s32.totalorder %v10659_v62, 3  ;;  %v2515_v60 = vand.u32 31, %v2513_v45  ;;  %v2350_v8 = vmul.u32 %v10604_v11, %v2334_v61 }
 0x2bb   : > { %v2200_v59 = vor.u32 8388608, %v2199_v26  ;;  %v2236_v20 = vsel %vm2224_vm7, %v10695_v24, %v10697_v39  ;;  %v2238_v15 = vsel %vm2226_vm8, %v2220_v42, %v2237_v40  ;;  %v10730_v55 = vmin.u32 %v2052_v63, %v10646_v10 }
 0x2bc   : > { %v10727_v34 = vpop.eup %8377  ;;  %v2232_v53 = vsel %vm2224_vm7, %v10705_v3, %v10695_v24  ;;  %v2234_v11 = vsel %vm2226_vm8, %v10697_v39, %v2233_v31  ;;  %v14279_v56 = vand.u32 2147483647, %v10517_v0  ;;  %v10740_v26 = vadd.s32 %v2354_v38, %v2350_v8 }
 0x2bd   : > { %14643 = vst [vmem:[#allocation37_spill] sm:$0xff] %v10727_v34  ;;  %vm2225_vm10 = vcmp.lt.s32.totalorder %v10659_v62, 2  ;;  %v10743_v42 = vmul.f32 0.7853982, %v8374_v30  ;;  %vm2905_vm9 = vcmp.lt.s32.totalorder %v2904_v1, 2  ;;  %vm2906_vm11 = vcmp.eq.s32.totalorder %v2904_v1, 0 }
 0x2be   : > { %v2239_v16 = vsel %vm2225_vm10, %v2236_v20, %v2238_v15  ;;  %v10747_v40 = vsub.s32 32, %v2515_v60  ;;  %v1113_v63 = vadd.f32 1.0, %v8376_v54  ;;  %vm2909_vm13 = vcmp.eq.s32.totalorder %v2904_v1, 2 }
 0x2bf   : > { %14644 = vst [vmem:[#allocation38_spill] sm:$0xff] %v10743_v42  ;;  %v2235_v61 = vsel %vm2225_vm10, %v2232_v53, %v2234_v11  ;;  %v10751_v31 = vshll.u32 %v2200_v59, 8  ;;  %vm1254_vm14 = vweird.f32 %v9243_v7  ;;  %v1258_v38 = vxor.u32 2147483648, %v10326_v2 }
 0x2c0   : > { %v1261_v30 = vxor.u32 2147483648, %v10285_v48  ;;  %v2054_v8 = vclz %v10730_v55  ;;  %v10759_v20 = vand.u32 8388607, %v14279_v56  ;;  %vm1257_vm15 = vcmp.eq.s32.totalorder %v10712_v41, 0 }
 0x2c1   : > { %vm1260_vm0 = vcmp.eq.s32.totalorder %v10712_v41, 2  ;;  %v2356_v54 = vadd.s32 536870912, %v10740_v26  ;;  %v10765_v59 = vmul.u32.u64.low %v10751_v31, %v2239_v16  ;;  %v10766_v15 = vmul.u32.u64.high %v10751_v31, %v2239_v16, %v10765_v59 }
 0x2c2   : > { %v2401_v53 = vand.u32 2139095040, %v10743_v42  ;;  %vm1256_vm1 = vcmp.lt.s32.totalorder %v10712_v41, 2  ;;  %v10771_v55 = vmul.u32.u64.low %v10751_v31, %v2235_v61  ;;  %v10772_v11 = vmul.u32.u64.high %v10751_v31, %v2235_v61, %v10771_v55 }
 0x2c3   : > { %v2528_v56 = vshrl.u32 %v14543_v32, %v10747_v40  ;;  %8381 = vrcp.f32 %v1113_v63  ;;  %v2519_v0 = vshrl.u32 %v14547_v21, %v10747_v40  ;;  %v2522_v16 = vshrl.u32 %v14548_v43, %v10747_v40 }
 0x2c4   : > { %14645 = vst [vmem:[#allocation39_spill] sm:$0xff] %v10771_v55  ;;  %v2908_v59 = vsel %vm2906_vm11, %v10285_v48, %v1258_v38  ;;  %v2911_v44 = vsel %vm2909_vm13, %v1261_v30, %v10326_v2  ;;  %v2208_v61 = vshrl.u32 %v14539_v51, %v10607_v50  ;;  %v10787_v37 = vshrl.u32 %v2513_v45, 5 }
 0x2c5   : > { %v2527_v34 = vshll.u32 %v14546_v49, %v2515_v60  ;;  %v2531_v63 = vshrl.u32 %v14544_v23, %v10747_v40  ;;  %v2518_v46 = vshll.u32 %v14539_v51, %v2515_v60  ;;  %v2521_v14 = vshll.u32 %v14547_v21, %v2515_v60 }
 0x2c6   : > { %v2525_v57 = vshrl.u32 %v14546_v49, %v10747_v40  ;;  %v2402_v5 = vshrl.u32 %v2401_v53, 23  ;;  %v8380_v29 = vpop.eup %8379  ;;  %v10796_v47 = vshrl.u32 %v2356_v54, 30  ;;  %v2530_v50 = vshll.u32 %v14543_v32, %v2515_v60 }
 0x2c7   : > { %v2529_v18 = vor.u32 %v2528_v56, %v2527_v34  ;;  %v2912_v45 = vsel %vm2905_vm9, %v2908_v59, %v2911_v44  ;;  %v2229_v19 = vsel %vm2227_vm6, %v10697_v39, 2102212464  ;;  %v10803_v9 = vor.u32 %v2519_v0, %v2518_v46 }
 0x2c8   : > { %14646 = vst [vmem:[#allocation40_spill] sm:$0xff] %v10796_v47  ;;  %v10805_v52 = vor.u32 %v2522_v16, %v2521_v14  ;;  %v2524_v36 = vshll.u32 %v14548_v43, %v2515_v60  ;;  %v2532_v49 = vor.u32 %v2531_v63, %v2530_v50  ;;  %v10810_v54 = vsel %vm1254_vm14, nan, %v2912_v45 }
 0x2c9   : > { %14647 = vst [vmem:[#allocation41_spill] sm:$0xff] %v10810_v54  ;;  %v1259_v1 = vsel %vm1257_vm15, %v10285_v48, %v1258_v38  ;;  %vm2536_vm2 = vcmp.lt.s32.totalorder %v10787_v37, 4  ;;  %v7332_v39 = vadd.s32 4294967169, %v2402_v5  ;;  %4489 = vperm.xlu0 %8066, %v10810_v54   ;;  %v14300_v0 = vmov 5  }
 0x2ca   : > { %v10815_v44 = vor.u32 %v2525_v57, %v2524_v36  ;;  %8062 = vset.pattern.permute.xlu1 %v14300_v0  ;;  %v1262_v14 = vsel %vm1260_vm0, %v1261_v30, %v10326_v2  ;;  %v2358_v46 = vshll.u32 %v10796_v47, 30  ;;  %v2542_v60 = vsel %vm2536_vm2, %v2529_v18, 920167782 }
 0x2cb   : > { %v1263_v48 = vsel %vm1256_vm1, %v1259_v1, %v1262_v14  ;;  %5502 = vperm.xlu1 %8062, %v10391_v4   ;;  %v3215_v5 = vadd.s32 3, %v10254_v22  ;;  %v2169_v57 = vand.u32 2147483647, %v10640_v27  ;;  %v7318_v36 = vadd.s32 4294967294, %v2054_v8 }
 0x2cc   : > { %v2228_v34 = vsel %vm2224_vm7, %v2208_v61, %v10705_v3  ;;  %v2230_v2 = vsel %vm2226_vm8, %v10695_v24, %v2229_v19  ;;  %vm2533_vm4 = vcmp.lt.s32.totalorder %v10787_v37, 1  ;;  %vm2535_vm12 = vcmp.lt.s32.totalorder %v10787_v37, 3 }
 0x2cd   : > { %v2546_v41 = vsel %vm2536_vm2, %v2532_v49, 1326507024  ;;  %v10843_v56 = vsel %vm1254_vm14, nan, %v1263_v48  ;;  %v2509_v27 = vor.u32 8388608, %v10759_v20  ;;  %v2541_v3 = vsel %vm2533_vm4, %v10803_v9, %v10805_v52 }
 0x2ce   : > { %14648 = vst [vmem:[#allocation42_spill] sm:$0xff] %v10843_v56  ;;  %v2543_v19 = vsel %vm2535_vm12, %v10815_v44, %v2542_v60  ;;  %v2408_v24 = vadd.s32 1, %v7332_v39  ;;  %4569 = vperm.xlu0 %8066, %v10843_v56   ;;  %v10855_v49 = vsub.s32 %v10740_v26, %v2358_v46  ;;  %v2231_v7 = vsel %vm2225_vm10, %v2228_v34, %v2230_v2 }
 0x2cf   : > { %v2250_v38 = vadd.s32 1, %v10772_v11  ;;  %v14649_v30 = vmov 6   ;;  %v3216_v8 = vand.u32 3, %v3215_v5  ;;  %vm2534_vm3 = vcmp.lt.s32.totalorder %v10787_v37, 2 }
 0x2d0   : > { %8064 = vset.pattern.permute.xlu1 %v14649_v30  ;;  %v8382_v20 = vpop.eup %8381  ;;  %v2545_v53 = vsel %vm2533_vm4, %v10805_v52, %v10815_v44  ;;  %v2547_v26 = vsel %vm2535_vm12, %v2529_v18, %v2546_v41  ;;  %v1112_v16 = vadd.f32 1.0, %v8380_v29  ;;  %vm7319_vm6 = vcmp.lt.s32.totalorder %v7318_v36, 0 }
 0x2d1   : > { %5768 = vperm.xlu1 %8064, %v10540_v6   ;;  %vm2249_vm7 = vc.u32 %v10766_v15, %v10771_v55  ;;  %v2544_v62 = vsel %vm2534_vm3, %v2541_v3, %v2543_v19  ;;  %v10873_v59 = vshll.u32 %v2509_v27, 8  ;;  %vm2409_vm8 = vcmp.gt.s32.totalorder %v2408_v24, 0 }
 0x2d2   : > { %v14650_v61 = vmov 1   ;;  %v1567_v63 = vxor.u32 2147483648, %v10362_v25  ;;  %v1570_v50 = vxor.u32 2147483648, %v10337_v35  ;;  %v2361_v29 = vsub.s32 0, %v10855_v49 }
 0x2d3   : > { %8067 = vset.pattern.permute.xlu0 %v14650_v61  ;;  %v2247_v18 = vmul.u32 %v10751_v31, %v2231_v7  ;;  %v2548_v45 = vsel %vm2534_vm3, %v2545_v53, %v2547_v26  ;;  %v10882_v1 = vmul.f32 0.7853982, %v8382_v20  ;;  %v2251_v39 = vsel %vm2249_vm7, %v2250_v38, %v10772_v11 }
 0x2d4   : > { %4690 = vperm.xlu0 %8067, %v10810_v54   ;;  %v10887_v14 = vmul.u32.u64.low %v10873_v59, %v2544_v62  ;;  %v10888_v46 = vmul.u32.u64.high %v10873_v59, %v2544_v62, %v10887_v14  ;;  %8383 = vrcp.f32 %v1112_v16  ;;  %v14298_v60 = vmov 7  }
 0x2d5   : > { %14651 = vst [vmem:[#allocation43_spill] sm:$0xff] %v10882_v1  ;;  %8065 = vset.pattern.permute.xlu1 %v14298_v60  ;;  %v2410_v48 = vsel %vm2409_vm8, %v2408_v24, 0  ;;  %vm3218_vm10 = vcmp.eq.s32.totalorder %v3216_v8, 0  ;;  %vm3221_vm9 = vcmp.eq.s32.totalorder %v3216_v8, 2  ;;  %v1564_v31 = vand.u32 3, %v10254_v22 }
 0x2d6   : > { %14652 = vst [vmem:[#allocation44_spill] sm:$0xff] %v10887_v14  ;;  %5968 = vperm.xlu1 %8065, %v10540_v6   ;;  %v10895_v5 = vmul.u32.u64.low %v10873_v59, %v2548_v45  ;;  %v10896_v34 = vmul.u32.u64.high %v10873_v59, %v2548_v45, %v10895_v5  ;;  %v3220_v11 = vsel %vm3218_vm10, %v10337_v35, %v1567_v63  ;;  %v3223_v2 = vsel %vm3221_vm9, %v1570_v50, %v10362_v25 }
 0x2d7   : > { %v14654_v41 = vcvt.s32.f32 %v10595_v33  ;;  %v10905_v3 = vsel %vm7319_vm6, 0, %v7318_v36  ;;  %v7329_v19 = vmin.u32 %v2361_v29, %v10855_v49  ;;  %v2710_v24 = vand.u32 2139095040, %v10882_v1 }
 0x2d8   : > { %14653 = vst [vmem:[#allocation45_spill] sm:$0xff] %v10896_v34  ;;  %v14655_v22 = vmov 3   ;;  %v10910_v7 = vadd.s32 %v2251_v39, %v2247_v18  ;;  %v2538_v38 = vsel %vm2536_vm2, %v10815_v44, 2102212464  ;;  %v2412_v20 = vand.u32 31, %v2410_v48 }
 0x2d9   : > { %v10902_v27 = vmul.f32 %v14654_v41, %v2169_v57  ;;  %8070 = vset.pattern.permute.xlu0 %v14655_v22  ;;  %vm3217_vm11 = vcmp.lt.s32.totalorder %v3216_v8, 2  ;;  %v2517_v33 = vshrl.u32 %v14539_v51, %v10747_v40  ;;  %vm1566_vm13 = vcmp.eq.s32.totalorder %v1564_v31, 0 }
 0x2da   : > { %5094 = vperm.xlu0 %8070, %v10810_v54   ;;  %8068 = vset.pattern.permute.xlu1 %v14650_v61  ;;  %v3224_v57 = vsel %vm3217_vm11, %v3220_v11, %v3223_v2  ;;  %vm1569_vm14 = vcmp.eq.s32.totalorder %v1564_v31, 2  ;;  %v2062_v36 = vsub.s32 4294967266, %v10905_v3  ;;  %vm1563_vm15 = vweird.f32 %v14566_v58 }
 0x2db   : > { %4754 = vperm.xlu1 %8068, %v10843_v56   ;;  %v1568_v44 = vsel %vm1566_vm13, %v10337_v35, %v1567_v63  ;;  %v1571_v53 = vsel %vm1569_vm14, %v1570_v50, %v10362_v25  ;;  %v2363_v26 = vclz %v7329_v19  ;;  %v2537_v40 = vsel %vm2533_vm4, %v2517_v33, %v10803_v9 }
 0x2dc   : > { %v2539_v8 = vsel %vm2535_vm12, %v10805_v52, %v2538_v38  ;;  %v2711_v16 = vshrl.u32 %v2710_v24, 23  ;;  %v2253_v62 = vadd.s32 536870912, %v10910_v7  ;;  %v10931_v29 = vsub.s32 32, %v2412_v20 }
 0x2dd   : > { %v10936_v35 = vsel %vm1563_vm15, nan, %v3224_v57  ;;  %vm1565_vm0 = vcmp.lt.s32.totalorder %v1564_v31, 2  ;;  %v10941_v9 = vadd.s32 %v10427_v12, %v10439_v17  ;;  %v2559_v52 = vadd.s32 1, %v10888_v46 }
 0x2de   : > { %8077 = vset.pattern.permute.xlu0 %v14650_v61  ;;  %v1572_v63 = vsel %vm1565_vm0, %v1568_v44, %v1571_v53  ;;  %v2540_v45 = vsel %vm2534_vm3, %v2537_v40, %v2539_v8  ;;  %vm2558_vm1 = vc.u32 %v10896_v34, %v10887_v14  ;;  %v14656_v39 = vmov 2  }
 0x2df   : > { %4702 = vperm.xlu0 %8077, %v10936_v35   ;;  %8069 = vset.pattern.permute.xlu1 %v14656_v39  ;;  %v10953_v12 = vadd.s32 127, %v2062_v36  ;;  %v10955_v17 = vadd.s32 4294967294, %v2363_v26  ;;  %v14297_v31 = vand.u32 2147483647, %v10743_v42  ;;  %v7344_v5 = vadd.s32 4294967169, %v2711_v16 }
 0x2e0   : > { %4892 = vperm.xlu1 %8069, %v10810_v54   ;;  %v10959_v11 = vshrl.u32 %v2253_v62, 30  ;;  %v2425_v37 = vshrl.u32 %v14543_v32, %v10931_v29  ;;  %v2428_v2 = vshrl.u32 %v14544_v23, %v10931_v29  ;;  %v10967_v41 = vsel %vm1563_vm15, nan, %v1572_v63 }
 0x2e1   : > { %v8384_v19 = vpop.eup %8383  ;;  %v2556_v24 = vmul.u32 %v10873_v59, %v2540_v45  ;;  %v2560_v38 = vsel %vm2558_vm1, %v2559_v52, %v10888_v46  ;;  %v10971_v33 = vshrl.u32 %v2410_v48, 5  ;;  %v1457_v57 = vsel %vm10227_vm5, 0, %v10261_v28  ;;  %v14660_v52 = vld [vmem:[#allocation10_spill] sm:$0xff]  ;;  %v14661_v45 = vld [vmem:[#allocation8_spill] sm:$0xff] }
 0x2e2   : > { %14657 = vst [vmem:[#allocation46_spill] sm:$0xff] %v10959_v11  ;;  %v2415_v36 = vshll.u32 %v14539_v51, %v2412_v20  ;;  %v2416_v58 = vshrl.u32 %v14547_v21, %v10931_v29  ;;  %v14658_v44 = vmov 2102212464   ;;  %v2427_v26 = vshll.u32 %v14543_v32, %v2412_v20 }
 0x2e3   : > { %4766 = vperm.xlu0 %8077, %v10967_v41   ;;  %v2424_v53 = vshll.u32 %v14658_v44, %v2412_v20  ;;  %v2418_v59 = vshll.u32 %v14547_v21, %v2412_v20  ;;  %v2419_v46 = vshrl.u32 %v14548_v43, %v10931_v29  ;;  %v2422_v48 = vshrl.u32 %v14658_v44, %v10931_v29 }
 0x2e4   : > { %v2717_v40 = vadd.s32 1, %v7344_v5  ;;  %8071 = vset.pattern.permute.xlu1 %v14655_v22  ;;  %v2421_v13 = vshll.u32 %v14548_v43, %v2412_v20  ;;  %v2429_v8 = vor.u32 %v2428_v2, %v2427_v26  ;;  %v1461_v16 = vand.u32 3, %v1457_v57  ;;  %v14662_v2 = vld [vmem:[#allocation15_spill] sm:$0xff] }
 0x2e5   : > { %v2426_v28 = vor.u32 %v2425_v37, %v2424_v53  ;;  %5158 = vperm.xlu1 %8071, %v10843_v56   ;;  %v10990_v62 = vmul.f32 0.7853982, %v8384_v19  ;;  %v1464_v63 = vxor.u32 2147483648, %v14660_v52  ;;  %v1467_v18 = vxor.u32 2147483648, %v14661_v45 }
 0x2e6   : > { %v3111_v25 = vadd.s32 3, %v1457_v57  ;;  %vm7331_vm5 = vcmp.lt.s32.totalorder %v10955_v17, 0  ;;  %v2255_v5 = vshll.u32 %v10959_v11, 30  ;;  %v10997_v50 = vadd.s32 %v2560_v38, %v2556_v24 }
 0x2e7   : > { %14659 = vst [vmem:[#allocation47_spill] sm:$0xff] %v10990_v62  ;;  %8080 = vset.pattern.permute.xlu0 %v14655_v22  ;;  %v2405_v20 = vand.u32 8388607, %v14297_v31  ;;  %v2417_v37 = vor.u32 %v2416_v58, %v2415_v36  ;;  %vm1460_vm2 = vweird.f32 %v14662_v2  ;;  %v2420_v19 = vor.u32 %v2419_v46, %v2418_v59 }
 0x2e8   : > { %5170 = vperm.xlu0 %8080, %v10967_v41   ;;  %v2423_v53 = vor.u32 %v2422_v48, %v2421_v13  ;;  %vm2433_vm4 = vcmp.lt.s32.totalorder %v10971_v33, 4  ;;  %vm2718_vm12 = vcmp.gt.s32.totalorder %v2717_v40, 0  ;;  %v14663_v38 = vmov 4  }
 0x2e9   : > { %v2439_v57 = vsel %vm2433_vm4, %v2426_v28, 920167782  ;;  %v2443_v24 = vsel %vm2433_vm4, %v2429_v8, 1326507024  ;;  %8072 = vset.pattern.permute.xlu1 %v14663_v38  ;;  %vm1463_vm3 = vcmp.eq.s32.totalorder %v1461_v16, 0  ;;  %vm1466_vm6 = vcmp.eq.s32.totalorder %v1461_v16, 2 }
 0x2ea   : > { %v2607_v36 = vand.u32 2139095040, %v10990_v62  ;;  %5296 = vperm.xlu1 %8072, %v10810_v54   ;;  %v1465_v58 = vsel %vm1463_vm3, %v14661_v45, %v1464_v63  ;;  %v1468_v26 = vsel %vm1466_vm6, %v1467_v18, %v14660_v52  ;;  %v3112_v59 = vand.u32 3, %v3111_v25 }
 0x2eb   : > { %v11014_v46 = vsub.s32 %v10910_v7, %v2255_v5  ;;  %v2406_v48 = vor.u32 8388608, %v2405_v20  ;;  %vm2430_vm7 = vcmp.lt.s32.totalorder %v10971_v33, 1  ;;  %v2719_v13 = vsel %vm2718_vm12, %v2717_v40, 0 }
 0x2ec   : > { %8084 = vset.pattern.permute.xlu0 %v14649_v30  ;;  %v2562_v8 = vadd.s32 536870912, %v10997_v50  ;;  %vm2432_vm8 = vcmp.lt.s32.totalorder %v10971_v33, 3  ;;  %v2438_v31 = vsel %vm2430_vm7, %v2417_v37, %v2420_v19  ;;  %vm1462_vm10 = vcmp.lt.s32.totalorder %v1461_v16, 2 }
 0x2ed   : > { %5776 = vperm.xlu0 %8084, %v10967_v41   ;;  %v2440_v7 = vsel %vm2432_vm8, %v2423_v53, %v2439_v57  ;;  %v2442_v25 = vsel %vm2430_vm7, %v2420_v19, %v2423_v53  ;;  %v2444_v40 = vsel %vm2432_vm8, %v2426_v28, %v2443_v24  ;;  %v1469_v5 = vsel %vm1462_vm10, %v1465_v58, %v1468_v26  ;;  %v14666_v58 = vld [vmem:[#allocation22_spill] sm:$0xff] }
 0x2ee   : > { %v11029_v20 = vand.u32 31, %v2719_v13  ;;  %v2608_v60 = vshrl.u32 %v2607_v36, 23  ;;  %5360 = vperm.xlu1 %8072, %v10843_v56   ;;  %vm3114_vm9 = vcmp.eq.s32.totalorder %v3112_v59, 0  ;;  %vm3117_vm11 = vcmp.eq.s32.totalorder %v3112_v59, 2 }
 0x2ef   : > { %vm2431_vm13 = vcmp.lt.s32.totalorder %v10971_v33, 2  ;;  %v11033_v16 = vshll.u32 %v2406_v48, 8  ;;  %v3116_v57 = vsel %vm3114_vm9, %v14661_v45, %v1464_v63  ;;  %v3119_v0 = vsel %vm3117_vm11, %v1467_v18, %v14660_v52 }
 0x2f0   : > { %v2435_v6 = vsel %vm2433_vm4, %v2423_v53, 2102212464  ;;  %v2441_v28 = vsel %vm2431_vm13, %v2438_v31, %v2440_v7  ;;  %v14664_v24 = vmov 0   ;;  %v11044_v36 = vsel %vm1460_vm2, nan, %v1469_v5  ;;  %v14673_v5 = vld [vmem:[#allocation16_spill] sm:$0xff] }
 0x2f1   : > { %8087 = vset.pattern.permute.xlu0 %v14664_v24  ;;  %14665 = vst [vmem:[#allocation10_spill] sm:$0xff] %v11044_v36  ;;  %v3423_v26 = vadd.s32 3, %v14666_v58  ;;  %v11047_v48 = vshrl.u32 %v2562_v8, 30  ;;  %v2414_v63 = vshrl.u32 %v14539_v51, %v10931_v29  ;;  %v2445_v18 = vsel %vm2431_vm13, %v2442_v25, %v2444_v40 }
 0x2f2   : > { %4579 = vperm.xlu0 %8087, %v11044_v36   ;;  %vm3113_vm14 = vcmp.lt.s32.totalorder %v3112_v59, 2  ;;  %v11057_v31 = vsel %vm7331_vm5, 0, %v10955_v17  ;;  %v11060_v52 = vsub.s32 32, %v11029_v20  ;;  %v7340_v45 = vadd.s32 4294967169, %v2608_v60 }
 0x2f3   : > { %14667 = vst [vmem:[#allocation8_spill] sm:$0xff] %v11047_v48  ;;  %v14668_v53 = vmov 5   ;;  %v3120_v8 = vsel %vm3113_vm14, %v3116_v57, %v3119_v0  ;;  %v2434_v29 = vsel %vm2430_vm7, %v2414_v63, %v2417_v37  ;;  %v2436_v7 = vsel %vm2432_vm8, %v2420_v19, %v2435_v6  ;;  %v14671_v37 = vld [vmem:[#allocation13_spill] sm:$0xff] }
 0x2f4   : > { %8073 = vset.pattern.permute.xlu1 %v14668_v53  ;;  %v11068_v59 = vmul.u32.u64.low %v11033_v16, %v2441_v28  ;;  %v11069_v25 = vmul.u32.u64.high %v11033_v16, %v2441_v28, %v11068_v59  ;;  %v11075_v60 = vmul.u32.u64.low %v11033_v16, %v2445_v18  ;;  %v11076_v40 = vmul.u32.u64.high %v11033_v16, %v2445_v18, %v11075_v60  ;;  %v14672_v57 = vld [vmem:[#allocation9_spill] sm:$0xff] }
 0x2f5   : > { %5562 = vperm.xlu1 %8073, %v10843_v56   ;;  %v3424_v0 = vand.u32 3, %v3423_v26  ;;  %v11082_v6 = vsel %vm1460_vm2, nan, %v3120_v8  ;;  %v1773_v19 = vxor.u32 2147483648, %v14671_v37  ;;  %v1776_v28 = vxor.u32 2147483648, %v14672_v57 }
 0x2f6   : > { %14669 = vst [vmem:[#allocation15_spill] sm:$0xff] %v11068_v59  ;;  %14670 = vst [vmem:[#allocation22_spill] sm:$0xff] %v11076_v40  ;;  %8090 = vset.pattern.permute.xlu0 %v14655_v22  ;;  %v11088_v63 = vsel %vm2431_vm13, %v2434_v29, %v2436_v7  ;;  %v2737_v26 = vshrl.u32 %v14544_v23, %v11060_v52  ;;  %v2614_v60 = vadd.s32 1, %v7340_v45  ;;  %vm1769_vm15 = vweird.f32 %v14673_v5 }
 0x2f7   : > { %5102 = vperm.xlu0 %8090, %v11082_v6   ;;  %v11095_v2 = vshrl.u32 %v2719_v13, 5  ;;  %v2728_v8 = vshrl.u32 %v14548_v43, %v11060_v52  ;;  %v2731_v33 = vshrl.u32 %v14658_v44, %v11060_v52  ;;  %v2736_v29 = vshll.u32 %v14543_v32, %v11029_v20 }
 0x2f8   : > { %v2734_v45 = vshrl.u32 %v14543_v32, %v11060_v52  ;;  %vm3426_vm0 = vcmp.eq.s32.totalorder %v3424_v0, 0  ;;  %vm3429_vm1 = vcmp.eq.s32.totalorder %v3424_v0, 2  ;;  %v1770_v13 = vand.u32 3, %v14666_v58 }
 0x2f9   : > { %8074 = vset.pattern.permute.xlu1 %v14649_v30  ;;  %v2727_v7 = vshll.u32 %v14547_v21, %v11029_v20  ;;  %v2730_v17 = vshll.u32 %v14548_v43, %v11029_v20  ;;  %v3428_v18 = vsel %vm3426_vm0, %v14672_v57, %v1773_v19  ;;  %v3431_v4 = vsel %vm3429_vm1, %v1776_v28, %v14671_v37 }
 0x2fa   : > { %5700 = vperm.xlu1 %8074, %v10810_v54   ;;  %v14674_v42 = vand.u32 2147483647, %v10882_v1  ;;  %v2733_v36 = vshll.u32 %v14658_v44, %v11029_v20  ;;  %v2738_v47 = vor.u32 %v2737_v26, %v2736_v29  ;;  %vm2615_vm5 = vcmp.gt.s32.totalorder %v2614_v60, 0 }
 0x2fb   : > { %8094 = vset.pattern.permute.xlu0 %v14649_v30  ;;  %v2725_v58 = vshrl.u32 %v14547_v21, %v11060_v52  ;;  %v11121_v14 = vor.u32 %v2728_v8, %v2727_v7  ;;  %v11123_v34 = vor.u32 %v2731_v33, %v2730_v17  ;;  %vm3425_vm2 = vcmp.lt.s32.totalorder %v3424_v0, 2 }
 0x2fc   : > { %v2714_v11 = vand.u32 8388607, %v14674_v42  ;;  %5708 = vperm.xlu0 %8094, %v11082_v6   ;;  %v2735_v55 = vor.u32 %v2734_v45, %v2733_v36  ;;  %v3432_v42 = vsel %vm3425_vm2, %v3428_v18, %v3431_v4  ;;  %vm1772_vm4 = vcmp.eq.s32.totalorder %v1770_v13, 0 }
 0x2fd   : > { %vm1775_vm12 = vcmp.eq.s32.totalorder %v1770_v13, 2  ;;  %vm2742_vm3 = vcmp.lt.s32.totalorder %v11095_v2, 4  ;;  %v2616_v26 = vsel %vm2615_vm5, %v2614_v60, 0  ;;  %v1774_v29 = vsel %vm1772_vm4, %v14672_v57, %v1773_v19 }
 0x2fe   : > { %5764 = vperm.xlu1 %8074, %v10843_v56   ;;  %v1777_v1 = vsel %vm1775_vm12, %v1776_v28, %v14671_v37  ;;  %v2456_v8 = vadd.s32 1, %v11069_v25  ;;  %v2724_v17 = vshll.u32 %v14539_v51, %v11029_v20  ;;  %v2752_v36 = vsel %vm2742_vm3, %v2738_v47, 1326507024 }
 0x2ff   : > { %v14318_v0 = vand.u32 2147483647, %v10990_v62  ;;  %vm2455_vm6 = vc.u32 %v11076_v40, %v11068_v59  ;;  %vm2739_vm7 = vcmp.lt.s32.totalorder %v11095_v2, 1  ;;  %v11142_v4 = vsel %vm1769_vm15, nan, %v3432_v42 }
 0x300   : > { %8098 = vset.pattern.permute.xlu0 %v14650_v61  ;;  %vm1771_vm8 = vcmp.lt.s32.totalorder %v1770_v13, 2  ;;  %v11144_v37 = vor.u32 %v2725_v58, %v2724_v17  ;;  %vm2741_vm10 = vcmp.lt.s32.totalorder %v11095_v2, 3  ;;  %v2618_v20 = vand.u32 31, %v2616_v26 }
 0x301   : > { %4710 = vperm.xlu0 %8098, %v11142_v4   ;;  %v14675_v47 = vmov 7   ;;  %v1778_v19 = vsel %vm1771_vm8, %v1774_v29, %v1777_v1  ;;  %v2715_v57 = vor.u32 8388608, %v2714_v11  ;;  %v2748_v28 = vsel %vm2742_vm3, %v2735_v55, 920167782 }
 0x302   : > { %8075 = vset.pattern.permute.xlu1 %v14675_v47  ;;  %v2751_v18 = vsel %vm2739_vm7, %v11121_v14, %v11123_v34  ;;  %v2753_v60 = vsel %vm2741_vm10, %v2735_v55, %v2752_v36  ;;  %v14676_v33 = vsub.s32 0, %v11014_v46  ;;  %v14677_v1 = vshll.u32 %v11047_v48, 30  ;;  %v14684_v48 = vld [vmem:[#allocation28_spill] sm:$0xff] }
 0x303   : > { %5900 = vperm.xlu1 %8075, %v10810_v54   ;;  %v2453_v13 = vmul.u32 %v11033_v16, %v11088_v63  ;;  %v11172_v7 = vand.u32 8388607, %v14318_v0  ;;  %v2457_v55 = vsel %vm2455_vm6, %v2456_v8, %v11069_v25  ;;  %vm2740_vm9 = vcmp.lt.s32.totalorder %v11095_v2, 2 }
 0x304   : > { %v11161_v45 = vmin.u32 %v14676_v33, %v11014_v46  ;;  %v11166_v11 = vsub.s32 %v10997_v50, %v14677_v1  ;;  %v11181_v58 = vsel %vm1769_vm15, nan, %v1778_v19  ;;  %v14679_v50 = vld [vmem:[#allocation11_spill] sm:$0xff]  ;;  %v2747_v16 = vsel %vm2739_vm7, %v11144_v37, %v11121_v14 }
 0x305   : > { %14678 = vst [vmem:[#allocation13_spill] sm:$0xff] %v11181_v58  ;;  %v3319_v42 = vadd.s32 3, %v14679_v50  ;;  %v2749_v63 = vsel %vm2741_vm10, %v11123_v34, %v2748_v28  ;;  %v11193_v25 = vsel %vm2740_vm9, %v2751_v18, %v2753_v60  ;;  %v11195_v29 = vsub.s32 32, %v2618_v20  ;;  %4774 = vperm.xlu0 %8098, %v11181_v58   ;;  %v14682_v18 = vld [vmem:[#allocation17_spill] sm:$0xff] }
 0x306   : > { %v14680_v5 = vsub.s32 32, %v10905_v3  ;;  %v11205_v19 = vshll.u32 %v2715_v57, 8  ;;  %v11210_v60 = vadd.s32 %v2457_v55, %v2453_v13  ;;  %v2621_v0 = vshll.u32 %v14539_v51, %v2618_v20  ;;  %v14681_v13 = vld [vmem:[#allocation26_spill] sm:$0xff] }
 0x307   : > { %5964 = vperm.xlu1 %8075, %v10843_v56   ;;  %v3320_v57 = vand.u32 3, %v3319_v42  ;;  %v2631_v36 = vshrl.u32 %v14543_v32, %v11195_v29  ;;  %v1670_v55 = vxor.u32 2147483648, %v14681_v13  ;;  %v1673_v17 = vxor.u32 2147483648, %v14682_v18 }
 0x308   : > { %v11201_v8 = vshrl.u32 %v10941_v9, %v14680_v5  ;;  %v11215_v9 = vsel %vm2740_vm9, %v2747_v16, %v2749_v63  ;;  %v11219_v1 = vmul.u32.u64.low %v11205_v19, %v11193_v25  ;;  %v11220_v5 = vmul.u32.u64.high %v11205_v19, %v11193_v25, %v11219_v1  ;;  %v14683_v25 = vld [vmem:[#allocation20_spill] sm:$0xff] }
 0x309   : > { %8100 = vset.pattern.permute.xlu0 %v14655_v22  ;;  %v11228_v28 = vshrl.u32 %v2616_v26, 5  ;;  %v2624_v16 = vshll.u32 %v14547_v21, %v2618_v20  ;;  %v2627_v63 = vshll.u32 %v14548_v43, %v2618_v20  ;;  %v2634_v42 = vshrl.u32 %v14544_v23, %v11195_v29 }
 0x30a   : > { %5114 = vperm.xlu0 %8100, %v11142_v4   ;;  %vm1666_vm11 = vweird.f32 %v14683_v25  ;;  %v2622_v1 = vshrl.u32 %v14547_v21, %v11195_v29  ;;  %v2625_v26 = vshrl.u32 %v14548_v43, %v11195_v29  ;;  %v2628_v33 = vshrl.u32 %v14658_v44, %v11195_v29 }
 0x30b   : > { %8076 = vset.pattern.permute.xlu1 %v14664_v24  ;;  %v2630_v54 = vshll.u32 %v14658_v44, %v2618_v20  ;;  %v2633_v23 = vshll.u32 %v14543_v32, %v2618_v20  ;;  %vm3322_vm13 = vcmp.eq.s32.totalorder %v3320_v57, 0  ;;  %vm3325_vm14 = vcmp.eq.s32.totalorder %v3320_v57, 2 }
 0x30c   : > { %4504 = vperm.xlu1 %8076, %v10936_v35   ;;  %v1667_v56 = vand.u32 3, %v14679_v50  ;;  %v3324_v58 = vsel %vm3322_vm13, %v14682_v18, %v1670_v55  ;;  %v3327_v21 = vsel %vm3325_vm14, %v1673_v17, %v14681_v13  ;;  %v3631_v43 = vadd.s32 3, %v14684_v48 }
 0x30d   : > { %v2632_v62 = vor.u32 %v2631_v36, %v2630_v54  ;;  %v2723_v59 = vshrl.u32 %v14539_v51, %v11060_v52  ;;  %v11254_v44 = vmul.u32.u64.low %v11205_v19, %v11215_v9  ;;  %v11255_v40 = vmul.u32.u64.high %v11205_v19, %v11215_v9, %v11254_v44 }
 0x30e   : > { %v2635_v32 = vor.u32 %v2634_v42, %v2633_v23  ;;  %8104 = vset.pattern.permute.xlu0 %v14649_v30  ;;  %v11259_v20 = vor.u32 %v2622_v1, %v2621_v0  ;;  %v11261_v54 = vor.u32 %v2625_v26, %v2624_v16  ;;  %v11263_v50 = vor.u32 %v2628_v33, %v2627_v63  ;;  %v14685_v63 = vld [vmem:[#allocation14_spill] sm:$0xff]  ;;  %v14686_v42 = vld [vmem:[#allocation12_spill] sm:$0xff] }
 0x30f   : > { %5720 = vperm.xlu0 %8104, %v11142_v4   ;;  %vm3321_vm15 = vcmp.lt.s32.totalorder %v3320_v57, 2  ;;  %vm2639_vm0 = vcmp.lt.s32.totalorder %v11228_v28, 4  ;;  %vm1669_vm1 = vcmp.eq.s32.totalorder %v1667_v56, 0  ;;  %vm1672_vm5 = vcmp.eq.s32.totalorder %v1667_v56, 2 }
 0x310   : > { %4584 = vperm.xlu1 %8076, %v10967_v41   ;;  %v3328_v52 = vsel %vm3321_vm15, %v3324_v58, %v3327_v21  ;;  %v2645_v36 = vsel %vm2639_vm0, %v2632_v62, 920167782  ;;  %v1671_v0 = vsel %vm1669_vm1, %v14682_v18, %v1670_v55  ;;  %v1674_v9 = vsel %vm1672_vm5, %v1673_v17, %v14681_v13  ;;  %v14687_v58 = vld [vmem:[#allocation30_spill] sm:$0xff] }
 0x311   : > { %v3632_v16 = vand.u32 3, %v3631_v43  ;;  %vm2636_vm2 = vcmp.lt.s32.totalorder %v11228_v28, 1  ;;  %v2649_v33 = vsel %vm2639_vm0, %v2635_v32, 1326507024  ;;  %v1979_v57 = vxor.u32 2147483648, %v14685_v63 }
 0x312   : > { %v1982_v1 = vxor.u32 2147483648, %v14686_v42  ;;  %vm2091_vm4 = vcmp.lt.s32.totalorder %v14687_v58, 0  ;;  %vm2638_vm12 = vcmp.lt.s32.totalorder %v11228_v28, 3  ;;  %v2644_v18 = vsel %vm2636_vm2, %v11259_v20, %v11261_v54 }
 0x313   : > { %8107 = vset.pattern.permute.xlu0 %v14664_v24  ;;  %v11286_v17 = vsel %vm1666_vm11, nan, %v3328_v52  ;;  %vm1668_vm6 = vcmp.lt.s32.totalorder %v1667_v56, 2  ;;  %v2744_v13 = vsel %vm2742_vm3, %v11123_v34, 2102212464  ;;  %v2646_v55 = vsel %vm2638_vm12, %v11263_v50, %v2645_v36 }
 0x314   : > { %8078 = vset.pattern.permute.xlu1 %v14656_v39  ;;  %v2648_v26 = vsel %vm2636_vm2, %v11261_v54, %v11263_v50  ;;  %4509 = vperm.xlu0 %8107, %v11286_v17   ;;  %v1675_v23 = vsel %vm1668_vm6, %v1671_v0, %v1674_v9  ;;  %v2650_v56 = vsel %vm2638_vm12, %v2632_v62, %v2649_v33  ;;  %vm3634_vm8 = vcmp.eq.s32.totalorder %v3632_v16, 0 }
 0x315   : > { %4904 = vperm.xlu1 %8078, %v10936_v35   ;;  %vm3637_vm13 = vcmp.eq.s32.totalorder %v3632_v16, 2  ;;  %v1976_v34 = vand.u32 3, %v14684_v48  ;;  %v2459_v21 = vadd.s32 536870912, %v11210_v60  ;;  %vm2637_vm3 = vcmp.lt.s32.totalorder %v11228_v28, 2 }
 0x316   : > { %v3636_v43 = vsel %vm3634_vm8, %v14686_v42, %v1979_v57  ;;  %v3639_v32 = vsel %vm3637_vm13, %v1982_v1, %v14685_v63  ;;  %v2743_v52 = vsel %vm2739_vm7, %v2723_v59, %v11144_v37  ;;  %v2647_v36 = vsel %vm2637_vm3, %v2644_v18, %v2646_v55 }
 0x317   : > { %v14688_v62 = vor.u32 8388608, %v11172_v7  ;;  %v11319_v48 = vsel %vm1666_vm11, nan, %v1675_v23  ;;  %v14689_v9 = vand.u32 2147483647, %v14687_v58  ;;  %v2745_v59 = vsel %vm2741_vm10, %v11121_v14, %v2744_v13 }
 0x318   : > { %vm2764_vm7 = vc.u32 %v11220_v5, %v11254_v44  ;;  %v2651_v37 = vsel %vm2637_vm3, %v2648_v26, %v2650_v56  ;;  %4589 = vperm.xlu0 %8107, %v11319_v48   ;;  %vm3633_vm11 = vcmp.lt.s32.totalorder %v3632_v16, 2  ;;  %v2765_v7 = vadd.s32 1, %v11255_v40  ;;  %v14692_v56 = vld [vmem:[#allocation21_spill] sm:$0xff] }
 0x319   : > { %v11315_v0 = vshll.u32 %v14688_v62, 8  ;;  %vm11323_vm14 = vcmp.le.f32.partialorder %v14689_v9, 0.7853982  ;;  %4968 = vperm.xlu1 %8078, %v10967_v41   ;;  %v3640_v25 = vsel %vm3633_vm11, %v3636_v43, %v3639_v32  ;;  %vm1978_vm15 = vcmp.eq.s32.totalorder %v1976_v34, 0 }
 0x31a   : > { %vm1981_vm1 = vcmp.eq.s32.totalorder %v1976_v34, 2  ;;  %v1980_v14 = vsel %vm1978_vm15, %v14686_v42, %v1979_v57  ;;  %v2746_v26 = vsel %vm2740_vm9, %v2743_v52, %v2745_v59  ;;  %vm1975_vm10 = vweird.f32 %v14692_v56 }
 0x31b   : > { %v11338_v18 = vmul.u32.u64.low %v11315_v0, %v2647_v36  ;;  %v11339_v55 = vmul.u32.u64.high %v11315_v0, %v2647_v36, %v11338_v18  ;;  %v1983_v13 = vsel %vm1981_vm1, %v1982_v1, %v14685_v63  ;;  %v14693_v43 = vxor.u32 2147483648, %v10902_v27 }
 0x31c   : > { %v11347_v23 = vmul.u32.u64.low %v11315_v0, %v2651_v37  ;;  %v11348_v16 = vmul.u32.u64.high %v11315_v0, %v2651_v37, %v11347_v23  ;;  %v14694_v36 = vclz %v11161_v45  ;;  %8115 = vset.pattern.permute.xlu0 %v14650_v61  ;;  %v11361_v2 = vsel %vm1975_vm10, nan, %v3640_v25 }
 0x31d   : > { %v2174_v32 = vsel %vm2091_vm4, %v14693_v43, %v10902_v27  ;;  %8079 = vset.pattern.permute.xlu1 %v14655_v22  ;;  %vm1977_vm9 = vcmp.lt.s32.totalorder %v1976_v34, 2  ;;  %v14695_v63 = vshll.u32 %v10646_v10, %v10905_v3  ;;  %v11368_v1 = vshrl.u32 %v2459_v21, 30  ;;  %4718 = vperm.xlu0 %8115, %v11361_v2   ;;  %v14698_v21 = vld [vmem:[#allocation34_spill] sm:$0xff] }
 0x31e   : > { %v7326_v57 = vadd.s32 4294967294, %v14694_v36  ;;  %v2766_v27 = vsel %vm2764_vm7, %v2765_v7, %v11255_v40  ;;  %5106 = vperm.xlu1 %8079, %v10936_v35   ;;  %v1984_v45 = vsel %vm1977_vm9, %v1980_v14, %v1983_v13  ;;  %v14696_v52 = vshll.u32 %v10953_v12, 23 }
 0x31f   : > { %v2061_v42 = vor.u32 %v11201_v8, %v14695_v63  ;;  %v2367_v62 = vsub.s32 32, %v11057_v31  ;;  %v2762_v10 = vmul.u32 %v11205_v19, %v2746_v26  ;;  %v2641_v3 = vsel %vm2639_vm0, %v11263_v50, 2102212464  ;;  %v14697_v8 = vld [vmem:[#allocation33_spill] sm:$0xff]  ;;  %v14701_v50 = vld [vmem:[#allocation35_spill] sm:$0xff] }
 0x320   : > { %v2065_v34 = vor.u32 4788187, %v14696_v52  ;;  %v2351_v9 = vadd.s32 %v14698_v21, %v14697_v8  ;;  %v14699_v40 = vsub.s32 4294967266, %v11057_v31  ;;  %v14700_v37 = vsub.s32 0, %v11166_v11 }
 0x321   : > { %v2620_v12 = vshrl.u32 %v14539_v51, %v11195_v29  ;;  %vm7327_vm5 = vcmp.lt.s32.totalorder %v7326_v57, 0  ;;  %v11392_v25 = vadd.s32 %v2766_v27, %v2762_v10  ;;  %v11396_v19 = vsel %vm1975_vm10, nan, %v1984_v45 }
 0x322   : > { %v2372_v59 = vadd.s32 127, %v14699_v40  ;;  %v7337_v7 = vmin.u32 %v14700_v37, %v11166_v11  ;;  %v3527_v14 = vadd.s32 3, %v14701_v50  ;;  %v2177_v13 = vsel %vm11323_vm14, %v14687_v58, %v2174_v32  ;;  %4782 = vperm.xlu0 %8115, %v11396_v19   ;;  %8081 = vset.pattern.permute.xlu1 %v14663_v38 }
 0x323   : > { %v2461_v26 = vshll.u32 %v11368_v1, 30  ;;  %v2640_v23 = vsel %vm2636_vm2, %v2620_v12, %v11259_v20  ;;  %v2642_v51 = vsel %vm2638_vm12, %v11261_v54, %v2641_v3  ;;  %v2066_v29 = vand.u32 2147483647, %v2065_v34  ;;  %5308 = vperm.xlu1 %8081, %v10936_v35   ;;  %v14704_v3 = vld [vmem:[#allocation19_spill] sm:$0xff] }
 0x324   : > { %v2068_v56 = vcvt.s32.f32 %v2061_v42  ;;  %v2369_v43 = vshrl.u32 %v2351_v9, %v2367_v62  ;;  %v2662_v36 = vadd.s32 1, %v11339_v55  ;;  %v2373_v32 = vshll.u32 %v2372_v59, 23  ;;  %v14703_v62 = vld [vmem:[#allocation36_spill] sm:$0xff] }
 0x325   : > { %v11414_v63 = vsel %vm7327_vm5, 0, %v7326_v57  ;;  %v2569_v20 = vclz %v7337_v7  ;;  %vm2661_vm0 = vc.u32 %v11348_v16, %v11338_v18  ;;  %v2368_v54 = vshll.u32 %v10855_v49, %v11057_v31  ;;  %v14702_v57 = vld [vmem:[#allocation37_spill] sm:$0xff] }
 0x326   : > { %v2768_v27 = vadd.s32 536870912, %v11392_v25  ;;  %v2643_v42 = vsel %vm2637_vm3, %v2640_v23, %v2642_v51  ;;  %v3528_v45 = vand.u32 3, %v3527_v14  ;;  %8385 = vcosq.f32 %v2177_v13  ;;  %8118 = vset.pattern.permute.xlu0 %v14655_v22  ;;  %v14705_v14 = vld [vmem:[#allocation18_spill] sm:$0xff] }
 0x327   : > { %v11424_v52 = vsub.s32 %v11210_v60, %v2461_v26  ;;  %v1876_v34 = vxor.u32 2147483648, %v14702_v57  ;;  %v1879_v10 = vxor.u32 2147483648, %v14703_v62  ;;  %vm1988_vm2 = vcmp.lt.s32.totalorder %v14704_v3, 0  ;;  %5186 = vperm.xlu0 %8118, %v11396_v19   ;;  %8082 = vset.pattern.permute.xlu1 %v14668_v53 }
 0x328   : > { %v2069_v8 = vmul.f32 %v2068_v56, %v2066_v29  ;;  %v2370_v49 = vor.u32 %v2369_v43, %v2368_v54  ;;  %v2268_v31 = vsub.s32 4294967266, %v11414_v63  ;;  %v2663_v28 = vsel %vm2661_vm0, %v2662_v36, %v11339_v55  ;;  %5574 = vperm.xlu1 %8082, %v10967_v41  }
 0x329   : > { %8387 = vsinq.f32 %v2177_v13  ;;  %v2374_v60 = vor.u32 4788187, %v2373_v32  ;;  %v7338_v21 = vadd.s32 4294967294, %v2569_v20  ;;  %v2659_v9 = vmul.u32 %v11315_v0, %v2643_v42 }
 0x32a   : > { %v11436_v40 = vshrl.u32 %v2768_v27, 30  ;;  %vm3530_vm12 = vcmp.eq.s32.totalorder %v3528_v45, 0  ;;  %vm3533_vm6 = vcmp.eq.s32.totalorder %v3528_v45, 2  ;;  %v1873_v59 = vand.u32 3, %v14701_v50  ;;  %v11450_v50 = vpop.permute.xlu1 %4574 }
 0x32b   : > { %v2464_v37 = vsub.s32 0, %v11424_v52  ;;  %v11440_v55 = vadd.s32 %v2663_v28, %v2659_v9  ;;  %v3532_v7 = vsel %vm3530_vm12, %v14703_v62, %v1876_v34  ;;  %v3535_v12 = vsel %vm3533_vm6, %v1879_v10, %v14702_v57  ;;  %8122 = vset.pattern.permute.xlu0 %v14649_v30  ;;  %14707 = vst [vmem:[#allocation9_spill] sm:$0xff] %v11450_v50  ;;  %v14709_v28 = vld [vmem:[#allocation29_spill] sm:$0xff] }
 0x32c   : > { %v14706_v13 = vsub.s32 4, %v14705_v14  ;;  %v2070_v26 = vxor.u32 2147483648, %v2069_v8  ;;  %v2377_v23 = vcvt.s32.f32 %v2370_v49  ;;  %v2269_v51 = vadd.s32 127, %v2268_v31  ;;  %5792 = vperm.xlu0 %8122, %v11396_v19   ;;  %8083 = vset.pattern.permute.xlu1 %v14649_v30 }
 0x32d   : > { %v2375_v29 = vand.u32 2147483647, %v2374_v60  ;;  %v2264_v56 = vsub.s32 32, %v11414_v63  ;;  %vm7339_vm8 = vcmp.lt.s32.totalorder %v7338_v21, 0  ;;  %vm3529_vm13 = vcmp.lt.s32.totalorder %v3528_v45, 2  ;;  %5712 = vperm.xlu1 %8083, %v10936_v35   ;;  %v14708_v45 = vld [vmem:[#allocation39_spill] sm:$0xff] }
 0x32e   : > { %v2176_v0 = vsel %vm2091_vm4, %v14706_v13, %v14705_v14  ;;  %v2770_v43 = vshll.u32 %v11436_v40, 30  ;;  %v3536_v36 = vsel %vm3529_vm13, %v3532_v7, %v3535_v12  ;;  %vm1875_vm4 = vcmp.eq.s32.totalorder %v1873_v59, 0 }
 0x32f   : > { %vm1878_vm3 = vcmp.eq.s32.totalorder %v1873_v59, 2  ;;  %v7333_v32 = vmin.u32 %v2464_v37, %v11424_v52  ;;  %v2665_v20 = vadd.s32 536870912, %v11440_v55  ;;  %v1877_v54 = vsel %vm1875_vm4, %v14703_v62, %v1876_v34 }
 0x330   : > { %v1880_v27 = vsel %vm1878_vm3, %v1879_v10, %v14702_v57  ;;  %v11463_v42 = vsel %vm11323_vm14, 0, %v2176_v0  ;;  %v2248_v49 = vadd.s32 %v14708_v45, %v10766_v15  ;;  %v2270_v31 = vshll.u32 %v2269_v51, 23  ;;  %8124 = vset.pattern.permute.xlu0 %v14664_v24  ;;  %v11475_v57 = vpop.permute.xlu0 %4494 }
 0x331   : > { %vm1872_vm7 = vweird.f32 %v14709_v28  ;;  %v2071_v60 = vsel %vm1988_vm2, %v2070_v26, %v2069_v8  ;;  %v2378_v9 = vmul.f32 %v2377_v23, %v2375_v29  ;;  %14710 = vst [vmem:[#allocation16_spill] sm:$0xff] %v11475_v57  ;;  %vm1874_vm14 = vcmp.lt.s32.totalorder %v1873_v59, 2  ;;  %8085 = vset.pattern.permute.xlu1 %v14675_v47  ;;  %v11485_v8 = vpop.permute.xlu1 %4694 }
 0x332   : > { %v11473_v34 = vsel %vm1872_vm7, nan, %v3536_v36  ;;  %v2266_v33 = vshrl.u32 %v2248_v49, %v2264_v56  ;;  %v11478_v62 = vsel %vm7339_vm8, 0, %v7338_v21  ;;  %v11481_v15 = vsub.s32 %v11392_v25, %v2770_v43  ;;  %14711 = vst [vmem:[#allocation11_spill] sm:$0xff] %v11485_v8  ;;  %5912 = vperm.xlu1 %8085, %v10936_v35   ;;  %v14715_v21 = vld [vmem:[#allocation32_spill] sm:$0xff] }
 0x333   : > { %4519 = vperm.xlu0 %8124, %v11473_v34   ;;  %v1881_v10 = vsel %vm1874_vm14, %v1877_v54, %v1880_v27  ;;  %v14712_v37 = vand.u32 2147483647, %v14704_v3  ;;  %v2466_v59 = vclz %v7333_v32  ;;  %v11493_v12 = vshrl.u32 %v2665_v20, 30  ;;  %v11496_v25 = vpop.eup %8385  ;;  %v14717_v54 = vld [vmem:[#allocation23_spill] sm:$0xff] }
 0x334   : > { %v2072_v14 = vsub.s32 4, %v14715_v21  ;;  %v2265_v0 = vshll.u32 %v11014_v46, %v11414_v63  ;;  %v2271_v26 = vor.u32 4788187, %v2270_v31  ;;  %v2379_v23 = vxor.u32 2147483648, %v2378_v9  ;;  %v11515_v63 = vpop.permute.xlu0 %4758 }
 0x335   : > { %vm11489_vm11 = vcmp.le.f32.partialorder %v14712_v37, 0.7853982  ;;  %v2577_v51 = vsub.s32 4294967266, %v11478_v62  ;;  %v11507_v29 = vsel %vm1872_vm7, nan, %v1881_v10  ;;  %v3839_v56 = vadd.s32 3, %v11463_v42  ;;  %14716 = vst [vmem:[#allocation26_spill] sm:$0xff] %v11515_v63  ;;  %v11520_v45 = vpop.permute.xlu1 %4960 }
 0x336   : > { %v2074_v13 = vsel %vm11489_vm11, %v14704_v3, %v2071_v60  ;;  %v11510_v43 = vpop.eup %8387  ;;  %v2267_v36 = vor.u32 %v2266_v33, %v2265_v0  ;;  %v2773_v32 = vsub.s32 0, %v11481_v15  ;;  %v7334_v20 = vadd.s32 4294967294, %v2466_v59  ;;  %8086 = vset.pattern.permute.xlu1 %v14664_v24  ;;  %14718 = vst [vmem:[#allocation17_spill] sm:$0xff] %v11520_v45 }
 0x337   : > { %4599 = vperm.xlu0 %8124, %v11507_v29   ;;  %8389 = vcosq.f32 %v2074_v13  ;;  %v2667_v46 = vshll.u32 %v11493_v12, 30  ;;  %vm2297_vm15 = vcmp.lt.s32.totalorder %v14717_v54, 0  ;;  %v2272_v27 = vand.u32 2147483647, %v2271_v26  ;;  %4499 = vperm.xlu1 %8086, %v11082_v6  }
 0x338   : > { %8391 = vsinq.f32 %v2074_v13  ;;  %v2073_v49 = vsel %vm1988_vm2, %v2072_v14, %v14715_v21  ;;  %v2380_v31 = vsel %vm2297_vm15, %v2379_v23, %v2378_v9  ;;  %v2578_v28 = vadd.s32 127, %v2577_v51  ;;  %v14722_v51 = vld [vmem:[#allocation45_spill] sm:$0xff] }
 0x339   : > { %v3840_v60 = vand.u32 3, %v3839_v56  ;;  %v2274_v33 = vcvt.s32.f32 %v2267_v36  ;;  %v7345_v10 = vmin.u32 %v2773_v32, %v11481_v15  ;;  %v2185_v37 = vxor.u32 2147483648, %v11510_v43  ;;  %v14723_v56 = vld [vmem:[#allocation44_spill] sm:$0xff] }
 0x33a   : > { %v2188_v59 = vxor.u32 2147483648, %v11496_v25  ;;  %v14719_v13 = vand.u32 2147483647, %v14717_v54  ;;  %v2573_v21 = vsub.s32 32, %v11478_v62  ;;  %vm7335_vm10 = vcmp.lt.s32.totalorder %v7334_v20, 0 }
 0x33b   : > { %8126 = vset.pattern.permute.xlu0 %v14655_v22  ;;  %v11539_v9 = vsub.s32 %v11440_v55, %v2667_v46  ;;  %v11544_v14 = vsel %vm11489_vm11, 0, %v2073_v49  ;;  %v2275_v23 = vmul.f32 %v2274_v33, %v2272_v27  ;;  %v2557_v36 = vadd.s32 %v14723_v56, %v14722_v51  ;;  %8088 = vset.pattern.permute.xlu1 %v14650_v61  ;;  %v11558_v49 = vpop.permute.xlu1 %5098  ;;  %v14726_v33 = vld [vmem:[#allocation40_spill] sm:$0xff] }
 0x33c   : > { %vm11533_vm1 = vcmp.le.f32.partialorder %v14719_v13, 0.7853982  ;;  %5118 = vperm.xlu0 %8126, %v11473_v34   ;;  %v2579_v32 = vshll.u32 %v2578_v28, 23  ;;  %v11552_v13 = vpop.permute.xlu0 %5162  ;;  %4698 = vperm.xlu1 %8088, %v11082_v6   ;;  %vm3842_vm9 = vcmp.eq.s32.totalorder %v3840_v60, 0  ;;  %vm3845_vm5 = vcmp.eq.s32.totalorder %v3840_v60, 2  ;;  %14725 = vst [vmem:[#allocation28_spill] sm:$0xff] %v11558_v49 }
 0x33d   : > { %v2383_v26 = vsel %vm11533_vm1, %v14717_v54, %v2380_v31  ;;  %14724 = vst [vmem:[#allocation20_spill] sm:$0xff] %v11552_v13  ;;  %v2182_v55 = vand.u32 3, %v11463_v42  ;;  %v11556_v7 = vsel %vm7335_vm10, 0, %v7334_v20  ;;  %v2775_v46 = vclz %v7345_v10  ;;  %v14727_v10 = vld [vmem:[#allocation10_spill] sm:$0xff] }
 0x33e   : > { %v3844_v27 = vsel %vm3842_vm9, %v11496_v25, %v2185_v37  ;;  %v3847_v31 = vsel %vm3845_vm5, %v2188_v59, %v11510_v43  ;;  %v2381_v51 = vsub.s32 4, %v14726_v33  ;;  %8393 = vcosq.f32 %v2383_v26 }
 0x33f   : > { %v2575_v28 = vshrl.u32 %v2557_v36, %v2573_v21  ;;  %v2670_v56 = vsub.s32 0, %v11539_v9  ;;  %8395 = vsinq.f32 %v2383_v26  ;;  %v2276_v45 = vxor.u32 2147483648, %v2275_v23 }
 0x340   : > { %8130 = vset.pattern.permute.xlu0 %v14649_v30  ;;  %v2574_v42 = vshll.u32 %v11166_v11, %v11478_v62  ;;  %vm3841_vm0 = vcmp.lt.s32.totalorder %v3840_v60, 2  ;;  %v2474_v20 = vsub.s32 4294967266, %v11556_v7  ;;  %4762 = vperm.xlu1 %8088, %v14727_v10   ;;  %vm2184_vm2 = vcmp.eq.s32.totalorder %v2182_v55, 0  ;;  %v11573_v11 = vpop.permute.xlu0 %5704 }
 0x341   : > { %5724 = vperm.xlu0 %8130, %v11473_v34   ;;  %v3848_v49 = vsel %vm3841_vm0, %v3844_v27, %v3847_v31  ;;  %vm2187_vm12 = vcmp.eq.s32.totalorder %v2182_v55, 2  ;;  %v2580_v21 = vor.u32 4788187, %v2579_v32  ;;  %v7346_v36 = vadd.s32 4294967294, %v2775_v46  ;;  %14728 = vst [vmem:[#allocation14_spill] sm:$0xff] %v11573_v11 }
 0x342   : > { %v2186_v13 = vsel %vm2184_vm2, %v11496_v25, %v2185_v37  ;;  %v2189_v26 = vsel %vm2187_vm12, %v2188_v59, %v11510_v43  ;;  %v2576_v57 = vor.u32 %v2575_v28, %v2574_v42  ;;  %v7341_v50 = vmin.u32 %v2670_v56, %v11539_v9  ;;  %v11584_v25 = vpop.permute.xlu1 %5364  ;;  %v14730_v37 = vld [vmem:[#allocation24_spill] sm:$0xff] }
 0x343   : > { %vm2181_vm6 = vweird.f32 %v14687_v58  ;;  %v3735_v62 = vadd.s32 3, %v11544_v14  ;;  %14729 = vst [vmem:[#allocation12_spill] sm:$0xff] %v11584_v25  ;;  %vm2183_vm8 = vcmp.lt.s32.totalorder %v2182_v55, 2  ;;  %vm2194_vm13 = vcmp.lt.s32.totalorder %v14730_v37, 0  ;;  %v14732_v25 = vld [vmem:[#allocation15_spill] sm:$0xff] }
 0x344   : > { %v11577_v60 = vpop.eup %8389  ;;  %v11582_v32 = vsel %vm2181_vm6, nan, %v3848_v49  ;;  %v2475_v59 = vadd.s32 127, %v2474_v20  ;;  %8089 = vset.pattern.permute.xlu1 %v14656_v39  ;;  %v2190_v46 = vsel %vm2183_vm8, %v2186_v13, %v2189_v26  ;;  %v2382_v27 = vsel %vm2297_vm15, %v2381_v51, %v14726_v33  ;;  %v14731_v20 = vld [vmem:[#allocation22_spill] sm:$0xff] }
 0x345   : > { %8134 = vset.pattern.permute.xlu0 %v14650_v61  ;;  %v8392_v43 = vpop.eup %8391  ;;  %v2581_v31 = vand.u32 2147483647, %v2580_v21  ;;  %v2470_v49 = vsub.s32 32, %v11556_v7  ;;  %vm7347_vm4 = vcmp.lt.s32.totalorder %v7346_v36, 0  ;;  %4900 = vperm.xlu1 %8089, %v11082_v6   ;;  %v2277_v55 = vsel %vm2194_vm13, %v2276_v45, %v2275_v23  ;;  %v11615_v23 = vpop.permute.xlu0 %4489 }
 0x346   : > { %4726 = vperm.xlu0 %8134, %v11582_v32   ;;  %v2583_v28 = vcvt.s32.f32 %v2576_v57  ;;  %v2672_v56 = vclz %v7341_v50  ;;  %v3736_v42 = vand.u32 3, %v3735_v62  ;;  %v2454_v11 = vadd.s32 %v14732_v25, %v14731_v20  ;;  %14736 = vst [vmem:[#allocation30_spill] sm:$0xff] %v11615_v23 }
 0x347   : > { %v11600_v13 = vsel %vm2181_vm6, nan, %v2190_v46  ;;  %v2082_v33 = vxor.u32 2147483648, %v8392_v43  ;;  %v2085_v51 = vxor.u32 2147483648, %v11577_v60  ;;  %v11605_v21 = vsel %vm11533_vm1, 0, %v2382_v27  ;;  %v11625_v46 = vpop.permute.xlu1 %5502 }
 0x348   : > { %v14733_v26 = vand.u32 2147483647, %v14730_v37  ;;  %v2476_v50 = vshll.u32 %v2475_v59, 23  ;;  %v11613_v45 = vsel %vm7347_vm4, 0, %v7346_v36  ;;  %v11621_v0 = vmul.f32 %v2583_v28, %v2581_v31  ;;  %14737 = vst [vmem:[#allocation21_spill] sm:$0xff] %v11625_v46 }
 0x349   : > { %v2471_v62 = vshll.u32 %v11424_v52, %v11556_v7  ;;  %v2472_v25 = vshrl.u32 %v2454_v11, %v2470_v49  ;;  %8091 = vset.pattern.permute.xlu1 %v14655_v22  ;;  %v7342_v36 = vadd.s32 4294967294, %v2672_v56  ;;  %vm3738_vm7 = vcmp.eq.s32.totalorder %v3736_v42, 0  ;;  %v14738_v11 = vld [vmem:[#allocation46_spill] sm:$0xff]  ;;  %v11639_v20 = vpop.permute.xlu0 %4569 }
 0x34a   : > { %vm11609_vm3 = vcmp.le.f32.partialorder %v14733_v26, 0.7853982  ;;  %4790 = vperm.xlu0 %8134, %v11600_v13   ;;  %5166 = vperm.xlu1 %8091, %v14727_v10   ;;  %vm3741_vm14 = vcmp.eq.s32.totalorder %v3736_v42, 2  ;;  %v2079_v59 = vand.u32 3, %v11544_v14  ;;  %v2783_v31 = vsub.s32 4294967266, %v11613_v45  ;;  %14739 = vst [vmem:[#allocation33_spill] sm:$0xff] %v11639_v20 }
 0x34b   : > { %v2280_v58 = vsel %vm11609_vm3, %v14730_v37, %v2277_v55  ;;  %v11630_v27 = vpop.eup %8393  ;;  %v3740_v55 = vsel %vm3738_vm7, %v11577_v60, %v2082_v33  ;;  %v3743_v28 = vsel %vm3741_vm14, %v2085_v51, %v8392_v43  ;;  %v4047_v52 = vadd.s32 3, %v11605_v21 }
 0x34c   : > { %v11635_v7 = vpop.eup %8395  ;;  %v2278_v49 = vsub.s32 4, %v14738_v11  ;;  %8397 = vcosq.f32 %v2280_v58  ;;  %v2477_v56 = vor.u32 4788187, %v2476_v50  ;;  %v2585_v14 = vxor.u32 2147483648, %v11621_v0  ;;  %v11643_v46 = vpop.permute.xlu1 %5768 }
 0x34d   : > { %8399 = vsinq.f32 %v2280_v58  ;;  %v2473_v26 = vor.u32 %v2472_v25, %v2471_v62  ;;  %vm3737_vm11 = vcmp.lt.s32.totalorder %v3736_v42, 2  ;;  %vm7343_vm15 = vcmp.lt.s32.totalorder %v7342_v36, 0 }
 0x34e   : > { %8136 = vset.pattern.permute.xlu0 %v14655_v22  ;;  %8092 = vset.pattern.permute.xlu1 %v14663_v38  ;;  %v3744_v23 = vsel %vm3737_vm11, %v3740_v55, %v3743_v28  ;;  %vm2081_vm1 = vcmp.eq.s32.totalorder %v2079_v59, 0  ;;  %vm2084_vm10 = vcmp.eq.s32.totalorder %v2079_v59, 2  ;;  %v2784_v50 = vadd.s32 127, %v2783_v31 }
 0x34f   : > { %5130 = vperm.xlu0 %8136, %v11582_v32   ;;  %5368 = vperm.xlu1 %8092, %v14727_v10   ;;  %v2083_v20 = vsel %vm2081_vm1, %v11577_v60, %v2082_v33  ;;  %v2086_v58 = vsel %vm2084_vm10, %v2085_v51, %v8392_v43  ;;  %v4048_v8 = vand.u32 3, %v4047_v52  ;;  %v2478_v63 = vand.u32 2147483647, %v2477_v56  ;;  %v11656_v31 = vpop.permute.xlu0 %4690 }
 0x350   : > { %vm2078_vm9 = vweird.f32 %v14704_v3  ;;  %v2391_v42 = vxor.u32 2147483648, %v11635_v7  ;;  %v2394_v62 = vxor.u32 2147483648, %v11630_v27  ;;  %v2779_v25 = vsub.s32 32, %v11613_v45 }
 0x351   : > { %v11653_v55 = vsel %vm7343_vm15, 0, %v7342_v36  ;;  %v11660_v60 = vsel %vm2078_vm9, nan, %v3744_v23  ;;  %vm2080_vm5 = vcmp.lt.s32.totalorder %v2079_v59, 2  ;;  %v2279_v43 = vsel %vm2194_vm13, %v2278_v49, %v14738_v11  ;;  %v11668_v52 = vpop.permute.xlu1 %5968  ;;  %v14741_v59 = vld [vmem:[#allocation25_spill] sm:$0xff] }
 0x352   : > { %v2480_v33 = vcvt.s32.f32 %v2473_v26  ;;  %v2763_v51 = vadd.s32 %v11254_v44, %v11220_v5  ;;  %v2087_v36 = vsel %vm2080_vm5, %v2083_v20, %v2086_v58  ;;  %v2785_v28 = vshll.u32 %v2784_v50, 23  ;;  %14740 = vst [vmem:[#allocation34_spill] sm:$0xff] %v11668_v52 }
 0x353   : > { %8142 = vset.pattern.permute.xlu0 %v14664_v24  ;;  %8093 = vset.pattern.permute.xlu1 %v14668_v53  ;;  %vm4050_vm0 = vcmp.eq.s32.totalorder %v4048_v8, 0  ;;  %vm4053_vm2 = vcmp.eq.s32.totalorder %v4048_v8, 2  ;;  %v2388_v23 = vand.u32 3, %v11605_v21  ;;  %vm2503_vm12 = vcmp.lt.s32.totalorder %v14741_v59, 0 }
 0x354   : > { %4529 = vperm.xlu0 %8142, %v11660_v60   ;;  %v2680_v11 = vsub.s32 4294967266, %v11653_v55  ;;  %5506 = vperm.xlu1 %8093, %v11082_v6   ;;  %v4052_v5 = vsel %vm4050_vm0, %v11630_v27, %v2391_v42  ;;  %v4055_v44 = vsel %vm4053_vm2, %v2394_v62, %v11635_v7  ;;  %v2586_v49 = vsel %vm2503_vm12, %v2585_v14, %v11621_v0 }
 0x355   : > { %v2481_v56 = vmul.f32 %v2480_v33, %v2478_v63  ;;  %v2781_v20 = vshrl.u32 %v2763_v51, %v2779_v25  ;;  %v11682_v26 = vsel %vm2078_vm9, nan, %v2087_v36  ;;  %v2281_v21 = vsel %vm11609_vm3, 0, %v2279_v43  ;;  %v11695_v63 = vpop.permute.xlu0 %5094 }
 0x356   : > { %v14742_v50 = vand.u32 2147483647, %v14741_v59  ;;  %v2780_v52 = vshll.u32 %v11481_v15, %v11613_v45  ;;  %14745 = vst [vmem:[#allocation35_spill] sm:$0xff] %v11695_v63  ;;  %vm4049_vm8 = vcmp.lt.s32.totalorder %v4048_v8, 2  ;;  %v2786_v3 = vor.u32 4788187, %v2785_v28  ;;  %v11701_v25 = vpop.permute.xlu1 %4754 }
 0x357   : > { %v4056_v0 = vsel %vm4049_vm8, %v4052_v5, %v4055_v44  ;;  %vm2390_vm13 = vcmp.eq.s32.totalorder %v2388_v23, 0  ;;  %vm2393_vm4 = vcmp.eq.s32.totalorder %v2388_v23, 2  ;;  %v2681_v14 = vadd.s32 127, %v2680_v11 }
 0x358   : > { %vm11688_vm6 = vcmp.le.f32.partialorder %v14742_v50, 0.7853982  ;;  %4609 = vperm.xlu0 %8142, %v11682_v26   ;;  %5570 = vperm.xlu1 %8093, %v14727_v10   ;;  %v2392_v15 = vsel %vm2390_vm13, %v11630_v27, %v2391_v42  ;;  %v2395_v45 = vsel %vm2393_vm4, %v2394_v62, %v11635_v7  ;;  %v2482_v8 = vxor.u32 2147483648, %v2481_v56  ;;  %v14747_v27 = vld [vmem:[#allocation38_spill] sm:$0xff] }
 0x359   : > { %v2589_v57 = vsel %vm11688_vm6, %v14741_v59, %v2586_v49  ;;  %v11705_v43 = vpop.eup %8397  ;;  %v2782_v33 = vor.u32 %v2781_v20, %v2780_v52  ;;  %vm2387_vm3 = vweird.f32 %v14717_v54  ;;  %v3943_v51 = vadd.s32 3, %v2281_v21  ;;  %v14748_v52 = vld [vmem:[#allocation8_spill] sm:$0xff] }
 0x35a   : > { %v8400_v36 = vpop.eup %8399  ;;  %v2676_v28 = vsub.s32 32, %v11653_v55  ;;  %v11712_v11 = vsel %vm2387_vm3, nan, %v4056_v0  ;;  %vm2389_vm7 = vcmp.lt.s32.totalorder %v2388_v23, 2  ;;  %8401 = vcosq.f32 %v2589_v57  ;;  %v11716_v42 = vpop.permute.xlu0 %4702 }
 0x35b   : > { %14746 = vst [vmem:[#allocation37_spill] sm:$0xff] %v11712_v11  ;;  %vm2400_vm14 = vcmp.lt.s32.totalorder %v14747_v27, 0  ;;  %v2787_v7 = vand.u32 2147483647, %v2786_v3  ;;  %v2396_v62 = vsel %vm2389_vm7, %v2392_v15, %v2395_v45  ;;  %v2587_v5 = vsub.s32 4, %v14748_v52  ;;  %v11725_v50 = vpop.permute.xlu1 %4892 }
 0x35c   : > { %8150 = vset.pattern.permute.xlu0 %v14650_v61  ;;  %8403 = vsinq.f32 %v2589_v57  ;;  %v2660_v44 = vadd.s32 %v11338_v18, %v11348_v16  ;;  %v2682_v49 = vshll.u32 %v2681_v14, 23  ;;  %8095 = vset.pattern.permute.xlu1 %v14649_v30  ;;  %v2483_v23 = vsel %vm2400_vm14, %v2482_v8, %v2481_v56  ;;  %14749 = vst [vmem:[#allocation36_spill] sm:$0xff] %v11725_v50 }
 0x35d   : > { %4734 = vperm.xlu0 %8150, %v11712_v11   ;;  %v2789_v20 = vcvt.s32.f32 %v2782_v33  ;;  %5772 = vperm.xlu1 %8095, %v14727_v10   ;;  %v3944_v3 = vand.u32 3, %v3943_v51  ;;  %v11729_v15 = vsel %vm2387_vm3, nan, %v2396_v62  ;;  %v2288_v57 = vxor.u32 2147483648, %v8400_v36 }
 0x35e   : > { %v2678_v0 = vshrl.u32 %v2660_v44, %v2676_v28  ;;  %v2291_v18 = vxor.u32 2147483648, %v11705_v43  ;;  %v11733_v14 = vpop.permute.xlu0 %4766  ;;  %v2588_v56 = vsel %vm2503_vm12, %v2587_v5, %v14748_v52  ;;  %v14750_v45 = vand.u32 2147483647, %v14747_v27  ;;  %v14753_v44 = vld [vmem:[#allocation43_spill] sm:$0xff] }
 0x35f   : > { %v2790_v16 = vmul.f32 %v2789_v20, %v2787_v7  ;;  %v2677_v54 = vshll.u32 %v11539_v9, %v11653_v55  ;;  %v2683_v33 = vor.u32 4788187, %v2682_v49  ;;  %vm3946_vm15 = vcmp.eq.s32.totalorder %v3944_v3, 0 }
 0x360   : > { %vm11740_vm11 = vcmp.le.f32.partialorder %v14750_v45, 0.7853982  ;;  %vm3949_vm1 = vcmp.eq.s32.totalorder %v3944_v3, 2  ;;  %v2285_v28 = vand.u32 3, %v2281_v21  ;;  %v11751_v62 = vpop.permute.xlu1 %5158  ;;  %v3948_v52 = vsel %vm3946_vm15, %v11705_v43, %v2288_v57 }
 0x361   : > { %4798 = vperm.xlu0 %8150, %v11729_v15   ;;  %v2486_v51 = vsel %vm11740_vm11, %v14747_v27, %v2483_v23  ;;  %8096 = vset.pattern.permute.xlu1 %v14675_v47  ;;  %v2679_v7 = vor.u32 %v2678_v0, %v2677_v54  ;;  %v3951_v5 = vsel %vm3949_vm1, %v2291_v18, %v8400_v36  ;;  %v2590_v9 = vsel %vm11688_vm6, 0, %v2588_v56 }
 0x362   : > { %5972 = vperm.xlu1 %8096, %v14727_v10   ;;  %v2791_v55 = vxor.u32 2147483648, %v2790_v16  ;;  %8405 = vcosq.f32 %v2486_v51  ;;  %vm2709_vm10 = vcmp.lt.s32.totalorder %v14753_v44, 0  ;;  %v2684_v49 = vand.u32 2147483647, %v2683_v33 }
 0x363   : > { %v11759_v21 = vpop.permute.xlu0 %5170  ;;  %vm3945_vm9 = vcmp.lt.s32.totalorder %v3944_v3, 2  ;;  %8407 = vsinq.f32 %v2486_v51  ;;  %vm2287_vm5 = vcmp.eq.s32.totalorder %v2285_v28, 0  ;;  %vm2290_vm0 = vcmp.eq.s32.totalorder %v2285_v28, 2 }
 0x364   : > { %14754 = vst [vmem:[#allocation19_spill] sm:$0xff] %v11759_v21  ;;  %v3952_v23 = vsel %vm3945_vm9, %v3948_v52, %v3951_v5  ;;  %v2484_v20 = vsub.s32 4, %v11368_v1  ;;  %v2686_v58 = vcvt.s32.f32 %v2679_v7  ;;  %v2289_v0 = vsel %vm2287_vm5, %v11705_v43, %v2288_v57  ;;  %v14760_v5 = vld [vmem:[#allocation13_spill] sm:$0xff] }
 0x365   : > { %8153 = vset.pattern.permute.xlu0 %v14655_v22  ;;  %v2292_v56 = vsel %vm2290_vm0, %v2291_v18, %v8400_v36  ;;  %v2792_v45 = vsel %vm2709_vm10, %v2791_v55, %v2790_v16  ;;  %vm2284_vm2 = vweird.f32 %v14730_v37  ;;  %v11768_v3 = vpop.permute.xlu1 %5296  ;;  %v4255_v54 = vadd.s32 3, %v2590_v9 }
 0x366   : > { %5202 = vperm.xlu0 %8153, %v11729_v15   ;;  %8097 = vset.pattern.permute.xlu1 %v14664_v24  ;;  %14755 = vst [vmem:[#allocation18_spill] sm:$0xff] %v11768_v3  ;;  %v2687_v51 = vmul.f32 %v2686_v58, %v2684_v49  ;;  %v11773_v7 = vsel %vm2284_vm2, nan, %v3952_v23  ;;  %vm2286_vm12 = vcmp.lt.s32.totalorder %v2285_v28, 2  ;;  %v14756_v36 = vand.u32 2147483647, %v14753_v44 }
 0x367   : > { %4514 = vperm.xlu1 %8097, %v11142_v4   ;;  %v8402_v33 = vpop.eup %8401  ;;  %v2293_v16 = vsel %vm2286_vm12, %v2289_v0, %v2292_v56  ;;  %v2485_v52 = vsel %vm2400_vm14, %v2484_v20, %v11368_v1  ;;  %v4256_v49 = vand.u32 3, %v4255_v54  ;;  %v2793_v1 = vsub.s32 4, %v11436_v40 }
 0x368   : > { %vm11777_vm6 = vcmp.le.f32.partialorder %v14756_v36, 0.7853982  ;;  %v11782_v18 = vpop.permute.xlu0 %5776  ;;  %v2688_v23 = vxor.u32 2147483648, %v2687_v51  ;;  %v11795_v58 = vsel %vm2284_vm2, nan, %v2293_v16  ;;  %v2600_v0 = vxor.u32 2147483648, %v8402_v33 }
 0x369   : > { %v8404_v43 = vpop.eup %8403  ;;  %14759 = vst [vmem:[#allocation39_spill] sm:$0xff] %v11782_v18  ;;  %v2795_v28 = vsel %vm11777_vm6, %v14753_v44, %v2792_v45  ;;  %v11791_v55 = vpop.permute.xlu1 %5360  ;;  %14762 = vst [vmem:[#allocation32_spill] sm:$0xff] %v11795_v58  ;;  %v2487_v56 = vsel %vm11740_vm11, 0, %v2485_v52  ;;  %v14764_v45 = vld [vmem:[#allocation47_spill] sm:$0xff]  ;;  %vm4258_vm13 = vcmp.eq.s32.totalorder %v4256_v49, 0  ;;  %vm4261_vm4 = vcmp.eq.s32.totalorder %v4256_v49, 2 }
 0x36a   : > { %8157 = vset.pattern.permute.xlu0 %v14664_v24  ;;  %14761 = vst [vmem:[#allocation29_spill] sm:$0xff] %v11791_v55  ;;  %v2597_v36 = vxor.u32 2147483648, %v8404_v43  ;;  %8409 = vcosq.f32 %v2795_v28  ;;  %vm2606_vm8 = vcmp.lt.s32.totalorder %v14764_v45, 0  ;;  %v2594_v37 = vand.u32 3, %v2590_v9 }
 0x36b   : > { %4539 = vperm.xlu0 %8157, %v11773_v7   ;;  %4594 = vperm.xlu1 %8097, %v14760_v5   ;;  %8411 = vsinq.f32 %v2795_v28  ;;  %v2689_v54 = vsel %vm2606_vm8, %v2688_v23, %v2687_v51  ;;  %v4263_v52 = vsel %vm4261_vm4, %v2600_v0, %v8404_v43  ;;  %v4151_v50 = vadd.s32 3, %v2487_v56 }
 0x36c   : > { %v4260_v16 = vsel %vm4258_vm13, %v8402_v33, %v2597_v36  ;;  %v2794_v18 = vsel %vm2709_vm10, %v2793_v1, %v11436_v40  ;;  %v14766_v9 = vand.u32 2147483647, %v14764_v45  ;;  %vm4257_vm7 = vcmp.lt.s32.totalorder %v4256_v49, 2 }
 0x36d   : > { %v11801_v20 = vpop.permute.xlu0 %4579  ;;  %vm2596_vm14 = vcmp.eq.s32.totalorder %v2594_v37, 0  ;;  %vm2599_vm11 = vcmp.eq.s32.totalorder %v2594_v37, 2  ;;  %vm2593_vm15 = vweird.f32 %v14741_v59  ;;  %v2796_v63 = vsel %vm11777_vm6, 0, %v2794_v18 }
 0x36e   : > { %14763 = vst [vmem:[#allocation23_spill] sm:$0xff] %v11801_v20  ;;  %vm11816_vm3 = vcmp.le.f32.partialorder %v14766_v9, 0.7853982  ;;  %v2598_v40 = vsel %vm2596_vm14, %v8402_v33, %v2597_v36  ;;  %v2601_v1 = vsel %vm2599_vm11, %v2600_v0, %v8404_v43  ;;  %v4152_v9 = vand.u32 3, %v4151_v50 }
 0x36f   : > { %4619 = vperm.xlu0 %8157, %v11795_v58   ;;  %8099 = vset.pattern.permute.xlu1 %v14656_v39  ;;  %v8406_v28 = vpop.eup %8405  ;;  %v2692_v51 = vsel %vm11816_vm3, %v14764_v45, %v2689_v54  ;;  %vm2595_vm1 = vcmp.lt.s32.totalorder %v2594_v37, 2  ;;  %v2690_v33 = vsub.s32 4, %v11493_v12  ;;  %v2491_v57 = vand.u32 3, %v2487_v56 }
 0x370   : > { %4912 = vperm.xlu1 %8099, %v11142_v4   ;;  %v11808_v8 = vpop.permute.xlu1 %5562  ;;  %v8408_v20 = vpop.eup %8407  ;;  %v2497_v49 = vxor.u32 2147483648, %v8406_v28  ;;  %8413 = vcosq.f32 %v2692_v51  ;;  %v2602_v50 = vsel %vm2595_vm1, %v2598_v40, %v2601_v1  ;;  %vm4154_vm10 = vcmp.eq.s32.totalorder %v4152_v9, 0 }
 0x371   : > { %14765 = vst [vmem:[#allocation45_spill] sm:$0xff] %v11808_v8  ;;  %v4264_v8 = vsel %vm4257_vm7, %v4260_v16, %v4263_v52  ;;  %v2494_v55 = vxor.u32 2147483648, %v8408_v20  ;;  %8415 = vsinq.f32 %v2692_v51  ;;  %vm4157_vm9 = vcmp.eq.s32.totalorder %v4152_v9, 2 }
 0x372   : > { %v11824_v23 = vpop.permute.xlu0 %5102  ;;  %v11835_v54 = vsel %vm2593_vm15, nan, %v4264_v8  ;;  %v4159_v0 = vsel %vm4157_vm9, %v2497_v49, %v8408_v20  ;;  %v4463_v37 = vadd.s32 3, %v2796_v63  ;;  %v11847_v16 = vsel %vm2593_vm15, nan, %v2602_v50 }
 0x373   : > { %8159 = vset.pattern.permute.xlu0 %v14655_v22  ;;  %14769 = vst [vmem:[#allocation44_spill] sm:$0xff] %v11824_v23  ;;  %14770 = vst [vmem:[#allocation40_spill] sm:$0xff] %v11835_v54  ;;  %v4156_v36 = vsel %vm4154_vm10, %v8406_v28, %v2494_v55  ;;  %vm4153_vm5 = vcmp.lt.s32.totalorder %v4152_v9, 2  ;;  %v2691_v56 = vsel %vm2606_vm8, %v2690_v33, %v11493_v12  ;;  %vm2493_vm0 = vcmp.eq.s32.totalorder %v2491_v57, 0 }
 0x374   : > { %5134 = vperm.xlu0 %8159, %v11773_v7   ;;  %4976 = vperm.xlu1 %8099, %v14760_v5   ;;  %14772 = vst [vmem:[#allocation24_spill] sm:$0xff] %v11847_v16  ;;  %v4160_v51 = vsel %vm4153_vm5, %v4156_v36, %v4159_v0  ;;  %vm2496_vm2 = vcmp.eq.s32.totalorder %v2491_v57, 2  ;;  %v2495_v1 = vsel %vm2493_vm0, %v8406_v28, %v2494_v55  ;;  %v4464_v59 = vand.u32 3, %v4463_v37 }
 0x375   : > { %v11828_v3 = vpop.permute.xlu1 %5700  ;;  %vm2490_vm12 = vweird.f32 %v14747_v27  ;;  %v2693_v12 = vsel %vm11816_vm3, 0, %v2691_v56  ;;  %vm2492_vm6 = vcmp.lt.s32.totalorder %v2491_v57, 2  ;;  %v2800_v28 = vand.u32 3, %v2796_v63 }
 0x376   : > { %v11865_v33 = vsel %vm2490_vm12, nan, %v4160_v51  ;;  %vm4466_vm8 = vcmp.eq.s32.totalorder %v4464_v59, 0  ;;  %vm4469_vm13 = vcmp.eq.s32.totalorder %v4464_v59, 2  ;;  %v4359_v0 = vadd.s32 3, %v2693_v12 }
 0x377   : > { %v11839_v43 = vpop.permute.xlu0 %5708  ;;  %v8410_v8 = vpop.eup %8409  ;;  %14774 = vst [vmem:[#allocation15_spill] sm:$0xff] %v11865_v33  ;;  %vm4465_vm4 = vcmp.lt.s32.totalorder %v4464_v59, 2  ;;  %vm2802_vm3 = vcmp.eq.s32.totalorder %v2800_v28, 0  ;;  %vm2805_vm7 = vcmp.eq.s32.totalorder %v2800_v28, 2  ;;  %vm2799_vm14 = vweird.f32 %v14753_v44 }
 0x378   : > { %8164 = vset.pattern.permute.xlu0 %v14650_v61  ;;  %14771 = vst [vmem:[#allocation10_spill] sm:$0xff] %v11839_v43  ;;  %8101 = vset.pattern.permute.xlu1 %v14655_v22  ;;  %v8412_v52 = vpop.eup %8411  ;;  %v2498_v43 = vsel %vm2496_vm2, %v2497_v49, %v8408_v20  ;;  %v2806_v23 = vxor.u32 2147483648, %v8410_v8  ;;  %vm2801_vm11 = vcmp.lt.s32.totalorder %v2800_v28, 2  ;;  %vm2696_vm0 = vweird.f32 %v14764_v45 }
 0x379   : > { %4742 = vperm.xlu0 %8164, %v11835_v54   ;;  %5178 = vperm.xlu1 %8101, %v14760_v5   ;;  %v11843_v18 = vpop.permute.xlu1 %5764  ;;  %v2803_v9 = vxor.u32 2147483648, %v8412_v52  ;;  %v2499_v55 = vsel %vm2492_vm6, %v2495_v1, %v2498_v43 }
 0x37a   : > { %v4471_v36 = vsel %vm4469_vm13, %v2806_v23, %v8412_v52  ;;  %v11875_v56 = vsel %vm2490_vm12, nan, %v2499_v55  ;;  %v2807_v1 = vsel %vm2805_vm7, %v2806_v23, %v8412_v52 }
 0x37b   : > { %v4468_v21 = vsel %vm4466_vm8, %v8410_v8, %v2803_v9  ;;  %14776 = vst [vmem:[#allocation25_spill] sm:$0xff] %v11875_v56  ;;  %v2804_v51 = vsel %vm2802_vm3, %v8410_v8, %v2803_v9  ;;  %v2697_v8 = vand.u32 3, %v2693_v12 }
 0x37c   : > { %v11853_v40 = vpop.permute.xlu0 %4710  ;;  %v4472_v57 = vsel %vm4465_vm4, %v4468_v21, %v4471_v36  ;;  %v2808_v23 = vsel %vm2801_vm11, %v2804_v51, %v2807_v1 }
 0x37d   : > { %4806 = vperm.xlu0 %8164, %v11847_v16   ;;  %8102 = vset.pattern.permute.xlu1 %v14663_v38  ;;  %v8414_v37 = vpop.eup %8413  ;;  %v11888_v59 = vsel %vm2799_vm14, nan, %v4472_v57  ;;  %vm2699_vm9 = vcmp.eq.s32.totalorder %v2697_v8, 0  ;;  %vm2702_vm5 = vcmp.eq.s32.totalorder %v2697_v8, 2  ;;  %vm2698_vm2 = vcmp.lt.s32.totalorder %v2697_v8, 2 }
 0x37e   : > { %5380 = vperm.xlu1 %8102, %v14760_v5   ;;  %v11858_v50 = vpop.permute.xlu1 %5900  ;;  %v8416_v43 = vpop.eup %8415  ;;  %14778 = vst [vmem:[#allocation8_spill] sm:$0xff] %v11888_v59 }
 0x37f   : > { %14773 = vst [vmem:[#allocation22_spill] sm:$0xff] %v11858_v50  ;;  %v4360_v50 = vand.u32 3, %v4359_v0  ;;  %v2700_v55 = vxor.u32 2147483648, %v8416_v43  ;;  %v11898_v0 = vsel %vm2799_vm14, nan, %v2808_v23 }
 0x380   : > { %v11868_v20 = vpop.permute.xlu0 %4774  ;;  %14780 = vst [vmem:[#allocation13_spill] sm:$0xff] %v11898_v0 }
 0x381   : > { %8166 = vset.pattern.permute.xlu0 %v14664_v24  ;;  %vm4362_vm15 = vcmp.eq.s32.totalorder %v4360_v50, 0  ;;  %vm4365_vm1 = vcmp.eq.s32.totalorder %v4360_v50, 2  ;;  %vm4361_vm10 = vcmp.lt.s32.totalorder %v4360_v50, 2  ;;  %v2701_v12 = vsel %vm2699_vm9, %v8414_v37, %v2700_v55 }
 0x382   : > { %4549 = vperm.xlu0 %8166, %v11865_v33   ;;  %8103 = vset.pattern.permute.xlu1 %v14668_v53  ;;  %v11871_v49 = vpop.permute.xlu1 %5964  ;;  %v4364_v21 = vsel %vm4362_vm15, %v8414_v37, %v2700_v55 }
 0x383   : > { %14775 = vst [vmem:[#allocation46_spill] sm:$0xff] %v11871_v49  ;;  %5518 = vperm.xlu1 %8103, %v11142_v4   ;;  %v2703_v49 = vxor.u32 2147483648, %v8414_v37 }
 0x385   : > { %v11879_v63 = vpop.permute.xlu0 %5114  ;;  %v4367_v36 = vsel %vm4365_vm1, %v2703_v49, %v8416_v43  ;;  %v2704_v57 = vsel %vm2702_vm5, %v2703_v49, %v8416_v43 }
 0x386   : > { %4629 = vperm.xlu0 %8166, %v11875_v56   ;;  %14777 = vst [vmem:[#allocation38_spill] sm:$0xff] %v11879_v63  ;;  %v4368_v28 = vsel %vm4361_vm10, %v4364_v21, %v4367_v36  ;;  %v2705_v50 = vsel %vm2698_vm2, %v2701_v12, %v2704_v57  ;;  %v14784_v21 = vld [vmem:[#allocation27_spill] sm:$0xff]  ;;  %v14793_v63 = vld [vmem:[#allocation42_spill] sm:$0xff] }
 0x387   : > { %8105 = vset.pattern.permute.xlu1 %v14649_v30  ;;  %v11883_v27 = vpop.permute.xlu1 %4504  ;;  %v11909_v44 = vsel %vm2696_vm0, nan, %v4368_v28  ;;  %v11918_v43 = vsel %vm2696_vm0, nan, %v2705_v50 }
 0x388   : > { %5784 = vperm.xlu1 %8105, %v14760_v5   ;;  %14781 = vst [vmem:[#allocation47_spill] sm:$0xff] %v11909_v44  ;;  %14782 = vst [vmem:[#allocation48_spill] sm:$0xff] %v11918_v43 }
 0x38a   : > { %8169 = vset.pattern.permute.xlu0 %v14650_v61  ;;  %v11892_v52 = vpop.permute.xlu0 %5720 }
 0x38b   : > { %4750 = vperm.xlu0 %8169, %v11888_v59   ;;  %14779 = vst [vmem:[#allocation43_spill] sm:$0xff] %v11892_v52  ;;  %v11894_v9 = vpop.permute.xlu1 %4584 }
 0x38c   : > { %8106 = vset.pattern.permute.xlu1 %v14675_v47 }
 0x38d   : > { %5984 = vperm.xlu1 %8106, %v14760_v5  }
 0x38f   : > { %4814 = vperm.xlu0 %8169, %v11898_v0   ;;  %v11903_v51 = vpop.permute.xlu0 %4509 }
 0x390   : > { %v11906_v1 = vpop.permute.xlu1 %4904 }
 0x391   : > { %8108 = vset.pattern.permute.xlu1 %v14650_v61 }
 0x392   : > { %4706 = vperm.xlu1 %8108, %v11286_v17  }
 0x393   : > { %8171 = vset.pattern.permute.xlu0 %v14664_v24  ;;  %v11914_v37 = vpop.permute.xlu0 %4589 }
 0x394   : > { %4559 = vperm.xlu0 %8171, %v11909_v44   ;;  %v11916_v49 = vpop.permute.xlu1 %4968 }
 0x396   : > { %4770 = vperm.xlu1 %8108, %v11319_v48  }
 0x398   : > { %4639 = vperm.xlu0 %8171, %v11918_v43   ;;  %v11922_v45 = vpop.permute.xlu0 %4718 }
 0x399   : > { %v11924_v55 = vpop.permute.xlu1 %5106 }
 0x39a   : > { %8109 = vset.pattern.permute.xlu1 %v14655_v22 }
 0x39b   : > { %5110 = vperm.xlu1 %8109, %v11286_v17  }
 0x39c   : > { %8175 = vset.pattern.permute.xlu0 %v14655_v22 }
 0x39d   : > { %5146 = vperm.xlu0 %8175, %v11835_v54   ;;  %v11930_v23 = vpop.permute.xlu0 %4782 }
 0x39e   : > { %v11932_v8 = vpop.permute.xlu1 %5308 }
 0x39f   : > { %14783 = vst [vmem:[#allocation49_spill] sm:$0xff] %v11932_v8  ;;  %5174 = vperm.xlu1 %8109, %v11319_v48  }
 0x3a1   : > { %8176 = vset.pattern.permute.xlu0 %v14656_v39 }
 0x3a2   : > { %4896 = vperm.xlu0 %8176, %v14784_v21   ;;  %v11937_v36 = vpop.permute.xlu0 %5186 }
 0x3a3   : > { %14785 = vst [vmem:[#allocation27_spill] sm:$0xff] %v11937_v36  ;;  %8110 = vset.pattern.permute.xlu1 %v14663_v38  ;;  %v11940_v28 = vpop.permute.xlu1 %5574 }
 0x3a4   : > { %14786 = vst [vmem:[#allocation50_spill] sm:$0xff] %v11940_v28  ;;  %5312 = vperm.xlu1 %8110, %v11286_v17  }
 0x3a6   : > { %4908 = vperm.xlu0 %8176, %v11286_v17  }
 0x3a7   : > { %v11944_v12 = vpop.permute.xlu0 %5792 }
 0x3a8   : > { %14787 = vst [vmem:[#allocation51_spill] sm:$0xff] %v11944_v12  ;;  %5376 = vperm.xlu1 %8110, %v11319_v48   ;;  %v11948_v57 = vpop.permute.xlu1 %5712 }
 0x3aa   : > { %4916 = vperm.xlu0 %8176, %v11473_v34  }
 0x3ac   : > { %8111 = vset.pattern.permute.xlu1 %v14668_v53 }
 0x3ad   : > { %5578 = vperm.xlu1 %8111, %v11319_v48   ;;  %v11955_v28 = vpop.permute.xlu1 %5912 }
 0x3ae   : > { %4924 = vperm.xlu0 %8176, %v11660_v60   ;;  %v11951_v50 = vpop.permute.xlu0 %4519  ;;  %14789 = vst [vmem:[#allocation53_spill] sm:$0xff] %v11955_v28 }
 0x3af   : > { %14788 = vst [vmem:[#allocation52_spill] sm:$0xff] %v11951_v50 }
 0x3b1   : > { %8112 = vset.pattern.permute.xlu1 %v14649_v30 }
 0x3b2   : > { %4932 = vperm.xlu0 %8176, %v11773_v7   ;;  %v11958_v8 = vpop.permute.xlu0 %4599  ;;  %5716 = vperm.xlu1 %8112, %v11286_v17   ;;  %v11962_v12 = vpop.permute.xlu1 %4499 }
 0x3b3   : > { %14790 = vst [vmem:[#allocation54_spill] sm:$0xff] %v11958_v8  ;;  %14791 = vst [vmem:[#allocation55_spill] sm:$0xff] %v11962_v12 }
 0x3b6   : > { %4940 = vperm.xlu0 %8176, %v11865_v33   ;;  %5780 = vperm.xlu1 %8112, %v11319_v48  }
 0x3b7   : > { %v11965_v36 = vpop.permute.xlu0 %5118  ;;  %v11968_v52 = vpop.permute.xlu1 %4698 }
 0x3b8   : > { %14792 = vst [vmem:[#allocation56_spill] sm:$0xff] %v11965_v36 }
 0x3ba   : > { %4956 = vperm.xlu0 %8176, %v14793_v63   ;;  %8113 = vset.pattern.permute.xlu1 %v14675_v47 }
 0x3bb   : > { %5916 = vperm.xlu1 %8113, %v11286_v17   ;;  %v11975_v50 = vpop.permute.xlu1 %4762 }
 0x3bc   : > { %v11971_v28 = vpop.permute.xlu0 %5724 }
 0x3bd   : > { %14794 = vst [vmem:[#allocation42_spill] sm:$0xff] %v11971_v28 }
 0x3be   : > { %4964 = vperm.xlu0 %8176, %v14727_v10  }
 0x3bf   : > { %5980 = vperm.xlu1 %8113, %v11319_v48  }
 0x3c0   : > { %v11982_v36 = vpop.permute.xlu1 %4900 }
 0x3c1   : > { %v11978_v8 = vpop.permute.xlu0 %4726  ;;  %14796 = vst [vmem:[#allocation58_spill] sm:$0xff] %v11982_v36 }
 0x3c2   : > { %14795 = vst [vmem:[#allocation57_spill] sm:$0xff] %v11978_v8  ;;  %4972 = vperm.xlu0 %8176, %v11319_v48  }
 0x3c3   : > { %8114 = vset.pattern.permute.xlu1 %v14664_v24 }
 0x3c4   : > { %4524 = vperm.xlu1 %8114, %v11361_v2  }
 0x3c5   : > { %v11984_v12 = vpop.permute.xlu0 %4790  ;;  %v11989_v63 = vpop.permute.xlu1 %5166 }
 0x3c6   : > { %14797 = vst [vmem:[#allocation59_spill] sm:$0xff] %v11984_v12  ;;  %4980 = vperm.xlu0 %8176, %v11507_v29   ;;  %14798 = vst [vmem:[#allocation60_spill] sm:$0xff] %v11989_v63 }
 0x3c8   : > { %4604 = vperm.xlu1 %8114, %v11396_v19  }
 0x3ca   : > { %4988 = vperm.xlu0 %8176, %v11682_v26   ;;  %v11992_v10 = vpop.permute.xlu0 %5130  ;;  %v11995_v8 = vpop.permute.xlu1 %5368 }
 0x3cb   : > { %14799 = vst [vmem:[#allocation61_spill] sm:$0xff] %v11992_v10  ;;  %14800 = vst [vmem:[#allocation62_spill] sm:$0xff] %v11995_v8 }
 0x3cc   : > { %8116 = vset.pattern.permute.xlu1 %v14656_v39 }
 0x3cd   : > { %4920 = vperm.xlu1 %8116, %v11361_v2  }
 0x3ce   : > { %4996 = vperm.xlu0 %8176, %v11795_v58  }
 0x3cf   : > { %v11999_v48 = vpop.permute.xlu0 %4529  ;;  %v12002_v12 = vpop.permute.xlu1 %5506 }
 0x3d0   : > { %14801 = vst [vmem:[#allocation63_spill] sm:$0xff] %v11999_v48  ;;  %14802 = vst [vmem:[#allocation64_spill] sm:$0xff] %v12002_v12 }
 0x3d1   : > { %4984 = vperm.xlu1 %8116, %v11396_v19  }
 0x3d2   : > { %5004 = vperm.xlu0 %8176, %v11875_v56  }
 0x3d3   : > { %v12005_v28 = vpop.permute.xlu0 %4609  ;;  %v12008_v10 = vpop.permute.xlu1 %5570 }
 0x3d4   : > { %14803 = vst [vmem:[#allocation65_spill] sm:$0xff] %v12005_v28  ;;  %14804 = vst [vmem:[#allocation66_spill] sm:$0xff] %v12008_v10 }
 0x3d5   : > { %8117 = vset.pattern.permute.xlu1 %v14655_v22 }
 0x3d6   : > { %4948 = vperm.xlu0 %8176, %v11909_v44   ;;  %5122 = vperm.xlu1 %8117, %v11361_v2  }
 0x3d8   : > { %v12012_v8 = vpop.permute.xlu0 %4734  ;;  %v12016_v48 = vpop.permute.xlu1 %5772 }
 0x3d9   : > { %14805 = vst [vmem:[#allocation67_spill] sm:$0xff] %v12012_v8  ;;  %14806 = vst [vmem:[#allocation68_spill] sm:$0xff] %v12016_v48 }
 0x3da   : > { %5012 = vperm.xlu0 %8176, %v11918_v43   ;;  %8119 = vset.pattern.permute.xlu1 %v14663_v38 }
 0x3db   : > { %5324 = vperm.xlu1 %8119, %v11361_v2  }
 0x3dc   : > { %v12018_v36 = vpop.permute.xlu0 %4798 }
 0x3dd   : > { %14807 = vst [vmem:[#allocation69_spill] sm:$0xff] %v12018_v36  ;;  %v12024_v28 = vpop.permute.xlu1 %5972 }
 0x3de   : > { %8182 = vset.pattern.permute.xlu0 %v14655_v22  ;;  %14808 = vst [vmem:[#allocation70_spill] sm:$0xff] %v12024_v28 }
 0x3df   : > { %5150 = vperm.xlu0 %8182, %v11909_v44   ;;  %8120 = vset.pattern.permute.xlu1 %v14668_v53 }
 0x3e0   : > { %5590 = vperm.xlu1 %8120, %v11396_v19  }
 0x3e1   : > { %v12026_v56 = vpop.permute.xlu0 %5202 }
 0x3e2   : > { %14809 = vst [vmem:[#allocation71_spill] sm:$0xff] %v12026_v56  ;;  %v12031_v8 = vpop.permute.xlu1 %4514 }
 0x3e3   : > { %5218 = vperm.xlu0 %8182, %v11898_v0   ;;  %14810 = vst [vmem:[#allocation72_spill] sm:$0xff] %v12031_v8  ;;  %v8199_v8 = vld [vmem:[%s14192_s2 + $0xc0] ss:$16 sps:$4 sm:$0xff]  }
 0x3e4   : > { %8121 = vset.pattern.permute.xlu1 %v14649_v30 }
 0x3e5   : > { %5728 = vperm.xlu1 %8121, %v11361_v2  }
 0x3e6   : > { %v12033_v36 = vpop.permute.xlu0 %4539  ;;  %v12039_v43 = vpop.permute.xlu1 %4594 }
 0x3e7   : > { %14811 = vst [vmem:[#allocation73_spill] sm:$0xff] %v12033_v36  ;;  %8183 = vset.pattern.permute.xlu0 %v14675_v47  ;;  %14812 = vst [vmem:[#allocation74_spill] sm:$0xff] %v12039_v43  ;;  %v8202_v43 = vld [vmem:[%s14192_s2 + $0xc8] ss:$16 sps:$4 sm:$0xff]  }
 0x3e8   : > { %5904 = vperm.xlu0 %8183, %v14784_v21  }
 0x3e9   : > { %8123 = vset.pattern.permute.xlu1 %v14675_v47 }
 0x3ea   : > { %v12041_v56 = vpop.permute.xlu0 %4619  ;;  %5928 = vperm.xlu1 %8123, %v11361_v2  }
 0x3eb   : > { %14813 = vst [vmem:[#allocation75_spill] sm:$0xff] %v12041_v56  ;;  %v12046_v28 = vpop.permute.xlu1 %4912 }
 0x3ec   : > { %5908 = vperm.xlu0 %8183, %v11082_v6   ;;  %14814 = vst [vmem:[#allocation76_spill] sm:$0xff] %v12046_v28 }
 0x3ee   : > { %8125 = vset.pattern.permute.xlu1 %v14650_v61 }
 0x3ef   : > { %v12048_v36 = vpop.permute.xlu0 %5134  ;;  %4714 = vperm.xlu1 %8125, %v11473_v34   ;;  %v12053_v48 = vpop.permute.xlu1 %4976 }
 0x3f0   : > { %14815 = vst [vmem:[#allocation77_spill] sm:$0xff] %v12048_v36  ;;  %5976 = vperm.xlu0 %8183, %v10967_v41   ;;  %14816 = vst [vmem:[#allocation78_spill] sm:$0xff] %v12053_v48 }
 0x3f3   : > { %4778 = vperm.xlu1 %8125, %v11507_v29  }
 0x3f4   : > { %5920 = vperm.xlu0 %8183, %v11142_v4   ;;  %v12056_v56 = vpop.permute.xlu0 %4742  ;;  %v12059_v12 = vpop.permute.xlu1 %5178 }
 0x3f5   : > { %14817 = vst [vmem:[#allocation79_spill] sm:$0xff] %v12056_v56  ;;  %14818 = vst [vmem:[#allocation80_spill] sm:$0xff] %v12059_v12 }
 0x3f7   : > { %8127 = vset.pattern.permute.xlu1 %v14655_v22 }
 0x3f8   : > { %5924 = vperm.xlu0 %8183, %v11473_v34   ;;  %v12062_v10 = vpop.permute.xlu0 %4806  ;;  %5182 = vperm.xlu1 %8127, %v11507_v29  }
 0x3f9   : > { %14819 = vst [vmem:[#allocation81_spill] sm:$0xff] %v12062_v10  ;;  %v12066_v36 = vpop.permute.xlu1 %5380 }
 0x3fa   : > { %14820 = vst [vmem:[#allocation82_spill] sm:$0xff] %v12066_v36 }
 0x3fc   : > { %5992 = vperm.xlu0 %8183, %v11396_v19   ;;  %8128 = vset.pattern.permute.xlu1 %v14663_v38 }
 0x3fd   : > { %v12069_v28 = vpop.permute.xlu0 %4549  ;;  %5384 = vperm.xlu1 %8128, %v11507_v29  }
 0x3fe   : > { %14821 = vst [vmem:[#allocation83_spill] sm:$0xff] %v12069_v28  ;;  %v12074_v56 = vpop.permute.xlu1 %5518 }
 0x3ff   : > { %14822 = vst [vmem:[#allocation84_spill] sm:$0xff] %v12074_v56  ;;  %v8195_v56 = vld [vmem:[%s14192_s2 + $0xe4] ss:$16 sps:$4 sm:$0xff]  }
 0x400   : > { %5936 = vperm.xlu0 %8183, %v11582_v32   ;;  %6491 = vmatprep.subr.bf16.mxu0 %v8195_v56  ;;  %v8204_v56 = vld [vmem:[%s14192_s2 + $0xcc] ss:$16 sps:$4 sm:$0xff]  }
 0x401   : > { %v12076_v12 = vpop.permute.xlu0 %4629  ;;  %8129 = vset.pattern.permute.xlu1 %v14668_v53 }
 0x402   : > { %14823 = vst [vmem:[#allocation85_spill] sm:$0xff] %v12076_v12  ;;  %5522 = vperm.xlu1 %8129, %v11473_v34   ;;  %v8193_v12 = vld [vmem:[%s14192_s2 + $0xe0] ss:$16 sps:$4 sm:$0xff]  }
 0x403   : > { %v12081_v10 = vpop.permute.xlu1 %5784  ;;  %6492 = vmatpush1.bf16.msra.mxu0 %v8193_v12  ;;  %v8205_v12 = vld [vmem:[%s14192_s2 + $0xa0] ss:$16 sps:$4 sm:$0xff]  }
 0x404   : > { %5940 = vperm.xlu0 %8183, %v11773_v7   ;;  %14824 = vst [vmem:[#allocation86_spill] sm:$0xff] %v12081_v10 }
 0x406   : > { %v12083_v36 = vpop.permute.xlu0 %4750  ;;  %5586 = vperm.xlu1 %8129, %v11507_v29  }
 0x407   : > { %14825 = vst [vmem:[#allocation87_spill] sm:$0xff] %v12083_v36  ;;  %v8196_v36 = vld [vmem:[%s14192_s2 + $0xe8] ss:$16 sps:$4 sm:$0xff]  }
 0x408   : > { %6008 = vperm.xlu0 %8183, %v11729_v15   ;;  %v12089_v48 = vpop.permute.xlu1 %5984 }
 0x409   : > { %14827 = vst [vmem:[#allocation89_spill] sm:$0xff] %v12089_v48  ;;  %v8201_v48 = vld [vmem:[%s14192_s2 + $0xc4] ss:$16 sps:$4 sm:$0xff]  }
 0x40a   : > { %v12087_v28 = vpop.permute.xlu0 %4814  ;;  %8131 = vset.pattern.permute.xlu1 %v14649_v30  ;;  %6493 = vmatprep.subr.bf16.mxu0 %v8201_v48 }
 0x40b   : > { %14826 = vst [vmem:[#allocation88_spill] sm:$0xff] %v12087_v28  ;;  %v8198_v28 = vld [vmem:[%s14192_s2 + $0xec] ss:$16 sps:$4 sm:$0xff]   ;;  %5788 = vperm.xlu1 %8131, %v11507_v29   ;;  %6494 = vmatpush1.bf16.msra.mxu0 %v8199_v8 }
 0x40c   : > { %5952 = vperm.xlu0 %8183, %v11835_v54   ;;  %6604 = vmatprep.subr.bf16.mxu1 %v8198_v28 }
 0x40d   : > { %v12111_v63 = vpop.permute.xlu1 %4706  ;;  %6605 = vmatpush1.bf16.msra.mxu1 %v8196_v36 }
 0x40e   : > { %6606 = vmatprep.subr.bf16.mxu1 %v8204_v56  ;;  %v8216_v56 = vld [vmem:[%s14192_s2 + $0x8c] ss:$16 sps:$4 sm:$0xff]  }
 0x40f   : > { %v12109_v10 = vpop.permute.xlu0 %4559  ;;  %8132 = vset.pattern.permute.xlu1 %v14675_v47 }
 0x410   : > { %14828 = vst [vmem:[#allocation90_spill] sm:$0xff] %v12109_v10  ;;  %8185 = vset.pattern.permute.xlu0 %v14663_v38  ;;  %5988 = vperm.xlu1 %8132, %v11507_v29   ;;  %v8208_v29 = vld [vmem:[%s14192_s2 + $0xa8] ss:$16 sps:$4 sm:$0xff]   ;;  %v8211_v10 = vld [vmem:[%s14192_s2 + $0x80] ss:$16 sps:$4 sm:$0xff]  }
 0x411   : > { %5300 = vperm.xlu0 %8185, %v14784_v21   ;;  %v12128_v28 = vpop.permute.xlu1 %4770  ;;  %6607 = vmatpush1.bf16.msra.mxu1 %v8202_v43  ;;  %v8207_v21 = vld [vmem:[%s14192_s2 + $0xa4] ss:$16 sps:$4 sm:$0xff]  }
 0x412   : > { %v8213_v43 = vld [vmem:[%s14192_s2 + $0x84] ss:$16 sps:$4 sm:$0xff]   ;;  %6495 = vmatprep.subr.bf16.mxu0 %v8207_v21 }
 0x413   : > { %v12126_v36 = vpop.permute.xlu0 %4639  ;;  %6496 = vmatpush1.bf16.msra.mxu0 %v8205_v12  ;;  %v8219_v21 = vld [vmem:[%s14192_s2 + $0x64] ss:$16 sps:$4 sm:$0xff]  }
 0x414   : > { %14829 = vst [vmem:[#allocation91_spill] sm:$0xff] %v12126_v36  ;;  %8133 = vset.pattern.permute.xlu1 %v14664_v24  ;;  %v8214_v36 = vld [vmem:[%s14192_s2 + $0x88] ss:$16 sps:$4 sm:$0xff]   ;;  %6497 = vmatprep.subr.bf16.mxu0 %v8213_v43  ;;  %v8225_v43 = vld [vmem:[%s14192_s2 + $0x44] ss:$16 sps:$4 sm:$0xff]  }
 0x415   : > { %5304 = vperm.xlu0 %8185, %v11082_v6   ;;  %4534 = vperm.xlu1 %8133, %v11582_v32   ;;  %v8210_v6 = vld [vmem:[%s14192_s2 + $0xac] ss:$16 sps:$4 sm:$0xff]  }
 0x416   : > { %v12150_v48 = vpop.permute.xlu1 %5110  ;;  %6608 = vmatprep.subr.bf16.mxu1 %v8210_v6  ;;  %v8220_v6 = vld [vmem:[%s14192_s2 + $0x68] ss:$16 sps:$4 sm:$0xff]  }
 0x417   : > { %14831 = vst [vmem:[#allocation93_spill] sm:$0xff] %v12150_v48  ;;  %6609 = vmatpush1.bf16.msra.mxu1 %v8208_v29  ;;  %6498 = vmatpush1.bf16.msra.mxu0 %v8211_v10  ;;  %v8217_v29 = vld [vmem:[%s14192_s2 + $0x60] ss:$16 sps:$4 sm:$0xff]  }
 0x418   : > { %v12148_v8 = vpop.permute.xlu0 %5146  ;;  %6610 = vmatprep.subr.bf16.mxu1 %v8216_v56  ;;  %6499 = vmatprep.subr.bf16.mxu0 %v8219_v21  ;;  %v8226_v56 = vld [vmem:[%s14192_s2 + $0x48] ss:$16 sps:$4 sm:$0xff]   ;;  %v8231_v21 = vld [vmem:[%s14192_s2 + $0x24] ss:$16 sps:$4 sm:$0xff]  }
 0x419   : > { %14830 = vst [vmem:[#allocation92_spill] sm:$0xff] %v12148_v8  ;;  %5372 = vperm.xlu0 %8185, %v10967_v41   ;;  %4614 = vperm.xlu1 %8133, %v11600_v13   ;;  %v8222_v41 = vld [vmem:[%s14192_s2 + $0x6c] ss:$16 sps:$4 sm:$0xff]  }
 0x41a   : > { %v12166_v8 = vpop.permute.xlu1 %5174 }
 0x41b   : > { %6611 = vmatpush1.bf16.msra.mxu1 %v8214_v36  ;;  %6500 = vmatpush1.bf16.msra.mxu0 %v8217_v29  ;;  %v8223_v36 = vld [vmem:[%s14192_s2 + $0x40] ss:$16 sps:$4 sm:$0xff]  }
 0x41c   : > { %6612 = vmatprep.subr.bf16.mxu1 %v8222_v41  ;;  %6501 = vmatprep.subr.bf16.mxu0 %v8225_v43  ;;  %v8234_v41 = vld [vmem:[%s14192_s2 + $0x2c] ss:$16 sps:$4 sm:$0xff]   ;;  %v8232_v43 = vld [vmem:[%s14192_s2 + $0x28] ss:$16 sps:$4 sm:$0xff]  }
 0x41d   : > { %5316 = vperm.xlu0 %8185, %v11142_v4   ;;  %v12172_v12 = vpop.permute.xlu0 %4896  ;;  %8135 = vset.pattern.permute.xlu1 %v14656_v39 }
 0x41e   : > { %4928 = vperm.xlu1 %8135, %v11582_v32  }
 0x41f   : > { %v12185_v10 = vpop.permute.xlu1 %5312  ;;  %6613 = vmatpush1.bf16.msra.mxu1 %v8220_v6  ;;  %6502 = vmatpush1.bf16.msra.mxu0 %v8223_v36 }
 0x420   : > { %14832 = vst [vmem:[#allocation94_spill] sm:$0xff] %v12185_v10  ;;  %v8229_v10 = vld [vmem:[%s14192_s2 + $0x20] ss:$16 sps:$4 sm:$0xff]   ;;  %6503 = vmatprep.subr.bf16.mxu0 %v8231_v21 }
 0x421   : > { %5320 = vperm.xlu0 %8185, %v11473_v34   ;;  %v12183_v4 = vpop.permute.xlu0 %4908  ;;  %v8228_v34 = vld [vmem:[%s14192_s2 + $0x4c] ss:$16 sps:$4 sm:$0xff]   ;;  %v8235_v21 = vld [vmem:[%s14192_s2] ss:$16 sps:$4 sm:$0xff]  }
 0x422   : > { %4992 = vperm.xlu1 %8135, %v11600_v13   ;;  %6614 = vmatprep.subr.bf16.mxu1 %v8228_v34  ;;  %v8240_v34 = vld [vmem:[%s14192_s2 + $0xc] ss:$16 sps:$4 sm:$0xff]  }
 0x423   : > { %v12209_v6 = vpop.permute.xlu1 %5376  ;;  %6615 = vmatpush1.bf16.msra.mxu1 %v8226_v56  ;;  %6504 = vmatpush1.bf16.msra.mxu0 %v8229_v10 }
 0x424   : > { %14834 = vst [vmem:[#allocation96_spill] sm:$0xff] %v12209_v6  ;;  %6616 = vmatprep.subr.bf16.mxu1 %v8234_v41  ;;  %v8238_v41 = vld [vmem:[%s14192_s2 + $0x8] ss:$16 sps:$4 sm:$0xff]   ;;  %v8259_v6 = vld [vmem:[%s14192_s2 + $0x180] ss:$16 sps:$4 sm:$0xff]  }
 0x425   : > { %5388 = vperm.xlu0 %8185, %v11396_v19   ;;  %v12207_v29 = vpop.permute.xlu0 %4916  ;;  %v8237_v19 = vld [vmem:[%s14192_s2 + $0x4] ss:$16 sps:$4 sm:$0xff]  }
 0x426   : > { %14833 = vst [vmem:[#allocation95_spill] sm:$0xff] %v12207_v29  ;;  %8137 = vset.pattern.permute.xlu1 %v14655_v22  ;;  %6505 = vmatprep.subr.bf16.mxu0 %v8237_v19 }
 0x427   : > { %5194 = vperm.xlu1 %8137, %v11600_v13   ;;  %6617 = vmatpush1.bf16.msra.mxu1 %v8232_v43  ;;  %v8241_v43 = vld [vmem:[%s14192_s2 + $0x1e0] ss:$16 sps:$4 sm:$0xff]  }
 0x428   : > { %v12228_v56 = vpop.permute.xlu1 %5578  ;;  %6618 = vmatprep.subr.bf16.mxu1 %v8240_v34  ;;  %6506 = vmatpush1.bf16.msra.mxu0 %v8235_v21  ;;  %v8244_v34 = vld [vmem:[%s14192_s2 + $0x1e8] ss:$16 sps:$4 sm:$0xff]   ;;  %v8252_v21 = vld [vmem:[%s14192_s2 + $0x1cc] ss:$16 sps:$4 sm:$0xff]  }
 0x429   : > { %5332 = vperm.xlu0 %8185, %v11582_v32   ;;  %v12225_v36 = vpop.permute.xlu0 %4924  ;;  %14836 = vst [vmem:[#allocation98_spill] sm:$0xff] %v12228_v56  ;;  %v8246_v56 = vld [vmem:[%s14192_s2 + $0x1ec] ss:$16 sps:$4 sm:$0xff]  }
 0x42a   : > { %14835 = vst [vmem:[#allocation97_spill] sm:$0xff] %v12225_v36  ;;  %v8243_v36 = vld [vmem:[%s14192_s2 + $0x1e4] ss:$16 sps:$4 sm:$0xff]  }
 0x42b   : > { %8138 = vset.pattern.permute.xlu1 %v14663_v38  ;;  %6619 = vmatpush1.bf16.msra.mxu1 %v8238_v41  ;;  %v8250_v41 = vld [vmem:[%s14192_s2 + $0x1c8] ss:$16 sps:$4 sm:$0xff]  }
 0x42c   : > { %5396 = vperm.xlu1 %8138, %v11600_v13   ;;  %6507 = vmatprep.subr.bf16.mxu0 %v8243_v36  ;;  %v8247_v36 = vld [vmem:[%s14192_s2 + $0x1c0] ss:$16 sps:$4 sm:$0xff]  }
 0x42d   : > { %5336 = vperm.xlu0 %8185, %v11773_v7   ;;  %v12243_v10 = vpop.permute.xlu0 %4932  ;;  %v12250_v19 = vpop.permute.xlu1 %5716  ;;  %6620 = vmatprep.subr.bf16.mxu1 %v8246_v56 }
 0x42e   : > { %14837 = vst [vmem:[#allocation99_spill] sm:$0xff] %v12243_v10  ;;  %14838 = vst [vmem:[#allocation100_spill] sm:$0xff] %v12250_v19  ;;  %v8249_v10 = vld [vmem:[%s14192_s2 + $0x1c4] ss:$16 sps:$4 sm:$0xff]   ;;  %6508 = vmatpush2.bf16.msra.mxu0 %v8241_v43  ;;  %v8258_v19 = vld [vmem:[%s14192_s2 + $0x1ac] ss:$16 sps:$4 sm:$0xff]  }
 0x42f   : > { %6621 = vmatpush2.bf16.msra.mxu1 %v8244_v34  ;;  %6509 = vmatprep.subr.bf16.mxu0 %v8249_v10  ;;  %v8253_v34 = vld [vmem:[%s14192_s2 + $0x1a0] ss:$16 sps:$4 sm:$0xff]   ;;  %v8256_v10 = vld [vmem:[%s14192_s2 + $0x1a8] ss:$16 sps:$4 sm:$0xff]  }
 0x430   : > { %8139 = vset.pattern.permute.xlu1 %v14668_v53  ;;  %6622 = vmatprep.subr.bf16.mxu1 %v8252_v21  ;;  %v8261_v21 = vld [vmem:[%s14192_s2 + $0x184] ss:$16 sps:$4 sm:$0xff]  }
 0x431   : > { %5404 = vperm.xlu0 %8185, %v11729_v15   ;;  %v12262_v29 = vpop.permute.xlu0 %4940  ;;  %5534 = vperm.xlu1 %8139, %v11582_v32   ;;  %v12269_v56 = vpop.permute.xlu1 %5780 }
 0x432   : > { %14839 = vst [vmem:[#allocation101_spill] sm:$0xff] %v12262_v29  ;;  %14840 = vst [vmem:[#allocation102_spill] sm:$0xff] %v12269_v56  ;;  %v8255_v29 = vld [vmem:[%s14192_s2 + $0x1a4] ss:$16 sps:$4 sm:$0xff]   ;;  %6510 = vmatpush2.bf16.msra.mxu0 %v8247_v36  ;;  %v8264_v36 = vld [vmem:[%s14192_s2 + $0x18c] ss:$16 sps:$4 sm:$0xff]  }
 0x433   : > { %6623 = vmatpush2.bf16.msra.mxu1 %v8250_v41  ;;  %6511 = vmatprep.subr.bf16.mxu0 %v8255_v29  ;;  %v8262_v29 = vld [vmem:[%s14192_s2 + $0x188] ss:$16 sps:$4 sm:$0xff]  }
 0x434   : > { %6624 = vmatprep.subr.bf16.mxu1 %v8258_v19  ;;  %v8270_v19 = vld [vmem:[%s14192_s2 + $0x16c] ss:$16 sps:$4 sm:$0xff]  }
 0x435   : > { %5348 = vperm.xlu0 %8185, %v11835_v54   ;;  %v12278_v43 = vpop.permute.xlu0 %4956  ;;  %8140 = vset.pattern.permute.xlu1 %v14649_v30 }
 0x436   : > { %5800 = vperm.xlu1 %8140, %v11600_v13   ;;  %v12294_v56 = vpop.permute.xlu1 %5916  ;;  %6512 = vmatpush2.bf16.msra.mxu0 %v8253_v34 }
 0x437   : > { %14841 = vst [vmem:[#allocation103_spill] sm:$0xff] %v12294_v56  ;;  %6625 = vmatpush2.bf16.msra.mxu1 %v8256_v10  ;;  %6513 = vmatprep.subr.bf16.mxu0 %v8261_v21  ;;  %v8267_v56 = vld [vmem:[%s14192_s2 + $0x164] ss:$16 sps:$4 sm:$0xff]   ;;  %v8265_v10 = vld [vmem:[%s14192_s2 + $0x160] ss:$16 sps:$4 sm:$0xff]  }
 0x438   : > { %6626 = vmatprep.subr.bf16.mxu1 %v8264_v36  ;;  %v8268_v21 = vld [vmem:[%s14192_s2 + $0x168] ss:$16 sps:$4 sm:$0xff]  }
 0x439   : > { %5352 = vperm.xlu0 %8185, %v11909_v44   ;;  %v12300_v41 = vpop.permute.xlu0 %4964 }
 0x43a   : > { %14842 = vst [vmem:[#allocation104_spill] sm:$0xff] %v12300_v41  ;;  %8141 = vset.pattern.permute.xlu1 %v14675_v47  ;;  %v12312_v48 = vpop.permute.xlu1 %5980  ;;  %6514 = vmatpush2.bf16.msra.mxu0 %v8259_v6  ;;  %v14846_v6 = vld [vmem:[#allocation41_spill] sm:$0xff]  ;;  %v8277_v41 = vld [vmem:[%s14192_s2 + $0x120] ss:$16 sps:$4 sm:$0xff]  }
 0x43b   : > { %14843 = vst [vmem:[#allocation105_spill] sm:$0xff] %v12312_v48  ;;  %6000 = vperm.xlu1 %8141, %v11600_v13   ;;  %6627 = vmatpush2.bf16.msra.mxu1 %v8262_v29  ;;  %v8271_v29 = vld [vmem:[%s14192_s2 + $0x140] ss:$16 sps:$4 sm:$0xff]  }
 0x43c   : > { %6515 = vmatprep.subr.bf16.mxu0 %v8267_v56  ;;  %6628 = vmatprep.subr.bf16.mxu1 %v8270_v19  ;;  %v8273_v56 = vld [vmem:[%s14192_s2 + $0x144] ss:$16 sps:$4 sm:$0xff]   ;;  %v8274_v19 = vld [vmem:[%s14192_s2 + $0x148] ss:$16 sps:$4 sm:$0xff]  }
 0x43d   : > { %5420 = vperm.xlu0 %8185, %v11898_v0   ;;  %v12318_v34 = vpop.permute.xlu0 %4972 }
 0x43e   : > { %6516 = vmatpush2.bf16.msra.mxu0 %v8265_v10 }
 0x43f   : > { %8143 = vset.pattern.permute.xlu1 %v14650_v61  ;;  %v12331_v48 = vpop.permute.xlu1 %4524  ;;  %6629 = vmatpush2.bf16.msra.mxu1 %v8268_v21  ;;  %v14848_v21 = vld [vmem:[#allocation31_spill] sm:$0xff] }
 0x440   : > { %14845 = vst [vmem:[#allocation107_spill] sm:$0xff] %v12331_v48  ;;  %4722 = vperm.xlu1 %8143, %v11660_v60   ;;  %6517 = vmatprep.subr.bf16.mxu0 %v8273_v56  ;;  %v8280_v56 = vld [vmem:[%s14192_s2 + $0x128] ss:$16 sps:$4 sm:$0xff]  }
 0x441   : > { %8187 = vset.pattern.permute.xlu0 %v14668_v53  ;;  %v12328_v36 = vpop.permute.xlu0 %4980 }
 0x442   : > { %14844 = vst [vmem:[#allocation106_spill] sm:$0xff] %v12328_v36  ;;  %5498 = vperm.xlu0 %8187, %v14846_v6   ;;  %v8276_v6 = vld [vmem:[%s14192_s2 + $0x14c] ss:$16 sps:$4 sm:$0xff]   ;;  %6518 = vmatpush2.bf16.msra.mxu0 %v8271_v29 }
 0x443   : > { %v12349_v10 = vpop.permute.xlu1 %4604  ;;  %6630 = vmatprep.subr.bf16.mxu1 %v8276_v6  ;;  %v8282_v29 = vld [vmem:[%s14192_s2 + $0x12c] ss:$16 sps:$4 sm:$0xff]  }
 0x444   : > { %4786 = vperm.xlu1 %8143, %v11682_v26   ;;  %6631 = vmatpush2.bf16.msra.mxu1 %v8274_v19  ;;  %v8285_v19 = vld [vmem:[%s14192_s2 + $0x104] ss:$16 sps:$4 sm:$0xff]   ;;  %v8288_v6 = vld [vmem:[%s14192_s2 + $0x10c] ss:$16 sps:$4 sm:$0xff]  }
 0x445   : > { %v12347_v36 = vpop.permute.xlu0 %4988  ;;  %6632 = vmatprep.subr.bf16.mxu1 %v8282_v29 }
 0x446   : > { %14847 = vst [vmem:[#allocation41_spill] sm:$0xff] %v12347_v36  ;;  %5566 = vperm.xlu0 %8187, %v14848_v21   ;;  %v8279_v36 = vld [vmem:[%s14192_s2 + $0x124] ss:$16 sps:$4 sm:$0xff]  }
 0x447   : > { %6519 = vmatprep.subr.bf16.mxu0 %v8279_v36 }
 0x448   : > { %v12365_v21 = vpop.permute.xlu1 %4920  ;;  %8144 = vset.pattern.permute.xlu1 %v14655_v22  ;;  %6520 = vmatpush2.bf16.msra.mxu0 %v8277_v41 }
 0x449   : > { %v12353_v48 = vpop.permute.xlu0 %4996  ;;  %14850 = vst [vmem:[#allocation108_spill] sm:$0xff] %v12365_v21  ;;  %5126 = vperm.xlu1 %8144, %v11660_v60   ;;  %6633 = vmatpush2.bf16.msra.mxu1 %v8280_v56  ;;  %v8286_v21 = vld [vmem:[%s14192_s2 + $0x108] ss:$16 sps:$4 sm:$0xff]  }
 0x44a   : > { %14849 = vst [vmem:[#allocation31_spill] sm:$0xff] %v12353_v48  ;;  %5510 = vperm.xlu0 %8187, %v10936_v35   ;;  %v8283_v48 = vld [vmem:[%s14192_s2 + $0x100] ss:$16 sps:$4 sm:$0xff]   ;;  %6521 = vmatprep.subr.bf16.mxu0 %v8285_v19 }
 0x44b   : > { %6634 = vmatprep.subr.bf16.mxu1 %v8288_v6 }
 0x44c   : > { %v12387_v36 = vpop.permute.xlu1 %4984  ;;  %6522 = vmatpush2.bf16.msra.mxu0 %v8283_v48 }
 0x44d   : > { %v12378_v35 = vpop.permute.xlu0 %5004  ;;  %14852 = vst [vmem:[#allocation110_spill] sm:$0xff] %v12387_v36  ;;  %5190 = vperm.xlu1 %8144, %v11682_v26   ;;  %6635 = vmatpush2.bf16.msra.mxu1 %v8286_v21 }
 0x44e   : > { %14851 = vst [vmem:[#allocation109_spill] sm:$0xff] %v12378_v35  ;;  %5514 = vperm.xlu0 %8187, %v11286_v17  }
 0x451   : > { %v12390_v29 = vpop.permute.xlu0 %4948  ;;  %v12393_v41 = vpop.permute.xlu1 %5122  ;;  %8145 = vset.pattern.permute.xlu1 %v14663_v38 }
 0x452   : > { %14853 = vst [vmem:[#allocation111_spill] sm:$0xff] %v12390_v29  ;;  %5582 = vperm.xlu0 %8187, %v14760_v5   ;;  %14854 = vst [vmem:[#allocation112_spill] sm:$0xff] %v12393_v41  ;;  %5328 = vperm.xlu1 %8145, %v11660_v60   ;;  %v14896_v41 = vld [vmem:[#allocation16_spill] sm:$0xff] }
 0x455   : > { %v12396_v56 = vpop.permute.xlu0 %5012 }
 0x456   : > { %14855 = vst [vmem:[#allocation113_spill] sm:$0xff] %v12396_v56  ;;  %5526 = vperm.xlu0 %8187, %v11361_v2   ;;  %v12400_v17 = vpop.permute.xlu1 %5324  ;;  %5392 = vperm.xlu1 %8145, %v11682_v26  }
 0x457   : > { %14856 = vst [vmem:[#allocation114_spill] sm:$0xff] %v12400_v17 }
 0x45a   : > { %5530 = vperm.xlu0 %8187, %v11660_v60   ;;  %v12404_v48 = vpop.permute.xlu0 %5150  ;;  %8146 = vset.pattern.permute.xlu1 %v14668_v53 }
 0x45b   : > { %14857 = vst [vmem:[#allocation115_spill] sm:$0xff] %v12404_v48  ;;  %v12407_v5 = vpop.permute.xlu1 %5590  ;;  %5594 = vperm.xlu1 %8146, %v11682_v26  }
 0x45c   : > { %14858 = vst [vmem:[#allocation116_spill] sm:$0xff] %v12407_v5 }
 0x45e   : > { %5598 = vperm.xlu0 %8187, %v11600_v13   ;;  %v12410_v21 = vpop.permute.xlu0 %5218 }
 0x45f   : > { %14859 = vst [vmem:[#allocation117_spill] sm:$0xff] %v12410_v21  ;;  %8147 = vset.pattern.permute.xlu1 %v14649_v30 }
 0x460   : > { %v12415_v2 = vpop.permute.xlu1 %5728  ;;  %5732 = vperm.xlu1 %8147, %v11660_v60  }
 0x461   : > { %14860 = vst [vmem:[#allocation118_spill] sm:$0xff] %v12415_v2 }
 0x462   : > { %5542 = vperm.xlu0 %8187, %v11712_v11  }
 0x463   : > { %v12417_v19 = vpop.permute.xlu0 %5904 }
 0x464   : > { %14861 = vst [vmem:[#allocation119_spill] sm:$0xff] %v12417_v19  ;;  %5796 = vperm.xlu1 %8147, %v11682_v26  }
 0x465   : > { %v12424_v13 = vpop.permute.xlu1 %5928 }
 0x466   : > { %5546 = vperm.xlu0 %8187, %v11865_v33   ;;  %14863 = vst [vmem:[#allocation121_spill] sm:$0xff] %v12424_v13 }
 0x467   : > { %v12421_v6 = vpop.permute.xlu0 %5908 }
 0x468   : > { %14862 = vst [vmem:[#allocation120_spill] sm:$0xff] %v12421_v6  ;;  %8148 = vset.pattern.permute.xlu1 %v14675_v47 }
 0x469   : > { %5932 = vperm.xlu1 %8148, %v11660_v60  }
 0x46a   : > { %5614 = vperm.xlu0 %8187, %v11847_v16   ;;  %v12431_v21 = vpop.permute.xlu1 %4714 }
 0x46b   : > { %v12427_v48 = vpop.permute.xlu0 %5976  ;;  %14865 = vst [vmem:[#allocation123_spill] sm:$0xff] %v12431_v21 }
 0x46c   : > { %14864 = vst [vmem:[#allocation122_spill] sm:$0xff] %v12427_v48 }
 0x46d   : > { %5996 = vperm.xlu1 %8148, %v11682_v26  }
 0x46e   : > { %5558 = vperm.xlu0 %8187, %v11888_v59   ;;  %v12437_v56 = vpop.permute.xlu1 %4778 }
 0x46f   : > { %v12434_v29 = vpop.permute.xlu0 %5920  ;;  %14867 = vst [vmem:[#allocation125_spill] sm:$0xff] %v12437_v56 }
 0x470   : > { %14866 = vst [vmem:[#allocation124_spill] sm:$0xff] %v12434_v29 }
 0x471   : > { %8149 = vset.pattern.permute.xlu1 %v14664_v24  ;;  %v14907_v24 = vld [vmem:[#allocation30_spill] sm:$0xff] }
 0x472   : > { %8189 = vset.pattern.permute.xlu0 %v14649_v30  ;;  %4544 = vperm.xlu1 %8149, %v11712_v11  }
 0x473   : > { %5736 = vperm.xlu0 %8189, %v11582_v32   ;;  %v12441_v35 = vpop.permute.xlu0 %5924  ;;  %v12445_v60 = vpop.permute.xlu1 %5182 }
 0x474   : > { %14868 = vst [vmem:[#allocation126_spill] sm:$0xff] %v12441_v35  ;;  %14869 = vst [vmem:[#allocation127_spill] sm:$0xff] %v12445_v60 }
 0x476   : > { %4624 = vperm.xlu1 %8149, %v11729_v15  }
 0x477   : > { %5740 = vperm.xlu0 %8189, %v11773_v7   ;;  %v12448_v13 = vpop.permute.xlu0 %5992 }
 0x478   : > { %14870 = vst [vmem:[#allocation128_spill] sm:$0xff] %v12448_v13  ;;  %v12451_v26 = vpop.permute.xlu1 %5384  ;;  %v4474_v13 = vlaneseq }
 0x479   : > { %14871 = vst [vmem:[#allocation129_spill] sm:$0xff] %v12451_v26 }
 0x47a   : > { %8151 = vset.pattern.permute.xlu1 %v14656_v39 }
 0x47b   : > { %5808 = vperm.xlu0 %8189, %v11729_v15   ;;  %v12454_v5 = vpop.permute.xlu0 %5936  ;;  %4936 = vperm.xlu1 %8151, %v11712_v11  }
 0x47c   : > { %14872 = vst [vmem:[#allocation130_spill] sm:$0xff] %v12454_v5  ;;  %v12470_v5 = vand.u32 127, %v4474_v13 }
 0x47d   : > { %v12461_v35 = vpop.permute.xlu1 %5522 }
 0x47e   : > { %14874 = vst [vmem:[#allocation132_spill] sm:$0xff] %v12461_v35  ;;  %v12479_v35 = vadd.s32 128, %v12470_v5  ;;  %v4679_v13 = vshra.s32 %v12470_v5, 6  ;;  %v5285_v39 = vshra.s32 %v12470_v5, 3  ;;  %v5487_v19 = vshra.s32 %v12470_v5, 2 }
 0x47f   : > { %5752 = vperm.xlu0 %8189, %v11835_v54   ;;  %v12459_v32 = vpop.permute.xlu0 %5940  ;;  %5000 = vperm.xlu1 %8151, %v11729_v15  }
 0x480   : > { %14873 = vst [vmem:[#allocation131_spill] sm:$0xff] %v12459_v32  ;;  %v5690_v48 = vshra.s32 %v12479_v35, 1  ;;  %v5488_v16 = vshra.s32 %v12479_v35, 2 }
 0x481   : > { %v12467_v26 = vpop.permute.xlu1 %5586 }
 0x482   : > { %14876 = vst [vmem:[#allocation134_spill] sm:$0xff] %v12467_v26  ;;  %v5084_v26 = vshra.s32 %v12479_v35, 4 }
 0x483   : > { %5756 = vperm.xlu0 %8189, %v11909_v44   ;;  %v12465_v17 = vpop.permute.xlu0 %6008  ;;  %8152 = vset.pattern.permute.xlu1 %v14655_v22 }
 0x484   : > { %14875 = vst [vmem:[#allocation133_spill] sm:$0xff] %v12465_v17  ;;  %5138 = vperm.xlu1 %8152, %v11712_v11  }
 0x486   : > { %v12476_v32 = vpop.permute.xlu1 %5788 }
 0x487   : > { %5824 = vperm.xlu0 %8189, %v11898_v0   ;;  %v12473_v33 = vpop.permute.xlu0 %5952  ;;  %14878 = vst [vmem:[#allocation136_spill] sm:$0xff] %v12476_v32  ;;  %v4477_v0 = vshra.s32 %v12470_v5, 7  ;;  %v4478_v32 = vshra.s32 %v12479_v35, 7 }
 0x488   : > { %14877 = vst [vmem:[#allocation135_spill] sm:$0xff] %v12473_v33  ;;  %8154 = vset.pattern.permute.xlu1 %v14663_v38  ;;  %v4680_v33 = vshra.s32 %v12479_v35, 6 }
 0x489   : > { %5340 = vperm.xlu1 %8154, %v11712_v11   ;;  %v12508_v6 = vand.u32 1, %v4477_v0  ;;  %v12510_v21 = vand.u32 1, %v4478_v32  ;;  %v12525_v32 = vand.u32 1, %v5690_v48 }
 0x48a   : > { %v12500_v60 = vand.u32 1, %v4680_v33  ;;  %v12515_v33 = vand.u32 1, %v5084_v26 }
 0x48b   : > { %8192 = vset.pattern.permute.xlu0 %v14675_v47  ;;  %v12489_v44 = vpop.permute.xlu1 %5988  ;;  %v5083_v47 = vshra.s32 %v12470_v5, 4  ;;  %14885 = vst [vmem:[#allocation143_spill] sm:$0xff] %v12508_v6  ;;  %14886 = vst [vmem:[#allocation144_spill] sm:$0xff] %v12510_v21  ;;  %vm4481_vm8 = vcmp.eq.s32.totalorder %v12508_v6, 1  ;;  %vm4482_vm13 = vcmp.eq.s32.totalorder %v12510_v21, 1  ;;  %vm5694_vm14 = vcmp.eq.s32.totalorder %v12525_v32, 1 }
 0x48c   : > { %5960 = vperm.xlu0 %8192, %v11888_v59   ;;  %v12484_v17 = vpop.permute.xlu0 %5300  ;;  %14880 = vst [vmem:[#allocation138_spill] sm:$0xff] %v12489_v44  ;;  %v12498_v59 = vand.u32 1, %v4679_v13  ;;  %14883 = vst [vmem:[#allocation141_spill] sm:$0xff] %v12500_v60  ;;  %v5689_v44 = vshra.s32 %v12470_v5, 1  ;;  %vm4684_vm6 = vcmp.eq.s32.totalorder %v12500_v60, 1  ;;  %vm5088_vm3 = vcmp.eq.s32.totalorder %v12515_v33, 1 }
 0x48d   : > { %14879 = vst [vmem:[#allocation137_spill] sm:$0xff] %v12484_v17  ;;  %8155 = vset.pattern.permute.xlu1 %v14668_v53  ;;  %v12513_v13 = vand.u32 1, %v5083_v47  ;;  %v4882_v47 = vshra.s32 %v12479_v35, 5 }
 0x48e   : > { %14882 = vst [vmem:[#allocation140_spill] sm:$0xff] %v12498_v59  ;;  %5606 = vperm.xlu1 %8155, %v11729_v15   ;;  %v4881_v15 = vshra.s32 %v12470_v5, 5  ;;  %vm4683_vm12 = vcmp.eq.s32.totalorder %v12498_v59, 1  ;;  %v12523_v0 = vand.u32 1, %v5689_v44  ;;  %v14991_v59 = vmov 2  }
 0x48f   : > { %vm5087_vm4 = vcmp.eq.s32.totalorder %v12513_v13, 1 }
 0x490   : > { %v12495_v29 = vpop.permute.xlu0 %5304  ;;  %v12506_v17 = vpop.permute.xlu1 %4534  ;;  %14888 = vst [vmem:[#allocation146_spill] sm:$0xff] %v12523_v0  ;;  %v12541_v44 = vand.u32 1, %v4881_v15  ;;  %vm5693_vm7 = vcmp.eq.s32.totalorder %v12523_v0, 1  ;;  %v12558_v15 = vand.u32 1, %v4882_v47 }
 0x491   : > { %14881 = vst [vmem:[#allocation139_spill] sm:$0xff] %v12495_v29  ;;  %14884 = vst [vmem:[#allocation142_spill] sm:$0xff] %v12506_v17  ;;  %v5286_v29 = vshra.s32 %v12479_v35, 3  ;;  %v12527_v17 = vand.u32 1, %v5285_v39  ;;  %v5892_v39 = vand.u32 1, %v12479_v35 }
 0x492   : > { %8156 = vset.pattern.permute.xlu1 %v14649_v30  ;;  %v5891_v30 = vand.u32 1, %v12470_v5  ;;  %14890 = vst [vmem:[#allocation148_spill] sm:$0xff] %v12541_v44  ;;  %vm4885_vm9 = vcmp.eq.s32.totalorder %v12541_v44, 1  ;;  %vm4886_vm5 = vcmp.eq.s32.totalorder %v12558_v15, 1 }
 0x493   : > { %5744 = vperm.xlu1 %8156, %v11712_v11   ;;  %v14892_v11 = vld [vmem:[#allocation26_spill] sm:$0xff]  ;;  %vm5289_vm11 = vcmp.eq.s32.totalorder %v12527_v17, 1  ;;  %vm12581_vm10 = vcmp.eq.s32.totalorder %v5892_v39, 1  ;;  %v12598_v39 = vand.u32 1, %v5488_v16 }
 0x494   : > { %v12518_v56 = vpop.permute.xlu0 %5372  ;;  %v12531_v26 = vpop.permute.xlu1 %4614  ;;  %14894 = vst [vmem:[#allocation26_spill] sm:$0xff] %v12558_v15  ;;  %vm12570_vm1 = vcmp.eq.s32.totalorder %v5891_v30, 1  ;;  %v4817_v30 = vsel %vm4683_vm12, %v11656_v31, %v11701_v25  ;;  %v14908_v16 = vld [vmem:[#allocation14_spill] sm:$0xff] }
 0x495   : > { %14887 = vst [vmem:[#allocation145_spill] sm:$0xff] %v12518_v56  ;;  %14889 = vst [vmem:[#allocation147_spill] sm:$0xff] %v12531_v26  ;;  %v12535_v56 = vand.u32 1, %v5286_v29  ;;  %v14893_v26 = vld [vmem:[#allocation11_spill] sm:$0xff]  ;;  %vm5492_vm2 = vcmp.eq.s32.totalorder %v12598_v39, 1 }
 0x496   : > { %v4819_v2 = vsel %vm4683_vm12, %v14893_v26, %v14892_v11  ;;  %v4820_v29 = vsel %vm4684_vm6, %v14893_v26, %v14892_v11 }
 0x497   : > { %8158 = vset.pattern.permute.xlu1 %v14650_v61  ;;  %vm5290_vm15 = vcmp.eq.s32.totalorder %v12535_v56, 1 }
 0x498   : > { %v12543_v48 = vpop.permute.xlu0 %5316  ;;  %4730 = vperm.xlu1 %8158, %v11773_v7  }
 0x499   : > { %14891 = vst [vmem:[#allocation149_spill] sm:$0xff] %v12543_v48  ;;  %v14895_v48 = vld [vmem:[#allocation9_spill] sm:$0xff]  ;;  %v12575_v5 = vpop.permute.xlu1 %4928 }
 0x49a   : > { %v4649_v54 = vsel %vm4481_vm8, %v14896_v41, %v14895_v48  ;;  %v4650_v11 = vsel %vm4482_vm13, %v14896_v41, %v14895_v48  ;;  %14899 = vst [vmem:[#allocation11_spill] sm:$0xff] %v12575_v5  ;;  %v14903_v48 = vld [vmem:[#allocation20_spill] sm:$0xff] }
 0x49b   : > { %v12577_v47 = vmul.f32 %v4819_v2, %v4649_v54  ;;  %v12579_v26 = vmul.f32 %v4820_v29, %v4650_v11  ;;  %v4818_v54 = vsel %vm4684_vm6, %v11656_v31, %v11701_v25  ;;  %v12596_v2 = vand.u32 1, %v5487_v19  ;;  %v14904_v29 = vld [vmem:[#allocation28_spill] sm:$0xff] }
 0x49c   : > { %v12586_v41 = vpop.permute.xlu0 %5320  ;;  %v12604_v11 = vsel %vm5087_vm4, %v14904_v29, %v14903_v48  ;;  %v12610_v5 = vsel %vm5088_vm3, %v14904_v29, %v14903_v48  ;;  %v12625_v19 = vsel %vm5693_vm7, %v14908_v16, %v11643_v46  ;;  %v4653_v48 = vsel %vm4481_vm8, %v11883_v27, %v11894_v9  ;;  %4794 = vperm.xlu1 %8158, %v11795_v58  }
 0x49d   : > { %14902 = vst [vmem:[#allocation9_spill] sm:$0xff] %v12586_v41  ;;  %14905 = vst [vmem:[#allocation16_spill] sm:$0xff] %v12610_v5  ;;  %v14906_v41 = vld [vmem:[#allocation33_spill] sm:$0xff]  ;;  %v4654_v29 = vsel %vm4482_vm13, %v11883_v27, %v11894_v9  ;;  %v12636_v36 = vpop.permute.xlu1 %4992  ;;  %v4823_v5 = vsel %vm4683_vm12, %v11716_v42, %v11733_v14  ;;  %v4824_v9 = vsel %vm4684_vm6, %v11716_v42, %v11733_v14  ;;  %vm5491_vm0 = vcmp.eq.s32.totalorder %v12596_v2, 1 }
 0x49e   : > { %v4647_v31 = vsel %vm4481_vm8, %v14907_v24, %v14906_v41  ;;  %v4648_v25 = vsel %vm4482_vm13, %v14907_v24, %v14906_v41  ;;  %14909 = vst [vmem:[#allocation20_spill] sm:$0xff] %v12625_v19  ;;  %14910 = vst [vmem:[#allocation28_spill] sm:$0xff] %v12636_v36  ;;  %v12642_v24 = vsel %vm5694_vm14, %v14908_v16, %v11643_v46  ;;  %v14913_v36 = vld [vmem:[#allocation35_spill] sm:$0xff]  ;;  %v14914_v14 = vld [vmem:[#allocation29_spill] sm:$0xff] }
 0x49f   : > { %14911 = vst [vmem:[#allocation33_spill] sm:$0xff] %v12642_v24  ;;  %v12644_v41 = vmul.f32 %v4817_v30, %v4647_v31  ;;  %v12646_v19 = vmul.f32 %v4818_v54, %v4648_v25  ;;  %v12662_v46 = vsel %vm5087_vm4, %v14913_v36, %v11751_v62  ;;  %v5025_v30 = vsel %vm4885_vm9, %v11906_v1, %v11916_v49  ;;  %v14915_v31 = vld [vmem:[#allocation18_spill] sm:$0xff] }
 0x4a0   : > { %v12652_v27 = vpop.permute.xlu0 %5388  ;;  %v5026_v54 = vsel %vm4886_vm5, %v11906_v1, %v11916_v49  ;;  %v12678_v42 = vsel %vm5088_vm3, %v14913_v36, %v11751_v62  ;;  %v12684_v25 = vsel %vm5289_vm11, %v14915_v31, %v14914_v14  ;;  %v4855_v16 = vmul.f32 %v4823_v5, %v4653_v48  ;;  %v14916_v49 = vld [vmem:[#allocation19_spill] sm:$0xff]  ;;  %8160 = vset.pattern.permute.xlu1 %v14655_v22  ;;  %v14929_v22 = vld [vmem:[#allocation74_spill] sm:$0xff] }
 0x4a1   : > { %14912 = vst [vmem:[#allocation30_spill] sm:$0xff] %v12652_v27  ;;  %v4856_v27 = vmul.f32 %v4824_v9, %v4654_v29  ;;  %v12690_v1 = vsel %vm5290_vm15, %v14915_v31, %v14914_v14  ;;  %v12696_v62 = vsel %vm5693_vm7, %v11828_v3, %v11843_v18  ;;  %v5227_v36 = vsel %vm5087_vm4, %v11924_v55, %v14916_v49 }
 0x4a2   : > { %v5228_v5 = vsel %vm5088_vm3, %v11924_v55, %v14916_v49  ;;  %v12711_v48 = vsel %vm5694_vm14, %v11828_v3, %v11843_v18  ;;  %v4827_v29 = vsel %vm4683_vm12, %v11853_v40, %v11868_v20  ;;  %v5057_v9 = vmul.f32 %v5025_v30, %v4855_v16  ;;  %5198 = vperm.xlu1 %8160, %v11795_v58   ;;  %v12720_v55 = vpop.permute.xlu1 %5194  ;;  %v14935_v3 = vld [vmem:[#allocation60_spill] sm:$0xff] }
 0x4a3   : > { %14917 = vst [vmem:[#allocation14_spill] sm:$0xff] %v12711_v48  ;;  %v5058_v14 = vmul.f32 %v5026_v54, %v4856_v27  ;;  %14919 = vst [vmem:[#allocation29_spill] sm:$0xff] %v12720_v55  ;;  %v4828_v49 = vsel %vm4684_vm6, %v11853_v40, %v11868_v20  ;;  %v4655_v30 = vsel %vm4481_vm8, %v11903_v51, %v11914_v37  ;;  %v14936_v18 = vld [vmem:[#allocation44_spill] sm:$0xff] }
 0x4a4   : > { %v12717_v31 = vpop.permute.xlu0 %5332  ;;  %v4656_v40 = vsel %vm4482_vm13, %v11903_v51, %v11914_v37  ;;  %v12742_v20 = vmul.f32 %v5227_v36, %v5057_v9  ;;  %v4821_v16 = vsel %vm4683_vm12, %v11968_v52, %v11975_v50  ;;  %v12754_v27 = vsel %vm4683_vm12, %v11922_v45, %v11930_v23  ;;  %v14924_v37 = vld [vmem:[#allocation39_spill] sm:$0xff] }
 0x4a5   : > { %14918 = vst [vmem:[#allocation35_spill] sm:$0xff] %v12717_v31  ;;  %v12744_v54 = vmul.f32 %v5228_v5, %v5058_v14  ;;  %v12760_v51 = vsel %vm4684_vm6, %v11922_v45, %v11930_v23  ;;  %v12766_v36 = vsel %vm5693_vm7, %v11948_v57, %v14924_v37  ;;  %v4822_v5 = vsel %vm4684_vm6, %v11968_v52, %v11975_v50  ;;  %v14927_v14 = vld [vmem:[#allocation23_spill] sm:$0xff]  ;;  %v14930_v31 = vld [vmem:[#allocation72_spill] sm:$0xff] }
 0x4a6   : > { %14922 = vst [vmem:[#allocation18_spill] sm:$0xff] %v12742_v20  ;;  %14925 = vst [vmem:[#allocation39_spill] sm:$0xff] %v12766_v36  ;;  %v12776_v9 = vsel %vm5694_vm14, %v11948_v57, %v14924_v37  ;;  %v14928_v45 = vld [vmem:[#allocation55_spill] sm:$0xff]  ;;  %v4657_v55 = vsel %vm4481_vm8, %v14930_v31, %v14929_v22  ;;  %v4658_v52 = vsel %vm4482_vm13, %v14930_v31, %v14929_v22  ;;  %8161 = vset.pattern.permute.xlu1 %v14663_v38  ;;  %v14932_v57 = vld [vmem:[#allocation54_spill] sm:$0xff] }
 0x4a7   : > { %14923 = vst [vmem:[#allocation19_spill] sm:$0xff] %v12744_v54  ;;  %14926 = vst [vmem:[#allocation150_spill] sm:$0xff] %v12776_v9  ;;  %v4651_v23 = vsel %vm4481_vm8, %v14928_v45, %v14927_v14  ;;  %v14933_v37 = vld [vmem:[#allocation52_spill] sm:$0xff]  ;;  %v4652_v22 = vsel %vm4482_vm13, %v14928_v45, %v14927_v14  ;;  %5400 = vperm.xlu1 %8161, %v11795_v58   ;;  %v12816_v24 = vsel %vm5087_vm4, %v14936_v18, %v14935_v3  ;;  %v14937_v54 = vld [vmem:[#allocation78_spill] sm:$0xff] }
 0x4a8   : > { %v12790_v50 = vpop.permute.xlu0 %5336  ;;  %v12797_v36 = vsel %vm4481_vm8, %v14933_v37, %v14932_v57  ;;  %v12803_v9 = vsel %vm4482_vm13, %v14933_v37, %v14932_v57  ;;  %v4853_v31 = vmul.f32 %v4821_v16, %v4651_v23  ;;  %v4854_v38 = vmul.f32 %v4822_v5, %v4652_v22  ;;  %v14938_v57 = vld [vmem:[#allocation76_spill] sm:$0xff]  ;;  %v14939_v23 = vld [vmem:[#allocation17_spill] sm:$0xff] }
 0x4a9   : > { %14931 = vst [vmem:[#allocation23_spill] sm:$0xff] %v12790_v50  ;;  %v12810_v50 = vpop.permute.xlu1 %5396  ;;  %v5029_v37 = vsel %vm4885_vm9, %v14938_v57, %v14937_v54  ;;  %v5030_v16 = vsel %vm4886_vm5, %v14938_v57, %v14937_v54  ;;  %v12830_v5 = vsel %vm5088_vm3, %v14936_v18, %v14935_v3  ;;  %v4859_v14 = vmul.f32 %v4827_v29, %v4657_v55  ;;  %v14941_v20 = vld [vmem:[#allocation64_spill] sm:$0xff]  ;;  %v14944_v29 = vld [vmem:[#allocation38_spill] sm:$0xff] }
 0x4aa   : > { %14934 = vst [vmem:[#allocation55_spill] sm:$0xff] %v12810_v50  ;;  %v4860_v45 = vmul.f32 %v4828_v49, %v4658_v52  ;;  %v5021_v22 = vsel %vm4885_vm9, %v12172_v12, %v14939_v23  ;;  %v14940_v50 = vld [vmem:[#allocation66_spill] sm:$0xff]  ;;  %v14943_v3 = vld [vmem:[#allocation80_spill] sm:$0xff] }
 0x4ab   : > { %v12840_v48 = vsel %vm5491_vm0, %v14941_v20, %v14940_v50  ;;  %v12846_v54 = vsel %vm5492_vm2, %v14941_v20, %v14940_v50  ;;  %v5231_v55 = vsel %vm5087_vm4, %v14944_v29, %v14943_v3  ;;  %v5232_v49 = vsel %vm5088_vm3, %v14944_v29, %v14943_v3  ;;  %v14946_v50 = vld [vmem:[#allocation36_spill] sm:$0xff]  ;;  %8162 = vset.pattern.permute.xlu1 %v14668_v53 }
 0x4ac   : > { %14942 = vst [vmem:[#allocation74_spill] sm:$0xff] %v12846_v54  ;;  %v12856_v18 = vpop.permute.xlu0 %5404  ;;  %v5061_v52 = vmul.f32 %v5029_v37, %v4859_v14  ;;  %v5062_v57 = vmul.f32 %v5030_v16, %v4860_v45  ;;  %v5022_v20 = vsel %vm4886_vm5, %v12172_v12, %v14939_v23  ;;  %v5019_v54 = vsel %vm4885_vm9, %v14946_v50, %v12278_v43  ;;  %v14948_v45 = vld [vmem:[#allocation68_spill] sm:$0xff]  ;;  %v14949_v23 = vld [vmem:[#allocation10_spill] sm:$0xff] }
 0x4ad   : > { %14945 = vst [vmem:[#allocation72_spill] sm:$0xff] %v12856_v18  ;;  %v4825_v3 = vsel %vm4683_vm12, %v12111_v63, %v12128_v28  ;;  %v4826_v37 = vsel %vm4684_vm6, %v12111_v63, %v12128_v28  ;;  %v5053_v16 = vmul.f32 %v5021_v22, %v12577_v47  ;;  %v5020_v12 = vsel %vm4886_vm5, %v14946_v50, %v12278_v43  ;;  %v12881_v14 = vpop.permute.xlu1 %5534 }
 0x4ae   : > { %5538 = vperm.xlu1 %8162, %v11773_v7   ;;  %14947 = vst [vmem:[#allocation54_spill] sm:$0xff] %v12881_v14  ;;  %v12887_v29 = vsel %vm5693_vm7, %v14949_v23, %v14948_v45  ;;  %v12893_v63 = vsel %vm5694_vm14, %v14949_v23, %v14948_v45  ;;  %v12895_v28 = vmul.f32 %v5231_v55, %v5061_v52  ;;  %v14951_v55 = vld [vmem:[#allocation86_spill] sm:$0xff]  ;;  %v14952_v52 = vld [vmem:[#allocation43_spill] sm:$0xff]  ;;  %v14988_v14 = vld [vmem:[#allocation12_spill] sm:$0xff] }
 0x4af   : > { %v12897_v47 = vmul.f32 %v5232_v49, %v5062_v57  ;;  %v5054_v7 = vmul.f32 %v5022_v20, %v12579_v26  ;;  %v5051_v43 = vmul.f32 %v5019_v54, %v12644_v41  ;;  %v5027_v22 = vsel %vm4885_vm9, %v12183_v4, %v12318_v34 }
 0x4b0   : > { %v5028_v50 = vsel %vm4886_vm5, %v12183_v4, %v12318_v34  ;;  %v12909_v45 = vpop.permute.xlu0 %5348  ;;  %v12915_v49 = vsel %vm5693_vm7, %v14952_v52, %v14951_v55  ;;  %v4857_v26 = vmul.f32 %v4825_v3, %v4655_v30  ;;  %v4858_v41 = vmul.f32 %v4826_v37, %v4656_v40  ;;  %v14953_v4 = vld [vmem:[#allocation93_spill] sm:$0xff]  ;;  %v14955_v40 = vld [vmem:[#allocation58_spill] sm:$0xff] }
 0x4b1   : > { %14950 = vst [vmem:[#allocation52_spill] sm:$0xff] %v12909_v45  ;;  %v5052_v54 = vmul.f32 %v5020_v12, %v12646_v19  ;;  %v12922_v57 = vsel %vm5694_vm14, %v14952_v52, %v14951_v55  ;;  %v5229_v34 = vsel %vm5087_vm4, %v14953_v4, %v12166_v8  ;;  %v5230_v20 = vsel %vm5088_vm3, %v14953_v4, %v12166_v8  ;;  %v14954_v19 = vld [vmem:[#allocation104_spill] sm:$0xff]  ;;  %v12944_v55 = vpop.permute.xlu1 %5800 }
 0x4b2   : > { %v12933_v30 = vmul.f32 %v12604_v11, %v5053_v16  ;;  %5602 = vperm.xlu1 %8162, %v11795_v58   ;;  %v5023_v3 = vsel %vm4885_vm9, %v14955_v40, %v14954_v19  ;;  %v5024_v37 = vsel %vm4886_vm5, %v14955_v40, %v14954_v19  ;;  %v5059_v12 = vmul.f32 %v5027_v22, %v4857_v26  ;;  %v14957_v11 = vld [vmem:[#allocation107_spill] sm:$0xff]  ;;  %v14958_v4 = vld [vmem:[#allocation16_spill] sm:$0xff] }
 0x4b3   : > { %v5060_v23 = vmul.f32 %v5028_v50, %v4858_v41  ;;  %14956 = vst [vmem:[#allocation60_spill] sm:$0xff] %v12944_v55  ;;  %v5253_v8 = vmul.f32 %v12662_v46, %v5051_v43  ;;  %v4661_v16 = vsel %vm4481_vm8, %v14957_v11, %v12349_v10  ;;  %v4662_v52 = vsel %vm4482_vm13, %v14957_v11, %v12349_v10  ;;  %v14960_v22 = vld [vmem:[#allocation96_spill] sm:$0xff]  ;;  %v14961_v50 = vld [vmem:[#allocation94_spill] sm:$0xff]  ;;  %v14975_v58 = vld [vmem:[#allocation95_spill] sm:$0xff] }
 0x4b4   : > { %v5256_v45 = vmul.f32 %v14958_v4, %v5054_v7  ;;  %v12956_v18 = vpop.permute.xlu0 %5352  ;;  %v5431_v26 = vsel %vm5289_vm11, %v14961_v50, %v14960_v22  ;;  %v5432_v46 = vsel %vm5290_vm15, %v14961_v50, %v14960_v22  ;;  %v5254_v43 = vmul.f32 %v12678_v42, %v5052_v54  ;;  %v14962_v41 = vld [vmem:[#allocation102_spill] sm:$0xff]  ;;  %v14963_v19 = vld [vmem:[#allocation100_spill] sm:$0xff] }
 0x4b5   : > { %14959 = vst [vmem:[#allocation44_spill] sm:$0xff] %v12956_v18  ;;  %v12971_v10 = vsel %vm5693_vm7, %v14963_v19, %v14962_v41  ;;  %v5055_v7 = vmul.f32 %v5023_v3, %v4853_v31  ;;  %v5056_v40 = vmul.f32 %v5024_v37, %v4854_v38  ;;  %v14964_v11 = vld [vmem:[#allocation110_spill] sm:$0xff]  ;;  %v14965_v4 = vld [vmem:[#allocation108_spill] sm:$0xff]  ;;  %v14966_v50 = vmov 0   ;;  %v14968_v3 = vld [vmem:[#allocation27_spill] sm:$0xff] }
 0x4b6   : > { %v5033_v18 = vsel %vm4885_vm9, %v14965_v4, %v14964_v11  ;;  %v5034_v22 = vsel %vm4886_vm5, %v14965_v4, %v14964_v11  ;;  %8163 = vset.pattern.permute.xlu1 %v14966_v50  ;;  %v5261_v42 = vmul.f32 %v5229_v34, %v5059_v12  ;;  %v5262_v54 = vmul.f32 %v5230_v20, %v5060_v23  ;;  %v14967_v31 = vld [vmem:[#allocation40_spill] sm:$0xff]  ;;  %v14972_v12 = vld [vmem:[#allocation105_spill] sm:$0xff]  ;;  %v14973_v23 = vld [vmem:[#allocation103_spill] sm:$0xff] }
 0x4b7   : > { %v4863_v53 = vmul.f32 %v12754_v27, %v4661_v16  ;;  %v4864_v55 = vmul.f32 %v12760_v51, %v4662_v52  ;;  %4554 = vperm.xlu1 %8163, %v14967_v31   ;;  %v12989_v38 = vsel %vm5694_vm14, %v14963_v19, %v14962_v41  ;;  %v14969_v37 = vld [vmem:[#allocation112_spill] sm:$0xff]  ;;  %v13001_v51 = vpop.permute.xlu1 %6000  ;;  %v5455_v20 = vmul.f32 %v12684_v25, %v5253_v8  ;;  %v14974_v4 = vld [vmem:[#allocation106_spill] sm:$0xff] }
 0x4b8   : > { %v5235_v11 = vsel %vm5087_vm4, %v14969_v37, %v14968_v3  ;;  %v5236_v27 = vsel %vm5088_vm3, %v14969_v37, %v14968_v3  ;;  %v12999_v34 = vpop.permute.xlu0 %5420  ;;  %14971 = vst [vmem:[#allocation76_spill] sm:$0xff] %v13001_v51  ;;  %v5456_v19 = vmul.f32 %v12690_v1, %v5254_v43  ;;  %v5031_v3 = vsel %vm4885_vm9, %v14975_v58, %v14974_v4  ;;  %v14977_v43 = vld [vmem:[#allocation34_spill] sm:$0xff] }
 0x4b9   : > { %14970 = vst [vmem:[#allocation78_spill] sm:$0xff] %v12999_v34  ;;  %v5065_v52 = vmul.f32 %v5033_v18, %v4863_v53  ;;  %v5066_v41 = vmul.f32 %v5034_v22, %v4864_v55  ;;  %v5032_v37 = vsel %vm4886_vm5, %v14975_v58, %v14974_v4  ;;  %v5257_v25 = vmul.f32 %v12816_v24, %v5055_v7  ;;  %v14976_v18 = vld [vmem:[#allocation24_spill] sm:$0xff]  ;;  %v14978_v22 = vld [vmem:[#allocation119_spill] sm:$0xff] }
 0x4ba   : > { %v5258_v8 = vmul.f32 %v12830_v5, %v5056_v40  ;;  %v13024_v1 = vmul.f32 %v5431_v26, %v5261_v42  ;;  %v13026_v55 = vmul.f32 %v5432_v46, %v5262_v54  ;;  %v6029_v16 = vsel %vm12570_vm1, %v14978_v22, %v14977_v43  ;;  %v14979_v24 = vld [vmem:[#allocation51_spill] sm:$0xff]  ;;  %v14980_v5 = vld [vmem:[#allocation118_spill] sm:$0xff]  ;;  %v14981_v26 = vld [vmem:[#allocation125_spill] sm:$0xff] }
 0x4bb   : > { %v13019_v34 = vmul.f32 %v5235_v11, %v5065_v52  ;;  %v13021_v53 = vmul.f32 %v5236_v27, %v5066_v41  ;;  %4634 = vperm.xlu1 %8163, %v14976_v18   ;;  %v6030_v58 = vsel %vm12581_vm10, %v14978_v22, %v14977_v43  ;;  %v13040_v7 = vsel %vm5694_vm14, %v14980_v5, %v14979_v24  ;;  %v14982_v40 = vld [vmem:[#allocation123_spill] sm:$0xff]  ;;  %v14983_v42 = vld [vmem:[#allocation70_spill] sm:$0xff]  ;;  %v14984_v54 = vld [vmem:[#allocation120_spill] sm:$0xff]  ;;  %v13062_v51 = vpop.permute.xlu1 %4722 }
 0x4bc   : > { %v4829_v46 = vsel %vm4683_vm12, %v14982_v40, %v14981_v26  ;;  %v4830_v27 = vsel %vm4684_vm6, %v14982_v40, %v14981_v26  ;;  %v14985_v52 = vld [vmem:[#allocation62_spill] sm:$0xff]  ;;  %v14986_v41 = vld [vmem:[#allocation139_spill] sm:$0xff]  ;;  %14987 = vst [vmem:[#allocation17_spill] sm:$0xff] %v13062_v51  ;;  %v14989_v11 = vld [vmem:[#allocation137_spill] sm:$0xff] }
 0x4bd   : > { %v5427_v4 = vsel %vm5289_vm11, %v14986_v41, %v14985_v52  ;;  %v5428_v43 = vsel %vm5290_vm15, %v14986_v41, %v14985_v52  ;;  %v5499_v22 = vpop.permute.xlu0 %5498  ;;  %v5425_v15 = vsel %vm5289_vm11, %v14989_v11, %v14988_v14  ;;  %v5426_v26 = vsel %vm5290_vm15, %v14989_v11, %v14988_v14  ;;  %v14990_v40 = vld [vmem:[#allocation45_spill] sm:$0xff]  ;;  %v14992_v14 = vld [vmem:[#allocation122_spill] sm:$0xff]  ;;  %v15003_v51 = vld [vmem:[#allocation19_spill] sm:$0xff] }
 0x4be   : > { %v5625_v44 = vsel %vm5491_vm0, %v5499_v22, %v14990_v40  ;;  %v5626_v52 = vsel %vm5492_vm2, %v5499_v22, %v14990_v40  ;;  %v4861_v21 = vmul.f32 %v4829_v46, %v12797_v36  ;;  %v14993_v11 = vld [vmem:[#allocation53_spill] sm:$0xff]  ;;  %v4862_v0 = vmul.f32 %v4830_v27, %v12803_v9 }
 0x4bf   : > { %v5657_v6 = vmul.f32 %v5625_v44, %v5455_v20  ;;  %v5658_v60 = vmul.f32 %v5626_v52, %v5456_v19  ;;  %8165 = vset.pattern.permute.xlu1 %v14991_v59  ;;  %v5459_v5 = vmul.f32 %v5427_v4, %v5257_v25  ;;  %v5460_v22 = vmul.f32 %v5428_v43, %v5258_v8  ;;  %v14994_v24 = vld [vmem:[#allocation145_spill] sm:$0xff]  ;;  %v14996_v25 = vld [vmem:[#allocation14_spill] sm:$0xff]  ;;  %v15000_v43 = vld [vmem:[#allocation56_spill] sm:$0xff] }
 0x4c0   : > { %4944 = vperm.xlu1 %8165, %v14967_v31   ;;  %v5457_v40 = vmul.f32 %v5425_v15, %v12933_v30  ;;  %v5458_v41 = vmul.f32 %v5426_v26, %v5256_v45  ;;  %v14995_v36 = vld [vmem:[#allocation49_spill] sm:$0xff]  ;;  %v13107_v30 = vpop.permute.xlu1 %4786  ;;  %v5063_v27 = vmul.f32 %v5031_v3, %v4861_v21 }
 0x4c1   : > { %v5429_v44 = vsel %vm5289_vm11, %v14995_v36, %v14994_v24  ;;  %v5430_v20 = vsel %vm5290_vm15, %v14995_v36, %v14994_v24  ;;  %v5567_v19 = vpop.permute.xlu0 %5566  ;;  %v5859_v9 = vmul.f32 %v12696_v62, %v5657_v6  ;;  %v5860_v8 = vmul.f32 %v14996_v25, %v5658_v60  ;;  %v14997_v46 = vld [vmem:[#allocation21_spill] sm:$0xff]  ;;  %14998 = vst [vmem:[#allocation66_spill] sm:$0xff] %v13107_v30  ;;  %v14999_v60 = vld [vmem:[#allocation127_spill] sm:$0xff]  ;;  %v15001_v36 = vld [vmem:[#allocation74_spill] sm:$0xff] }
 0x4c2   : > { %v5627_v15 = vsel %vm5491_vm0, %v14997_v46, %v5567_v19  ;;  %v5628_v45 = vsel %vm5492_vm2, %v14997_v46, %v5567_v19  ;;  %v6034_v24 = vsel %vm12581_vm10, %v14993_v11, %v14992_v14  ;;  %v5064_v62 = vmul.f32 %v5032_v37, %v4862_v0  ;;  %v15002_v25 = vld [vmem:[#allocation18_spill] sm:$0xff]  ;;  %v15004_v30 = vld [vmem:[#allocation20_spill] sm:$0xff]  ;;  %v15005_v3 = vld [vmem:[#allocation33_spill] sm:$0xff] }
 0x4c3   : > { %v5659_v4 = vmul.f32 %v5627_v15, %v5457_v40  ;;  %v5660_v6 = vmul.f32 %v5628_v45, %v5458_v41  ;;  %v5233_v26 = vsel %vm5087_vm4, %v15000_v43, %v14999_v60  ;;  %v5661_v52 = vmul.f32 %v12840_v48, %v5459_v5  ;;  %v15006_v37 = vld [vmem:[#allocation22_spill] sm:$0xff] }
 0x4c4   : > { %v5662_v19 = vmul.f32 %v15001_v36, %v5460_v22  ;;  %5008 = vperm.xlu1 %8165, %v14976_v18   ;;  %v5461_v46 = vmul.f32 %v5429_v44, %v15002_v25  ;;  %v5462_v31 = vmul.f32 %v5430_v20, %v15003_v51  ;;  %v15007_v40 = vld [vmem:[#allocation46_spill] sm:$0xff]  ;;  %v15011_v36 = vld [vmem:[#allocation89_spill] sm:$0xff]  ;;  %v15012_v25 = vld [vmem:[#allocation124_spill] sm:$0xff] }
 0x4c5   : > { %v5861_v21 = vmul.f32 %v15004_v30, %v5659_v4  ;;  %v5862_v41 = vmul.f32 %v15005_v3, %v5660_v6  ;;  %v5511_v0 = vpop.permute.xlu0 %5510  ;;  %v15008_v15 = vsel %vm12570_vm1, %v15006_v37, %v15007_v40  ;;  %v15009_v48 = vld [vmem:[#allocation50_spill] sm:$0xff]  ;;  %v15010_v51 = vsel %vm12581_vm10, %v15006_v37, %v15007_v40  ;;  %v13140_v6 = vpop.permute.xlu1 %5126 }
 0x4c6   : > { %v6059_v45 = vmul.f32 %v15008_v15, %v5859_v9  ;;  %v5631_v5 = vsel %vm5491_vm0, %v5511_v0, %v15009_v48  ;;  %v5632_v22 = vsel %vm5492_vm2, %v5511_v0, %v15009_v48  ;;  %v6060_v44 = vmul.f32 %v15010_v51, %v5860_v8 }
 0x4c7   : > { %v6061_v20 = vmul.f32 %v6029_v16, %v5861_v21  ;;  %v5663_v30 = vmul.f32 %v5631_v5, %v5461_v46  ;;  %v5664_v4 = vmul.f32 %v5632_v22, %v5462_v31  ;;  %v6062_v9 = vmul.f32 %v6030_v58, %v5862_v41  ;;  %v15014_v16 = vld [vmem:[#allocation82_spill] sm:$0xff]  ;;  %v15015_v31 = vld [vmem:[#allocation149_spill] sm:$0xff]  ;;  %v15017_v5 = vld [vmem:[#allocation15_spill] sm:$0xff] }
 0x4c8   : > { %v6038_v3 = vsel %vm12581_vm10, %v15012_v25, %v15011_v36  ;;  %v5234_v0 = vsel %vm5088_vm3, %v15000_v43, %v14999_v60  ;;  %v5265_v15 = vmul.f32 %v5233_v26, %v5063_v27  ;;  %v5864_v37 = vmul.f32 %v12893_v63, %v5662_v19  ;;  %v15016_v21 = vld [vmem:[#allocation150_spill] sm:$0xff]  ;;  %v15018_v63 = vld [vmem:[#allocation129_spill] sm:$0xff]  ;;  %v15020_v26 = vld [vmem:[#allocation39_spill] sm:$0xff] }
 0x4c9   : > { %v15013_v8 = vmov 1   ;;  %v5433_v58 = vsel %vm5289_vm11, %v15015_v31, %v15014_v16  ;;  %v6091_v46 = vpack.c.bf16 %v6061_v20, %v6059_v45  ;;  %v5866_v41 = vmul.f32 %v15016_v21, %v5664_v4  ;;  %v5515_v40 = vpop.permute.xlu0 %5514  ;;  %v15019_v60 = vld [vmem:[#allocation9_spill] sm:$0xff]  ;;  %v15021_v22 = vld [vmem:[#allocation98_spill] sm:$0xff]  ;;  %v13171_v20 = vpop.permute.xlu1 %5190 }
 0x4ca   : > { %8167 = vset.pattern.permute.xlu1 %v15013_v8  ;;  %v6092_v48 = vpack.c.bf16 %v6062_v9, %v6060_v44  ;;  %v5434_v27 = vsel %vm5290_vm15, %v15015_v31, %v15014_v16  ;;  %v5436_v43 = vsel %vm5290_vm15, %v15019_v60, %v15018_v63  ;;  %v5865_v19 = vmul.f32 %v15020_v26, %v5663_v30 }
 0x4cb   : > { %4738 = vperm.xlu1 %8167, %v15017_v5   ;;  %v5634_v45 = vsel %vm5492_vm2, %v5515_v40, %v15021_v22  ;;  %v5266_v51 = vmul.f32 %v5234_v0, %v5064_v62  ;;  %v5863_v44 = vmul.f32 %v12887_v29, %v5661_v52  ;;  %v6066_v4 = vmul.f32 %v6034_v24, %v5866_v41  ;;  %v15023_v52 = vld [vmem:[#allocation30_spill] sm:$0xff] }
 0x4cc   : > { %6523 = vmatprep.mubr.bf16.mxu0 %v6092_v48  ;;  %6636 = vmatprep.mubr.bf16.mxu1 %v6092_v48  ;;  %v5465_v9 = vmul.f32 %v5433_v58, %v12895_v28  ;;  %v5666_v16 = vmul.f32 %v5634_v45, %v13026_v55  ;;  %v15022_v30 = vsel %vm12581_vm10, %v14984_v54, %v14983_v42  ;;  %v15024_v0 = vld [vmem:[#allocation114_spill] sm:$0xff]  ;;  %v15025_v58 = vld [vmem:[#allocation25_spill] sm:$0xff] }
 0x4cd   : > { %6524 = vmatmul.mubr.bf16.vlgmr.msra.gmra.mxu0 %v6091_v46  ;;  %6637 = vmatmul.mubr.bf16.vlgmr.msra.gmra.mxu1 %v6091_v46  ;;  %v6064_v31 = vmul.f32 %v15022_v30, %v5864_v37  ;;  %v5466_v62 = vmul.f32 %v5434_v27, %v12897_v47  ;;  %v5468_v29 = vmul.f32 %v5436_v43, %v5266_v51  ;;  %v5583_v55 = vpop.permute.xlu0 %5582  ;;  %v15026_v46 = vld [vmem:[#allocation84_spill] sm:$0xff]  ;;  %v15028_v27 = vld [vmem:[#allocation134_spill] sm:$0xff] }
 0x4ce   : > { %v5438_v24 = vsel %vm5290_vm15, %v15024_v0, %v15023_v52  ;;  %v5633_v28 = vsel %vm5491_vm0, %v5515_v40, %v15021_v22  ;;  %v5635_v21 = vsel %vm5491_vm0, %v15026_v46, %v5583_v55  ;;  %v5636_v47 = vsel %vm5492_vm2, %v15026_v46, %v5583_v55  ;;  %v15029_v40 = vld [vmem:[#allocation132_spill] sm:$0xff] }
 0x4cf   : > { %4802 = vperm.xlu1 %8167, %v15025_v58   ;;  %v6094_v37 = vpack.c.bf16 %v6066_v4, %v6064_v31  ;;  %v15027_v41 = vsel %vm12570_vm1, %v14993_v11, %v14992_v14  ;;  %v5638_v43 = vsel %vm5492_vm2, %v15029_v40, %v15028_v27  ;;  %v5667_v26 = vmul.f32 %v5635_v21, %v5465_v9  ;;  %v15037_v21 = vld [vmem:[#allocation121_spill] sm:$0xff] }
 0x4d0   : > { %v6065_v48 = vmul.f32 %v15027_v41, %v5865_v19  ;;  %v5668_v22 = vmul.f32 %v5636_v47, %v5466_v62  ;;  %v15030_v45 = vsel %vm12570_vm1, %v14984_v54, %v14983_v42  ;;  %v5435_v4 = vsel %vm5289_vm11, %v15019_v60, %v15018_v63  ;;  %v13215_v19 = vpop.permute.xlu1 %5328  ;;  %v15032_v63 = vld [vmem:[#allocation42_spill] sm:$0xff] }
 0x4d1   : > { %v6063_v51 = vmul.f32 %v15030_v45, %v5863_v44  ;;  %v5665_v14 = vmul.f32 %v5633_v28, %v13024_v1  ;;  %v5868_v11 = vmul.f32 %v12989_v38, %v5666_v16  ;;  %6533 = vmatprep.mubr.bf16.mxu0 %v6094_v37  ;;  %6646 = vmatprep.mubr.bf16.mxu1 %v6094_v37  ;;  %v5527_v30 = vpop.permute.xlu0 %5526  ;;  %v15031_v1 = vld [vmem:[#allocation136_spill] sm:$0xff] }
 0x4d2   : > { %v5670_v9 = vmul.f32 %v5638_v43, %v5468_v29  ;;  %v5437_v42 = vsel %vm5289_vm11, %v15024_v0, %v15023_v52  ;;  %v5470_v54 = vmul.f32 %v5438_v24, %v13021_v53  ;;  %v5870_v44 = vmul.f32 %v12922_v57, %v5668_v22  ;;  %v15033_v16 = vld [vmem:[#allocation116_spill] sm:$0xff]  ;;  %v15040_v22 = vld [vmem:[#allocation126_spill] sm:$0xff] }
 0x4d3   : > { %8168 = vset.pattern.permute.xlu1 %v14966_v50  ;;  %v5840_v38 = vsel %vm5694_vm14, %v15032_v63, %v15031_v1  ;;  %v5869_v60 = vmul.f32 %v12915_v49, %v5667_v26  ;;  %v5640_v31 = vsel %vm5492_vm2, %v5527_v30, %v15033_v16  ;;  %v6093_v62 = vpack.c.bf16 %v6065_v48, %v6063_v51  ;;  %v15034_v29 = vld [vmem:[#allocation8_spill] sm:$0xff]  ;;  %v15038_v48 = vld [vmem:[#allocation13_spill] sm:$0xff]  ;;  %v15039_v26 = vld [vmem:[#allocation138_spill] sm:$0xff] }
 0x4d4   : > { %4564 = vperm.xlu1 %8168, %v15034_v29   ;;  %v5467_v53 = vmul.f32 %v5435_v4, %v5265_v15  ;;  %v5639_v57 = vsel %vm5491_vm0, %v5527_v30, %v15033_v16  ;;  %v5672_v50 = vmul.f32 %v5640_v31, %v5470_v54  ;;  %v6070_v52 = vmul.f32 %v6038_v3, %v5870_v44  ;;  %v13238_v49 = vpop.permute.xlu1 %5392 }
 0x4d5   : > { %v5469_v0 = vmul.f32 %v5437_v42, %v13019_v34  ;;  %v5867_v24 = vmul.f32 %v12971_v10, %v5665_v14  ;;  %6534 = vmatmul.mubr.bf16.gmra.mxu0 %v6093_v62  ;;  %6647 = vmatmul.mubr.bf16.gmra.mxu1 %v6093_v62  ;;  %v15035_v28 = vsel %vm12581_vm10, %v14973_v23, %v14972_v12  ;;  %v13250_v46 = vpop.permute.xlu0 %5530  ;;  %v15036_v10 = vld [vmem:[#allocation128_spill] sm:$0xff]  ;;  %v15041_v14 = vld [vmem:[#allocation51_spill] sm:$0xff]  ;;  %v15044_v62 = vld [vmem:[#allocation66_spill] sm:$0xff] }
 0x4d6   : > { %v6068_v15 = vmul.f32 %v15035_v28, %v5868_v11  ;;  %v6037_v55 = vsel %vm12570_vm1, %v15012_v25, %v15011_v36  ;;  %v5872_v3 = vmul.f32 %v5840_v38, %v5670_v9  ;;  %v5874_v34 = vmul.f32 %v13040_v7, %v5672_v50  ;;  %v15042_v11 = vld [vmem:[#allocation118_spill] sm:$0xff] }
 0x4d7   : > { %v6042_v47 = vsel %vm12581_vm10, %v15037_v21, %v15036_v10  ;;  %v5671_v37 = vmul.f32 %v5639_v57, %v5469_v0  ;;  %v6069_v43 = vmul.f32 %v6037_v55, %v5869_v60  ;;  %v6035_v36 = vsel %vm12570_vm1, %v14973_v23, %v14972_v12  ;;  %v15048_v55 = vld [vmem:[#allocation65_spill] sm:$0xff] }
 0x4d8   : > { %v6096_v41 = vpack.c.bf16 %v6070_v52, %v6068_v15  ;;  %4644 = vperm.xlu1 %8168, %v15038_v48   ;;  %v5637_v7 = vsel %vm5491_vm0, %v15029_v40, %v15028_v27  ;;  %v6074_v25 = vmul.f32 %v6042_v47, %v5874_v34  ;;  %v6040_v45 = vsel %vm12581_vm10, %v15040_v22, %v15039_v26  ;;  %v13275_v42 = vpop.permute.xlu1 %5594 }
 0x4d9   : > { %v5669_v51 = vmul.f32 %v5637_v7, %v5467_v53  ;;  %v6067_v4 = vmul.f32 %v6035_v36, %v5867_v24  ;;  %v5841_v12 = vsel %vm5693_vm7, %v15042_v11, %v15041_v14  ;;  %v13273_v23 = vpop.permute.xlu0 %5598  ;;  %v6072_v27 = vmul.f32 %v6040_v45, %v5872_v3  ;;  %v15045_v53 = vld [vmem:[#allocation17_spill] sm:$0xff]  ;;  %v15049_v3 = vld [vmem:[#allocation63_spill] sm:$0xff] }
 0x4da   : > { %6543 = vmatprep.mubr.bf16.mxu0 %v6096_v41  ;;  %6656 = vmatprep.mubr.bf16.mxu1 %v6096_v41  ;;  %v5873_v40 = vmul.f32 %v5841_v12, %v5671_v37  ;;  %v5839_v44 = vsel %vm5693_vm7, %v15032_v63, %v15031_v1  ;;  %v6041_v60 = vsel %vm12570_vm1, %v15037_v21, %v15036_v10  ;;  %v15052_v37 = vld [vmem:[#allocation147_spill] sm:$0xff]  ;;  %v15053_v41 = vld [vmem:[#allocation142_spill] sm:$0xff] }
 0x4db   : > { %v6095_v54 = vpack.c.bf16 %v6069_v43, %v6067_v4  ;;  %v6098_v30 = vpack.c.bf16 %v6074_v25, %v6072_v27  ;;  %v5871_v38 = vmul.f32 %v5839_v44, %v5669_v51  ;;  %v6039_v1 = vsel %vm12570_vm1, %v15040_v22, %v15039_v26  ;;  %v15054_v26 = vld [vmem:[#allocation59_spill] sm:$0xff]  ;;  %v15055_v22 = vld [vmem:[#allocation57_spill] sm:$0xff]  ;;  %v15056_v4 = vld [vmem:[#allocation28_spill] sm:$0xff] }
 0x4dc   : > { %8170 = vset.pattern.permute.xlu1 %v14991_v59  ;;  %v5733_v59 = vpop.permute.xlu1 %5732  ;;  %v6073_v31 = vmul.f32 %v6041_v60, %v5873_v40  ;;  %v4833_v50 = vsel %vm4683_vm12, %v15045_v53, %v15044_v62  ;;  %v4834_v0 = vsel %vm4684_vm6, %v15045_v53, %v15044_v62  ;;  %v4663_v10 = vsel %vm4481_vm8, %v15049_v3, %v15048_v55  ;;  %v15057_v14 = vld [vmem:[#allocation11_spill] sm:$0xff]  ;;  %v15061_v44 = vld [vmem:[#allocation41_spill] sm:$0xff] }
 0x4dd   : > { %4952 = vperm.xlu1 %8170, %v15034_v29   ;;  %6544 = vmatmul.mubr.bf16.gmra.mxu0 %v6095_v54  ;;  %v13287_v16 = vpop.permute.xlu0 %5542  ;;  %v6071_v63 = vmul.f32 %v6039_v1, %v5871_v38  ;;  %v4664_v47 = vsel %vm4482_vm13, %v15049_v3, %v15048_v55  ;;  %v4665_v43 = vsel %vm4481_vm8, %v15053_v41, %v15052_v37  ;;  %v15064_v62 = vld [vmem:[#allocation61_spill] sm:$0xff] }
 0x4de   : > { %6657 = vmatmul.mubr.bf16.gmra.mxu1 %v6095_v54  ;;  %6553 = vmatprep.mubr.bf16.mxu0 %v6098_v30  ;;  %v4666_v36 = vsel %vm4482_vm13, %v15053_v41, %v15052_v37  ;;  %v4865_v7 = vmul.f32 %v4833_v50, %v4663_v10  ;;  %v4866_v25 = vmul.f32 %v4834_v0, %v4664_v47  ;;  %v15060_v54 = vld [vmem:[#allocation47_spill] sm:$0xff] }
 0x4df   : > { %6666 = vmatprep.mubr.bf16.mxu1 %v6098_v30  ;;  %v6097_v28 = vpack.c.bf16 %v6073_v31, %v6071_v63  ;;  %v4835_v45 = vsel %vm4683_vm12, %v15055_v22, %v15054_v26  ;;  %v4836_v51 = vsel %vm4684_vm6, %v15055_v22, %v15054_v26  ;;  %v5037_v12 = vsel %vm4885_vm9, %v15057_v14, %v15056_v4  ;;  %v15062_v30 = vld [vmem:[#allocation97_spill] sm:$0xff]  ;;  %v15065_v41 = vld [vmem:[#allocation55_spill] sm:$0xff] }
 0x4e0   : > { %v5797_v15 = vpop.permute.xlu1 %5796  ;;  %v5038_v27 = vsel %vm4886_vm5, %v15057_v14, %v15056_v4  ;;  %v5035_v38 = vsel %vm4885_vm9, %v15062_v30, %v15061_v44  ;;  %v5036_v60 = vsel %vm4886_vm5, %v15062_v30, %v15061_v44  ;;  %v4867_v31 = vmul.f32 %v4835_v45, %v4665_v43  ;;  %v15063_v63 = vld [vmem:[#allocation29_spill] sm:$0xff]  ;;  %v15066_v43 = vld [vmem:[#allocation35_spill] sm:$0xff]  ;;  %v15068_v14 = vld [vmem:[#allocation54_spill] sm:$0xff] }
 0x4e1   : > { %5016 = vperm.xlu1 %8170, %v15038_v48   ;;  %v13302_v24 = vpop.permute.xlu0 %5546  ;;  %v4868_v1 = vmul.f32 %v4836_v51, %v4666_v36  ;;  %v5239_v53 = vsel %vm5087_vm4, %v15064_v62, %v15063_v63  ;;  %v5240_v50 = vsel %vm5088_vm3, %v15064_v62, %v15063_v63  ;;  %v5237_v0 = vsel %vm5087_vm4, %v13140_v6, %v13171_v20 }
 0x4e2   : > { %v5069_v3 = vmul.f32 %v5037_v12, %v4867_v31  ;;  %v5067_v47 = vmul.f32 %v5035_v38, %v4865_v7  ;;  %v5068_v37 = vmul.f32 %v5036_v60, %v4866_v25  ;;  %v5441_v36 = vsel %vm5289_vm11, %v15066_v43, %v15065_v41  ;;  %v15067_v25 = vld [vmem:[#allocation48_spill] sm:$0xff] }
 0x4e3   : > { %v5070_v10 = vmul.f32 %v5038_v27, %v4868_v1  ;;  %v5442_v26 = vsel %vm5290_vm15, %v15066_v43, %v15065_v41  ;;  %v5643_v12 = vsel %vm5491_vm0, %v15068_v14, %v13273_v23  ;;  %v5644_v27 = vsel %vm5492_vm2, %v15068_v14, %v13273_v23 }
 0x4e4   : > { %v5933_v55 = vpop.permute.xlu1 %5932  ;;  %v5271_v22 = vmul.f32 %v5239_v53, %v5069_v3  ;;  %v5269_v51 = vmul.f32 %v5237_v0, %v5067_v47  ;;  %v5843_v1 = vsel %vm5693_vm7, %v5733_v59, %v5797_v15  ;;  %v5844_v23 = vsel %vm5694_vm14, %v5733_v59, %v5797_v15  ;;  %v15070_v3 = vld [vmem:[#allocation32_spill] sm:$0xff] }
 0x4e5   : > { %8172 = vset.pattern.permute.xlu1 %v15013_v8  ;;  %6554 = vmatmul.mubr.bf16.gmra.mxu0 %v6097_v28  ;;  %v13337_v40 = vpop.permute.xlu0 %5614  ;;  %v5272_v45 = vmul.f32 %v5240_v50, %v5070_v10  ;;  %v15069_v63 = vmov 6   ;;  %v15071_v10 = vld [vmem:[#allocation60_spill] sm:$0xff]  ;;  %v15074_v14 = vmov 3  }
 0x4e6   : > { %6667 = vmatmul.mubr.bf16.gmra.mxu1 %v6097_v28  ;;  %4746 = vperm.xlu1 %8172, %v15060_v54   ;;  %v5238_v28 = vsel %vm5088_vm3, %v13140_v6, %v13171_v20  ;;  %v5439_v6 = vsel %vm5289_vm11, %v13215_v19, %v13238_v49  ;;  %v5440_v20 = vsel %vm5290_vm15, %v13215_v19, %v13238_v49 }
 0x4e7   : > { %v5270_v4 = vmul.f32 %v5238_v28, %v5068_v37  ;;  %v5641_v19 = vsel %vm5491_vm0, %v13250_v46, %v13275_v42  ;;  %v5642_v49 = vsel %vm5492_vm2, %v13250_v46, %v13275_v42  ;;  %v5473_v30 = vmul.f32 %v5441_v36, %v5271_v22 }
 0x4e8   : > { %v5997_v44 = vpop.permute.xlu1 %5996  ;;  %v5474_v38 = vmul.f32 %v5442_v26, %v5272_v45  ;;  %v5471_v60 = vmul.f32 %v5439_v6, %v5269_v51  ;;  %v15072_v26 = vld [vmem:[#allocation76_spill] sm:$0xff]  ;;  %v15073_v6 = vld [vmem:[#allocation130_spill] sm:$0xff] }
 0x4e9   : > { %v13380_v7 = vpop.permute.xlu0 %5558  ;;  %v5472_v31 = vmul.f32 %v5440_v20, %v5270_v4  ;;  %v5675_v62 = vmul.f32 %v5643_v12, %v5473_v30  ;;  %v6043_v46 = vsel %vm12570_vm1, %v5933_v55, %v5997_v44  ;;  %v6044_v42 = vsel %vm12581_vm10, %v5933_v55, %v5997_v44 }
 0x4ea   : > { %4810 = vperm.xlu1 %8172, %v15067_v25   ;;  %v5676_v53 = vmul.f32 %v5644_v27, %v5474_v38  ;;  %v5673_v50 = vmul.f32 %v5641_v19, %v5471_v60  ;;  %v6045_v20 = vsel %vm12570_vm1, %v15073_v6, %v15072_v26  ;;  %v6046_v55 = vsel %vm12581_vm10, %v15073_v6, %v15072_v26  ;;  %v15076_v38 = vld [vmem:[#allocation37_spill] sm:$0xff]  ;;  %v6828_v6 = vld [vmem:[%s14193_s3 + $0x78] sm:$0xff] }
 0x4eb   : > { %v5674_v0 = vmul.f32 %v5642_v49, %v5472_v31  ;;  %v15075_v30 = vmov 7  }
 0x4ec   : > { %v5875_v15 = vmul.f32 %v5843_v1, %v5673_v50  ;;  %v15077_v1 = vmov 4  }
 0x4ed   : > { %v5876_v37 = vmul.f32 %v5844_v23, %v5674_v0  ;;  %v13415_v36 = vpop.permute.xlu1 %4544  ;;  %v15079_v0 = vld [vmem:[#allocation40_spill] sm:$0xff] }
 0x4ee   : > { %8173 = vset.pattern.permute.xlu1 %v15069_v63  ;;  %v5737_v28 = vpop.permute.xlu0 %5736  ;;  %v6075_v22 = vmul.f32 %v6043_v46, %v5875_v15 }
 0x4ef   : > { %5804 = vperm.xlu1 %8173, %v15070_v3   ;;  %v5845_v47 = vsel %vm5693_vm7, %v5737_v28, %v15071_v10  ;;  %v5846_v59 = vsel %vm5694_vm14, %v5737_v28, %v15071_v10  ;;  %v6076_v45 = vmul.f32 %v6044_v42, %v5876_v37 }
 0x4f0   : > { %v5877_v41 = vmul.f32 %v5845_v47, %v5675_v62  ;;  %v5878_v43 = vmul.f32 %v5846_v59, %v5676_v53  ;;  %v15078_v53 = vmov 5  }
 0x4f1   : > { %v13427_v27 = vpop.permute.xlu1 %4624 }
 0x4f2   : > { %v6077_v51 = vmul.f32 %v6045_v20, %v5877_v41  ;;  %v6078_v4 = vmul.f32 %v6046_v55, %v5878_v43  ;;  %v6843_v20 = vld [vmem:[%s14193_s3 + $0xf0] sm:$0xff] }
 0x4f3   : > { %8174 = vset.pattern.permute.xlu1 %v15074_v14  ;;  %v6827_v55 = vld [vmem:[%s14193_s3 + $0x70] sm:$0xff] }
 0x4f4   : > { %5142 = vperm.xlu1 %8174, %v15017_v5   ;;  %v6100_v12 = vpack.c.bf16 %v6078_v4, %v6076_v45  ;;  %v6099_v19 = vpack.c.bf16 %v6077_v51, %v6075_v22  ;;  %v15080_v51 = vld [vmem:[#allocation88_spill] sm:$0xff]  ;;  %v15081_v4 = vld [vmem:[#allocation87_spill] sm:$0xff] }
 0x4f6   : > { %6563 = vmatprep.mubr.bf16.mxu0 %v6100_v12  ;;  %6676 = vmatprep.mubr.bf16.mxu1 %v6100_v12  ;;  %v13430_v49 = vpop.permute.xlu1 %4936  ;;  %v4848_v12 = vsel %vm4684_vm6, %v15081_v4, %v15080_v51 }
 0x4f7   : > { %6564 = vmatmul.mubr.bf16.gmra.mxu0 %v6099_v19  ;;  %6677 = vmatmul.mubr.bf16.gmra.mxu1 %v6099_v19 }
 0x4f8   : > { %5206 = vperm.xlu1 %8174, %v15025_v58  }
 0x4fa   : > { %v13433_v44 = vpop.permute.xlu1 %5000 }
 0x4fc   : > { %5210 = vperm.xlu1 %8174, %v14976_v18  }
 0x4ff   : > { %v13437_v60 = vpop.permute.xlu1 %5138 }
 0x500   : > { %8177 = vset.pattern.permute.xlu1 %v15075_v30 }
 0x501   : > { %5944 = vperm.xlu1 %8177, %v15076_v38  }
 0x504   : > { %v13440_v31 = vpop.permute.xlu1 %5340 }
 0x505   : > { %6004 = vperm.xlu1 %8177, %v15070_v3  }
 0x509   : > { %8178 = vset.pattern.permute.xlu1 %v15077_v1  ;;  %v13444_v23 = vpop.permute.xlu1 %5606 }
 0x50a   : > { %5344 = vperm.xlu1 %8178, %v15017_v5  }
 0x50e   : > { %5408 = vperm.xlu1 %8178, %v15025_v58   ;;  %v13447_v62 = vpop.permute.xlu1 %5744 }
 0x512   : > { %5412 = vperm.xlu1 %8178, %v14976_v18  }
 0x513   : > { %v13451_v50 = vpop.permute.xlu1 %4730 }
 0x516   : > { %8179 = vset.pattern.permute.xlu1 %v15078_v53 }
 0x517   : > { %5550 = vperm.xlu1 %8179, %v15079_v0   ;;  %v13454_v28 = vpop.permute.xlu1 %4794  ;;  %v6841_v0 = vld [vmem:[%s14193_s3 + $0xe0] sm:$0xff] }
 0x51b   : > { %5610 = vperm.xlu1 %8179, %v15025_v58  }
 0x51d   : > { %v13458_v3 = vpop.permute.xlu1 %5198 }
 0x51f   : > { %8180 = vset.pattern.permute.xlu1 %v15069_v63 }
 0x520   : > { %5748 = vperm.xlu1 %8180, %v15017_v5  }
 0x522   : > { %v13462_v46 = vpop.permute.xlu1 %5400 }
 0x524   : > { %5812 = vperm.xlu1 %8180, %v15025_v58  }
 0x528   : > { %5816 = vperm.xlu1 %8180, %v14976_v18  }
 0x529   : > { %v13465_v42 = vpop.permute.xlu1 %5538 }
 0x52c   : > { %8181 = vset.pattern.permute.xlu1 %v15074_v14  ;;  %v4847_v14 = vsel %vm4683_vm12, %v15081_v4, %v15080_v51  ;;  %v6838_v51 = vld [vmem:[%s14193_s3 + $0xc8] sm:$0xff] }
 0x52d   : > { %5154 = vperm.xlu1 %8181, %v15034_v29   ;;  %v13469_v10 = vpop.permute.xlu1 %5602  ;;  %v6822_v4 = vld [vmem:[%s14193_s3 + $0x48] sm:$0xff] }
 0x531   : > { %5214 = vperm.xlu1 %8181, %v15067_v25  }
 0x532   : > { %v13472_v47 = vpop.permute.xlu1 %4554 }
 0x535   : > { %8184 = vset.pattern.permute.xlu1 %v15075_v30 }
 0x536   : > { %5948 = vperm.xlu1 %8184, %v15017_v5   ;;  %v13476_v59 = vpop.permute.xlu1 %4634 }
 0x53a   : > { %6012 = vperm.xlu1 %8184, %v15025_v58   ;;  %v6844_v58 = vld [vmem:[%s14193_s3 + $0xf8] sm:$0xff] }
 0x53b   : > { %v13479_v15 = vpop.permute.xlu1 %4944  ;;  %7755 = vmatprep.subr.mxu0 %v6844_v58 }
 0x53c   : > { %7756 = vmatpush3.msra.mxu0 %v6828_v6 }
 0x53d   : > { %7757 = vmatprep.subr.mxu0 %v6843_v20  ;;  %v6840_v20 = vld [vmem:[%s14193_s3 + $0xd8] sm:$0xff] }
 0x53e   : > { %6016 = vperm.xlu1 %8184, %v14976_v18   ;;  %7758 = vmatpush3.msra.mxu0 %v6827_v55  ;;  %v6839_v55 = vld [vmem:[%s14193_s3 + $0xd0] sm:$0xff] }
 0x53f   : > { %v13482_v37 = vpop.permute.xlu1 %5008 }
 0x542   : > { %8186 = vset.pattern.permute.xlu1 %v15077_v1 }
 0x543   : > { %5356 = vperm.xlu1 %8186, %v15034_v29  }
 0x546   : > { %v13486_v41 = vpop.permute.xlu1 %4738 }
 0x547   : > { %5416 = vperm.xlu1 %8186, %v15067_v25  }
 0x54a   : > { %v13489_v43 = vpop.permute.xlu1 %4802 }
 0x54b   : > { %8188 = vset.pattern.permute.xlu1 %v15078_v53  ;;  %v6826_v53 = vld [vmem:[%s14193_s3 + $0x68] sm:$0xff] }
 0x54c   : > { %5554 = vperm.xlu1 %8188, %v15060_v54  }
 0x54f   : > { %v4565_v5 = vpop.permute.xlu1 %4564 }
 0x550   : > { %5618 = vperm.xlu1 %8188, %v15067_v25  }
 0x553   : > { %v4645_v18 = vpop.permute.xlu1 %4644 }
 0x554   : > { %5622 = vperm.xlu1 %8188, %v15038_v48   ;;  %v4677_v22 = vsel %vm4481_vm8, %v4565_v5, %v4645_v18  ;;  %v4678_v45 = vsel %vm4482_vm13, %v4565_v5, %v4645_v18  ;;  %v6825_v18 = vld [vmem:[%s14193_s3 + $0x60] sm:$0xff] }
 0x555   : > { %v4879_v19 = vmul.f32 %v4847_v14, %v4677_v22  ;;  %v4880_v38 = vmul.f32 %v4848_v12, %v4678_v45  ;;  %v6823_v22 = vld [vmem:[%s14193_s3 + $0x50] sm:$0xff]  ;;  %v6837_v14 = vld [vmem:[%s14193_s3 + $0xc0] sm:$0xff] }
 0x556   : > { %v6821_v12 = vld [vmem:[%s14193_s3 + $0x40] sm:$0xff] }
 0x558   : > { %v4953_v26 = vpop.permute.xlu1 %4952  ;;  %8190 = vset.pattern.permute.xlu1 %v15069_v63  ;;  %v6842_v63 = vld [vmem:[%s14193_s3 + $0xe8] sm:$0xff] }
 0x559   : > { %5760 = vperm.xlu1 %8190, %v15034_v29   ;;  %7759 = vmatprep.subr.mxu0 %v6842_v63  ;;  %v6835_v63 = vld [vmem:[%s14193_s3 + $0xb0] sm:$0xff] }
 0x55a   : > { %7760 = vmatpush3.msra.mxu0 %v6826_v53  ;;  %v6819_v53 = vld [vmem:[%s14193_s3 + $0x30] sm:$0xff] }
 0x55b   : > { %7761 = vmatprep.subr.mxu0 %v6841_v0  ;;  %v6834_v0 = vld [vmem:[%s14193_s3 + $0xa8] sm:$0xff] }
 0x55c   : > { %v5017_v1 = vpop.permute.xlu1 %5016  ;;  %7762 = vmatpush3.msra.mxu0 %v6825_v18  ;;  %v6817_v18 = vld [vmem:[%s14193_s3 + $0x20] sm:$0xff] }
 0x55d   : > { %v5049_v5 = vsel %vm4885_vm9, %v4953_v26, %v5017_v1  ;;  %v5050_v29 = vsel %vm4886_vm5, %v4953_v26, %v5017_v1  ;;  %5820 = vperm.xlu1 %8190, %v15067_v25   ;;  %v6824_v26 = vld [vmem:[%s14193_s3 + $0x58] sm:$0xff]  ;;  %7763 = vmatprep.subr.mxu0 %v6840_v20 }
 0x55e   : > { %v13537_v58 = vmul.f32 %v5049_v5, %v4879_v19  ;;  %v13539_v6 = vmul.f32 %v5050_v29, %v4880_v38  ;;  %7764 = vmatpush3.msra.mxu0 %v6824_v26  ;;  %v6820_v1 = vld [vmem:[%s14193_s3 + $0x38] sm:$0xff]  ;;  %v6818_v5 = vld [vmem:[%s14193_s3 + $0x28] sm:$0xff]  ;;  %v6833_v29 = vld [vmem:[%s14193_s3 + $0xa0] sm:$0xff] }
 0x55f   : > { %7765 = vmatprep.subr.mxu0 %v6839_v55  ;;  %v6832_v20 = vld [vmem:[%s14193_s3 + $0x98] sm:$0xff]  ;;  %v6831_v55 = vld [vmem:[%s14193_s3 + $0x90] sm:$0xff] }
 0x560   : > { %7766 = vmatpush3.msra.mxu0 %v6823_v22  ;;  %v4837_v22 = vsel %vm4683_vm12, %v13451_v50, %v13454_v28 }
 0x561   : > { %v4747_v45 = vpop.permute.xlu1 %4746  ;;  %8191 = vset.pattern.permute.xlu1 %v15075_v30  ;;  %7767 = vmatprep.subr.mxu0 %v6838_v51  ;;  %v6815_v51 = vld [vmem:[%s14193_s3 + $0x10] sm:$0xff] }
 0x562   : > { %5956 = vperm.xlu1 %8191, %v15060_v54   ;;  %7768 = vmatpush3.msra.mxu0 %v6822_v4  ;;  %v6836_v54 = vld [vmem:[%s14193_s3 + $0xb8] sm:$0xff]  ;;  %v6830_v4 = vld [vmem:[%s14193_s3 + $0x88] sm:$0xff] }
 0x563   : > { %7769 = vmatprep.subr.mxu0 %v6837_v14  ;;  %v15082_v14 = vld [vmem:[#allocation75_spill] sm:$0xff] }
 0x564   : > { %7770 = vmatpush3.msra.mxu0 %v6821_v12  ;;  %v15083_v12 = vld [vmem:[#allocation73_spill] sm:$0xff] }
 0x565   : > { %v4811_v19 = vpop.permute.xlu1 %4810  ;;  %7771 = vmatprep.subr.mxu0 %v6836_v54 }
 0x566   : > { %v13573_v30 = vsel %vm4683_vm12, %v4747_v45, %v4811_v19  ;;  %v13577_v38 = vsel %vm4684_vm6, %v4747_v45, %v4811_v19  ;;  %6020 = vperm.xlu1 %8191, %v15067_v25   ;;  %7772 = vmatpush3.msra.mxu0 %v6820_v1  ;;  %v4838_v45 = vsel %vm4684_vm6, %v13451_v50, %v13454_v28  ;;  %v6814_v28 = vld [vmem:[%s14193_s3 + $0x8] sm:$0xff] }
 0x567   : > { %7773 = vmatprep.subr.mxu0 %v6835_v63  ;;  %v4667_v19 = vsel %vm4481_vm8, %v15083_v12, %v15082_v14  ;;  %v4668_v50 = vsel %vm4482_vm13, %v15083_v12, %v15082_v14  ;;  %v6829_v63 = vld [vmem:[%s14193_s3 + $0x80] sm:$0xff]  ;;  %v5741_v14 = vpop.permute.xlu0 %5740 }
 0x568   : > { %7774 = vmatpush3.msra.mxu0 %v6819_v53  ;;  %v4869_v54 = vmul.f32 %v4837_v22, %v4667_v19  ;;  %v4870_v1 = vmul.f32 %v4838_v45, %v4668_v50  ;;  %v4669_v53 = vsel %vm4481_vm8, %v13415_v36, %v13427_v27  ;;  %v15086_v22 = vld [vmem:[#allocation31_spill] sm:$0xff] }
 0x569   : > { %7775 = vmatprep.subr.mxu0 %v6834_v0  ;;  %v4670_v0 = vsel %vm4482_vm13, %v13415_v36, %v13427_v27  ;;  %v15087_v36 = vld [vmem:[#allocation99_spill] sm:$0xff] }
 0x56a   : > { %v13592_v25 = vpop.permute.xlu1 %5804  ;;  %6024 = vperm.xlu1 %8191, %v15038_v48   ;;  %7776 = vmatpush3.msra.mxu0 %v6818_v5  ;;  %v6816_v48 = vld [vmem:[%s14193_s3 + $0x18] sm:$0xff]  ;;  %v5039_v27 = vsel %vm4885_vm9, %v15087_v36, %v15086_v22  ;;  %v5040_v45 = vsel %vm4886_vm5, %v15087_v36, %v15086_v22  ;;  %v15089_v36 = vld [vmem:[#allocation77_spill] sm:$0xff] }
 0x56b   : > { %7777 = vmatprep.subr.mxu0 %v6833_v29  ;;  %v6813_v29 = vld [vmem:[%s14193_s3] sm:$0xff]  ;;  %v5071_v50 = vmul.f32 %v5039_v27, %v4869_v54 }
 0x56c   : > { %7778 = vmatpush3.msra.mxu0 %v6817_v18  ;;  %v15084_v18 = vld [vmem:[#allocation69_spill] sm:$0xff] }
 0x56d   : > { %7779 = vmatprep.subr.mxu0 %v6832_v20  ;;  %v15085_v20 = vld [vmem:[#allocation67_spill] sm:$0xff] }
 0x56e   : > { %7780 = vmatpush3.msra.mxu0 %v6816_v48  ;;  %v4839_v48 = vsel %vm4683_vm12, %v15085_v20, %v15084_v18 }
 0x56f   : > { %v13610_v26 = vpop.permute.xlu1 %5142  ;;  %7781 = vmatprep.subr.mxu0 %v6831_v55  ;;  %v4840_v55 = vsel %vm4684_vm6, %v15085_v20, %v15084_v18  ;;  %v4871_v12 = vmul.f32 %v4839_v48, %v4669_v53  ;;  %v15088_v18 = vld [vmem:[#allocation71_spill] sm:$0xff]  ;;  %v15090_v53 = vld [vmem:[#allocation72_spill] sm:$0xff] }
 0x570   : > { %7782 = vmatpush3.msra.mxu0 %v6815_v51  ;;  %v5041_v51 = vsel %vm4885_vm9, %v13430_v49, %v13433_v44  ;;  %v4872_v19 = vmul.f32 %v4840_v55, %v4670_v0  ;;  %v5243_v20 = vsel %vm5087_vm4, %v13437_v60, %v15088_v18  ;;  %v5244_v22 = vsel %vm5088_vm3, %v13437_v60, %v15088_v18 }
 0x571   : > { %7783 = vmatprep.subr.mxu0 %v6830_v4  ;;  %v5042_v4 = vsel %vm4886_vm5, %v13430_v49, %v13433_v44  ;;  %v5241_v49 = vsel %vm5087_vm4, %v15089_v36, %v13458_v3  ;;  %v5242_v44 = vsel %vm5088_vm3, %v15089_v36, %v13458_v3  ;;  %v5445_v0 = vsel %vm5289_vm11, %v13440_v31, %v15090_v53 }
 0x572   : > { %7784 = vmatpush3.msra.mxu0 %v6814_v28  ;;  %v5072_v28 = vmul.f32 %v5040_v45, %v4870_v1  ;;  %v5073_v1 = vmul.f32 %v5041_v51, %v4871_v12  ;;  %v5446_v60 = vsel %vm5290_vm15, %v13440_v31, %v15090_v53  ;;  %v5273_v45 = vmul.f32 %v5241_v49, %v5071_v50 }
 0x573   : > { %v13651_v5 = vpop.permute.xlu1 %5206  ;;  %7785 = vmatprep.subr.mxu0 %v6829_v63  ;;  %v5074_v63 = vmul.f32 %v5042_v4, %v4872_v19  ;;  %v5647_v4 = vsel %vm5491_vm0, %v13287_v16, %v13444_v23  ;;  %v5648_v31 = vsel %vm5492_vm2, %v13287_v16, %v13444_v23  ;;  %v5645_v12 = vsel %vm5491_vm0, %v13465_v42, %v13469_v10  ;;  %v5809_v19 = vpop.permute.xlu0 %5808 }
 0x574   : > { %7786 = vmatpush3.msra.mxu0 %v6813_v29  ;;  %v15091_v29 = vld [vmem:[#allocation23_spill] sm:$0xff]  ;;  %v5275_v55 = vmul.f32 %v5243_v20, %v5073_v1  ;;  %v5274_v51 = vmul.f32 %v5242_v44, %v5072_v28  ;;  %v5849_v16 = vsel %vm5693_vm7, %v13447_v62, %v5809_v19  ;;  %v5850_v23 = vsel %vm5694_vm14, %v13447_v62, %v5809_v19 }
 0x575   : > { %v5443_v48 = vsel %vm5289_vm11, %v15091_v29, %v13462_v46  ;;  %v5444_v3 = vsel %vm5290_vm15, %v15091_v29, %v13462_v46  ;;  %v5276_v27 = vmul.f32 %v5244_v22, %v5074_v63  ;;  %v5646_v46 = vsel %vm5492_vm2, %v13465_v42, %v13469_v10  ;;  %v15092_v63 = vld [vmem:[#allocation133_spill] sm:$0xff] }
 0x576   : > { %v5477_v50 = vmul.f32 %v5445_v0, %v5275_v55  ;;  %v5475_v18 = vmul.f32 %v5443_v48, %v5273_v45  ;;  %v5476_v20 = vmul.f32 %v5444_v3, %v5274_v51  ;;  %v5847_v36 = vsel %vm5693_vm7, %v5741_v14, %v13592_v25  ;;  %v15093_v55 = vld [vmem:[#allocation131_spill] sm:$0xff] }
 0x577   : > { %v13696_v54 = vpop.permute.xlu1 %5210  ;;  %v5478_v28 = vmul.f32 %v5446_v60, %v5276_v27  ;;  %v5848_v42 = vsel %vm5694_vm14, %v5741_v14, %v13592_v25 }
 0x578   : > { %v5679_v10 = vmul.f32 %v5647_v4, %v5477_v50  ;;  %v5677_v44 = vmul.f32 %v5645_v12, %v5475_v18  ;;  %v5678_v1 = vmul.f32 %v5646_v46, %v5476_v20 }
 0x579   : > { %v5680_v49 = vmul.f32 %v5648_v31, %v5478_v28 }
 0x57a   : > { %v5881_v0 = vmul.f32 %v5849_v16, %v5679_v10  ;;  %v5879_v29 = vmul.f32 %v5847_v36, %v5677_v44  ;;  %v5880_v48 = vmul.f32 %v5848_v42, %v5678_v1  ;;  %v4841_v36 = vsel %vm4683_vm12, %v13486_v41, %v13489_v43  ;;  %v15094_v10 = vld [vmem:[#allocation85_spill] sm:$0xff] }
 0x57b   : > { %v5882_v60 = vmul.f32 %v5850_v23, %v5680_v49  ;;  %v4842_v42 = vsel %vm4684_vm6, %v13486_v41, %v13489_v43  ;;  %v15095_v49 = vld [vmem:[#allocation83_spill] sm:$0xff]  ;;  %v4674_v41 = vsel %vm4482_vm13, %v13472_v47, %v13476_v59 }
 0x57c   : > { %v5945_v22 = vpop.permute.xlu1 %5944  ;;  %v4671_v44 = vsel %vm4481_vm8, %v15095_v49, %v15094_v10  ;;  %v4672_v1 = vsel %vm4482_vm13, %v15095_v49, %v15094_v10 }
 0x57d   : > { %v6049_v53 = vsel %vm12570_vm1, %v5945_v22, %v15092_v63  ;;  %v6050_v62 = vsel %vm12581_vm10, %v5945_v22, %v15092_v63  ;;  %v4673_v63 = vsel %vm4481_vm8, %v13472_v47, %v13476_v59  ;;  %v5046_v47 = vsel %vm4886_vm5, %v13479_v15, %v13482_v37  ;;  %v15098_v59 = vld [vmem:[#allocation109_spill] sm:$0xff] }
 0x57e   : > { %v6081_v27 = vmul.f32 %v6049_v53, %v5881_v0  ;;  %v6082_v45 = vmul.f32 %v6050_v62, %v5882_v60  ;;  %v4873_v53 = vmul.f32 %v4841_v36, %v4671_v44  ;;  %v4874_v62 = vmul.f32 %v4842_v42, %v4672_v1  ;;  %v15096_v0 = vld [vmem:[#allocation81_spill] sm:$0xff]  ;;  %v15097_v60 = vld [vmem:[#allocation79_spill] sm:$0xff] }
 0x580   : > { %v6005_v3 = vpop.permute.xlu1 %6004 }
 0x581   : > { %v6047_v25 = vsel %vm12570_vm1, %v15093_v55, %v6005_v3  ;;  %v6048_v14 = vsel %vm12581_vm10, %v15093_v55, %v6005_v3  ;;  %v5045_v3 = vsel %vm4885_vm9, %v13479_v15, %v13482_v37  ;;  %v15099_v55 = vld [vmem:[#allocation101_spill] sm:$0xff]  ;;  %v5246_v15 = vsel %vm5088_vm3, %v13610_v26, %v13651_v5  ;;  %v15100_v37 = vld [vmem:[#allocation92_spill] sm:$0xff] }
 0x582   : > { %v6079_v51 = vmul.f32 %v6047_v25, %v5879_v29  ;;  %v6080_v4 = vmul.f32 %v6048_v14, %v5880_v48  ;;  %v4843_v29 = vsel %vm4683_vm12, %v15097_v60, %v15096_v0  ;;  %v4844_v48 = vsel %vm4684_vm6, %v15097_v60, %v15096_v0  ;;  %v5753_v0 = vpop.permute.xlu0 %5752 }
 0x583   : > { %v5043_v57 = vsel %vm4885_vm9, %v15099_v55, %v15098_v59  ;;  %v5044_v52 = vsel %vm4886_vm5, %v15099_v55, %v15098_v59  ;;  %v4875_v25 = vmul.f32 %v4843_v29, %v4673_v63  ;;  %v4876_v14 = vmul.f32 %v4844_v48, %v4674_v41 }
 0x584   : > { %v6102_v31 = vpack.c.bf16 %v6082_v45, %v6080_v4  ;;  %v6101_v12 = vpack.c.bf16 %v6081_v27, %v6079_v51  ;;  %v5245_v27 = vsel %vm5087_vm4, %v13610_v26, %v13651_v5  ;;  %v5247_v45 = vsel %vm5087_vm4, %v15100_v37, %v13696_v54  ;;  %v15101_v5 = vld [vmem:[#allocation52_spill] sm:$0xff] }
 0x585   : > { %v5345_v46 = vpop.permute.xlu1 %5344  ;;  %v5248_v51 = vsel %vm5088_vm3, %v15100_v37, %v13696_v54  ;;  %v5075_v36 = vmul.f32 %v5043_v57, %v4873_v53  ;;  %v5076_v42 = vmul.f32 %v5044_v52, %v4874_v62  ;;  %v15102_v37 = vld [vmem:[#allocation135_spill] sm:$0xff] }
 0x586   : > { %6573 = vmatprep.mubr.bf16.mxu0 %v6102_v31  ;;  %6686 = vmatprep.mubr.bf16.mxu1 %v6102_v31  ;;  %v5077_v31 = vmul.f32 %v5045_v3, %v4875_v25 }
 0x587   : > { %6574 = vmatmul.mubr.bf16.gmra.mxu0 %v6101_v12  ;;  %6687 = vmatmul.mubr.bf16.gmra.mxu1 %v6101_v12  ;;  %v5078_v12 = vmul.f32 %v5046_v47, %v4876_v14  ;;  %v5277_v54 = vmul.f32 %v5245_v27, %v5075_v36  ;;  %v5278_v1 = vmul.f32 %v5246_v15, %v5076_v42 }
 0x588   : > { %v5279_v63 = vmul.f32 %v5247_v45, %v5077_v31 }
 0x589   : > { %v5409_v19 = vpop.permute.xlu1 %5408  ;;  %v5280_v41 = vmul.f32 %v5248_v51, %v5078_v12 }
 0x58a   : > { %v5447_v10 = vsel %vm5289_vm11, %v5345_v46, %v5409_v19  ;;  %v5448_v26 = vsel %vm5290_vm15, %v5345_v46, %v5409_v19 }
 0x58b   : > { %v5479_v60 = vmul.f32 %v5447_v10, %v5277_v54  ;;  %v5480_v29 = vmul.f32 %v5448_v26, %v5278_v1 }
 0x58d   : > { %v5413_v50 = vpop.permute.xlu1 %5412  ;;  %v13862_v26 = vpop.f32.mrf.mxu0 }
 0x58e   : > { %v5449_v49 = vsel %vm5289_vm11, %v15101_v5, %v5413_v50  ;;  %v5450_v44 = vsel %vm5290_vm15, %v15101_v5, %v5413_v50  ;;  %v13864_v5 = vpop.f32.mrf.mxu1  ;;  %v6717_v35 = vmul.f32 %v13862_v26, %v13862_v26 }
 0x58f   : > { %v5481_v48 = vmul.f32 %v5449_v49, %v5279_v63  ;;  %v5482_v3 = vmul.f32 %v5450_v44, %v5280_v41  ;;  %v13866_v44 = vpop.f32.mrf.mxu0  ;;  %v6749_v61 = vmul.f32 %v13864_v5, %v13864_v5 }
 0x590   : > { %v13868_v54 = vpop.f32.mrf.mxu1  ;;  %v6718_v32 = vmul.f32 %v13866_v44, %v13866_v44 }
 0x591   : > { %v13870_v63 = vpop.f32.mrf.mxu0 }
 0x592   : > { %v5551_v28 = vpop.permute.xlu1 %5550  ;;  %v13872_v41 = vpop.f32.mrf.mxu1 }
 0x593   : > { %v5651_v53 = vsel %vm5491_vm0, %v5551_v28, %v13337_v40  ;;  %v5652_v46 = vsel %vm5492_vm2, %v5551_v28, %v13337_v40 }
 0x594   : > { %v5683_v55 = vmul.f32 %v5651_v53, %v5481_v48 }
 0x596   : > { %v5611_v18 = vpop.permute.xlu1 %5610 }
 0x597   : > { %v5649_v19 = vsel %vm5491_vm0, %v13302_v24, %v5611_v18  ;;  %v5650_v50 = vsel %vm5492_vm2, %v13302_v24, %v5611_v18  ;;  %v5684_v24 = vmul.f32 %v5652_v46, %v5482_v3  ;;  %v13874_v46 = vpop.f32.mrf.mxu0  ;;  %v15103_v3 = vld [vmem:[#allocation91_spill] sm:$0xff] }
 0x598   : > { %v5681_v18 = vmul.f32 %v5649_v19, %v5479_v60  ;;  %v5682_v57 = vmul.f32 %v5650_v50, %v5480_v29  ;;  %v13876_v19 = vpop.f32.mrf.mxu1 }
 0x59b   : > { %v5749_v20 = vpop.permute.xlu1 %5748 }
 0x59f   : > { %v5813_v22 = vpop.permute.xlu1 %5812 }
 0x5a0   : > { %v5851_v47 = vsel %vm5693_vm7, %v5749_v20, %v5813_v22  ;;  %v5852_v40 = vsel %vm5694_vm14, %v5749_v20, %v5813_v22 }
 0x5a1   : > { %v5883_v14 = vmul.f32 %v5851_v47, %v5681_v18  ;;  %v5884_v27 = vmul.f32 %v5852_v40, %v5682_v57  ;;  %v15104_v47 = vld [vmem:[#allocation90_spill] sm:$0xff] }
 0x5a2   : > { %v4675_v40 = vsel %vm4481_vm8, %v15104_v47, %v15103_v3 }
 0x5a3   : > { %v5817_v16 = vpop.permute.xlu1 %5816 }
 0x5a4   : > { %v5853_v28 = vsel %vm5693_vm7, %v5753_v0, %v5817_v16  ;;  %v5854_v59 = vsel %vm5694_vm14, %v5753_v0, %v5817_v16  ;;  %v13880_v0 = vpop.f32.mrf.mxu1 }
 0x5a5   : > { %v5885_v15 = vmul.f32 %v5853_v28, %v5683_v55  ;;  %v5886_v20 = vmul.f32 %v5854_v59, %v5684_v24  ;;  %v4676_v28 = vsel %vm4482_vm13, %v15104_v47, %v15103_v3  ;;  %v5757_v55 = vpop.permute.xlu0 %5756  ;;  %v4877_v24 = vmul.f32 %v13573_v30, %v4675_v40 }
 0x5a6   : > { %v13884_v48 = vpop.f32.mrf.mxu1  ;;  %v4878_v18 = vmul.f32 %v13577_v38, %v4676_v28 }
 0x5a8   : > { %v13754_v23 = vpop.permute.xlu1 %5154 }
 0x5ac   : > { %v13780_v43 = vpop.permute.xlu1 %5214 }
 0x5b1   : > { %v5949_v4 = vpop.permute.xlu1 %5948 }
 0x5b5   : > { %v6013_v62 = vpop.permute.xlu1 %6012 }
 0x5b6   : > { %v6051_v52 = vsel %vm12570_vm1, %v5949_v4, %v6013_v62  ;;  %v6052_v25 = vsel %vm12581_vm10, %v5949_v4, %v6013_v62  ;;  %v13878_v62 = vpop.f32.mrf.mxu0 }
 0x5b7   : > { %v6083_v51 = vmul.f32 %v6051_v52, %v5883_v14  ;;  %v6084_v31 = vmul.f32 %v6052_v25, %v5884_v27  ;;  %v13898_v52 = vpop.f32.mrf.mxu1  ;;  %v15105_v25 = vld [vmem:[#allocation113_spill] sm:$0xff]  ;;  %v15106_v14 = vld [vmem:[#allocation111_spill] sm:$0xff] }
 0x5b8   : > { %v13882_v29 = vpop.f32.mrf.mxu0  ;;  %v5047_v34 = vsel %vm4885_vm9, %v15106_v14, %v15105_v25  ;;  %v5048_v21 = vsel %vm4886_vm5, %v15106_v14, %v15105_v25  ;;  %v15107_v27 = vld [vmem:[#allocation117_spill] sm:$0xff] }
 0x5b9   : > { %v6017_v22 = vpop.permute.xlu1 %6016  ;;  %v5251_v30 = vsel %vm5087_vm4, %v13754_v23, %v15107_v27  ;;  %v5252_v38 = vsel %vm5088_vm3, %v13754_v23, %v15107_v27  ;;  %v6722_v5 = vmul.f32 %v13882_v29, %v13882_v29 }
 0x5ba   : > { %v6053_v45 = vsel %vm12570_vm1, %v15102_v37, %v6017_v22  ;;  %v6054_v16 = vsel %vm12581_vm10, %v15102_v37, %v6017_v22  ;;  %v13896_v57 = vpop.f32.mrf.mxu0  ;;  %v5080_v22 = vmul.f32 %v5048_v21, %v4878_v18 }
 0x5bb   : > { %v6085_v12 = vmul.f32 %v6053_v45, %v5885_v15  ;;  %v6086_v36 = vmul.f32 %v6054_v16, %v5886_v20  ;;  %v15108_v15 = vld [vmem:[#allocation115_spill] sm:$0xff]  ;;  %v5079_v20 = vmul.f32 %v5047_v34, %v4877_v24  ;;  %v13926_v16 = vpop.f32.mrf.mxu1 }
 0x5bc   : > { %v5249_v11 = vsel %vm5087_vm4, %v15108_v15, %v13780_v43  ;;  %v5250_v8 = vsel %vm5088_vm3, %v15108_v15, %v13780_v43  ;;  %v13924_v45 = vpop.f32.mrf.mxu0  ;;  %v6756_v29 = vmul.f32 %v13926_v16, %v13926_v16 }
 0x5bd   : > { %v6104_v10 = vpack.c.bf16 %v6086_v36, %v6084_v31  ;;  %v6103_v4 = vpack.c.bf16 %v6085_v12, %v6083_v51  ;;  %v15109_v51 = vld [vmem:[#allocation78_spill] sm:$0xff]  ;;  %v15110_v31 = vld [vmem:[#allocation44_spill] sm:$0xff]  ;;  %v5825_v12 = vpop.permute.xlu0 %5824  ;;  %v5283_v36 = vmul.f32 %v5251_v30, %v13537_v58  ;;  %v5282_v3 = vmul.f32 %v5250_v8, %v5080_v22  ;;  %v13954_v18 = vpop.f32.mrf.mxu1 }
 0x5be   : > { %v5357_v42 = vpop.permute.xlu1 %5356  ;;  %v13952_v24 = vpop.f32.mrf.mxu0 }
 0x5bf   : > { %6583 = vmatprep.mubr.bf16.mxu0 %v6104_v10  ;;  %6696 = vmatprep.mubr.bf16.mxu1 %v6104_v10  ;;  %v5453_v23 = vsel %vm5289_vm11, %v5357_v42, %v15109_v51  ;;  %v5454_v13 = vsel %vm5290_vm15, %v5357_v42, %v15109_v51  ;;  %v5284_v10 = vmul.f32 %v5252_v38, %v13539_v6 }
 0x5c0   : > { %6584 = vmatmul.mubr.bf16.gmra.mxu0 %v6103_v4  ;;  %6697 = vmatmul.mubr.bf16.gmra.mxu1 %v6103_v4  ;;  %v5281_v4 = vmul.f32 %v5249_v11, %v5079_v20  ;;  %v6660_v11 = vpop.f32.mrf.mxu1  ;;  %v6725_v16 = vmul.f32 %v13952_v24, %v13952_v24 }
 0x5c1   : > { %v5486_v58 = vmul.f32 %v5454_v13, %v5284_v10  ;;  %v5961_v27 = vpop.permute.xlu0 %5960  ;;  %v6752_v10 = vmul.f32 %v13876_v19, %v13876_v19  ;;  %v6721_v19 = vmul.f32 %v13878_v62, %v13878_v62  ;;  %v6755_v62 = vmul.f32 %v13898_v52, %v13898_v52 }
 0x5c2   : > { %v5417_v49 = vpop.permute.xlu1 %5416 }
 0x5c3   : > { %v5451_v33 = vsel %vm5289_vm11, %v15110_v31, %v5417_v49  ;;  %v5452_v43 = vsel %vm5290_vm15, %v15110_v31, %v5417_v49  ;;  %v5485_v49 = vmul.f32 %v5453_v23, %v5283_v36  ;;  %v6720_v36 = vmul.f32 %v13874_v46, %v13874_v46 }
 0x5c4   : > { %v5483_v40 = vmul.f32 %v5451_v33, %v5281_v4  ;;  %v5484_v6 = vmul.f32 %v5452_v43, %v5282_v3  ;;  %v6662_v43 = vpop.f32.mrf.mxu1  ;;  %v6781_v4 = vadd.f32 %v6749_v61, %v6717_v35  ;;  %v6719_v3 = vmul.f32 %v13870_v63, %v13870_v63 }
 0x5c5   : > { %v6753_v63 = vmul.f32 %v13880_v0, %v13880_v0 }
 0x5c7   : > { %v5555_v1 = vpop.permute.xlu1 %5554 }
 0x5cb   : > { %v5619_v53 = vpop.permute.xlu1 %5618 }
 0x5cc   : > { %v5653_v47 = vsel %vm5491_vm0, %v5555_v1, %v5619_v53  ;;  %v5654_v42 = vsel %vm5492_vm2, %v5555_v1, %v5619_v53 }
 0x5cf   : > { %v5623_v50 = vpop.permute.xlu1 %5622 }
 0x5d0   : > { %v5655_v17 = vsel %vm5491_vm0, %v13380_v7, %v5623_v50  ;;  %v5656_v56 = vsel %vm5492_vm2, %v13380_v7, %v5623_v50  ;;  %v5685_v7 = vmul.f32 %v5653_v47, %v5483_v40  ;;  %v5686_v50 = vmul.f32 %v5654_v42, %v5484_v6 }
 0x5d1   : > { %v5687_v25 = vmul.f32 %v5655_v17, %v5485_v49  ;;  %v5688_v14 = vmul.f32 %v5656_v56, %v5486_v58  ;;  %v6751_v47 = vmul.f32 %v13872_v41, %v13872_v41  ;;  %v6784_v17 = vadd.f32 %v6752_v10, %v6720_v36 }
 0x5d2   : > { %v6754_v56 = vmul.f32 %v13884_v48, %v13884_v48  ;;  %v6724_v40 = vmul.f32 %v13924_v45, %v13924_v45  ;;  %v6785_v48 = vadd.f32 %v6753_v63, %v6721_v19  ;;  %v6723_v6 = vmul.f32 %v13896_v57, %v13896_v57 }
 0x5d3   : > { %v6783_v46 = vadd.f32 %v6751_v47, %v6719_v3 }
 0x5d4   : > { %v5761_v60 = vpop.permute.xlu1 %5760  ;;  %v6786_v58 = vadd.f32 %v6754_v56, %v6722_v5  ;;  %v6787_v45 = vadd.f32 %v6755_v62, %v6723_v6 }
 0x5d5   : > { %v5857_v1 = vsel %vm5693_vm7, %v5761_v60, %v5825_v12  ;;  %v5858_v2 = vsel %vm5694_vm14, %v5761_v60, %v5825_v12  ;;  %v6664_v12 = vpop.f32.mrf.mxu1 }
 0x5d6   : > { %v5889_v30 = vmul.f32 %v5857_v1, %v5687_v25  ;;  %v5890_v38 = vmul.f32 %v5858_v2, %v5688_v14  ;;  %v6788_v1 = vadd.f32 %v6756_v29, %v6724_v40  ;;  %v6760_v14 = vmul.f32 %v6664_v12, %v6664_v12 }
 0x5d7   : > { %v6668_v26 = vpop.f32.mrf.mxu1 }
 0x5d8   : > { %v5821_v59 = vpop.permute.xlu1 %5820 }
 0x5d9   : > { %v5855_v53 = vsel %vm5693_vm7, %v5757_v55, %v5821_v59  ;;  %v5856_v39 = vsel %vm5694_vm14, %v5757_v55, %v5821_v59  ;;  %v6750_v59 = vmul.f32 %v13868_v54, %v13868_v54  ;;  %v6547_v55 = vpop.f32.mrf.mxu0  ;;  %v6670_v41 = vpop.f32.mrf.mxu1 }
 0x5da   : > { %v5887_v60 = vmul.f32 %v5855_v53, %v5685_v7  ;;  %v5888_v15 = vmul.f32 %v5856_v39, %v5686_v50  ;;  %v6726_v2 = vmul.f32 %v6547_v55, %v6547_v55  ;;  %v6758_v53 = vmul.f32 %v6660_v11, %v6660_v11 }
 0x5db   : > { %v6549_v33 = vpop.f32.mrf.mxu0  ;;  %v6782_v44 = vadd.f32 %v6750_v59, %v6718_v32  ;;  %v6672_v0 = vpop.f32.mrf.mxu1  ;;  %v6757_v39 = vmul.f32 %v13954_v18, %v13954_v18  ;;  %v6761_v59 = vmul.f32 %v6668_v26, %v6668_v26 }
 0x5dc   : > { %v6790_v57 = vadd.f32 %v6758_v53, %v6726_v2 }
 0x5dd   : > { %v5957_v37 = vpop.permute.xlu1 %5956  ;;  %v6551_v54 = vpop.f32.mrf.mxu0 }
 0x5de   : > { %v6674_v50 = vpop.f32.mrf.mxu1  ;;  %v6728_v25 = vmul.f32 %v6551_v54, %v6551_v54 }
 0x5df   : > { %v6555_v42 = vpop.f32.mrf.mxu0 }
 0x5e0   : > { %v6729_v32 = vmul.f32 %v6555_v42, %v6555_v42 }
 0x5e1   : > { %v6021_v28 = vpop.permute.xlu1 %6020  ;;  %v6557_v49 = vpop.f32.mrf.mxu0 }
 0x5e2   : > { %v6055_v34 = vsel %vm12570_vm1, %v5957_v37, %v6021_v28  ;;  %v6056_v21 = vsel %vm12581_vm10, %v5957_v37, %v6021_v28 }
 0x5e3   : > { %v6087_v22 = vmul.f32 %v6055_v34, %v5887_v60  ;;  %v6088_v37 = vmul.f32 %v6056_v21, %v5888_v15  ;;  %v6559_v28 = vpop.f32.mrf.mxu0  ;;  %v6678_v34 = vpop.f32.mrf.mxu1  ;;  %v6789_v21 = vadd.f32 %v6757_v39, %v6725_v16  ;;  %v6730_v60 = vmul.f32 %v6557_v49, %v6557_v49 }
 0x5e4   : > { %v6762_v15 = vmul.f32 %v6670_v41, %v6670_v41  ;;  %v6765_v54 = vmul.f32 %v6678_v34, %v6678_v34 }
 0x5e5   : > { %v6025_v9 = vpop.permute.xlu1 %6024  ;;  %v6561_v7 = vpop.f32.mrf.mxu0 }
 0x5e6   : > { %v6057_v8 = vsel %vm12570_vm1, %v5961_v27, %v6025_v9  ;;  %v6058_v20 = vsel %vm12581_vm10, %v5961_v27, %v6025_v9  ;;  %v6727_v27 = vmul.f32 %v6549_v33, %v6549_v33  ;;  %v6680_v24 = vpop.f32.mrf.mxu1  ;;  %v6794_v55 = vadd.f32 %v6762_v15, %v6730_v60 }
 0x5e7   : > { %v6089_v51 = vmul.f32 %v6057_v8, %v5889_v30  ;;  %v6090_v23 = vmul.f32 %v6058_v20, %v5890_v38  ;;  %v6565_v52 = vpop.f32.mrf.mxu0  ;;  %v6759_v30 = vmul.f32 %v6662_v43, %v6662_v43  ;;  %v6792_v38 = vadd.f32 %v6760_v14, %v6728_v25 }
 0x5e8   : > { %v6732_v11 = vmul.f32 %v6561_v7, %v6561_v7  ;;  %v6764_v8 = vmul.f32 %v6674_v50, %v6674_v50  ;;  %v6766_v33 = vmul.f32 %v6680_v24, %v6680_v24  ;;  %v6733_v61 = vmul.f32 %v6565_v52, %v6565_v52 }
 0x5e9   : > { %v6106_v13 = vpack.c.bf16 %v6090_v23, %v6088_v37  ;;  %v6105_v31 = vpack.c.bf16 %v6089_v51, %v6087_v22  ;;  %v6567_v9 = vpop.f32.mrf.mxu0  ;;  %v6791_v18 = vadd.f32 %v6759_v30, %v6727_v27  ;;  %v6682_v22 = vpop.f32.mrf.mxu1  ;;  %v6793_v37 = vadd.f32 %v6761_v59, %v6729_v32 }
 0x5ea   : > { %v6731_v51 = vmul.f32 %v6559_v28, %v6559_v28  ;;  %v6763_v23 = vmul.f32 %v6672_v0, %v6672_v0  ;;  %v6767_v47 = vmul.f32 %v6682_v22, %v6682_v22 }
 0x5eb   : > { %6593 = vmatprep.mubr.bf16.mxu0 %v6106_v13  ;;  %6706 = vmatprep.mubr.bf16.mxu1 %v6106_v13  ;;  %v6569_v20 = vpop.f32.mrf.mxu0  ;;  %v6796_v13 = vadd.f32 %v6764_v8, %v6732_v11 }
 0x5ec   : > { %6594 = vmatmul.mubr.bf16.gmra.mxu0 %v6105_v31  ;;  %6707 = vmatmul.mubr.bf16.gmra.mxu1 %v6105_v31  ;;  %v6734_v31 = vmul.f32 %v6567_v9, %v6567_v9  ;;  %v6795_v35 = vadd.f32 %v6763_v23, %v6731_v51  ;;  %v6735_v3 = vmul.f32 %v6569_v20, %v6569_v20 }
 0x5ed   : > { %6916 = vmatprep.mubr.f32.mxu0 %v6782_v44  ;;  %v6571_v43 = vpop.f32.mrf.mxu0  ;;  %v6684_v44 = vpop.f32.mrf.mxu1 }
 0x5ee   : > { %v6798_v12 = vadd.f32 %v6766_v33, %v6734_v31  ;;  %v6736_v36 = vmul.f32 %v6571_v43, %v6571_v43  ;;  %v6768_v10 = vmul.f32 %v6684_v44, %v6684_v44  ;;  %v6799_v26 = vadd.f32 %v6767_v47, %v6735_v3  ;;  %v14011_v47 = vld [vmem:[%s14194_s4] ss:$0 sm:$0xff] }
 0x5f0   : > { %v6800_v42 = vadd.f32 %v6768_v10, %v6736_v36 }
 0x5f4   : > { %6917 = vmatmul.mubr.f32.vlgmr.msra.gmra.mxu0 %v6781_v4  ;;  %v6797_v4 = vadd.f32 %v6765_v54, %v6733_v61 }
 0x5f5   : > { %6921 = vmatprep.mubr.f32.mxu0 %v6784_v17 }
 0x5f8   : > { %6922 = vmatmul.mubr.f32.gmra.mxu0 %v6783_v46 }
 0x5f9   : > { %6926 = vmatprep.mubr.f32.mxu0 %v6786_v58 }
 0x5fc   : > { %6927 = vmatmul.mubr.f32.gmra.mxu0 %v6785_v48 }
 0x5fd   : > { %6931 = vmatprep.mubr.f32.mxu0 %v6788_v1 }
 0x600   : > { %6932 = vmatmul.mubr.f32.gmra.mxu0 %v6787_v45 }
 0x601   : > { %6936 = vmatprep.mubr.f32.mxu0 %v6790_v57 }
 0x604   : > { %6937 = vmatmul.mubr.f32.gmra.mxu0 %v6789_v21 }
 0x605   : > { %6941 = vmatprep.mubr.f32.mxu0 %v6792_v38 }
 0x608   : > { %6942 = vmatmul.mubr.f32.gmra.mxu0 %v6791_v18 }
 0x609   : > { %6946 = vmatprep.mubr.f32.mxu0 %v6794_v55 }
 0x60c   : > { %6947 = vmatmul.mubr.f32.gmra.mxu0 %v6793_v37 }
 0x60d   : > { %6951 = vmatprep.mubr.f32.mxu0 %v6796_v13 }
 0x610   : > { %6952 = vmatmul.mubr.f32.gmra.mxu0 %v6795_v35 }
 0x611   : > { %6956 = vmatprep.mubr.f32.mxu0 %v6798_v12 }
 0x614   : > { %6957 = vmatmul.mubr.f32.gmra.mxu0 %v6797_v4 }
 0x615   : > { %6961 = vmatprep.mubr.f32.mxu0 %v6800_v42 }
 0x618   : > { %6962 = vmatmul.mubr.f32.gmra.mxu0 %v6799_v26 }
 0x647   : > { %v6575_v17 = vpop.f32.mrf.mxu0  ;;  %v6688_v5 = vpop.f32.mrf.mxu1 }
 0x648   : > { %v6737_v56 = vmul.f32 %v6575_v17, %v6575_v17  ;;  %v6769_v46 = vmul.f32 %v6688_v5, %v6688_v5 }
 0x649   : > { %v6577_v19 = vpop.f32.mrf.mxu0  ;;  %v6690_v63 = vpop.f32.mrf.mxu1 }
 0x64a   : > { %v6738_v49 = vmul.f32 %v6577_v19, %v6577_v19  ;;  %v6770_v41 = vmul.f32 %v6690_v63, %v6690_v63  ;;  %v6801_v48 = vadd.f32 %v6769_v46, %v6737_v56 }
 0x64b   : > { %v6579_v58 = vpop.f32.mrf.mxu0  ;;  %v6692_v40 = vpop.f32.mrf.mxu1 }
 0x64c   : > { %v6802_v29 = vadd.f32 %v6770_v41, %v6738_v49  ;;  %v6739_v6 = vmul.f32 %v6579_v58, %v6579_v58  ;;  %v6771_v62 = vmul.f32 %v6692_v40, %v6692_v40 }
 0x64d   : > { %v6581_v28 = vpop.f32.mrf.mxu0  ;;  %v6694_v0 = vpop.f32.mrf.mxu1 }
 0x64e   : > { %v6740_v1 = vmul.f32 %v6581_v28, %v6581_v28  ;;  %v6772_v2 = vmul.f32 %v6694_v0, %v6694_v0  ;;  %6966 = vmatprep.mubr.f32.mxu0 %v6802_v29  ;;  %v6803_v45 = vadd.f32 %v6771_v62, %v6739_v6 }
 0x64f   : > { %6967 = vmatmul.mubr.f32.gmra.mxu0 %v6801_v48 }
 0x650   : > { %v6804_v53 = vadd.f32 %v6772_v2, %v6740_v1 }
 0x652   : > { %6971 = vmatprep.mubr.f32.mxu0 %v6804_v53 }
 0x653   : > { %6972 = vmatmul.mubr.f32.gmra.mxu0 %v6803_v45 }
 0x680   : > { %v6585_v16 = vpop.f32.mrf.mxu0  ;;  %v6698_v39 = vpop.f32.mrf.mxu1 }
 0x681   : > { %v6741_v7 = vmul.f32 %v6585_v16, %v6585_v16  ;;  %v6773_v50 = vmul.f32 %v6698_v39, %v6698_v39 }
 0x682   : > { %v6587_v57 = vpop.f32.mrf.mxu0  ;;  %v6700_v25 = vpop.f32.mrf.mxu1 }
 0x683   : > { %v6742_v14 = vmul.f32 %v6587_v57, %v6587_v57  ;;  %v6774_v52 = vmul.f32 %v6700_v25, %v6700_v25  ;;  %v6805_v30 = vadd.f32 %v6773_v50, %v6741_v7 }
 0x684   : > { %v6589_v34 = vpop.f32.mrf.mxu0  ;;  %v6702_v21 = vpop.f32.mrf.mxu1 }
 0x685   : > { %v6806_v27 = vadd.f32 %v6774_v52, %v6742_v14  ;;  %v6743_v38 = vmul.f32 %v6589_v34, %v6589_v34  ;;  %v6775_v60 = vmul.f32 %v6702_v21, %v6702_v21 }
 0x686   : > { %v6591_v15 = vpop.f32.mrf.mxu0  ;;  %v6704_v9 = vpop.f32.mrf.mxu1 }
 0x687   : > { %v6744_v24 = vmul.f32 %v6591_v15, %v6591_v15  ;;  %v6776_v18 = vmul.f32 %v6704_v9, %v6704_v9  ;;  %6976 = vmatprep.mubr.f32.mxu0 %v6806_v27  ;;  %v6807_v59 = vadd.f32 %v6775_v60, %v6743_v38 }
 0x688   : > { %6977 = vmatmul.mubr.f32.gmra.mxu0 %v6805_v30 }
 0x689   : > { %v6808_v32 = vadd.f32 %v6776_v18, %v6744_v24 }
 0x68b   : > { %6981 = vmatprep.mubr.f32.mxu0 %v6808_v32 }
 0x68c   : > { %6982 = vmatmul.mubr.f32.gmra.mxu0 %v6807_v59 }
 0x6ac   : > { %v6595_v55 = vpop.f32.mrf.mxu0  ;;  %v6708_v11 = vpop.f32.mrf.mxu1 }
 0x6ad   : > { %v6745_v8 = vmul.f32 %v6595_v55, %v6595_v55  ;;  %v6777_v20 = vmul.f32 %v6708_v11, %v6708_v11 }
 0x6ae   : > { %v6597_v22 = vpop.f32.mrf.mxu0  ;;  %v6710_v37 = vpop.f32.mrf.mxu1 }
 0x6af   : > { %v6746_v51 = vmul.f32 %v6597_v22, %v6597_v22  ;;  %v6778_v23 = vmul.f32 %v6710_v37, %v6710_v37  ;;  %v6809_v43 = vadd.f32 %v6777_v20, %v6745_v8 }
 0x6b0   : > { %v6599_v13 = vpop.f32.mrf.mxu0  ;;  %v6712_v31 = vpop.f32.mrf.mxu1 }
 0x6b1   : > { %v6810_v33 = vadd.f32 %v6778_v23, %v6746_v51  ;;  %v6747_v44 = vmul.f32 %v6599_v13, %v6599_v13  ;;  %v6779_v35 = vmul.f32 %v6712_v31, %v6712_v31 }
 0x6b2   : > { %v6601_v61 = vpop.f32.mrf.mxu0  ;;  %v6714_v54 = vpop.f32.mrf.mxu1 }
 0x6b3   : > { %v6748_v12 = vmul.f32 %v6601_v61, %v6601_v61  ;;  %v6780_v36 = vmul.f32 %v6714_v54, %v6714_v54  ;;  %6986 = vmatprep.mubr.f32.mxu0 %v6810_v33  ;;  %v6811_v3 = vadd.f32 %v6779_v35, %v6747_v44 }
 0x6b4   : > { %v7787_v10 = vpop.f32.mrf.mxu0  ;;  %6987 = vmatmul.mubr.f32.gmra.mxu0 %v6809_v43 }
 0x6b5   : > { %v6812_v4 = vadd.f32 %v6780_v36, %v6748_v12 }
 0x6b6   : > { %v7788_v42 = vpop.f32.mrf.mxu0 }
 0x6b7   : > { %v7789_v26 = vadd.f32 %v7788_v42, %v7787_v10  ;;  %6991 = vmatprep.mubr.f32.mxu0 %v6812_v4 }
 0x6b8   : > { %v7790_v17 = vpop.f32.mrf.mxu0  ;;  %6992 = vmatmul.mubr.f32.gmra.mxu0 %v6811_v3 }
 0x6b9   : > { %v14014_v5 = vadd.f32 %v7789_v26, %v14011_v47 }
 0x6ba   : > { %v7791_v56 = vpop.f32.mrf.mxu0 }
 0x6bb   : > { %v7792_v46 = vadd.f32 %v7791_v56, %v7790_v17  ;;  %6997 = vmax.xlane.f32.xlu0 %v14014_v5 }
 0x6bc   : > { %v7793_v19 = vpop.f32.mrf.mxu0 }
 0x6bd   : > { %v14018_v63 = vadd.f32 %v7792_v46, %v14011_v47 }
 0x6be   : > { %v7794_v49 = vpop.f32.mrf.mxu0 }
 0x6bf   : > { %v7795_v41 = vadd.f32 %v7794_v49, %v7793_v19  ;;  %6999 = vmax.xlane.f32.xlu1 %v14018_v63 }
 0x6c0   : > { %v7796_v58 = vpop.f32.mrf.mxu0 }
 0x6c1   : > { %v6929_v40 = vadd.f32 %v7795_v41, %v14011_v47 }
 0x6c2   : > { %v7797_v29 = vpop.f32.mrf.mxu0 }
 0x6c3   : > { %v7798_v48 = vadd.f32 %v7797_v29, %v7796_v58  ;;  %7001 = vmax.xlane.f32.xlu0 %v6929_v40 }
 0x6c4   : > { %v7799_v6 = vpop.f32.mrf.mxu0 }
 0x6c5   : > { %v6934_v62 = vadd.f32 %v7798_v48, %v14011_v47 }
 0x6c6   : > { %v7800_v28 = vpop.f32.mrf.mxu0 }
 0x6c7   : > { %v7801_v0 = vadd.f32 %v7800_v28, %v7799_v6  ;;  %7003 = vmax.xlane.f32.xlu0 %v6934_v62 }
 0x6c8   : > { %v7802_v1 = vpop.f32.mrf.mxu0 }
 0x6c9   : > { %v6939_v2 = vadd.f32 %v7801_v0, %v14011_v47 }
 0x6ca   : > { %v7803_v53 = vpop.f32.mrf.mxu0 }
 0x6cb   : > { %v7804_v45 = vadd.f32 %v7803_v53, %v7802_v1  ;;  %7005 = vmax.xlane.f32.xlu1 %v6939_v2 }
 0x6cc   : > { %v7805_v16 = vpop.f32.mrf.mxu0 }
 0x6cd   : > { %v6944_v39 = vadd.f32 %v7804_v45, %v14011_v47 }
 0x6ce   : > { %v7806_v7 = vpop.f32.mrf.mxu0 }
 0x6cf   : > { %v7807_v50 = vadd.f32 %v7806_v7, %v7805_v16  ;;  %7007 = vmax.xlane.f32.xlu0 %v6944_v39 }
 0x6d0   : > { %v7808_v57 = vpop.f32.mrf.mxu0 }
 0x6d1   : > { %v6949_v25 = vadd.f32 %v7807_v50, %v14011_v47 }
 0x6d2   : > { %v7809_v14 = vpop.f32.mrf.mxu0 }
 0x6d3   : > { %v7810_v52 = vadd.f32 %v7809_v14, %v7808_v57  ;;  %7009 = vmax.xlane.f32.xlu1 %v6949_v25 }
 0x6d4   : > { %v7811_v34 = vpop.f32.mrf.mxu0 }
 0x6d5   : > { %v6954_v21 = vadd.f32 %v7810_v52, %v14011_v47 }
 0x6d6   : > { %v7812_v27 = vpop.f32.mrf.mxu0 }
 0x6d7   : > { %v7813_v30 = vadd.f32 %v7812_v27, %v7811_v34  ;;  %7011 = vmax.xlane.f32.xlu0 %v6954_v21 }
 0x6d8   : > { %v7814_v38 = vpop.f32.mrf.mxu0 }
 0x6d9   : > { %v6959_v60 = vadd.f32 %v7813_v30, %v14011_v47 }
 0x6da   : > { %v7815_v15 = vpop.f32.mrf.mxu0 }
 0x6db   : > { %v7816_v9 = vadd.f32 %v7815_v15, %v7814_v38  ;;  %7013 = vmax.xlane.f32.xlu1 %v6959_v60 }
 0x6dd   : > { %v14029_v24 = vadd.f32 %v7816_v9, %v14011_v47 }
 0x6df   : > { %7015 = vmax.xlane.f32.xlu0 %v14029_v24 }
 0x70f   : > { %v7817_v18 = vpop.f32.mrf.mxu0 }
 0x711   : > { %v7818_v32 = vpop.f32.mrf.mxu0 }
 0x712   : > { %v7819_v59 = vadd.f32 %v7818_v32, %v7817_v18 }
 0x713   : > { %v7820_v55 = vpop.f32.mrf.mxu0 }
 0x714   : > { %v14033_v11 = vadd.f32 %v7819_v59, %v14011_v47 }
 0x715   : > { %v7821_v8 = vpop.f32.mrf.mxu0 }
 0x716   : > { %v7822_v20 = vadd.f32 %v7821_v8, %v7820_v55  ;;  %7017 = vmax.xlane.f32.xlu1 %v14033_v11 }
 0x718   : > { %v14037_v22 = vadd.f32 %v7822_v20, %v14011_v47 }
 0x71a   : > { %7019 = vmax.xlane.f32.xlu0 %v14037_v22 }
 0x744   : > { %v6998_v35 = vpop.xlane.xlu0 %6997 }
 0x745   : > { %v14049_v54 = vsub.f32 %v14014_v5, %v6998_v35 }
 0x747   : > { %v7045_v10 = vmul.f32 1.442695, %v14049_v54 }
 0x748   : > { %v7823_v37 = vpop.f32.mrf.mxu0  ;;  %v7000_v12 = vpop.xlane.xlu1 %6999 }
 0x749   : > { %v14052_v36 = vsub.f32 %v14018_v63, %v7000_v12  ;;  %8417 = vpow2.f32 %v7045_v10 }
 0x74a   : > { %v7824_v51 = vpop.f32.mrf.mxu0 }
 0x74b   : > { %v7825_v23 = vadd.f32 %v7824_v51, %v7823_v37  ;;  %v7047_v26 = vmul.f32 1.442695, %v14052_v36 }
 0x74c   : > { %v7826_v13 = vpop.f32.mrf.mxu0  ;;  %v7002_v61 = vpop.xlane.xlu0 %7001 }
 0x74d   : > { %v14041_v31 = vadd.f32 %v7825_v23, %v14011_v47  ;;  %v14055_v4 = vsub.f32 %v6929_v40, %v7002_v61  ;;  %8419 = vpow2.f32 %v7047_v26 }
 0x74e   : > { %v7827_v33 = vpop.f32.mrf.mxu0 }
 0x74f   : > { %v7828_v43 = vadd.f32 %v7827_v33, %v7826_v13  ;;  %7021 = vmax.xlane.f32.xlu1 %v14041_v31  ;;  %v7049_v56 = vmul.f32 1.442695, %v14055_v4 }
 0x750   : > { %v7004_v3 = vpop.xlane.xlu0 %7003 }
 0x751   : > { %v14045_v44 = vadd.f32 %v7828_v43, %v14011_v47  ;;  %v14058_v17 = vsub.f32 %v6934_v62, %v7004_v3  ;;  %8421 = vpow2.f32 %v7049_v56 }
 0x753   : > { %7023 = vmax.xlane.f32.xlu0 %v14045_v44  ;;  %v7051_v63 = vmul.f32 1.442695, %v14058_v17 }
 0x754   : > { %v7006_v42 = vpop.xlane.xlu1 %7005 }
 0x755   : > { %v14061_v46 = vsub.f32 %v6939_v2, %v7006_v42  ;;  %8423 = vpow2.f32 %v7051_v63 }
 0x756   : > { %v8418_v52 = vpop.eup %8417 }
 0x757   : > { %v7053_v58 = vmul.f32 1.442695, %v14061_v46 }
 0x758   : > { %v7008_v5 = vpop.xlane.xlu0 %7007 }
 0x759   : > { %v14064_v49 = vsub.f32 %v6944_v39, %v7008_v5  ;;  %8425 = vpow2.f32 %v7053_v58 }
 0x75a   : > { %v8420_v34 = vpop.eup %8419 }
 0x75b   : > { %v7055_v28 = vmul.f32 1.442695, %v14064_v49 }
 0x75c   : > { %v7010_v19 = vpop.xlane.xlu1 %7009 }
 0x75d   : > { %v14067_v40 = vsub.f32 %v6949_v25, %v7010_v19  ;;  %8427 = vpow2.f32 %v7055_v28 }
 0x75e   : > { %v8422_v27 = vpop.eup %8421 }
 0x75f   : > { %v7057_v2 = vmul.f32 1.442695, %v14067_v40 }
 0x760   : > { %v7012_v29 = vpop.xlane.xlu0 %7011 }
 0x761   : > { %v14070_v0 = vsub.f32 %v6954_v21, %v7012_v29  ;;  %8429 = vpow2.f32 %v7057_v2 }
 0x762   : > { %v8424_v30 = vpop.eup %8423 }
 0x763   : > { %v7059_v50 = vmul.f32 1.442695, %v14070_v0 }
 0x764   : > { %v7014_v48 = vpop.xlane.xlu1 %7013 }
 0x765   : > { %v14073_v53 = vsub.f32 %v6959_v60, %v7014_v48  ;;  %8431 = vpow2.f32 %v7059_v50 }
 0x766   : > { %v8426_v38 = vpop.eup %8425 }
 0x767   : > { %v7061_v57 = vmul.f32 1.442695, %v14073_v53 }
 0x768   : > { %v7016_v16 = vpop.xlane.xlu0 %7015 }
 0x769   : > { %v14079_v25 = vsub.f32 %v14029_v24, %v7016_v16  ;;  %8433 = vpow2.f32 %v7061_v57 }
 0x76a   : > { %v8428_v60 = vpop.eup %8427 }
 0x76b   : > { %v7063_v21 = vmul.f32 1.442695, %v14079_v25 }
 0x76d   : > { %8435 = vpow2.f32 %v7063_v21 }
 0x76e   : > { %v8430_v15 = vpop.eup %8429 }
 0x774   : > { %v7829_v41 = vpop.f32.mrf.mxu0 }
 0x776   : > { %v7830_v6 = vpop.f32.mrf.mxu0 }
 0x777   : > { %v7831_v62 = vadd.f32 %v7830_v6, %v7829_v41 }
 0x778   : > { %v7832_v1 = vpop.f32.mrf.mxu0 }
 0x779   : > { %v6989_v45 = vadd.f32 %v7831_v62, %v14011_v47 }
 0x77a   : > { %v7833_v39 = vpop.f32.mrf.mxu0 }
 0x77b   : > { %v7834_v7 = vadd.f32 %v7833_v39, %v7832_v1  ;;  %7025 = vmax.xlane.f32.xlu1 %v6989_v45 }
 0x77d   : > { %v6994_v14 = vadd.f32 %v7834_v7, %v14011_v47  ;;  %v8432_v47 = vpop.eup %8431 }
 0x77e   : > { %v8434_v9 = vpop.eup %8433 }
 0x77f   : > { %7077 = vadd.xlane.f32.xlu1 %v8418_v52  ;;  %7027 = vmax.xlane.f32.xlu0 %v6994_v14  ;;  %v8436_v24 = vpop.eup %8435 }
 0x783   : > { %7081 = vadd.xlane.f32.xlu1 %v8422_v27  ;;  %7079 = vadd.xlane.f32.xlu0 %v8420_v34 }
 0x787   : > { %7085 = vadd.xlane.f32.xlu1 %v8426_v38  ;;  %7083 = vadd.xlane.f32.xlu0 %v8424_v30 }
 0x78b   : > { %7089 = vadd.xlane.f32.xlu1 %v8430_v15  ;;  %7087 = vadd.xlane.f32.xlu0 %v8428_v60 }
 0x78f   : > { %7093 = vadd.xlane.f32.xlu1 %v8434_v9  ;;  %7091 = vadd.xlane.f32.xlu0 %v8432_v47 }
 0x793   : > { %7095 = vadd.xlane.f32.xlu0 %v8436_v24 }
 0x79f   : > { %v7018_v18 = vpop.xlane.xlu1 %7017 }
 0x7a0   : > { %v14084_v32 = vsub.f32 %v14033_v11, %v7018_v18 }
 0x7a2   : > { %v7065_v59 = vmul.f32 1.442695, %v14084_v32 }
 0x7a3   : > { %v7020_v55 = vpop.xlane.xlu0 %7019 }
 0x7a4   : > { %8437 = vpow2.f32 %v7065_v59  ;;  %v14088_v8 = vsub.f32 %v14037_v22, %v7020_v55 }
 0x7a6   : > { %v7067_v20 = vmul.f32 1.442695, %v14088_v8 }
 0x7a8   : > { %8439 = vpow2.f32 %v7067_v20 }
 0x7b1   : > { %v8438_v37 = vpop.eup %8437 }
 0x7b2   : > { %7097 = vadd.xlane.f32.xlu1 %v8438_v37 }
 0x7b5   : > { %v8440_v51 = vpop.eup %8439 }
 0x7b6   : > { %7099 = vadd.xlane.f32.xlu0 %v8440_v51 }
 0x7d8   : > { %v7022_v23 = vpop.xlane.xlu1 %7021 }
 0x7d9   : > { %v14092_v13 = vsub.f32 %v14041_v31, %v7022_v23 }
 0x7db   : > { %v7069_v11 = vmul.f32 1.442695, %v14092_v13 }
 0x7dc   : > { %v7024_v33 = vpop.xlane.xlu0 %7023 }
 0x7dd   : > { %8441 = vpow2.f32 %v7069_v11  ;;  %v14096_v43 = vsub.f32 %v14045_v44, %v7024_v33 }
 0x7df   : > { %v7071_v22 = vmul.f32 1.442695, %v14096_v43 }
 0x7e1   : > { %8443 = vpow2.f32 %v7071_v22 }
 0x7ea   : > { %v8442_v35 = vpop.eup %8441 }
 0x7eb   : > { %7101 = vadd.xlane.f32.xlu1 %v8442_v35 }
 0x7ee   : > { %v8444_v61 = vpop.eup %8443 }
 0x7ef   : > { %7103 = vadd.xlane.f32.xlu0 %v8444_v61 }
 0x804   : > { %v7026_v12 = vpop.xlane.xlu1 %7025 }
 0x805   : > { %v14099_v10 = vsub.f32 %v6989_v45, %v7026_v12 }
 0x807   : > { %v7073_v31 = vmul.f32 1.442695, %v14099_v10 }
 0x808   : > { %v7078_v3 = vpop.xlane.xlu1 %7077  ;;  %v7028_v42 = vpop.xlane.xlu0 %7027 }
 0x809   : > { %8445 = vpow2.f32 %v7073_v31  ;;  %v14102_v26 = vsub.f32 %v6994_v14, %v7028_v42 }
 0x80a   : > { %8447 = vlog2.f32 %v7078_v3 }
 0x80b   : > { %v7075_v44 = vmul.f32 1.442695, %v14102_v26 }
 0x80c   : > { %v7082_v56 = vpop.xlane.xlu1 %7081  ;;  %v7080_v5 = vpop.xlane.xlu0 %7079 }
 0x80d   : > { %8449 = vpow2.f32 %v7075_v44 }
 0x80e   : > { %8451 = vlog2.f32 %v7082_v56 }
 0x80f   : > { %8453 = vlog2.f32 %v7080_v5 }
 0x810   : > { %v7086_v19 = vpop.xlane.xlu1 %7085  ;;  %v7084_v63 = vpop.xlane.xlu0 %7083 }
 0x811   : > { %8455 = vlog2.f32 %v7086_v19 }
 0x812   : > { %8457 = vlog2.f32 %v7084_v63 }
 0x814   : > { %v7090_v41 = vpop.xlane.xlu1 %7089  ;;  %v7088_v58 = vpop.xlane.xlu0 %7087 }
 0x815   : > { %8459 = vlog2.f32 %v7090_v41 }
 0x816   : > { %v8446_v29 = vpop.eup %8445  ;;  %8461 = vlog2.f32 %v7088_v58 }
 0x817   : > { %v8448_v48 = vpop.eup %8447  ;;  %7105 = vadd.xlane.f32.xlu1 %v8446_v29 }
 0x818   : > { %v7110_v6 = vmul.f32 0.6931472, %v8448_v48  ;;  %v7094_v62 = vpop.xlane.xlu1 %7093  ;;  %v7092_v28 = vpop.xlane.xlu0 %7091 }
 0x819   : > { %8463 = vlog2.f32 %v7094_v62 }
 0x81a   : > { %v8450_v1 = vpop.eup %8449  ;;  %v7141_v2 = vsub.f32 %v14049_v54, %v7110_v6  ;;  %8465 = vlog2.f32 %v7092_v28 }
 0x81b   : > { %v8452_v45 = vpop.eup %8451  ;;  %7107 = vadd.xlane.f32.xlu0 %v8450_v1 }
 0x81c   : > { %v8454_v16 = vpop.eup %8453  ;;  %7157 = vst [vmem:[%s14107_s26] sm:$0xff] %v7141_v2  ;;  %v7114_v39 = vmul.f32 0.6931472, %v8452_v45  ;;  %v7096_v7 = vpop.xlane.xlu0 %7095 }
 0x81d   : > { %v7112_v50 = vmul.f32 0.6931472, %v8454_v16  ;;  %8467 = vlog2.f32 %v7096_v7 }
 0x81e   : > { %v8456_v57 = vpop.eup %8455  ;;  %v7143_v14 = vsub.f32 %v14055_v4, %v7114_v39 }
 0x81f   : > { %v8458_v54 = vpop.eup %8457  ;;  %v7142_v52 = vsub.f32 %v14052_v36, %v7112_v50  ;;  %v7118_v34 = vmul.f32 0.6931472, %v8456_v57 }
 0x820   : > { %7159 = vst [vmem:[%s14107_s26 + $0x10] sm:$0xff] %v7143_v14  ;;  %v7116_v21 = vmul.f32 0.6931472, %v8458_v54 }
 0x821   : > { %7158 = vst [vmem:[%s14107_s26 + $0x8] sm:$0xff] %v7142_v52  ;;  %v7145_v27 = vsub.f32 %v14061_v46, %v7118_v34 }
 0x822   : > { %v8460_v30 = vpop.eup %8459  ;;  %v7144_v38 = vsub.f32 %v14058_v17, %v7116_v21 }
 0x823   : > { %v8462_v60 = vpop.eup %8461  ;;  %7161 = vst [vmem:[%s14107_s26 + $0x20] sm:$0xff] %v7145_v27  ;;  %v7122_v15 = vmul.f32 0.6931472, %v8460_v30 }
 0x824   : > { %7160 = vst [vmem:[%s14107_s26 + $0x18] sm:$0xff] %v7144_v38  ;;  %v7120_v4 = vmul.f32 0.6931472, %v8462_v60 }
 0x825   : > { %v7147_v36 = vsub.f32 %v14067_v40, %v7122_v15 }
 0x826   : > { %v8464_v47 = vpop.eup %8463  ;;  %v7146_v9 = vsub.f32 %v14064_v49, %v7120_v4 }
 0x827   : > { %v8466_v24 = vpop.eup %8465  ;;  %7163 = vst [vmem:[%s14107_s26 + $0x30] sm:$0xff] %v7147_v36  ;;  %v7126_v18 = vmul.f32 0.6931472, %v8464_v47 }
 0x828   : > { %7162 = vst [vmem:[%s14107_s26 + $0x28] sm:$0xff] %v7146_v9  ;;  %v7124_v46 = vmul.f32 0.6931472, %v8466_v24 }
 0x829   : > { %v7149_v17 = vsub.f32 %v14073_v53, %v7126_v18 }
 0x82a   : > { %v8468_v59 = vpop.eup %8467  ;;  %v7148_v55 = vsub.f32 %v14070_v0, %v7124_v46 }
 0x82b   : > { %7165 = vst [vmem:[%s14107_s26 + $0x40] sm:$0xff] %v7149_v17  ;;  %v7128_v20 = vmul.f32 0.6931472, %v8468_v59 }
 0x82c   : > { %7164 = vst [vmem:[%s14107_s26 + $0x38] sm:$0xff] %v7148_v55 }
 0x82d   : > { %v7150_v40 = vsub.f32 %v14079_v25, %v7128_v20 }
 0x82f   : > { %7166 = vst [vmem:[%s14107_s26 + $0x48] sm:$0xff] %v7150_v40 }
 0x83b   : > { %v7098_v37 = vpop.xlane.xlu1 %7097 }
 0x83c   : > { %8469 = vlog2.f32 %v7098_v37 }
 0x83f   : > { %v7100_v49 = vpop.xlane.xlu0 %7099 }
 0x840   : > { %8471 = vlog2.f32 %v7100_v49 }
 0x849   : > { %v8470_v51 = vpop.eup %8469 }
 0x84a   : > { %v7130_v23 = vmul.f32 0.6931472, %v8470_v51 }
 0x84c   : > { %v7151_v53 = vsub.f32 %v14084_v32, %v7130_v23 }
 0x84d   : > { %v8472_v11 = vpop.eup %8471 }
 0x84e   : > { %7167 = vst [vmem:[%s14107_s26 + $0x50] sm:$0xff] %v7151_v53  ;;  %v7132_v0 = vmul.f32 0.6931472, %v8472_v11 }
 0x850   : > { %v7152_v33 = vsub.f32 %v14088_v8, %v7132_v0 }
 0x852   : > { %7168 = vst [vmem:[%s14107_s26 + $0x58] sm:$0xff] %v7152_v33 }
 0x874   : > { %v7102_v22 = vpop.xlane.xlu1 %7101 }
 0x875   : > { %8473 = vlog2.f32 %v7102_v22 }
 0x878   : > { %v7104_v25 = vpop.xlane.xlu0 %7103 }
 0x879   : > { %8475 = vlog2.f32 %v7104_v25 }
 0x882   : > { %v8474_v35 = vpop.eup %8473 }
 0x883   : > { %v7134_v61 = vmul.f32 0.6931472, %v8474_v35 }
 0x885   : > { %v7153_v12 = vsub.f32 %v14092_v13, %v7134_v61 }
 0x886   : > { %v8476_v31 = vpop.eup %8475 }
 0x887   : > { %7169 = vst [vmem:[%s14107_s26 + $0x60] sm:$0xff] %v7153_v12  ;;  %v7136_v32 = vmul.f32 0.6931472, %v8476_v31 }
 0x889   : > { %v7154_v3 = vsub.f32 %v14096_v43, %v7136_v32 }
 0x88b   : > { %7170 = vst [vmem:[%s14107_s26 + $0x68] sm:$0xff] %v7154_v3 }
 0x8a0   : > { %v7106_v8 = vpop.xlane.xlu1 %7105 }
 0x8a1   : > { %8477 = vlog2.f32 %v7106_v8 }
 0x8a4   : > { %v7108_v42 = vpop.xlane.xlu0 %7107 }
 0x8a5   : > { %8479 = vlog2.f32 %v7108_v42 }
 0x8ae   : > { %v8478_v44 = vpop.eup %8477 }
 0x8af   : > { %v7138_v56 = vmul.f32 0.6931472, %v8478_v44 }
 0x8b1   : > { %v7155_v5 = vsub.f32 %v14099_v10, %v7138_v56 }
 0x8b2   : > { %v8480_v13 = vpop.eup %8479 }
 0x8b3   : > { %7171 = vst [vmem:[%s14107_s26 + $0x70] sm:$0xff] %v7155_v5  ;;  %v7140_v19 = vmul.f32 0.6931472, %v8480_v13 }
 0x8b5   : > { %v7156_v43 = vsub.f32 %v14102_v26, %v7140_v19 }
 0x8b7   : > { %7172 = vst [vmem:[%s14107_s26 + $0x78] sm:$0xff] %v7156_v43 }
 0x8b8   : > { %8522 = shalt.err (!%p8519_p10)
}
 0x8b9   : > { %s8523_s10 = scalar_lea.hbm %s14143_s7, 2048  ;;  %s8527_s23 = scalar_lea.hbm %s14195_s5, 4096 }
 0x8ba   : > { %p8524_p0 = scmp.ne.s32.totalorder %s14143_s7, %s8523_s10  ;;  %p8528_p1 = scmp.lt.s32.totalorder %s14143_s7, %s14195_s5 }
 0x8bb   : > { %p8529_p3 = scmp.lt.s32.totalorder %s8527_s23, %s8523_s10 }
 0x8bc   : > { %p8525_p2 = pnand %p8524_p0, %p15111_p12 }
 0x8bd   : > { %p8530_p6 = por %p8529_p3, %p8528_p1 }
 0x8be   : > { %p8526_p9 = pneg %p8525_p2 }
 0x8c0   : > { %p8531_p11 = pnand %p8530_p6, %p8526_p9 }
 0x8c2   : > { %8534 = shalt.err (!%p8531_p11)
}
 0x8c3   : > { %s8593_s11 = smov 128   ;;  %s8594_s14 = smov 8  }
 0x8c4   : > { %7992 = dma.vmem_to_hbm [thread:$0]  (%p15111_p12), %s14145_s12, 2048, %s14143_s7, %s7174_s6, %s8593_s11, %s8593_s11, %s8594_s14  }
 0x8c5 PF: > { %s7202_s15 = sand.u32 1, %s8561_s18   ;;  %p15112_p13 = scmp.ne.s32.totalorder %s14518_s30, 0 }
 0x8c6   : > { %p15113_p4 = scmp.ge.s32.totalorder %s8573_s21, 2  ;;  %s7203_s8 = scalar_lea.sflag [#allocation4], %s7202_s15 }
 0x8c8   : > { %p7999_p5 = pnand %p15113_p4, %p15112_p13 }
 0x8ca   : > { %p8000_p7 = pneg %p7999_p5 }
 0x8cc   : > { %8556 = dma.done.wait (%p8000_p7), %s7203_s8, 2048  }
 0x8cd   : > { %8558 = vsyncadd (%p8000_p7), %s7203_s8, 4294965248  ;;  %p18_p8 = scmp.ge.s32.totalorder %s8650_s24, 4   ;;  %s15114_s18 = smov %s8565_s19 }
 0x8ce   : > { %s15115_s19 = smov %s8569_s20  ;;  %s15116_s20 = smov %s8662_s27 }
 0x8cf   : > { %s15117_s21 = smov %s8650_s24  ;;  %20 = sbr.rel (!%p18_p8) target bundleno = 5 (0x5), region = 85 }
 0x8d4   :  { %7208 = vsyncpa [#allocation3], 1 }
 0x8d5   :  { %7210 = vsyncpa [#allocation3 + $0x1], 1 }
 0x8d6   :  { %7211 = vsyncpa [#allocation4], 1 }
 0x8d7   :  { %7213 = vsyncpa [#allocation4 + $0x1], 1 }

</bundles_post_ra>
